<compile_context>
chip_gen: v5e
topology: v5e:2x2
jax: 0.10.0
libtpu: 0.0.40
codegen_flags: <defaults>
</compile_context>

<pallas_src>
import math
import numpy as np
import jax
import jax.numpy as jnp
from jax.experimental import pallas as pl
from jax.experimental.pallas import tpu as pltpu

# ---- module hyper-parameters (small but consistent with the module) ---------
W_DIM = 32          # w_dim
IMG_CHANNELS = 3    # img_channels
HIDDEN = 64         # hidden_channels (module default)
L = 10              # positional-encoding octaves (module default)
IN0 = 4 * L         # input channels to layer 0 (= 40)
NUM_WS = 5          # five SynthesisLayers -> num_ws == 5
TILE_P = 512        # points per tile (lane axis); 512-2048 amortizes per-step overhead

_LRELU_GAIN = np.float32(math.sqrt(2.0))           # bias_act def_gain for 'lrelu'
_AFFINE_GAIN = np.float32(1.0 / math.sqrt(W_DIM))  # FullyConnectedLayer weight_gain
_PI = np.float32(np.pi)


def _pe_constants():
    """Per-channel PE constants matching torch.cat([sin(2^i*pi*p), cos(2^i*pi*p)], -1).

    Channel c in [0, 4L): octave i = c // 4, within-octave order [sin x, sin y, cos x, cos y].
    Returned columns (each [IN0, 1]):  value = sin(freq * (selx*x + (1-selx)*y) + phase).
    """
    freq = np.empty((IN0, 1), np.float32)
    phase = np.empty((IN0, 1), np.float32)
    selx = np.empty((IN0, 1), np.float32)
    for c in range(IN0):
        i = c // 4
        freq[c, 0] = np.float32(2.0 ** i) * _PI                 # exact, matches reference
        phase[c, 0] = np.float32(0.0) if (c % 4) < 2 else np.float32(np.pi / 2.0)
        selx[c, 0] = np.float32(1.0) if (c % 2) == 0 else np.float32(0.0)
    return jnp.asarray(freq), jnp.asarray(phase), jnp.asarray(selx)


def _bg_kernel(freq_ref, phase_ref, selx_ref, p_ref, ws_ref, *refs):
    """refs = 5 * (affine_wT, affine_b_row, conv_w, conv_b_col), out_ref, 5 * w_fin scratch."""
    n_param = 4 * NUM_WS
    param_refs = refs[:n_param]
    o_ref = refs[n_param]
    wfin_refs = refs[n_param + 1:]

    # ---- once per sample (t == 0): style affine + modulation/demodulation ----------
    # Depends only on the sample index -> hoisted out of the per-point-tile loop into
    # persistent VMEM scratch (the t grid axis is "arbitrary" so scratch persists).
    @pl.when(pl.program_id(1) == 0)
    def _():
        ws_mat = ws_ref[0]                                          # [num_ws, w_dim]
        for idx in range(NUM_WS):
            a_wT, a_b, c_w, _ = param_refs[4 * idx: 4 * idx + 4]
            ws_row = ws_mat[idx:idx + 1, :]                         # [1, w_dim]
            # styles = FullyConnectedLayer(w): w @ (affine_w * gain).T + bias(init=1)
            styles = (jnp.dot(ws_row, a_wT[...],
                              preferred_element_type=jnp.float32) * _AFFINE_GAIN
                      + a_b[...])                                   # [1, in_ch]
            # modulated_conv2d (kernel_size=1, fused_modconv, demodulate=True)
            w_mod = c_w[...] * styles                               # [out_ch, in_ch]
            dcoef = jax.lax.rsqrt(jnp.sum(w_mod * w_mod, axis=1, keepdims=True)
                                  + np.float32(1e-8))               # [out_ch, 1]
            wfin_refs[idx][...] = w_mod * dcoef                     # [out_ch, in_ch]

    # ---- positional encoding, channels-first: x = [4L, TP] (points on lanes) --------
    p_tile = p_ref[0]                                               # [2, TP]
    px = p_tile[0:1, :]                                             # [1, TP]
    py = p_tile[1:2, :]                                             # [1, TP]
    selx = selx_ref[...]                                            # [4L, 1]
    p_sel = selx * px + (np.float32(1.0) - selx) * py               # [4L, TP]
    # single-sin PE: sin(a + pi/2) == cos(a)  (half the EUP work of sin+cos+select)
    x = jnp.sin(p_sel * freq_ref[...] + phase_ref[...])             # [4L, TP]

    # ---- five modulated 1x1 convs: y = w_fin[out, in] @ x[in, TP] + b ---------------
    # (On v6e/v7x, casting the matmul operands to bf16 is a further MXU win; kept f32
    #  here so the numerical check against the f32 reference stays tight and v5e's
    #  f32-only VPU/EUP path is untouched.)
    for idx in range(NUM_WS):
        c_b = param_refs[4 * idx + 3]                               # [out_ch, 1]
        y = jnp.dot(wfin_refs[idx][...], x,
                    preferred_element_type=jnp.float32) + c_b[...]
        if idx < NUM_WS - 1:
            y = jnp.where(y >= 0, y, np.float32(0.2) * y) * _LRELU_GAIN   # lrelu, gain sqrt(2)
        else:
            y = jax.nn.sigmoid(y)                                          # sigmoid, gain 1
        x = y

    o_ref[0] = x                                                    # [img_channels, TP]


def init_params(key):
    """Deterministic synthetic parameters with the PyTorch-module shapes."""
    params = []
    for idx in range(NUM_WS):
        in_ch = IN0 if idx == 0 else HIDDEN
        out_ch = HIDDEN if idx < NUM_WS - 1 else IMG_CHANNELS
        key, k1, k2 = jax.random.split(key, 3)
        a_w = jax.random.normal(k1, (in_ch, W_DIM), jnp.float32)    # affine.weight ~ randn
        a_b = jnp.ones((in_ch,), jnp.float32)                       # affine.bias (bias_init=1)
        c_w = jax.random.normal(k2, (out_ch, in_ch), jnp.float32)   # conv weight [O,I,1,1] squeezed
        c_b = jnp.zeros((out_ch,), jnp.float32)                     # conv bias
        params.append((a_w, a_b, c_w, c_b))
    return params


def bg_synthesis_forward(ws, p, params, tile_p=TILE_P):
    """ws: [N, num_ws, w_dim]; p: [N, P, 2] -> [N, img_channels, P, 1] (PyTorch NCHW)."""
    N, P, _ = p.shape
    tp = min(tile_p, P)
    assert tp % 128 == 0 and P % tp == 0, "P must be a multiple of 128 and of the point tile"
    ws = ws.astype(jnp.float32)
    # points-on-lanes layout for lane-dense DMA / stores
    p_t = jnp.transpose(p.astype(jnp.float32), (0, 2, 1))           # [N, 2, P]
    freq, phase, selx = _pe_constants()

    in_specs = [
        pl.BlockSpec((IN0, 1), lambda n, t: (0, 0)),                # PE freq
        pl.BlockSpec((IN0, 1), lambda n, t: (0, 0)),                # PE phase
        pl.BlockSpec((IN0, 1), lambda n, t: (0, 0)),                # PE x/y select
        pl.BlockSpec((1, 2, tp), lambda n, t: (n, 0, t)),           # points (lane-dense)
        pl.BlockSpec((1, NUM_WS, W_DIM), lambda n, t: (n, 0, 0)),   # ws
    ]
    args = [freq, phase, selx, p_t, ws]
    scratch_shapes = []
    for (a_w, a_b, c_w, c_b) in params:
        in_ch, out_ch = a_w.shape[0], c_w.shape[0]
        layer_args = (jnp.transpose(a_w),                           # [w_dim, in_ch]
                      a_b.reshape(1, in_ch),                        # [1, in_ch]
                      c_w,                                          # [out_ch, in_ch]
                      c_b.reshape(out_ch, 1))                       # [out_ch, 1]
        for arr in layer_args:
            in_specs.append(pl.BlockSpec(arr.shape, lambda n, t: (0, 0)))
            args.append(arr)
        scratch_shapes.append(pltpu.VMEM((out_ch, in_ch), jnp.float32))   # per-sample w_fin

    out = pl.pallas_call(
        _bg_kernel,
        out_shape=jax.ShapeDtypeStruct((N, IMG_CHANNELS, P), jnp.float32),
        grid_spec=pltpu.PrefetchScalarGridSpec(
            num_scalar_prefetch=0,
            grid=(N, P // tp),
            in_specs=in_specs,
            out_specs=pl.BlockSpec((1, IMG_CHANNELS, tp), lambda n, t: (n, 0, t)),
            scratch_shapes=scratch_shapes,
        ),
        compiler_params=pltpu.CompilerParams(
            # n "parallel" (megacore shard); t must be sequential so the per-sample
            # w_fin scratch computed at t == 0 is reused by all later point tiles.
            dimension_semantics=("parallel", "arbitrary"),
            vmem_limit_bytes=32 * 1024 * 1024,   # headroom if tile_p is raised further
        ),
    )(*args)
    return out[..., None]                                           # [N, C, P, 1]


def reference_forward(ws, p, params):
    """Pure-JAX reference replicating the PyTorch semantics; returns [N, P, img_channels]."""
    ws = ws.astype(jnp.float32)
    p = p.astype(jnp.float32)
    feats = []
    for i in range(L):
        f = np.float32(2.0 ** i) * _PI
        feats.append(jnp.sin(f * p))
        feats.append(jnp.cos(f * p))
    x = jnp.concatenate(feats, axis=-1)                             # [N, P, 4L]
    for idx, (a_w, a_b, c_w, c_b) in enumerate(params):
        w_vec = ws[:, idx]                                          # [N, w_dim]
        styles = w_vec @ a_w.T * _AFFINE_GAIN + a_b[None, :]        # [N, in]
        w_mod = c_w[None, :, :] * styles[:, None, :]                # [N, out, in]
        dcoef = jax.lax.rsqrt(jnp.sum(w_mod * w_mod, axis=2, keepdims=True)
                              + np.float32(1e-8))                   # [N, out, 1]
        w_fin = w_mod * dcoef
        y = jnp.einsum('npi,noi->npo', x, w_fin) + c_b[None, None, :]
        if idx < NUM_WS - 1:
            y = jnp.where(y >= 0, y, np.float32(0.2) * y) * _LRELU_GAIN
        else:
            y = jax.nn.sigmoid(y)
        x = y
    return x


if __name__ == "__main__":
    key = jax.random.PRNGKey(0)
    k_p, k_ws, k_params = jax.random.split(key, 3)

    N, P = 2, 1024                                  # 2 samples, 1024 background points
    p = jax.random.uniform(k_p, (N, P, 2), jnp.float32, minval=-1.0, maxval=1.0)
    ws = jax.random.normal(k_ws, (N, NUM_WS, W_DIM), jnp.float32)
    params = init_params(k_params)

    # update_emas argument of the PyTorch forward is a no-op; nothing to translate.
    out = bg_synthesis_forward(ws, p, params)       # [N, 3, P, 1]
    out = jax.block_until_ready(out)
    assert out.shape == (N, IMG_CHANNELS, P, 1)

    ref = reference_forward(ws, p, params)          # [N, P, 3]
    out_npc = jnp.transpose(out[..., 0], (0, 2, 1)) # [N, P, 3]
    np.testing.assert_allclose(np.asarray(out_npc), np.asarray(ref), atol=3e-3, rtol=3e-3)

    print("KERNEL_OK")
</pallas_src>

<mosaic_0001>
module attributes {stable_mosaic.version = 11 : i64} {
  func.func @_bg_kernel(%arg0: i32, %arg1: i32, %arg2: memref<40x1xf32, #tpu.memory_space<vmem>>, %arg3: memref<40x1xf32, #tpu.memory_space<vmem>>, %arg4: memref<40x1xf32, #tpu.memory_space<vmem>>, %arg5: memref<1x2x512xf32, #tpu.memory_space<vmem>>, %arg6: memref<1x5x32xf32, #tpu.memory_space<vmem>>, %arg7: memref<32x40xf32, #tpu.memory_space<vmem>>, %arg8: memref<1x40xf32, #tpu.memory_space<vmem>>, %arg9: memref<64x40xf32, #tpu.memory_space<vmem>>, %arg10: memref<64x1xf32, #tpu.memory_space<vmem>>, %arg11: memref<32x64xf32, #tpu.memory_space<vmem>>, %arg12: memref<1x64xf32, #tpu.memory_space<vmem>>, %arg13: memref<64x64xf32, #tpu.memory_space<vmem>>, %arg14: memref<64x1xf32, #tpu.memory_space<vmem>>, %arg15: memref<32x64xf32, #tpu.memory_space<vmem>>, %arg16: memref<1x64xf32, #tpu.memory_space<vmem>>, %arg17: memref<64x64xf32, #tpu.memory_space<vmem>>, %arg18: memref<64x1xf32, #tpu.memory_space<vmem>>, %arg19: memref<32x64xf32, #tpu.memory_space<vmem>>, %arg20: memref<1x64xf32, #tpu.memory_space<vmem>>, %arg21: memref<64x64xf32, #tpu.memory_space<vmem>>, %arg22: memref<64x1xf32, #tpu.memory_space<vmem>>, %arg23: memref<32x64xf32, #tpu.memory_space<vmem>>, %arg24: memref<1x64xf32, #tpu.memory_space<vmem>>, %arg25: memref<3x64xf32, #tpu.memory_space<vmem>>, %arg26: memref<3x1xf32, #tpu.memory_space<vmem>>, %arg27: memref<1x3x512xf32, #tpu.memory_space<vmem>>, %arg28: memref<64x40xf32, #tpu.memory_space<vmem>>, %arg29: memref<64x64xf32, #tpu.memory_space<vmem>>, %arg30: memref<64x64xf32, #tpu.memory_space<vmem>>, %arg31: memref<64x64xf32, #tpu.memory_space<vmem>>, %arg32: memref<3x64xf32, #tpu.memory_space<vmem>>) attributes {dimension_semantics = [#tpu.dimension_semantics<parallel>, #tpu.dimension_semantics<arbitrary>], iteration_bounds = array<i64: 2, 2>, scalar_prefetch = 0 : i64, scratch_operands = 5 : i64, tpu.core_type = #tpu.core_type<tc>, window_params = [{pipeline_mode = #tpu.pipeline_mode<synchronous>, transform_indices = @transform_0, window_bounds = array<i64: 40, 1>}, {pipeline_mode = #tpu.pipeline_mode<synchronous>, transform_indices = @transform_1, window_bounds = array<i64: 40, 1>}, {pipeline_mode = #tpu.pipeline_mode<synchronous>, transform_indices = @transform_2, window_bounds = array<i64: 40, 1>}, {transform_indices = @transform_3, window_bounds = array<i64: 1, 2, 512>}, {transform_indices = @transform_4, window_bounds = array<i64: 1, 5, 32>}, {pipeline_mode = #tpu.pipeline_mode<synchronous>, transform_indices = @transform_5, window_bounds = array<i64: 32, 40>}, {pipeline_mode = #tpu.pipeline_mode<synchronous>, transform_indices = @transform_6, window_bounds = array<i64: 1, 40>}, {pipeline_mode = #tpu.pipeline_mode<synchronous>, transform_indices = @transform_7, window_bounds = array<i64: 64, 40>}, {pipeline_mode = #tpu.pipeline_mode<synchronous>, transform_indices = @transform_8, window_bounds = array<i64: 64, 1>}, {pipeline_mode = #tpu.pipeline_mode<synchronous>, transform_indices = @transform_9, window_bounds = array<i64: 32, 64>}, {pipeline_mode = #tpu.pipeline_mode<synchronous>, transform_indices = @transform_10, window_bounds = array<i64: 1, 64>}, {pipeline_mode = #tpu.pipeline_mode<synchronous>, transform_indices = @transform_11, window_bounds = array<i64: 64, 64>}, {pipeline_mode = #tpu.pipeline_mode<synchronous>, transform_indices = @transform_12, window_bounds = array<i64: 64, 1>}, {pipeline_mode = #tpu.pipeline_mode<synchronous>, transform_indices = @transform_13, window_bounds = array<i64: 32, 64>}, {pipeline_mode = #tpu.pipeline_mode<synchronous>, transform_indices = @transform_14, window_bounds = array<i64: 1, 64>}, {pipeline_mode = #tpu.pipeline_mode<synchronous>, transform_indices = @transform_15, window_bounds = array<i64: 64, 64>}, {pipeline_mode = #tpu.pipeline_mode<synchronous>, transform_indices = @transform_16, window_bounds = array<i64: 64, 1>}, {pipeline_mode = #tpu.pipeline_mode<synchronous>, transform_indices = @transform_17, window_bounds = array<i64: 32, 64>}, {pipeline_mode = #tpu.pipeline_mode<synchronous>, transform_indices = @transform_18, window_bounds = array<i64: 1, 64>}, {pipeline_mode = #tpu.pipeline_mode<synchronous>, transform_indices = @transform_19, window_bounds = array<i64: 64, 64>}, {pipeline_mode = #tpu.pipeline_mode<synchronous>, transform_indices = @transform_20, window_bounds = array<i64: 64, 1>}, {pipeline_mode = #tpu.pipeline_mode<synchronous>, transform_indices = @transform_21, window_bounds = array<i64: 32, 64>}, {pipeline_mode = #tpu.pipeline_mode<synchronous>, transform_indices = @transform_22, window_bounds = array<i64: 1, 64>}, {pipeline_mode = #tpu.pipeline_mode<synchronous>, transform_indices = @transform_23, window_bounds = array<i64: 3, 64>}, {pipeline_mode = #tpu.pipeline_mode<synchronous>, transform_indices = @transform_24, window_bounds = array<i64: 3, 1>}, {transform_indices = @transform_25, window_bounds = array<i64: 1, 3, 512>}]} {
    %c0_i32 = arith.constant 0 : i32
    %0 = arith.cmpi eq, %arg1, %c0_i32 : i32
    %1 = arith.extui %0 : i1 to i32
    %c0_i32_0 = arith.constant 0 : i32
    %2 = arith.cmpi ne, %1, %c0_i32_0 : i32
    scf.if %2 {
      %c0_50 = arith.constant 0 : index
      %c0_51 = arith.constant 0 : index
      %c0_52 = arith.constant 0 : index
      %85 = vector.load %arg6[%c0_50, %c0_51, %c0_52] : memref<1x5x32xf32, #tpu.memory_space<vmem>>, vector<1x5x32xf32>
      %86 = vector.shape_cast %85 : vector<1x5x32xf32> to vector<5x32xf32>
      %87 = vector.extract_strided_slice %86 {offsets = [0, 0], sizes = [1, 32], strides = [1, 1]} : vector<5x32xf32> to vector<1x32xf32>
      %c0_53 = arith.constant 0 : index
      %c0_54 = arith.constant 0 : index
      %88 = vector.load %arg7[%c0_53, %c0_54] : memref<32x40xf32, #tpu.memory_space<vmem>>, vector<32x40xf32>
      %cst_55 = arith.constant dense<0.000000e+00> : vector<1x40xf32>
      %89 = tpu.matmul %87, %88, %cst_55 {dimension_numbers = #tpu.dot_dimension_numbers<[1], [0], [0], [1], [0, 0, 1, 1], [], []>} : vector<1x32xf32>, vector<32x40xf32>, vector<1x40xf32> -> vector<1x40xf32>
      %cst_56 = arith.constant 0.176776692 : f32
      %90 = vector.broadcast %cst_56 : f32 to vector<1x40xf32>
      %91 = arith.mulf %89, %90 : vector<1x40xf32>
      %c0_57 = arith.constant 0 : index
      %c0_58 = arith.constant 0 : index
      %92 = vector.load %arg8[%c0_57, %c0_58] : memref<1x40xf32, #tpu.memory_space<vmem>>, vector<1x40xf32>
      %93 = arith.addf %91, %92 : vector<1x40xf32>
      %c0_59 = arith.constant 0 : index
      %c0_60 = arith.constant 0 : index
      %94 = vector.load %arg9[%c0_59, %c0_60] : memref<64x40xf32, #tpu.memory_space<vmem>>, vector<64x40xf32>
      %95 = vector.broadcast %93 : vector<1x40xf32> to vector<64x40xf32>
      %96 = arith.mulf %94, %95 : vector<64x40xf32>
      %97 = arith.mulf %96, %96 : vector<64x40xf32>
      %cst_61 = arith.constant dense<0.000000e+00> : vector<64xf32>
      %98 = vector.multi_reduction <add>, %97, %cst_61 [1] : vector<64x40xf32> to vector<64xf32>
      %99 = vector.shape_cast %98 : vector<64xf32> to vector<64x1xf32>
      %cst_62 = arith.constant 9.99999993E-9 : f32
      %100 = vector.broadcast %cst_62 : f32 to vector<64x1xf32>
      %101 = arith.addf %99, %100 : vector<64x1xf32>
      %102 = math.rsqrt %101 : vector<64x1xf32>
      %103 = vector.broadcast %102 : vector<64x1xf32> to vector<64x40xf32>
      %104 = arith.mulf %96, %103 : vector<64x40xf32>
      %c0_63 = arith.constant 0 : index
      %c0_64 = arith.constant 0 : index
      %105 = vector.load %arg28[%c0_63, %c0_64] : memref<64x40xf32, #tpu.memory_space<vmem>>, vector<64x40xf32>
      tpu.vector_store %arg28[%c0_63, %c0_64], %104 {strides = array<i32>} : memref<64x40xf32, #tpu.memory_space<vmem>>, vector<64x40xf32>,
      %106 = vector.extract_strided_slice %86 {offsets = [1, 0], sizes = [1, 32], strides = [1, 1]} : vector<5x32xf32> to vector<1x32xf32>
      %c0_65 = arith.constant 0 : index
      %c0_66 = arith.constant 0 : index
      %107 = vector.load %arg11[%c0_65, %c0_66] : memref<32x64xf32, #tpu.memory_space<vmem>>, vector<32x64xf32>
      %cst_67 = arith.constant dense<0.000000e+00> : vector<1x64xf32>
      %108 = tpu.matmul %106, %107, %cst_67 {dimension_numbers = #tpu.dot_dimension_numbers<[1], [0], [0], [1], [0, 0, 1, 1], [], []>} : vector<1x32xf32>, vector<32x64xf32>, vector<1x64xf32> -> vector<1x64xf32>
      %cst_68 = arith.constant 0.176776692 : f32
      %109 = vector.broadcast %cst_68 : f32 to vector<1x64xf32>
      %110 = arith.mulf %108, %109 : vector<1x64xf32>
      %c0_69 = arith.constant 0 : index
      %c0_70 = arith.constant 0 : index
      %111 = vector.load %arg12[%c0_69, %c0_70] : memref<1x64xf32, #tpu.memory_space<vmem>>, vector<1x64xf32>
      %112 = arith.addf %110, %111 : vector<1x64xf32>
      %c0_71 = arith.constant 0 : index
      %c0_72 = arith.constant 0 : index
      %113 = vector.load %arg13[%c0_71, %c0_72] : memref<64x64xf32, #tpu.memory_space<vmem>>, vector<64x64xf32>
      %114 = vector.broadcast %112 : vector<1x64xf32> to vector<64x64xf32>
      %115 = arith.mulf %113, %114 : vector<64x64xf32>
      %116 = arith.mulf %115, %115 : vector<64x64xf32>
      %cst_73 = arith.constant dense<0.000000e+00> : vector<64xf32>
      %117 = vector.multi_reduction <add>, %116, %cst_73 [1] : vector<64x64xf32> to vector<64xf32>
      %118 = vector.shape_cast %117 : vector<64xf32> to vector<64x1xf32>
      %cst_74 = arith.constant 9.99999993E-9 : f32
      %119 = vector.broadcast %cst_74 : f32 to vector<64x1xf32>
      %120 = arith.addf %118, %119 : vector<64x1xf32>
      %121 = math.rsqrt %120 : vector<64x1xf32>
      %122 = vector.broadcast %121 : vector<64x1xf32> to vector<64x64xf32>
      %123 = arith.mulf %115, %122 : vector<64x64xf32>
      %c0_75 = arith.constant 0 : index
      %c0_76 = arith.constant 0 : index
      %124 = vector.load %arg29[%c0_75, %c0_76] : memref<64x64xf32, #tpu.memory_space<vmem>>, vector<64x64xf32>
      tpu.vector_store %arg29[%c0_75, %c0_76], %123 {strides = array<i32>} : memref<64x64xf32, #tpu.memory_space<vmem>>, vector<64x64xf32>,
      %125 = vector.extract_strided_slice %86 {offsets = [2, 0], sizes = [1, 32], strides = [1, 1]} : vector<5x32xf32> to vector<1x32xf32>
      %c0_77 = arith.constant 0 : index
      %c0_78 = arith.constant 0 : index
      %126 = vector.load %arg15[%c0_77, %c0_78] : memref<32x64xf32, #tpu.memory_space<vmem>>, vector<32x64xf32>
      %cst_79 = arith.constant dense<0.000000e+00> : vector<1x64xf32>
      %127 = tpu.matmul %125, %126, %cst_79 {dimension_numbers = #tpu.dot_dimension_numbers<[1], [0], [0], [1], [0, 0, 1, 1], [], []>} : vector<1x32xf32>, vector<32x64xf32>, vector<1x64xf32> -> vector<1x64xf32>
      %cst_80 = arith.constant 0.176776692 : f32
      %128 = vector.broadcast %cst_80 : f32 to vector<1x64xf32>
      %129 = arith.mulf %127, %128 : vector<1x64xf32>
      %c0_81 = arith.constant 0 : index
      %c0_82 = arith.constant 0 : index
      %130 = vector.load %arg16[%c0_81, %c0_82] : memref<1x64xf32, #tpu.memory_space<vmem>>, vector<1x64xf32>
      %131 = arith.addf %129, %130 : vector<1x64xf32>
      %c0_83 = arith.constant 0 : index
      %c0_84 = arith.constant 0 : index
      %132 = vector.load %arg17[%c0_83, %c0_84] : memref<64x64xf32, #tpu.memory_space<vmem>>, vector<64x64xf32>
      %133 = vector.broadcast %131 : vector<1x64xf32> to vector<64x64xf32>
      %134 = arith.mulf %132, %133 : vector<64x64xf32>
      %135 = arith.mulf %134, %134 : vector<64x64xf32>
      %cst_85 = arith.constant dense<0.000000e+00> : vector<64xf32>
      %136 = vector.multi_reduction <add>, %135, %cst_85 [1] : vector<64x64xf32> to vector<64xf32>
      %137 = vector.shape_cast %136 : vector<64xf32> to vector<64x1xf32>
      %cst_86 = arith.constant 9.99999993E-9 : f32
      %138 = vector.broadcast %cst_86 : f32 to vector<64x1xf32>
      %139 = arith.addf %137, %138 : vector<64x1xf32>
      %140 = math.rsqrt %139 : vector<64x1xf32>
      %141 = vector.broadcast %140 : vector<64x1xf32> to vector<64x64xf32>
      %142 = arith.mulf %134, %141 : vector<64x64xf32>
      %c0_87 = arith.constant 0 : index
      %c0_88 = arith.constant 0 : index
      %143 = vector.load %arg30[%c0_87, %c0_88] : memref<64x64xf32, #tpu.memory_space<vmem>>, vector<64x64xf32>
      tpu.vector_store %arg30[%c0_87, %c0_88], %142 {strides = array<i32>} : memref<64x64xf32, #tpu.memory_space<vmem>>, vector<64x64xf32>,
      %144 = vector.extract_strided_slice %86 {offsets = [3, 0], sizes = [1, 32], strides = [1, 1]} : vector<5x32xf32> to vector<1x32xf32>
      %c0_89 = arith.constant 0 : index
      %c0_90 = arith.constant 0 : index
      %145 = vector.load %arg19[%c0_89, %c0_90] : memref<32x64xf32, #tpu.memory_space<vmem>>, vector<32x64xf32>
      %cst_91 = arith.constant dense<0.000000e+00> : vector<1x64xf32>
      %146 = tpu.matmul %144, %145, %cst_91 {dimension_numbers = #tpu.dot_dimension_numbers<[1], [0], [0], [1], [0, 0, 1, 1], [], []>} : vector<1x32xf32>, vector<32x64xf32>, vector<1x64xf32> -> vector<1x64xf32>
      %cst_92 = arith.constant 0.176776692 : f32
      %147 = vector.broadcast %cst_92 : f32 to vector<1x64xf32>
      %148 = arith.mulf %146, %147 : vector<1x64xf32>
      %c0_93 = arith.constant 0 : index
      %c0_94 = arith.constant 0 : index
      %149 = vector.load %arg20[%c0_93, %c0_94] : memref<1x64xf32, #tpu.memory_space<vmem>>, vector<1x64xf32>
      %150 = arith.addf %148, %149 : vector<1x64xf32>
      %c0_95 = arith.constant 0 : index
      %c0_96 = arith.constant 0 : index
      %151 = vector.load %arg21[%c0_95, %c0_96] : memref<64x64xf32, #tpu.memory_space<vmem>>, vector<64x64xf32>
      %152 = vector.broadcast %150 : vector<1x64xf32> to vector<64x64xf32>
      %153 = arith.mulf %151, %152 : vector<64x64xf32>
      %154 = arith.mulf %153, %153 : vector<64x64xf32>
      %cst_97 = arith.constant dense<0.000000e+00> : vector<64xf32>
      %155 = vector.multi_reduction <add>, %154, %cst_97 [1] : vector<64x64xf32> to vector<64xf32>
      %156 = vector.shape_cast %155 : vector<64xf32> to vector<64x1xf32>
      %cst_98 = arith.constant 9.99999993E-9 : f32
      %157 = vector.broadcast %cst_98 : f32 to vector<64x1xf32>
      %158 = arith.addf %156, %157 : vector<64x1xf32>
      %159 = math.rsqrt %158 : vector<64x1xf32>
      %160 = vector.broadcast %159 : vector<64x1xf32> to vector<64x64xf32>
      %161 = arith.mulf %153, %160 : vector<64x64xf32>
      %c0_99 = arith.constant 0 : index
      %c0_100 = arith.constant 0 : index
      %162 = vector.load %arg31[%c0_99, %c0_100] : memref<64x64xf32, #tpu.memory_space<vmem>>, vector<64x64xf32>
      tpu.vector_store %arg31[%c0_99, %c0_100], %161 {strides = array<i32>} : memref<64x64xf32, #tpu.memory_space<vmem>>, vector<64x64xf32>,
      %163 = vector.extract_strided_slice %86 {offsets = [4, 0], sizes = [1, 32], strides = [1, 1]} : vector<5x32xf32> to vector<1x32xf32>
      %c0_101 = arith.constant 0 : index
      %c0_102 = arith.constant 0 : index
      %164 = vector.load %arg23[%c0_101, %c0_102] : memref<32x64xf32, #tpu.memory_space<vmem>>, vector<32x64xf32>
      %cst_103 = arith.constant dense<0.000000e+00> : vector<1x64xf32>
      %165 = tpu.matmul %163, %164, %cst_103 {dimension_numbers = #tpu.dot_dimension_numbers<[1], [0], [0], [1], [0, 0, 1, 1], [], []>} : vector<1x32xf32>, vector<32x64xf32>, vector<1x64xf32> -> vector<1x64xf32>
      %cst_104 = arith.constant 0.176776692 : f32
      %166 = vector.broadcast %cst_104 : f32 to vector<1x64xf32>
      %167 = arith.mulf %165, %166 : vector<1x64xf32>
      %c0_105 = arith.constant 0 : index
      %c0_106 = arith.constant 0 : index
      %168 = vector.load %arg24[%c0_105, %c0_106] : memref<1x64xf32, #tpu.memory_space<vmem>>, vector<1x64xf32>
      %169 = arith.addf %167, %168 : vector<1x64xf32>
      %c0_107 = arith.constant 0 : index
      %c0_108 = arith.constant 0 : index
      %170 = vector.load %arg25[%c0_107, %c0_108] : memref<3x64xf32, #tpu.memory_space<vmem>>, vector<3x64xf32>
      %171 = vector.broadcast %169 : vector<1x64xf32> to vector<3x64xf32>
      %172 = arith.mulf %170, %171 : vector<3x64xf32>
      %173 = arith.mulf %172, %172 : vector<3x64xf32>
      %cst_109 = arith.constant dense<0.000000e+00> : vector<3xf32>
      %174 = vector.multi_reduction <add>, %173, %cst_109 [1] : vector<3x64xf32> to vector<3xf32>
      %175 = vector.shape_cast %174 : vector<3xf32> to vector<3x1xf32>
      %cst_110 = arith.constant 9.99999993E-9 : f32
      %176 = vector.broadcast %cst_110 : f32 to vector<3x1xf32>
      %177 = arith.addf %175, %176 : vector<3x1xf32>
      %178 = math.rsqrt %177 : vector<3x1xf32>
      %179 = vector.broadcast %178 : vector<3x1xf32> to vector<3x64xf32>
      %180 = arith.mulf %172, %179 : vector<3x64xf32>
      %c0_111 = arith.constant 0 : index
      %c0_112 = arith.constant 0 : index
      %181 = vector.load %arg32[%c0_111, %c0_112] : memref<3x64xf32, #tpu.memory_space<vmem>>, vector<3x64xf32>
      tpu.vector_store %arg32[%c0_111, %c0_112], %180 {strides = array<i32>} : memref<3x64xf32, #tpu.memory_space<vmem>>, vector<3x64xf32>,
    } else {
    }
    %c0 = arith.constant 0 : index
    %c0_1 = arith.constant 0 : index
    %c0_2 = arith.constant 0 : index
    %3 = vector.load %arg5[%c0, %c0_1, %c0_2] : memref<1x2x512xf32, #tpu.memory_space<vmem>>, vector<1x2x512xf32>
    %4 = vector.shape_cast %3 : vector<1x2x512xf32> to vector<2x512xf32>
    %5 = vector.extract_strided_slice %4 {offsets = [0, 0], sizes = [1, 512], strides = [1, 1]} : vector<2x512xf32> to vector<1x512xf32>
    %6 = vector.extract_strided_slice %4 {offsets = [1, 0], sizes = [1, 512], strides = [1, 1]} : vector<2x512xf32> to vector<1x512xf32>
    %c0_3 = arith.constant 0 : index
    %c0_4 = arith.constant 0 : index
    %7 = vector.load %arg4[%c0_3, %c0_4] : memref<40x1xf32, #tpu.memory_space<vmem>>, vector<40x1xf32>
    %8 = vector.broadcast %7 : vector<40x1xf32> to vector<40x512xf32>
    %9 = vector.broadcast %5 : vector<1x512xf32> to vector<40x512xf32>
    %10 = arith.mulf %8, %9 : vector<40x512xf32>
    %cst = arith.constant 1.000000e+00 : f32
    %11 = vector.broadcast %cst : f32 to vector<40x1xf32>
    %12 = arith.subf %11, %7 : vector<40x1xf32>
    %13 = vector.broadcast %12 : vector<40x1xf32> to vector<40x512xf32>
    %14 = vector.broadcast %6 : vector<1x512xf32> to vector<40x512xf32>
    %15 = arith.mulf %13, %14 : vector<40x512xf32>
    %16 = arith.addf %10, %15 : vector<40x512xf32>
    %c0_5 = arith.constant 0 : index
    %c0_6 = arith.constant 0 : index
    %17 = vector.load %arg2[%c0_5, %c0_6] : memref<40x1xf32, #tpu.memory_space<vmem>>, vector<40x1xf32>
    %18 = vector.broadcast %17 : vector<40x1xf32> to vector<40x512xf32>
    %19 = arith.mulf %16, %18 : vector<40x512xf32>
    %c0_7 = arith.constant 0 : index
    %c0_8 = arith.constant 0 : index
    %20 = vector.load %arg3[%c0_7, %c0_8] : memref<40x1xf32, #tpu.memory_space<vmem>>, vector<40x1xf32>
    %21 = vector.broadcast %20 : vector<40x1xf32> to vector<40x512xf32>
    %22 = arith.addf %19, %21 : vector<40x512xf32>
    %23 = math.sin %22 : vector<40x512xf32>
    %c0_9 = arith.constant 0 : index
    %c0_10 = arith.constant 0 : index
    %24 = vector.load %arg28[%c0_9, %c0_10] : memref<64x40xf32, #tpu.memory_space<vmem>>, vector<64x40xf32>
    %cst_11 = arith.constant dense<0.000000e+00> : vector<64x512xf32>
    %25 = tpu.matmul %24, %23, %cst_11 {dimension_numbers = #tpu.dot_dimension_numbers<[1], [0], [0], [1], [0, 0, 1, 1], [], []>} : vector<64x40xf32>, vector<40x512xf32>, vector<64x512xf32> -> vector<64x512xf32>
    %c0_12 = arith.constant 0 : index
    %c0_13 = arith.constant 0 : index
    %26 = vector.load %arg10[%c0_12, %c0_13] : memref<64x1xf32, #tpu.memory_space<vmem>>, vector<64x1xf32>
    %27 = vector.broadcast %26 : vector<64x1xf32> to vector<64x512xf32>
    %28 = arith.addf %25, %27 : vector<64x512xf32>
    %cst_14 = arith.constant 0.000000e+00 : f32
    %29 = vector.broadcast %cst_14 : f32 to vector<64x512xf32>
    %30 = arith.cmpf oge, %28, %29 : vector<64x512xf32>
    %cst_15 = arith.constant 2.000000e-01 : f32
    %31 = vector.broadcast %cst_15 : f32 to vector<64x512xf32>
    %32 = arith.mulf %31, %28 : vector<64x512xf32>
    %33 = arith.select %30, %28, %32 : vector<64x512xi1>, vector<64x512xf32>
    %cst_16 = arith.constant 1.41421354 : f32
    %34 = vector.broadcast %cst_16 : f32 to vector<64x512xf32>
    %35 = arith.mulf %33, %34 : vector<64x512xf32>
    %c0_17 = arith.constant 0 : index
    %c0_18 = arith.constant 0 : index
    %36 = vector.load %arg29[%c0_17, %c0_18] : memref<64x64xf32, #tpu.memory_space<vmem>>, vector<64x64xf32>
    %cst_19 = arith.constant dense<0.000000e+00> : vector<64x512xf32>
    %37 = tpu.matmul %36, %35, %cst_19 {dimension_numbers = #tpu.dot_dimension_numbers<[1], [0], [0], [1], [0, 0, 1, 1], [], []>} : vector<64x64xf32>, vector<64x512xf32>, vector<64x512xf32> -> vector<64x512xf32>
    %c0_20 = arith.constant 0 : index
    %c0_21 = arith.constant 0 : index
    %38 = vector.load %arg14[%c0_20, %c0_21] : memref<64x1xf32, #tpu.memory_space<vmem>>, vector<64x1xf32>
    %39 = vector.broadcast %38 : vector<64x1xf32> to vector<64x512xf32>
    %40 = arith.addf %37, %39 : vector<64x512xf32>
    %cst_22 = arith.constant 0.000000e+00 : f32
    %41 = vector.broadcast %cst_22 : f32 to vector<64x512xf32>
    %42 = arith.cmpf oge, %40, %41 : vector<64x512xf32>
    %cst_23 = arith.constant 2.000000e-01 : f32
    %43 = vector.broadcast %cst_23 : f32 to vector<64x512xf32>
    %44 = arith.mulf %43, %40 : vector<64x512xf32>
    %45 = arith.select %42, %40, %44 : vector<64x512xi1>, vector<64x512xf32>
    %cst_24 = arith.constant 1.41421354 : f32
    %46 = vector.broadcast %cst_24 : f32 to vector<64x512xf32>
    %47 = arith.mulf %45, %46 : vector<64x512xf32>
    %c0_25 = arith.constant 0 : index
    %c0_26 = arith.constant 0 : index
    %48 = vector.load %arg30[%c0_25, %c0_26] : memref<64x64xf32, #tpu.memory_space<vmem>>, vector<64x64xf32>
    %cst_27 = arith.constant dense<0.000000e+00> : vector<64x512xf32>
    %49 = tpu.matmul %48, %47, %cst_27 {dimension_numbers = #tpu.dot_dimension_numbers<[1], [0], [0], [1], [0, 0, 1, 1], [], []>} : vector<64x64xf32>, vector<64x512xf32>, vector<64x512xf32> -> vector<64x512xf32>
    %c0_28 = arith.constant 0 : index
    %c0_29 = arith.constant 0 : index
    %50 = vector.load %arg18[%c0_28, %c0_29] : memref<64x1xf32, #tpu.memory_space<vmem>>, vector<64x1xf32>
    %51 = vector.broadcast %50 : vector<64x1xf32> to vector<64x512xf32>
    %52 = arith.addf %49, %51 : vector<64x512xf32>
    %cst_30 = arith.constant 0.000000e+00 : f32
    %53 = vector.broadcast %cst_30 : f32 to vector<64x512xf32>
    %54 = arith.cmpf oge, %52, %53 : vector<64x512xf32>
    %cst_31 = arith.constant 2.000000e-01 : f32
    %55 = vector.broadcast %cst_31 : f32 to vector<64x512xf32>
    %56 = arith.mulf %55, %52 : vector<64x512xf32>
    %57 = arith.select %54, %52, %56 : vector<64x512xi1>, vector<64x512xf32>
    %cst_32 = arith.constant 1.41421354 : f32
    %58 = vector.broadcast %cst_32 : f32 to vector<64x512xf32>
    %59 = arith.mulf %57, %58 : vector<64x512xf32>
    %c0_33 = arith.constant 0 : index
    %c0_34 = arith.constant 0 : index
    %60 = vector.load %arg31[%c0_33, %c0_34] : memref<64x64xf32, #tpu.memory_space<vmem>>, vector<64x64xf32>
    %cst_35 = arith.constant dense<0.000000e+00> : vector<64x512xf32>
    %61 = tpu.matmul %60, %59, %cst_35 {dimension_numbers = #tpu.dot_dimension_numbers<[1], [0], [0], [1], [0, 0, 1, 1], [], []>} : vector<64x64xf32>, vector<64x512xf32>, vector<64x512xf32> -> vector<64x512xf32>
    %c0_36 = arith.constant 0 : index
    %c0_37 = arith.constant 0 : index
    %62 = vector.load %arg22[%c0_36, %c0_37] : memref<64x1xf32, #tpu.memory_space<vmem>>, vector<64x1xf32>
    %63 = vector.broadcast %62 : vector<64x1xf32> to vector<64x512xf32>
    %64 = arith.addf %61, %63 : vector<64x512xf32>
    %cst_38 = arith.constant 0.000000e+00 : f32
    %65 = vector.broadcast %cst_38 : f32 to vector<64x512xf32>
    %66 = arith.cmpf oge, %64, %65 : vector<64x512xf32>
    %cst_39 = arith.constant 2.000000e-01 : f32
    %67 = vector.broadcast %cst_39 : f32 to vector<64x512xf32>
    %68 = arith.mulf %67, %64 : vector<64x512xf32>
    %69 = arith.select %66, %64, %68 : vector<64x512xi1>, vector<64x512xf32>
    %cst_40 = arith.constant 1.41421354 : f32
    %70 = vector.broadcast %cst_40 : f32 to vector<64x512xf32>
    %71 = arith.mulf %69, %70 : vector<64x512xf32>
    %c0_41 = arith.constant 0 : index
    %c0_42 = arith.constant 0 : index
    %72 = vector.load %arg32[%c0_41, %c0_42] : memref<3x64xf32, #tpu.memory_space<vmem>>, vector<3x64xf32>
    %cst_43 = arith.constant dense<0.000000e+00> : vector<3x512xf32>
    %73 = tpu.matmul %72, %71, %cst_43 {dimension_numbers = #tpu.dot_dimension_numbers<[1], [0], [0], [1], [0, 0, 1, 1], [], []>} : vector<3x64xf32>, vector<64x512xf32>, vector<3x512xf32> -> vector<3x512xf32>
    %c0_44 = arith.constant 0 : index
    %c0_45 = arith.constant 0 : index
    %74 = vector.load %arg26[%c0_44, %c0_45] : memref<3x1xf32, #tpu.memory_space<vmem>>, vector<3x1xf32>
    %75 = vector.broadcast %74 : vector<3x1xf32> to vector<3x512xf32>
    %76 = arith.addf %73, %75 : vector<3x512xf32>
    %77 = arith.negf %76 : vector<3x512xf32>
    %78 = math.exp %77 : vector<3x512xf32>
    %cst_46 = arith.constant 1.000000e+00 : f32
    %79 = vector.broadcast %cst_46 : f32 to vector<3x512xf32>
    %80 = arith.addf %79, %78 : vector<3x512xf32>
    %81 = arith.divf %79, %80 : vector<3x512xf32>
    %c0_47 = arith.constant 0 : index
    %c0_48 = arith.constant 0 : index
    %c0_49 = arith.constant 0 : index
    %82 = vector.load %arg27[%c0_47, %c0_48, %c0_49] : memref<1x3x512xf32, #tpu.memory_space<vmem>>, vector<1x3x512xf32>
    %83 = vector.shape_cast %82 : vector<1x3x512xf32> to vector<3x512xf32>
    %84 = vector.shape_cast %81 : vector<3x512xf32> to vector<1x3x512xf32>
    tpu.vector_store %arg27[%c0_47, %c0_48, %c0_49], %84 {strides = array<i32>} : memref<1x3x512xf32, #tpu.memory_space<vmem>>, vector<1x3x512xf32>,
    return
  }
  func.func @transform_0(%arg0: i32, %arg1: i32) -> (i32, i32) {
    %c0_i32 = arith.constant 0 : i32
    %c0_i32_0 = arith.constant 0 : i32
    %c0_i32_1 = arith.constant 0 : i32
    return %c0_i32, %c0_i32_0 : i32, i32
  }
  func.func @transform_1(%arg0: i32, %arg1: i32) -> (i32, i32) {
    %c0_i32 = arith.constant 0 : i32
    %c0_i32_0 = arith.constant 0 : i32
    %c0_i32_1 = arith.constant 0 : i32
    return %c0_i32, %c0_i32_0 : i32, i32
  }
  func.func @transform_2(%arg0: i32, %arg1: i32) -> (i32, i32) {
    %c0_i32 = arith.constant 0 : i32
    %c0_i32_0 = arith.constant 0 : i32
    %c0_i32_1 = arith.constant 0 : i32
    return %c0_i32, %c0_i32_0 : i32, i32
  }
  func.func @transform_3(%arg0: i32, %arg1: i32) -> (i32, i32, i32) {
    %c0_i32 = arith.constant 0 : i32
    %c0_i32_0 = arith.constant 0 : i32
    return %arg0, %c0_i32, %arg1 : i32, i32, i32
  }
  func.func @transform_4(%arg0: i32, %arg1: i32) -> (i32, i32, i32) {
    %c0_i32 = arith.constant 0 : i32
    %c0_i32_0 = arith.constant 0 : i32
    %c0_i32_1 = arith.constant 0 : i32
    return %arg0, %c0_i32, %c0_i32_0 : i32, i32, i32
  }
  func.func @transform_5(%arg0: i32, %arg1: i32) -> (i32, i32) {
    %c0_i32 = arith.constant 0 : i32
    %c0_i32_0 = arith.constant 0 : i32
    %c0_i32_1 = arith.constant 0 : i32
    return %c0_i32, %c0_i32_0 : i32, i32
  }
  func.func @transform_6(%arg0: i32, %arg1: i32) -> (i32, i32) {
    %c0_i32 = arith.constant 0 : i32
    %c0_i32_0 = arith.constant 0 : i32
    %c0_i32_1 = arith.constant 0 : i32
    return %c0_i32, %c0_i32_0 : i32, i32
  }
  func.func @transform_7(%arg0: i32, %arg1: i32) -> (i32, i32) {
    %c0_i32 = arith.constant 0 : i32
    %c0_i32_0 = arith.constant 0 : i32
    %c0_i32_1 = arith.constant 0 : i32
    return %c0_i32, %c0_i32_0 : i32, i32
  }
  func.func @transform_8(%arg0: i32, %arg1: i32) -> (i32, i32) {
    %c0_i32 = arith.constant 0 : i32
    %c0_i32_0 = arith.constant 0 : i32
    %c0_i32_1 = arith.constant 0 : i32
    return %c0_i32, %c0_i32_0 : i32, i32
  }
  func.func @transform_9(%arg0: i32, %arg1: i32) -> (i32, i32) {
    %c0_i32 = arith.constant 0 : i32
    %c0_i32_0 = arith.constant 0 : i32
    %c0_i32_1 = arith.constant 0 : i32
    return %c0_i32, %c0_i32_0 : i32, i32
  }
  func.func @transform_10(%arg0: i32, %arg1: i32) -> (i32, i32) {
    %c0_i32 = arith.constant 0 : i32
    %c0_i32_0 = arith.constant 0 : i32
    %c0_i32_1 = arith.constant 0 : i32
    return %c0_i32, %c0_i32_0 : i32, i32
  }
  func.func @transform_11(%arg0: i32, %arg1: i32) -> (i32, i32) {
    %c0_i32 = arith.constant 0 : i32
    %c0_i32_0 = arith.constant 0 : i32
    %c0_i32_1 = arith.constant 0 : i32
    return %c0_i32, %c0_i32_0 : i32, i32
  }
  func.func @transform_12(%arg0: i32, %arg1: i32) -> (i32, i32) {
    %c0_i32 = arith.constant 0 : i32
    %c0_i32_0 = arith.constant 0 : i32
    %c0_i32_1 = arith.constant 0 : i32
    return %c0_i32, %c0_i32_0 : i32, i32
  }
  func.func @transform_13(%arg0: i32, %arg1: i32) -> (i32, i32) {
    %c0_i32 = arith.constant 0 : i32
    %c0_i32_0 = arith.constant 0 : i32
    %c0_i32_1 = arith.constant 0 : i32
    return %c0_i32, %c0_i32_0 : i32, i32
  }
  func.func @transform_14(%arg0: i32, %arg1: i32) -> (i32, i32) {
    %c0_i32 = arith.constant 0 : i32
    %c0_i32_0 = arith.constant 0 : i32
    %c0_i32_1 = arith.constant 0 : i32
    return %c0_i32, %c0_i32_0 : i32, i32
  }
  func.func @transform_15(%arg0: i32, %arg1: i32) -> (i32, i32) {
    %c0_i32 = arith.constant 0 : i32
    %c0_i32_0 = arith.constant 0 : i32
    %c0_i32_1 = arith.constant 0 : i32
    return %c0_i32, %c0_i32_0 : i32, i32
  }
  func.func @transform_16(%arg0: i32, %arg1: i32) -> (i32, i32) {
    %c0_i32 = arith.constant 0 : i32
    %c0_i32_0 = arith.constant 0 : i32
    %c0_i32_1 = arith.constant 0 : i32
    return %c0_i32, %c0_i32_0 : i32, i32
  }
  func.func @transform_17(%arg0: i32, %arg1: i32) -> (i32, i32) {
    %c0_i32 = arith.constant 0 : i32
    %c0_i32_0 = arith.constant 0 : i32
    %c0_i32_1 = arith.constant 0 : i32
    return %c0_i32, %c0_i32_0 : i32, i32
  }
  func.func @transform_18(%arg0: i32, %arg1: i32) -> (i32, i32) {
    %c0_i32 = arith.constant 0 : i32
    %c0_i32_0 = arith.constant 0 : i32
    %c0_i32_1 = arith.constant 0 : i32
    return %c0_i32, %c0_i32_0 : i32, i32
  }
  func.func @transform_19(%arg0: i32, %arg1: i32) -> (i32, i32) {
    %c0_i32 = arith.constant 0 : i32
    %c0_i32_0 = arith.constant 0 : i32
    %c0_i32_1 = arith.constant 0 : i32
    return %c0_i32, %c0_i32_0 : i32, i32
  }
  func.func @transform_20(%arg0: i32, %arg1: i32) -> (i32, i32) {
    %c0_i32 = arith.constant 0 : i32
    %c0_i32_0 = arith.constant 0 : i32
    %c0_i32_1 = arith.constant 0 : i32
    return %c0_i32, %c0_i32_0 : i32, i32
  }
  func.func @transform_21(%arg0: i32, %arg1: i32) -> (i32, i32) {
    %c0_i32 = arith.constant 0 : i32
    %c0_i32_0 = arith.constant 0 : i32
    %c0_i32_1 = arith.constant 0 : i32
    return %c0_i32, %c0_i32_0 : i32, i32
  }
  func.func @transform_22(%arg0: i32, %arg1: i32) -> (i32, i32) {
    %c0_i32 = arith.constant 0 : i32
    %c0_i32_0 = arith.constant 0 : i32
    %c0_i32_1 = arith.constant 0 : i32
    return %c0_i32, %c0_i32_0 : i32, i32
  }
  func.func @transform_23(%arg0: i32, %arg1: i32) -> (i32, i32) {
    %c0_i32 = arith.constant 0 : i32
    %c0_i32_0 = arith.constant 0 : i32
    %c0_i32_1 = arith.constant 0 : i32
    return %c0_i32, %c0_i32_0 : i32, i32
  }
  func.func @transform_24(%arg0: i32, %arg1: i32) -> (i32, i32) {
    %c0_i32 = arith.constant 0 : i32
    %c0_i32_0 = arith.constant 0 : i32
    %c0_i32_1 = arith.constant 0 : i32
    return %c0_i32, %c0_i32_0 : i32, i32
  }
  func.func @transform_25(%arg0: i32, %arg1: i32) -> (i32, i32, i32) {
    %c0_i32 = arith.constant 0 : i32
    %c0_i32_0 = arith.constant 0 : i32
    return %arg0, %c0_i32, %arg1 : i32, i32, i32
  }
}

</mosaic_0001>

<bundles_post_ra>
// kernel: tpu_custom_call.1
= control target key start
LH: loop header
LB: loop body
LE: loop exit
PB: predicated region body
PF: predicated region fallthrough
CT: control target
= control target key end

     0   :  { %s7254_s29 = smov 0   ;;  %s7260_s30 = smov 0   ;;  %s12098_s0 = inlined_call_operand.vmem [shape: f32[40,1], index: 0, kind: input, shape index: {}]   ;;  %s12099_s1 = inlined_call_operand.vmem [shape: f32[40,1], index: 1, kind: input, shape index: {}]   ;;  %s12100_s2 = inlined_call_operand.vmem [shape: f32[40,1], index: 2, kind: input, shape index: {}]   ;;  %s12101_s3 = inlined_call_operand.vmem [shape: f32[2,2,1024], index: 3, kind: input, shape index: {}]   ;;  %s12102_s4 = inlined_call_operand.vmem [shape: f32[2,5,32], index: 4, kind: input, shape index: {}]   ;;  %s12103_s5 = inlined_call_operand.vmem [shape: f32[32,40], index: 5, kind: input, shape index: {}]   ;;  %s12104_s6 = inlined_call_operand.vmem [shape: f32[1,40], index: 6, kind: input, shape index: {}]   ;;  %s12105_s7 = inlined_call_operand.vmem [shape: f32[64,40], index: 7, kind: input, shape index: {}]   ;;  %s12106_s8 = inlined_call_operand.vmem [shape: f32[64,1], index: 8, kind: input, shape index: {}]   ;;  %s12107_s9 = inlined_call_operand.vmem [shape: f32[32,64], index: 9, kind: input, shape index: {}]   ;;  %s12108_s10 = inlined_call_operand.vmem [shape: f32[1,64], index: 10, kind: input, shape index: {}]   ;;  %s12109_s11 = inlined_call_operand.vmem [shape: f32[64,64], index: 11, kind: input, shape index: {}]   ;;  %s12110_s12 = inlined_call_operand.vmem [shape: f32[64,1], index: 12, kind: input, shape index: {}]   ;;  %s12111_s13 = inlined_call_operand.vmem [shape: f32[32,64], index: 13, kind: input, shape index: {}]   ;;  %s12112_s14 = inlined_call_operand.vmem [shape: f32[1,64], index: 14, kind: input, shape index: {}]   ;;  %s12113_s15 = inlined_call_operand.vmem [shape: f32[64,64], index: 15, kind: input, shape index: {}]   ;;  %s12114_s16 = inlined_call_operand.vmem [shape: f32[64,1], index: 16, kind: input, shape index: {}]   ;;  %s12115_s17 = inlined_call_operand.vmem [shape: f32[32,64], index: 17, kind: input, shape index: {}]   ;;  %s12116_s18 = inlined_call_operand.vmem [shape: f32[1,64], index: 18, kind: input, shape index: {}]   ;;  %s12117_s19 = inlined_call_operand.vmem [shape: f32[64,64], index: 19, kind: input, shape index: {}]   ;;  %s12118_s20 = inlined_call_operand.vmem [shape: f32[64,1], index: 20, kind: input, shape index: {}]   ;;  %s12119_s21 = inlined_call_operand.vmem [shape: f32[32,64], index: 21, kind: input, shape index: {}]   ;;  %s12120_s22 = inlined_call_operand.vmem [shape: f32[1,64], index: 22, kind: input, shape index: {}]   ;;  %s12121_s23 = inlined_call_operand.vmem [shape: f32[3,64], index: 23, kind: input, shape index: {}]   ;;  %s12122_s24 = inlined_call_operand.vmem [shape: f32[3,1], index: 24, kind: input, shape index: {}]   ;;  %s12123_s25 = inlined_call_operand.vmem [shape: f32[2,3,1024], index: 25, kind: output, shape index: {}]  }
   0x1   :  { %12197 = sst [smem:[#allocation37_spill]] %s12098_s0 }
   0x2   :  { %12198 = sst [smem:[#allocation38_spill]] %s12099_s1 }
   0x3   :  { %12199 = sst [smem:[#allocation39_spill]] %s12100_s2  ;;  %s7256_s2 = smov 0  }
   0x4   :  { %12200 = sst [smem:[#allocation40_spill]] %s12101_s3 }
   0x5   :  { %12201 = sst [smem:[#allocation41_spill]] %s12102_s4 }
   0x6   :  { %12202 = sst [smem:[#allocation42_spill]] %s12103_s5 }
   0x7   :  { %12203 = sst [smem:[#allocation43_spill]] %s12104_s6  ;;  %s7258_s6 = smov 0  }
   0x8   :  { %12204 = sst [smem:[#allocation44_spill]] %s12105_s7  ;;  %s7262_s7 = smov 0  }
   0x9   :  { %12205 = sst [smem:[#allocation45_spill]] %s12106_s8 }
   0xa   :  { %12206 = sst [smem:[#allocation46_spill]] %s12107_s9 }
   0xb   :  { %12207 = sst [smem:[#allocation47_spill]] %s12110_s12 }
   0xc   :  { %12208 = sst [smem:[#allocation48_spill]] %s12114_s16 }
   0xd   :  { %12209 = sst [smem:[#allocation49_spill]] %s12118_s20 }
   0xe   :  { %12210 = sst [smem:[#allocation50_spill]] %s12122_s24 }
   0xf LB: > { %12211 = sst [smem:[#allocation7_spill]] %s7107_s6  ;;  %s44_s3 = sadd.s32 1, %s7107_s6  ;;  %s7115_s7 = sphi %s7262_s7, %s35_s7   ;;  %s7111_s30 = sphi %s7260_s30, %s12355_s30   ;;  %s7107_s6 = sphi %s7258_s6, %s12354_s6   ;;  %s7103_s2 = sphi %s7256_s2, %s12353_s2   ;;  %s7099_s29 = sphi %s7254_s29, %s12352_s29  }
  0x10   : > { %12212 = sst [smem:[#allocation8_spill]] %s7111_s30  ;;  %s47_s26 = sadd.s32 1, %s7111_s30 }
  0x11   : > { %12213 = sst [smem:[#allocation9_spill]] %s7115_s7  ;;  %p45_p0 = scmp.ge.s32.totalorder %s44_s3, 2 }
  0x12   : > { %p6733_p1 = scmp.ge.s32.totalorder %s7115_s7, 1  ;;  %p717_p2 = scmp.lt.s32.totalorder %s7115_s7, 5 }
  0x13   : > { %s12357_s3 = smov (%p45_p0, %s44_s3), 0  ;;  %s12359_s26 = smov (!%p45_p0, %s47_s26), %s7111_s30 }
  0x14   : > { %12214 = sst [smem:[#allocation10_spill]] %s12357_s3  ;;  %p718_p3 = pnand %p6733_p1, %p717_p2 }
  0x15   : > { %p49_p4 = scmp.ge.s32.totalorder %s12359_s26, 2 }
  0x16   : > { %721 = sbr.rel (%p718_p3) target bundleno = 2358 (0x936), region = 120 }
  0x17   : > { %s12361_s26 = smov (%p49_p4, %s12359_s26), 0 }
  0x18   : > { %12215 = sst [smem:[#allocation11_spill]] %s12361_s26 }
  0x1b   : > { %s6734_s1 = sshll.u32 %s7099_s29, 2  ;;  %p798_p5 = scmp.lt.s32.totalorder %s7103_s2, 1 }
  0x1c   : > { %p800_p6 = scmp.lt.s32.totalorder %s6734_s1, 7  ;;  %s12216_s9 = sld [smem:[#allocation41_spill]] }
  0x1d   : > { %s12363_s2 = smov (!%p798_p5, %s7103_s2), 1  ;;  %s12217_s7 = sld [smem:[#allocation40_spill]] }
  0x1e   : > { %s12365_s1 = smov (!%p800_p6, %s6734_s1), 7  ;;  %s6735_s8 = sshll.u32 %s12363_s2, 3 }
  0x1f   : > { %s803_s27 = sadd.s32 %s6735_s8, %s12365_s1  ;;  %p6741_p7 = scmp.ne.s32.totalorder %s7099_s29, 0 }
  0x20   : > { %s6736_s0 = sshll.u32 %s803_s27, 1  ;;  %s6740_s6 = sshll.u32 %s803_s27, 2 }
  0x21   : > { %s7295_s16 = scalar_lea.vmem %s12123_s25, %s6740_s6  ;;  %824 = sbr.rel (%p6741_p7) target bundleno = 408 (0x198), region = 124 }
  0x22   : > { %s810_s5 = scalar_lea.vmem %s12216_s9, %s6735_s8  ;;  %s12218_s12 = sld [smem:[#allocation42_spill]] (!%p6741_p7) }
  0x23   : > { %s7290_s24 = scalar_lea.vmem %s12217_s7, %s6736_s0  ;;  %s12219_s7 = sld [smem:[#allocation46_spill]] (!%p6741_p7) }
  0x24   : > { %s12221_s0 = sld [smem:[#allocation43_spill]] (!%p6741_p7) }
  0x25   : > { %s12222_s4 = sld [smem:[#allocation44_spill]] (!%p6741_p7) }
  0x26   : > { %v1198_v7 = vld [vmem:[%s12111_s13 + $0x18] sm:$0xff]  ;;  %v1197_v8 = vld [vmem:[%s12111_s13 + $0x10] sm:$0xff]  ;;  %v825_v9 = vld [vmem:[%s810_s5] sm:$0x1f]  ;;  %vm830_vm0 = vcmask 261120   ;;  %vm882_vm1 = vcmask 326656  }
  0x27   : > { %1214 = vmatpush.msra.mxu2 %v1198_v7  ;;  %v1381_v10 = vld [vmem:[%s12115_s17 + $0x18] sm:$0xff]  ;;  %v1380_v11 = vld [vmem:[%s12115_s17 + $0x10] sm:$0xff]  ;;  %v1015_v13 = vrot.slane %v825_v9, 1  ;;  %v1196_v14 = vld [vmem:[%s12111_s13 + $0x8] sm:$0xff]  ;;  %v1199_v18 = vrot.slane %v825_v9, 2  ;;  %v1382_v20 = vrot.slane %v825_v9, 3 }
  0x28   : > { %v829_v0 = vld [vmem:[%s12218_s12 + $0x18] sm:$0xff]  ;;  %v828_v1 = vld [vmem:[%s12218_s12 + $0x10] sm:$0xff]  ;;  %v827_v3 = vld [vmem:[%s12218_s12 + $0x8] sm:$0xff]  ;;  %1397 = vmatpush.msra.mxu3 %v1381_v10  ;;  %v1565_v24 = vrot.slane %v825_v9, 4  ;;  %vm1066_vm2 = vcmask 523264   ;;  %vm1595_vm3 = vcmask 518144  }
  0x29   : > { %846 = vmatpush.msra.mxu0 %v829_v0  ;;  %s12220_s3 = smov %s12219_s7  ;;  %v1014_v2 = vld [vmem:[%s12219_s7 + $0x18] sm:$0xff]  ;;  %v826_v4 = vld [vmem:[%s12218_s12] sm:$0xff]  ;;  %1215 = vmatpush.msra.mxu2 %v1197_v8  ;;  %v1379_v15 = vld [vmem:[%s12115_s17 + $0x8] sm:$0xff] }
  0x2a   : > { %1030 = vmatpush.msra.mxu1 %v1014_v2  ;;  %v1013_v5 = vld [vmem:[%s12220_s3 + $0x10] sm:$0xff]  ;;  %v1012_v6 = vld [vmem:[%s12220_s3 + $0x8] sm:$0xff]  ;;  %v1011_v12 = vld [vmem:[%s12220_s3] sm:$0xff]  ;;  %1398 = vmatpush.msra.mxu3 %v1380_v11 }
  0x2b   : > { %847 = vmatpush.msra.mxu0 %v828_v1  ;;  %v1564_v16 = vld [vmem:[%s12119_s21 + $0x18] sm:$0xff]  ;;  %v1195_v17 = vld [vmem:[%s12111_s13] sm:$0xff]  ;;  %1216 = vmatpush.msra.mxu2 %v1196_v14  ;;  %v1563_v21 = vld [vmem:[%s12119_s21 + $0x10] sm:$0xff] }
  0x2c   : > { %1031 = vmatpush.msra.mxu1 %v1013_v5  ;;  %v1378_v19 = vld [vmem:[%s12115_s17] sm:$0xff]  ;;  %1399 = vmatpush.msra.mxu3 %v1379_v15  ;;  %v1562_v22 = vld [vmem:[%s12119_s21 + $0x8] sm:$0xff]  ;;  %v859_v31 = vld [vmem:[%s12222_s4 + $0x10] sm:$0xff] }
  0x2d   : > { %848 = vmatpush.msra.mxu0 %v827_v3  ;;  %1217 = vmatpush.msra.mxu2 %v1195_v17  ;;  %v1561_v23 = vld [vmem:[%s12119_s21] sm:$0xff]  ;;  %v862_v39 = vld [vmem:[%s12222_s4 + $0x28] sm:$0xff]  ;;  %v860_v40 = vld [vmem:[%s12222_s4 + $0x18] sm:$0xff] }
  0x2e   : > { %1032 = vmatpush.msra.mxu1 %v1012_v6  ;;  %6744 = vmatmul.msk.f32.vlgmr.msra.gmra.mxu2 %vm830_vm0, %v1199_v18  ;;  %v855_v26 = vld [vmem:[%s12221_s0] sm:$0x1]  ;;  %v858_v45 = vld [vmem:[%s12222_s4 + $0x8] sm:$0xff]  ;;  %v864_v57 = vld [vmem:[%s12222_s4 + $0x38] sm:$0xff] }
  0x2f   : > { %849 = vmatpush.msra.mxu0 %v826_v4  ;;  %1400 = vmatpush.msra.mxu3 %v1378_v19  ;;  %v861_v30 = vld [vmem:[%s12222_s4 + $0x20] sm:$0xff]  ;;  %v863_v59 = vld [vmem:[%s12222_s4 + $0x30] sm:$0xff]  ;;  %v1044_v4 = vld [vmem:[%s12109_s11 + $0x18] sm:$0xff] }
  0x30   : > { %6742 = vmatmul.msk.f32.vlgmr.msra.gmra.mxu0 %vm830_vm0, %v825_v9  ;;  %1033 = vmatpush.msra.mxu1 %v1011_v12  ;;  %v857_v32 = vld [vmem:[%s12222_s4] sm:$0xff]  ;;  %v1043_v5 = vld [vmem:[%s12109_s11 + $0x10] sm:$0xff]  ;;  %v1042_v7 = vld [vmem:[%s12109_s11 + $0x8] sm:$0xff] }
  0x31   : > { %6743 = vmatmul.msk.f32.vlgmr.msra.gmra.mxu1 %vm830_vm0, %v1015_v13  ;;  %1580 = vmatpush.msrb.mxu0 %v1564_v16  ;;  %v1039_v35 = vld [vmem:[%s12108_s10] sm:$0x1]  ;;  %v1047_v19 = vld [vmem:[%s12109_s11 + $0x30] sm:$0xff] }
  0x32   : > { %6745 = vmatmul.msk.f32.vlgmr.msra.gmra.mxu3 %vm830_vm0, %v1382_v20  ;;  %v1041_v53 = vld [vmem:[%s12109_s11] sm:$0xff]  ;;  %v1046_v20 = vld [vmem:[%s12109_s11 + $0x28] sm:$0xff] }
  0x33   : > { %1581 = vmatpush.msrb.mxu0 %v1563_v21  ;;  %v1223_v15 = vld [vmem:[%s12112_s14] sm:$0x1] }
  0x35   : > { %1582 = vmatpush.msrb.mxu0 %v1562_v22  ;;  %v1045_v22 = vld [vmem:[%s12109_s11 + $0x20] sm:$0xff] }
  0x37   : > { %1583 = vmatpush.msrb.mxu0 %v1561_v23 }
  0x38   : > { %6746 = vmatmul.msk.f32.vlgmr.msrb.gmra.mxu0 %vm830_vm0, %v1565_v24 }
  0xad   : > { %v851_v25 = vpop.f32.mrf.mxu0 }
  0xae   : > { %v854_v27 = vmul.f32 0.17677669, %v851_v25  ;;  %v1035_v28 = vpop.f32.mrf.mxu1 }
  0xaf   : > { %v1038_v34 = vmul.f32 0.17677669, %v1035_v28 }
  0xb0   : > { %v856_v29 = vadd.f32 %v855_v26, %v854_v27 }
  0xb1   : > { %v1040_v44 = vadd.f32 %v1039_v35, %v1038_v34  ;;  %v1219_v8 = vpop.f32.mrf.mxu2 }
  0xb2   : > { %v865_v33 = vperm.slane %v856_v29, 0  ;;  %v1222_v14 = vmul.f32 0.17677669, %v1219_v8  ;;  %v1230_v8 = vld [vmem:[%s12113_s15 + $0x28] sm:$0xff] }
  0xb3   : > { %v7407_v52 = vperm.slane %v1040_v44, 0 }
  0xb4   : > { %v7377_v36 = vmul.f32 %v865_v33, %v861_v30  ;;  %v7379_v37 = vmul.f32 %v865_v33, %v859_v31  ;;  %v7381_v38 = vmul.f32 %v865_v33, %v857_v32  ;;  %v7398_v46 = vmul.f32 %v865_v33, %v862_v39  ;;  %v1226_v30 = vld [vmem:[%s12113_s15 + $0x8] sm:$0xff]  ;;  %v1225_v31 = vld [vmem:[%s12113_s15] sm:$0xff] }
  0xb5   : > { %v7403_v50 = vmul.f32 %v865_v33, %v860_v40  ;;  %v7405_v51 = vmul.f32 %v865_v33, %v858_v45  ;;  %v7422_v58 = vmul.f32 %v7407_v52, %v1041_v53  ;;  %v7429_v62 = vmul.f32 %v865_v33, %v864_v57  ;;  %v1048_v40 = vld [vmem:[%s12109_s11 + $0x38] sm:$0xff] }
  0xb6   : > { %v878_v41 = vmul.f32 %v7377_v36, %v7377_v36  ;;  %v876_v42 = vmul.f32 %v7379_v37, %v7379_v37  ;;  %v874_v43 = vmul.f32 %v7381_v38, %v7381_v38  ;;  %v879_v54 = vmul.f32 %v7398_v46, %v7398_v46  ;;  %v1228_v53 = vld [vmem:[%s12113_s15 + $0x18] sm:$0xff] }
  0xb7   : > { %v877_v55 = vmul.f32 %v7403_v50, %v7403_v50  ;;  %v875_v56 = vmul.f32 %v7405_v51, %v7405_v51  ;;  %v7432_v0 = vmul.f32 %v865_v33, %v863_v59  ;;  %v1058_v1 = vmul.f32 %v7422_v58, %v7422_v58 }
  0xb8   : > { %v895_v47 = vsel %vm882_vm1, %v878_v41, 0.0  ;;  %v889_v48 = vsel %vm882_vm1, %v876_v42, 0.0  ;;  %v883_v49 = vsel %vm882_vm1, %v874_v43, 0.0  ;;  %v898_v60 = vsel %vm882_vm1, %v879_v54, 0.0 }
  0xb9   : > { %896 = vadd.xlane.f32.xlu2 %v895_v47  ;;  %890 = vadd.xlane.f32.xlu1 %v889_v48  ;;  %v892_v61 = vsel %vm882_vm1, %v877_v55, 0.0  ;;  %v886_v63 = vsel %vm882_vm1, %v875_v56, 0.0  ;;  %v881_v2 = vmul.f32 %v7429_v62, %v7429_v62  ;;  %v880_v3 = vmul.f32 %v7432_v0, %v7432_v0  ;;  %v1227_v55 = vld [vmem:[%s12113_s15 + $0x10] sm:$0xff]  ;;  %v1402_v56 = vpop.f32.mrf.mxu3 }
  0xba   : > { %884 = vadd.xlane.f32.xlu0 %v883_v49  ;;  %v1067_v6 = vsel %vm1066_vm2, %v1058_v1, 0.0  ;;  %v7452_v10 = vmul.f32 %v7407_v52, %v1044_v4  ;;  %v7455_v11 = vmul.f32 %v7407_v52, %v1043_v5  ;;  %v7459_v13 = vmul.f32 %v7407_v52, %v1042_v7  ;;  %v1229_v49 = vld [vmem:[%s12113_s15 + $0x20] sm:$0xff]  ;;  %v1232_v5 = vld [vmem:[%s12113_s15 + $0x38] sm:$0xff] }
  0xbb   : > { %v904_v9 = vsel %vm882_vm1, %v881_v2, 0.0  ;;  %v901_v12 = vsel %vm882_vm1, %v880_v3, 0.0  ;;  %v1224_v21 = vadd.f32 %v1223_v15, %v1222_v14  ;;  %v7482_v25 = vmul.f32 %v7407_v52, %v1047_v19  ;;  %v1406_v1 = vld [vmem:[%s12116_s18] sm:$0x1]  ;;  %v1410_v19 = vld [vmem:[%s12117_s19 + $0x10] sm:$0xff] }
  0xbc   : > { %v1061_v16 = vmul.f32 %v7452_v10, %v7452_v10  ;;  %v1060_v17 = vmul.f32 %v7455_v11, %v7455_v11  ;;  %v1059_v18 = vmul.f32 %v7459_v13, %v7459_v13  ;;  %v7485_v26 = vmul.f32 %v7407_v52, %v1046_v20  ;;  %v1409_v20 = vld [vmem:[%s12117_s19 + $0x8] sm:$0xff] }
  0xbd   : > { %v7489_v28 = vmul.f32 %v7407_v52, %v1045_v22  ;;  %v1233_v29 = vperm.slane %v1224_v21, 0  ;;  %v1064_v32 = vmul.f32 %v7482_v25, %v7482_v25  ;;  %v7514_v44 = vmul.f32 %v7407_v52, %v1048_v40 }
  0xbe   : > { %v1076_v23 = vsel %vm1066_vm2, %v1061_v16, 0.0  ;;  %v1073_v24 = vsel %vm1066_vm2, %v1060_v17, 0.0  ;;  %v1070_v27 = vsel %vm1066_vm2, %v1059_v18, 0.0  ;;  %v1063_v33 = vmul.f32 %v7485_v26, %v7485_v26 }
  0xbf   : > { %v1062_v34 = vmul.f32 %v7489_v28, %v7489_v28  ;;  %v7503_v35 = vmul.f32 %v1233_v29, %v1226_v30  ;;  %v7505_v39 = vmul.f32 %v1233_v29, %v1225_v31  ;;  %v1085_v41 = vsel %vm1066_vm2, %v1064_v32, 0.0  ;;  %v1585_v31 = vpop.f32.mrf.mxu0 }
  0xc0   : > { %v1082_v42 = vsel %vm1066_vm2, %v1063_v33, 0.0  ;;  %v1065_v48 = vmul.f32 %v7514_v44, %v7514_v44  ;;  %v7533_v57 = vmul.f32 %v1233_v29, %v1229_v49  ;;  %v7535_v59 = vmul.f32 %v1233_v29, %v1228_v53 }
  0xc1   : > { %899 = vadd.xlane.f32.xlu2 %v898_v60  ;;  %893 = vadd.xlane.f32.xlu1 %v892_v61  ;;  %v1079_v43 = vsel %vm1066_vm2, %v1062_v34, 0.0  ;;  %v1243_v45 = vmul.f32 %v7503_v35, %v7503_v35  ;;  %v1242_v47 = vmul.f32 %v7505_v39, %v7505_v39  ;;  %v7538_v61 = vmul.f32 %v1233_v29, %v1227_v55 }
  0xc2   : > { %887 = vadd.xlane.f32.xlu0 %v886_v63  ;;  %v1088_v60 = vsel %vm1066_vm2, %v1065_v48, 0.0  ;;  %v1405_v63 = vmul.f32 0.17677669, %v1402_v56  ;;  %v1246_v2 = vmul.f32 %v7533_v57, %v7533_v57  ;;  %v1245_v3 = vmul.f32 %v7535_v59, %v7535_v59  ;;  %v1412_v48 = vld [vmem:[%s12117_s19 + $0x20] sm:$0xff] }
  0xc3   : > { %v1253_v52 = vsel %vm1066_vm2, %v1243_v45, 0.0  ;;  %v1250_v54 = vsel %vm1066_vm2, %v1242_v47, 0.0  ;;  %v1244_v4 = vmul.f32 %v7538_v61, %v7538_v61  ;;  %v7560_v14 = vmul.f32 %v1233_v29, %v1232_v5  ;;  %v1589_v45 = vld [vmem:[%s12120_s22] sm:$0x1]  ;;  %v1413_v47 = vld [vmem:[%s12117_s19 + $0x28] sm:$0xff] }
  0xc4   : > { %v1407_v7 = vadd.f32 %v1406_v1, %v1405_v63  ;;  %v7565_v17 = vmul.f32 %v1233_v29, %v1230_v8  ;;  %v1414_v8 = vld [vmem:[%s12117_s19 + $0x30] sm:$0xff] }
  0xc5   : > { %v1256_v16 = vsel %vm1066_vm2, %v1244_v4, 0.0  ;;  %v1249_v21 = vmul.f32 %v7560_v14, %v7560_v14 }
  0xc6   : > { %v1416_v18 = vperm.slane %v1407_v7, 0 }
  0xc7   : > { %v1271_v32 = vsel %vm1066_vm2, %v1249_v21, 0.0 }
  0xc8   : > { %v7612_v56 = vmul.f32 %v1416_v18, %v1413_v47 }
  0xc9   : > { %1068 = vadd.xlane.f32.xlu2 %v1067_v6  ;;  %905 = vadd.xlane.f32.xlu1 %v904_v9  ;;  %v1231_v6 = vld [vmem:[%s12113_s15 + $0x30] sm:$0xff]  ;;  %v1262_v9 = vsel %vm1066_vm2, %v1246_v2, 0.0  ;;  %v1591_v2 = vld [vmem:[%s12121_s23] sm:$0x7] }
  0xca   : > { %902 = vadd.xlane.f32.xlu0 %v901_v12  ;;  %v1259_v12 = vsel %vm1066_vm2, %v1245_v3, 0.0  ;;  %v7562_v15 = vmul.f32 %v1233_v29, %v1231_v6  ;;  %v7584_v29 = vmul.f32 %v1416_v18, %v1409_v20  ;;  %v1430_v3 = vmul.f32 %v7612_v56, %v7612_v56  ;;  %v1415_v6 = vld [vmem:[%s12117_s19 + $0x38] sm:$0xff] }
  0xcb   : > { %v7640_v20 = vmul.f32 %v1416_v18, %v1414_v8 }
  0xcc   : > { %v1248_v22 = vmul.f32 %v7562_v15, %v7562_v15 }
  0xce   : > { %v1268_v33 = vsel %vm1066_vm2, %v1248_v22, 0.0 }
  0xd1   : > { %1077 = vadd.xlane.f32.xlu2 %v1076_v23  ;;  %1074 = vadd.xlane.f32.xlu1 %v1073_v24  ;;  %v1408_v23 = vld [vmem:[%s12117_s19] sm:$0xff]  ;;  %v1247_v24 = vmul.f32 %v7565_v17, %v7565_v17 }
  0xd2   : > { %1071 = vadd.xlane.f32.xlu0 %v1070_v27  ;;  %v7582_v27 = vmul.f32 %v1416_v18, %v1410_v19  ;;  %v7586_v30 = vmul.f32 %v1416_v18, %v1408_v23  ;;  %v1431_v23 = vmul.f32 %v7640_v20, %v7640_v20 }
  0xd3   : > { %v1265_v34 = vsel %vm1066_vm2, %v1247_v24, 0.0 }
  0xd4   : > { %v1427_v40 = vmul.f32 %v7582_v27, %v7582_v27 }
  0xd6   : > { %v1439_v49 = vsel %vm1066_vm2, %v1427_v40, 0.0 }
  0xd9   : > { %1086 = vadd.xlane.f32.xlu2 %v1085_v41  ;;  %1083 = vadd.xlane.f32.xlu1 %v1082_v42  ;;  %v1426_v41 = vmul.f32 %v7584_v29, %v7584_v29  ;;  %v1588_v42 = vmul.f32 0.17677669, %v1585_v31 }
  0xda   : > { %1080 = vadd.xlane.f32.xlu0 %v1079_v43  ;;  %v1425_v43 = vmul.f32 %v7586_v30, %v7586_v30 }
  0xdb   : > { %v1436_v53 = vsel %vm1066_vm2, %v1426_v41, 0.0 }
  0xdc   : > { %v1433_v55 = vsel %vm1066_vm2, %v1425_v43, 0.0 }
  0xe1   : > { %1254 = vadd.xlane.f32.xlu2 %v1253_v52  ;;  %1251 = vadd.xlane.f32.xlu1 %v1250_v54  ;;  %v1590_v52 = vadd.f32 %v1589_v45, %v1588_v42  ;;  %v1411_v54 = vld [vmem:[%s12117_s19 + $0x18] sm:$0xff] }
  0xe2   : > { %1089 = vadd.xlane.f32.xlu0 %v1088_v60  ;;  %v7614_v60 = vmul.f32 %v1416_v18, %v1412_v48  ;;  %v7616_v63 = vmul.f32 %v1416_v18, %v1411_v54 }
  0xe3   : > { %v1592_v1 = vperm.slane %v1590_v52, 0 }
  0xe4   : > { %v1429_v4 = vmul.f32 %v7614_v60, %v7614_v60  ;;  %v1428_v5 = vmul.f32 %v7616_v63, %v7616_v63 }
  0xe5   : > { %v7630_v7 = vmul.f32 %v1592_v1, %v1591_v2 }
  0xe6   : > { %v1442_v19 = vsel %vm1066_vm2, %v1428_v5, 0.0 }
  0xe7   : > { %v1594_v21 = vmul.f32 %v7630_v7, %v7630_v7 }
  0xe9   : > { %1263 = vadd.xlane.f32.xlu2 %v1262_v9  ;;  %1260 = vadd.xlane.f32.xlu1 %v1259_v12  ;;  %v1448_v9 = vsel %vm1066_vm2, %v1430_v3, 0.0  ;;  %v1445_v12 = vsel %vm1066_vm2, %v1429_v4, 0.0  ;;  %v1596_v24 = vsel %vm1595_vm3, %v1594_v21, 0.0 }
  0xea   : > { %1257 = vadd.xlane.f32.xlu0 %v1256_v16  ;;  %v7637_v16 = vmul.f32 %v1416_v18, %v1415_v6  ;;  %v1451_v18 = vsel %vm1066_vm2, %v1431_v23, 0.0 }
  0xec   : > { %v1432_v22 = vmul.f32 %v7637_v16, %v7637_v16 }
  0xee   : > { %v1454_v31 = vsel %vm1066_vm2, %v1432_v22, 0.0 }
  0xf1   : > { %1272 = vadd.xlane.f32.xlu2 %v1271_v32  ;;  %1269 = vadd.xlane.f32.xlu1 %v1268_v33 }
  0xf2   : > { %1266 = vadd.xlane.f32.xlu0 %v1265_v34 }
  0xf9   : > { %1440 = vadd.xlane.f32.xlu2 %v1439_v49  ;;  %1437 = vadd.xlane.f32.xlu1 %v1436_v53 }
  0xfa   : > { %1434 = vadd.xlane.f32.xlu0 %v1433_v55 }
 0x101   : > { %1449 = vadd.xlane.f32.xlu2 %v1448_v9  ;;  %1446 = vadd.xlane.f32.xlu1 %v1445_v12 }
 0x102   : > { %1443 = vadd.xlane.f32.xlu0 %v1442_v19 }
 0x109   : > { %1597 = vadd.xlane.f32.xlu2 %v1596_v24  ;;  %1455 = vadd.xlane.f32.xlu1 %v1454_v31 }
 0x10a   : > { %1452 = vadd.xlane.f32.xlu0 %v1451_v18 }
 0x12c   : > { %v897_v32 = vpop.xlane.xlu2 %896  ;;  %v891_v33 = vpop.xlane.xlu1 %890 }
 0x12d   : > { %v911_v34 = vadd.f32 1e-08, %v897_v32  ;;  %v909_v40 = vadd.f32 1e-08, %v891_v33  ;;  %v885_v41 = vpop.xlane.xlu0 %884 }
 0x12e   : > { %v907_v42 = vadd.f32 1e-08, %v885_v41 }
 0x12f   : > { %6992 = vrsqrt.f32 %v911_v34  ;;  %vm961_vm4 = vweird.f32 %v911_v34  ;;  %vm941_vm6 = vweird.f32 %v909_v40 }
 0x130   : > { %6994 = vrsqrt.f32 %v909_v40  ;;  %vm921_vm8 = vweird.f32 %v907_v42 }
 0x131   : > { %6996 = vrsqrt.f32 %v907_v42 }
 0x134   : > { %v900_v43 = vpop.xlane.xlu2 %899  ;;  %v894_v45 = vpop.xlane.xlu1 %893 }
 0x135   : > { %v6993_v47 = vpop.eup %6992  ;;  %v7651_v48 = vadd.f32 1e-08, %v900_v43  ;;  %v7653_v49 = vadd.f32 1e-08, %v894_v45  ;;  %v888_v53 = vpop.xlane.xlu0 %887 }
 0x136   : > { %v6995_v52 = vpop.eup %6994  ;;  %v956_v54 = vmul.f32 %v6993_v47, %v911_v34  ;;  %v7655_v55 = vadd.f32 1e-08, %v888_v53  ;;  %vm962_vm5 = vweird.f32 %v6993_v47 }
 0x137   : > { %v6997_v1 = vpop.eup %6996  ;;  %v936_v2 = vmul.f32 %v6995_v52, %v909_v40  ;;  %6998 = vrsqrt.f32 %v7651_v48  ;;  %vm942_vm7 = vweird.f32 %v6995_v52  ;;  %vm963_vm10 = vmor %vm961_vm4, %vm962_vm5  ;;  %vm971_vm13 = vweird.f32 %v7651_v48 }
 0x138   : > { %v957_v3 = vmul.f32 %v6993_v47, %v956_v54  ;;  %v916_v4 = vmul.f32 %v6997_v1, %v907_v42  ;;  %7000 = vrsqrt.f32 %v7653_v49  ;;  %vm922_vm9 = vweird.f32 %v6997_v1  ;;  %vm943_vm11 = vmor %vm941_vm6, %vm942_vm7 }
 0x139   : > { %v937_v5 = vmul.f32 %v6995_v52, %v936_v2  ;;  %7002 = vrsqrt.f32 %v7655_v55  ;;  %vm923_vm12 = vmor %vm921_vm8, %vm922_vm9  ;;  %vm951_vm5 = vweird.f32 %v7653_v49  ;;  %vm931_vm6 = vweird.f32 %v7655_v55 }
 0x13a   : > { %v958_v6 = vmul.f32 0.5, %v957_v3  ;;  %v917_v8 = vmul.f32 %v6997_v1, %v916_v4 }
 0x13b   : > { %v938_v9 = vmul.f32 0.5, %v937_v5 }
 0x13c   : > { %v959_v12 = vsub.f32 1.5, %v958_v6  ;;  %v918_v19 = vmul.f32 0.5, %v917_v8  ;;  %v1069_v21 = vpop.xlane.xlu2 %1068  ;;  %v906_v22 = vpop.xlane.xlu1 %905 }
 0x13d   : > { %v7660_v23 = vpop.eup %6998  ;;  %v939_v24 = vsub.f32 1.5, %v938_v9  ;;  %v7662_v31 = vadd.f32 1e-08, %v1069_v21  ;;  %v903_v18 = vpop.xlane.xlu0 %902  ;;  %v7675_v2 = vadd.f32 1e-08, %v906_v22 }
 0x13e   : > { %v7664_v32 = vpop.eup %7000  ;;  %v960_v33 = vmul.f32 %v6993_v47, %v959_v12  ;;  %v919_v41 = vsub.f32 1.5, %v918_v19  ;;  %v966_v43 = vmul.f32 %v7660_v23, %v7651_v48  ;;  %vm972_vm14 = vweird.f32 %v7660_v23 }
 0x13f   : > { %v7668_v45 = vpop.eup %7002  ;;  %v940_v53 = vmul.f32 %v6995_v52, %v939_v24  ;;  %v946_v54 = vmul.f32 %v7664_v32, %v7653_v49  ;;  %7004 = vrsqrt.f32 %v7662_v31  ;;  %vm952_vm15 = vweird.f32 %v7664_v32  ;;  %vm973_vm4 = vmor %vm971_vm13, %vm972_vm14 }
 0x140   : > { %v964_v3 = vsel %vm963_vm10, %v6993_v47, %v960_v33  ;;  %v920_v4 = vmul.f32 %v6997_v1, %v919_v41  ;;  %v967_v5 = vmul.f32 %v7660_v23, %v966_v43  ;;  %v926_v6 = vmul.f32 %v7668_v45, %v7655_v55  ;;  %vm953_vm7 = vmor %vm951_vm5, %vm952_vm15 }
 0x141   : > { %v999_v34 = vmul.f32 %v964_v3, %v7377_v36  ;;  %v944_v8 = vsel %vm943_vm11, %v6995_v52, %v940_v53  ;;  %v947_v9 = vmul.f32 %v7664_v32, %v946_v54  ;;  %7006 = vrsqrt.f32 %v7675_v2 }
 0x142   : > { %v997_v12 = vmul.f32 %v944_v8, %v7379_v37  ;;  %v924_v47 = vsel %vm923_vm12, %v6997_v1, %v920_v4  ;;  %v968_v19 = vmul.f32 0.5, %v967_v5  ;;  %v927_v40 = vmul.f32 %v7668_v45, %v926_v6 }
 0x143   : > { %1007 = vst.msk [vmem:[#allocation2 + $0x20] sm:$0xff] %vm882_vm1, %v999_v34  ;;  %v995_v21 = vmul.f32 %v924_v47, %v7381_v38  ;;  %v948_v22 = vmul.f32 0.5, %v947_v9  ;;  %v7694_v37 = vadd.f32 1e-08, %v903_v18  ;;  %vm932_vm0 = vweird.f32 %v7668_v45 }
 0x144   : > { %1005 = vst.msk [vmem:[#allocation2 + $0x10] sm:$0xff] %vm882_vm1, %v997_v12  ;;  %v969_v36 = vsub.f32 1.5, %v968_v19  ;;  %v928_v42 = vmul.f32 0.5, %v927_v40  ;;  %v1078_v52 = vpop.xlane.xlu2 %1077  ;;  %v1075_v1 = vpop.xlane.xlu1 %1074  ;;  %vm933_vm8 = vmor %vm931_vm6, %vm932_vm0  ;;  %vm1105_vm10 = vweird.f32 %v7662_v31  ;;  %vm991_vm13 = vweird.f32 %v7675_v2 }
 0x145   : > { %v7005_v24 = vpop.eup %7004  ;;  %1003 = vst.msk [vmem:[#allocation2] sm:$0xff] %vm882_vm1, %v995_v21  ;;  %v949_v33 = vsub.f32 1.5, %v948_v22  ;;  %v7698_v38 = vadd.f32 1e-08, %v1078_v52  ;;  %v7700_v41 = vadd.f32 1e-08, %v1075_v1  ;;  %v1072_v43 = vpop.xlane.xlu0 %1071  ;;  %7008 = vrsqrt.f32 %v7694_v37 }
 0x146   : > { %v970_v53 = vmul.f32 %v7660_v23, %v969_v36  ;;  %v929_v54 = vsub.f32 1.5, %v928_v42  ;;  %v1100_v18 = vmul.f32 %v7005_v24, %v7662_v31  ;;  %v7726_v47 = vadd.f32 1e-08, %v1072_v43 }
 0x147   : > { %v950_v3 = vmul.f32 %v7664_v32, %v949_v33  ;;  %7010 = vrsqrt.f32 %v7698_v38  ;;  %v7007_v34 = vpop.eup %7006  ;;  %vm1106_vm9 = vweird.f32 %v7005_v24  ;;  %vm981_vm14 = vweird.f32 %v7694_v37 }
 0x148   : > { %v974_v4 = vsel %vm973_vm4, %v7660_v23, %v970_v53  ;;  %v930_v5 = vmul.f32 %v7668_v45, %v929_v54  ;;  %v1101_v6 = vmul.f32 %v7005_v24, %v1100_v18  ;;  %7012 = vrsqrt.f32 %v7700_v41  ;;  %vm1107_vm11 = vmor %vm1105_vm10, %vm1106_vm9 }
 0x149   : > { %v1000_v48 = vmul.f32 %v974_v4, %v7398_v46  ;;  %v954_v8 = vsel %vm953_vm7, %v7664_v32, %v950_v3  ;;  %v986_v9 = vmul.f32 %v7007_v34, %v7675_v2  ;;  %7014 = vrsqrt.f32 %v7726_v47 }
 0x14a   : > { %v998_v49 = vmul.f32 %v954_v8, %v7403_v50  ;;  %v934_v55 = vsel %vm933_vm8, %v7668_v45, %v930_v5  ;;  %v1102_v23 = vmul.f32 0.5, %v1101_v6  ;;  %vm992_vm12 = vweird.f32 %v7007_v34 }
 0x14b   : > { %1008 = vst.msk [vmem:[#allocation2 + $0x28] sm:$0xff] %vm882_vm1, %v1000_v48  ;;  %v996_v12 = vmul.f32 %v934_v55, %v7405_v51  ;;  %v987_v32 = vmul.f32 %v7007_v34, %v986_v9  ;;  %v7729_v21 = vpop.eup %7008  ;;  %vm993_vm15 = vmor %vm991_vm13, %vm992_vm12  ;;  %vm1135_vm7 = vweird.f32 %v7698_v38  ;;  %vm1125_vm8 = vweird.f32 %v7700_v41 }
 0x14c   : > { %1006 = vst.msk [vmem:[#allocation2 + $0x18] sm:$0xff] %vm882_vm1, %v998_v49  ;;  %v1103_v46 = vsub.f32 1.5, %v1102_v23  ;;  %v1087_v19 = vpop.xlane.xlu2 %1086  ;;  %v1084_v40 = vpop.xlane.xlu1 %1083  ;;  %v976_v52 = vmul.f32 %v7729_v21, %v7694_v37  ;;  %vm982_vm0 = vweird.f32 %v7729_v21  ;;  %vm1115_vm12 = vweird.f32 %v7726_v47 }
 0x14d   : > { %1004 = vst.msk [vmem:[#allocation2 + $0x8] sm:$0xff] %vm882_vm1, %v996_v12  ;;  %v7733_v50 = vadd.f32 1e-08, %v1087_v19  ;;  %v7735_v45 = vadd.f32 1e-08, %v1084_v40  ;;  %v1081_v51 = vpop.xlane.xlu0 %1080  ;;  %v7737_v22 = vpop.eup %7010  ;;  %v988_v42 = vmul.f32 0.5, %v987_v32  ;;  %vm983_vm6 = vmor %vm981_vm14, %vm982_vm0 }
 0x14e   : > { %v1104_v36 = vmul.f32 %v7005_v24, %v1103_v46  ;;  %v7742_v1 = vpop.eup %7012  ;;  %v1130_v33 = vmul.f32 %v7737_v22, %v7698_v38  ;;  %v977_v54 = vmul.f32 %v7729_v21, %v976_v52  ;;  %vm1136_vm4 = vweird.f32 %v7737_v22 }
 0x14f   : > { %7016 = vrsqrt.f32 %v7733_v50  ;;  %v989_v53 = vsub.f32 1.5, %v988_v42  ;;  %v1120_v31 = vmul.f32 %v7742_v1, %v7700_v41  ;;  %v7757_v6 = vpop.eup %7014  ;;  %v7763_v2 = vadd.f32 1e-08, %v1081_v51  ;;  %vm1137_vm9 = vmor %vm1135_vm7, %vm1136_vm4 }
 0x150   : > { %v1108_v43 = vsel %vm1107_vm11, %v7005_v24, %v1104_v36  ;;  %v1131_v3 = vmul.f32 %v7737_v22, %v1130_v33  ;;  %7018 = vrsqrt.f32 %v7735_v45  ;;  %v978_v5 = vmul.f32 0.5, %v977_v54 }
 0x151   : > { %v1179_v18 = vmul.f32 %v1108_v43, %v7422_v58  ;;  %v990_v4 = vmul.f32 %v7007_v34, %v989_v53  ;;  %v1121_v24 = vmul.f32 %v7742_v1, %v1120_v31  ;;  %v1110_v55 = vmul.f32 %v7757_v6, %v7726_v47 }
 0x152   : > { %v1132_v58 = vmul.f32 0.5, %v1131_v3  ;;  %v979_v8 = vsub.f32 1.5, %v978_v5  ;;  %vm1126_vm5 = vweird.f32 %v7742_v1  ;;  %7020 = vrsqrt.f32 %v7763_v2 }
 0x153   : > { %1187 = vst.msk [vmem:[#allocation3] sm:$0xff] %vm1066_vm2, %v1179_v18  ;;  %v994_v48 = vsel %vm993_vm15, %v7007_v34, %v990_v4  ;;  %v1122_v49 = vmul.f32 0.5, %v1121_v24  ;;  %v1111_v51 = vmul.f32 %v7757_v6, %v1110_v55  ;;  %vm1127_vm10 = vmor %vm1125_vm8, %vm1126_vm5  ;;  %vm1116_vm11 = vweird.f32 %v7757_v6 }
 0x154   : > { %v1255_v23 = vpop.xlane.xlu2 %1254  ;;  %v1252_v9 = vpop.xlane.xlu1 %1251  ;;  %v1002_v46 = vmul.f32 %v994_v48, %v7429_v62  ;;  %v1133_v32 = vsub.f32 1.5, %v1132_v58  ;;  %v980_v40 = vmul.f32 %v7729_v21, %v979_v8  ;;  %vm1165_vm14 = vweird.f32 %v7733_v50 }
 0x155   : > { %v7767_v12 = vpop.eup %7016  ;;  %v1090_v19 = vpop.xlane.xlu0 %1089  ;;  %v1123_v34 = vsub.f32 1.5, %v1122_v49  ;;  %v7786_v52 = vadd.f32 1e-08, %v1255_v23  ;;  %v1112_v53 = vmul.f32 0.5, %v1111_v51  ;;  %v7818_v47 = vadd.f32 1e-08, %v1252_v9 }
 0x156   : > { %v1160_v36 = vmul.f32 %v7767_v12, %v7733_v50  ;;  %v7776_v42 = vpop.eup %7018  ;;  %1010 = vst.msk [vmem:[#allocation2 + $0x38] sm:$0xff] %vm882_vm1, %v1002_v46  ;;  %v1134_v62 = vmul.f32 %v7737_v22, %v1133_v32  ;;  %v984_v33 = vsel %vm983_vm6, %v7729_v21, %v980_v40  ;;  %vm1166_vm13 = vweird.f32 %v7767_v12 }
 0x157   : > { %v1124_v43 = vmul.f32 %v7742_v1, %v1123_v34  ;;  %v1001_v37 = vmul.f32 %v984_v33, %v7432_v0  ;;  %v1150_v38 = vmul.f32 %v7776_v42, %v7735_v45  ;;  %v1113_v18 = vsub.f32 1.5, %v1112_v53  ;;  %vm1167_vm15 = vmor %vm1165_vm14, %vm1166_vm13 }
 0x158   : > { %v1161_v54 = vmul.f32 %v7767_v12, %v1160_v36  ;;  %v1138_v31 = vsel %vm1137_vm9, %v7737_v22, %v1134_v62  ;;  %v7802_v4 = vpop.eup %7020  ;;  %7022 = vrsqrt.f32 %v7786_v52  ;;  %v7820_v48 = vadd.f32 1e-08, %v1090_v19 }
 0x159   : > { %v1182_v41 = vmul.f32 %v1138_v31, %v7452_v10  ;;  %v1128_v21 = vsel %vm1127_vm10, %v7742_v1, %v1124_v43  ;;  %1009 = vst.msk [vmem:[#allocation2 + $0x30] sm:$0xff] %vm882_vm1, %v1001_v37  ;;  %v1151_v22 = vmul.f32 %v7776_v42, %v1150_v38  ;;  %v1114_v10 = vmul.f32 %v7757_v6, %v1113_v18  ;;  %vm1117_vm1 = vmor %vm1115_vm12, %vm1116_vm11 }
 0x15a   : > { %v1162_v3 = vmul.f32 0.5, %v1161_v54  ;;  %v1181_v0 = vmul.f32 %v1128_v21, %v7455_v11  ;;  %v1140_v1 = vmul.f32 %v7802_v4, %v7763_v2  ;;  %vm1156_vm0 = vweird.f32 %v7776_v42 }
 0x15b   : > { %1190 = vst.msk [vmem:[#allocation3 + $0x18] sm:$0xff] %vm1066_vm2, %v1182_v41  ;;  %v1152_v11 = vmul.f32 0.5, %v1151_v22  ;;  %v1118_v49 = vsel %vm1117_vm1, %v7757_v6, %v1114_v10  ;;  %7024 = vrsqrt.f32 %v7818_v47  ;;  %vm1155_vm4 = vweird.f32 %v7735_v45 }
 0x15c   : > { %v1163_v5 = vsub.f32 1.5, %v1162_v3  ;;  %v1264_v24 = vpop.xlane.xlu2 %1263  ;;  %v1261_v58 = vpop.xlane.xlu1 %1260  ;;  %1189 = vst.msk [vmem:[#allocation3 + $0x10] sm:$0xff] %vm1066_vm2, %v1181_v0  ;;  %v1141_v23 = vmul.f32 %v7802_v4, %v1140_v1  ;;  %v1180_v32 = vmul.f32 %v1118_v49, %v7459_v13  ;;  %7026 = vrsqrt.f32 %v7820_v48  ;;  %vm1157_vm5 = vmor %vm1155_vm4, %vm1156_vm0 }
 0x15d   : > { %v1258_v8 = vpop.xlane.xlu0 %1257  ;;  %v7825_v46 = vadd.f32 1e-08, %v1264_v24  ;;  %v1153_v50 = vsub.f32 1.5, %v1152_v11  ;;  %vm1146_vm6 = vweird.f32 %v7802_v4  ;;  %v7844_v51 = vadd.f32 1e-08, %v1261_v58 }
 0x15e   : > { %v1164_v55 = vmul.f32 %v7767_v12, %v1163_v5  ;;  %v1142_v19 = vmul.f32 0.5, %v1141_v23  ;;  %v7834_v6 = vpop.eup %7022  ;;  %1188 = vst.msk [vmem:[#allocation3 + $0x8] sm:$0xff] %vm1066_vm2, %v1180_v32  ;;  %vm1145_vm7 = vweird.f32 %v7763_v2  ;;  %vm1298_vm9 = vweird.f32 %v7786_v52 }
 0x15f   : > { %v1154_v13 = vmul.f32 %v7776_v42, %v1153_v50  ;;  %7028 = vrsqrt.f32 %v7825_v46  ;;  %vm1147_vm8 = vmor %vm1145_vm7, %vm1146_vm6  ;;  %vm1288_vm10 = vweird.f32 %v7818_v47  ;;  %vm1175_vm11 = vweird.f32 %v7820_v48 }
 0x160   : > { %v1168_v9 = vsel %vm1167_vm15, %v7767_v12, %v1164_v55  ;;  %v1143_v34 = vsub.f32 1.5, %v1142_v19  ;;  %v1293_v12 = vmul.f32 %v7834_v6, %v7786_v52  ;;  %7030 = vrsqrt.f32 %v7844_v51 }
 0x161   : > { %v1185_v40 = vmul.f32 %v1168_v9, %v7482_v25  ;;  %v1158_v36 = vsel %vm1157_vm5, %v7776_v42, %v1154_v13  ;;  %v7849_v25 = vadd.f32 1e-08, %v1258_v8  ;;  %v7855_v54 = vpop.eup %7024  ;;  %vm1299_vm12 = vweird.f32 %v7834_v6 }
 0x162   : > { %v1184_v45 = vmul.f32 %v1158_v36, %v7485_v26  ;;  %v1144_v62 = vmul.f32 %v7802_v4, %v1143_v34  ;;  %v1294_v33 = vmul.f32 %v7834_v6, %v1293_v12  ;;  %v7861_v37 = vpop.eup %7026  ;;  %v1283_v38 = vmul.f32 %v7855_v54, %v7818_v47  ;;  %vm1300_vm15 = vmor %vm1298_vm9, %vm1299_vm12 }
 0x163   : > { %1193 = vst.msk [vmem:[#allocation3 + $0x30] sm:$0xff] %vm1066_vm2, %v1185_v40  ;;  %7032 = vrsqrt.f32 %v7849_v25  ;;  %v1170_v18 = vmul.f32 %v7861_v37, %v7820_v48  ;;  %vm1289_vm13 = vweird.f32 %v7855_v54  ;;  %vm1328_vm1 = vweird.f32 %v7825_v46 }
 0x164   : > { %v1273_v43 = vpop.xlane.xlu2 %1272  ;;  %v1270_v53 = vpop.xlane.xlu1 %1269  ;;  %1192 = vst.msk [vmem:[#allocation3 + $0x28] sm:$0xff] %vm1066_vm2, %v1184_v45  ;;  %v1148_v26 = vsel %vm1147_vm8, %v7802_v4, %v1144_v62  ;;  %v1295_v31 = vmul.f32 0.5, %v1294_v33  ;;  %v1284_v4 = vmul.f32 %v7855_v54, %v1283_v38  ;;  %vm1176_vm14 = vweird.f32 %v7861_v37  ;;  %vm1290_vm6 = vmor %vm1288_vm10, %vm1289_vm13 }
 0x165   : > { %v7859_v2 = vadd.f32 1e-08, %v1273_v43  ;;  %v1267_v42 = vpop.xlane.xlu0 %1266  ;;  %v7868_v41 = vpop.eup %7028  ;;  %v1183_v21 = vmul.f32 %v1148_v26, %v7489_v28  ;;  %v1171_v28 = vmul.f32 %v7861_v37, %v1170_v18  ;;  %v7883_v22 = vadd.f32 1e-08, %v1270_v53  ;;  %vm1177_vm9 = vmor %vm1175_vm11, %vm1176_vm14 }
 0x166   : > { %v1296_v3 = vsub.f32 1.5, %v1295_v31  ;;  %v1323_v0 = vmul.f32 %v7868_v41, %v7825_v46  ;;  %v7885_v10 = vpop.eup %7030  ;;  %v1285_v1 = vmul.f32 0.5, %v1284_v4  ;;  %vm1329_vm0 = vweird.f32 %v7868_v41 }
 0x167   : > { %7034 = vrsqrt.f32 %v7859_v2  ;;  %1191 = vst.msk [vmem:[#allocation3 + $0x20] sm:$0xff] %vm1066_vm2, %v1183_v21  ;;  %v1172_v11 = vmul.f32 0.5, %v1171_v28  ;;  %v1313_v8 = vmul.f32 %v7885_v10, %v7844_v51  ;;  %vm1318_vm4 = vweird.f32 %v7844_v51  ;;  %vm1330_vm10 = vmor %vm1328_vm1, %vm1329_vm0 }
 0x168   : > { %v1297_v5 = vmul.f32 %v7834_v6, %v1296_v3  ;;  %v1324_v24 = vmul.f32 %v7868_v41, %v1323_v0  ;;  %7036 = vrsqrt.f32 %v7883_v22  ;;  %v1286_v55 = vsub.f32 1.5, %v1285_v1 }
 0x169   : > { %v7890_v58 = vpop.eup %7032  ;;  %vm1308_vm5 = vweird.f32 %v7849_v25  ;;  %v1173_v40 = vsub.f32 1.5, %v1172_v11  ;;  %v1314_v13 = vmul.f32 %v7885_v10, %v1313_v8  ;;  %v7907_v34 = vadd.f32 1e-08, %v1267_v42 }
 0x16a   : > { %v1301_v49 = vsel %vm1300_vm15, %v7834_v6, %v1297_v5  ;;  %v1325_v23 = vmul.f32 0.5, %v1324_v24  ;;  %v1303_v32 = vmul.f32 %v7890_v58, %v7849_v25  ;;  %v1287_v6 = vmul.f32 %v7855_v54, %v1286_v55 }
 0x16b   : > { %v1363_v19 = vmul.f32 %v1301_v49, %v7503_v35  ;;  %v1174_v35 = vmul.f32 %v7861_v37, %v1173_v40  ;;  %v1315_v33 = vmul.f32 0.5, %v1314_v13  ;;  %vm1319_vm7 = vweird.f32 %v7885_v10 }
 0x16c   : > { %v1441_v52 = vpop.xlane.xlu2 %1440  ;;  %v1438_v50 = vpop.xlane.xlu1 %1437  ;;  %v1326_v36 = vsub.f32 1.5, %v1325_v23  ;;  %v1304_v45 = vmul.f32 %v7890_v58, %v1303_v32  ;;  %vm1309_vm8 = vweird.f32 %v7890_v58  ;;  %v1291_v43 = vsel %vm1290_vm6, %v7855_v54, %v1287_v6  ;;  %vm1320_vm12 = vmor %vm1318_vm4, %vm1319_vm7 }
 0x16d   : > { %v7903_v9 = vpop.eup %7034  ;;  %v1435_v12 = vpop.xlane.xlu0 %1434  ;;  %1371 = vst.msk [vmem:[#allocation4 + $0x8] sm:$0xff] %vm1066_vm2, %v1363_v19  ;;  %v1362_v31 = vmul.f32 %v1291_v43, %v7505_v39  ;;  %v1178_v38 = vsel %vm1177_vm9, %v7861_v37, %v1174_v35  ;;  %v1316_v54 = vsub.f32 1.5, %v1315_v33  ;;  %7038 = vrsqrt.f32 %v7907_v34  ;;  %vm1310_vm1 = vmor %vm1308_vm5, %vm1309_vm8 }
 0x16e   : > { %v1353_v62 = vmul.f32 %v7903_v9, %v7859_v2  ;;  %v1327_v53 = vmul.f32 %v7868_v41, %v1326_v36  ;;  %v1305_v42 = vmul.f32 0.5, %v1304_v45  ;;  %v7928_v26 = vpop.eup %7036  ;;  %v1186_v48 = vmul.f32 %v1178_v38, %v7514_v44 }
 0x16f   : > { %1370 = vst.msk [vmem:[#allocation4] sm:$0xff] %vm1066_vm2, %v1362_v31  ;;  %v1317_v37 = vmul.f32 %v7885_v10, %v1316_v54  ;;  %vm1358_vm11 = vweird.f32 %v7859_v2  ;;  %v1343_v46 = vmul.f32 %v7928_v26, %v7883_v22  ;;  %vm1359_vm13 = vweird.f32 %v7903_v9 }
 0x170   : > { %v1354_v47 = vmul.f32 %v7903_v9, %v1353_v62  ;;  %v1331_v21 = vsel %vm1330_vm10, %v7868_v41, %v1327_v53  ;;  %v1306_v18 = vsub.f32 1.5, %v1305_v42  ;;  %1194 = vst.msk [vmem:[#allocation3 + $0x38] sm:$0xff] %vm1066_vm2, %v1186_v48  ;;  %v7961_v5 = vadd.f32 1e-08, %v1438_v50  ;;  %vm1360_vm14 = vmor %vm1358_vm11, %vm1359_vm13 }
 0x171   : > { %v1366_v39 = vmul.f32 %v1331_v21, %v7533_v57  ;;  %v7952_v57 = vadd.f32 1e-08, %v1441_v52  ;;  %v1321_v28 = vsel %vm1320_vm12, %v7885_v10, %v1317_v37  ;;  %v1344_v51 = vmul.f32 %v7928_v26, %v1343_v46 }
 0x172   : > { %v1355_v3 = vmul.f32 0.5, %v1354_v47  ;;  %v1307_v44 = vmul.f32 %v7890_v58, %v1306_v18  ;;  %v7963_v1 = vadd.f32 1e-08, %v1435_v12  ;;  %v1365_v24 = vmul.f32 %v1321_v28, %v7535_v59 }
 0x173   : > { %1374 = vst.msk [vmem:[#allocation4 + $0x20] sm:$0xff] %vm1066_vm2, %v1366_v39  ;;  %7040 = vrsqrt.f32 %v7952_v57  ;;  %v7039_v49 = vpop.eup %7038  ;;  %v1345_v25 = vmul.f32 0.5, %v1344_v51  ;;  %vm1349_vm15 = vweird.f32 %v7928_v26  ;;  %vm1348_vm0 = vweird.f32 %v7883_v22 }
 0x174   : > { %v1356_v41 = vsub.f32 1.5, %v1355_v3  ;;  %v1450_v4 = vpop.xlane.xlu2 %1449  ;;  %v1447_v0 = vpop.xlane.xlu1 %1446  ;;  %v1311_v11 = vsel %vm1310_vm1, %v7890_v58, %v1307_v44  ;;  %7042 = vrsqrt.f32 %v7961_v5  ;;  %1373 = vst.msk [vmem:[#allocation4 + $0x18] sm:$0xff] %vm1066_vm2, %v1365_v24  ;;  %v1333_v58 = vmul.f32 %v7039_v49, %v7907_v34  ;;  %vm1350_vm4 = vmor %vm1348_vm0, %vm1349_vm15 }
 0x175   : > { %v1444_v10 = vpop.xlane.xlu0 %1443  ;;  %v1364_v55 = vmul.f32 %v1311_v11, %v7538_v61  ;;  %v1346_v32 = vsub.f32 1.5, %v1345_v25  ;;  %7044 = vrsqrt.f32 %v7963_v1  ;;  %v7982_v2 = vadd.f32 1e-08, %v1450_v4 }
 0x176   : > { %v1357_v8 = vmul.f32 %v7903_v9, %v1356_v41  ;;  %v1334_v61 = vmul.f32 %v7039_v49, %v1333_v58  ;;  %v7984_v52 = vadd.f32 1e-08, %v1447_v0  ;;  %vm1338_vm5 = vweird.f32 %v7907_v34 }
 0x177   : > { %1372 = vst.msk [vmem:[#allocation4 + $0x10] sm:$0xff] %vm1066_vm2, %v1364_v55  ;;  %v1347_v50 = vmul.f32 %v7928_v26, %v1346_v32  ;;  %7046 = vrsqrt.f32 %v7982_v2  ;;  %vm1339_vm6 = vweird.f32 %v7039_v49  ;;  %vm1491_vm7 = vweird.f32 %v7952_v57 }
 0x178   : > { %v1361_v59 = vsel %vm1360_vm14, %v7903_v9, %v1357_v8  ;;  %v7989_v9 = vadd.f32 1e-08, %v1444_v10  ;;  %7048 = vrsqrt.f32 %v7984_v52  ;;  %vm1481_vm8 = vweird.f32 %v7961_v5  ;;  %vm1340_vm9 = vmor %vm1338_vm5, %vm1339_vm6 }
 0x179   : > { %v1369_v23 = vmul.f32 %v1361_v59, %v7560_v14  ;;  %v7991_v19 = vpop.eup %7040  ;;  %v1335_v14 = vmul.f32 0.5, %v1334_v61  ;;  %v1351_v12 = vsel %vm1350_vm4, %v7928_v26, %v1347_v50  ;;  %vm1471_vm10 = vweird.f32 %v7963_v1 }
 0x17a   : > { %v7043_v13 = vpop.eup %7042  ;;  %v1486_v6 = vmul.f32 %v7991_v19, %v7952_v57  ;;  %v1368_v22 = vmul.f32 %v1351_v12, %v7562_v15  ;;  %7050 = vrsqrt.f32 %v7989_v9  ;;  %vm1492_vm11 = vweird.f32 %v7991_v19 }
 0x17b   : > { %1377 = vst.msk [vmem:[#allocation4 + $0x38] sm:$0xff] %vm1066_vm2, %v1369_v23  ;;  %v1336_v36 = vsub.f32 1.5, %v1335_v14  ;;  %v1476_v45 = vmul.f32 %v7043_v13, %v7961_v5  ;;  %v8001_v35 = vpop.eup %7044  ;;  %vm1482_vm12 = vweird.f32 %v7043_v13  ;;  %vm1493_vm1 = vmor %vm1491_vm7, %vm1492_vm11  ;;  %vm1521_vm4 = vweird.f32 %v7982_v2 }
 0x17c   : > { %v1598_v40 = vpop.xlane.xlu2 %1597  ;;  %v1456_v62 = vpop.xlane.xlu1 %1455  ;;  %v1487_v33 = vmul.f32 %v7991_v19, %v1486_v6  ;;  %1376 = vst.msk [vmem:[#allocation4 + $0x30] sm:$0xff] %vm1066_vm2, %v1368_v22  ;;  %v1466_v15 = vmul.f32 %v8001_v35, %v7963_v1  ;;  %vm1472_vm13 = vweird.f32 %v8001_v35  ;;  %vm1483_vm14 = vmor %vm1481_vm8, %vm1482_vm12  ;;  %vm1511_vm7 = vweird.f32 %v7984_v52 }
 0x17d   : > { %v8006_v43 = vadd.f32 1e-08, %v1598_v40  ;;  %v1337_v53 = vmul.f32 %v7039_v49, %v1336_v36  ;;  %v1477_v42 = vmul.f32 %v7043_v13, %v1476_v45  ;;  %v1453_v47 = vpop.xlane.xlu0 %1452  ;;  %v8016_v31 = vadd.f32 1e-08, %v1456_v62  ;;  %v8018_v38 = vpop.eup %7046  ;;  %vm1473_vm0 = vmor %vm1471_vm10, %vm1472_vm13 }
 0x17e   : > { %v1488_v26 = vmul.f32 0.5, %v1487_v33  ;;  %v1467_v21 = vmul.f32 %v8001_v35, %v1466_v15  ;;  %v8022_v18 = vpop.eup %7048  ;;  %v1516_v39 = vmul.f32 %v8018_v38, %v7982_v2  ;;  %v8027_v37 = vadd.f32 1e-08, %v1453_v47 }
 0x17f   : > { %7052 = vrsqrt.f32 %v8006_v43  ;;  %v1341_v54 = vsel %vm1340_vm9, %v7039_v49, %v1337_v53  ;;  %v1478_v48 = vmul.f32 0.5, %v1477_v42  ;;  %v1506_v41 = vmul.f32 %v8022_v18, %v7984_v52 }
 0x180   : > { %v1367_v34 = vmul.f32 %v1341_v54, %v7565_v17  ;;  %v1489_v3 = vsub.f32 1.5, %v1488_v26  ;;  %v1468_v44 = vmul.f32 0.5, %v1467_v21  ;;  %v8031_v4 = vpop.eup %7050  ;;  %v1517_v17 = vmul.f32 %v8018_v38, %v1516_v39 }
 0x181   : > { %v1479_v46 = vsub.f32 1.5, %v1478_v48  ;;  %7054 = vrsqrt.f32 %v8016_v31  ;;  %v1507_v24 = vmul.f32 %v8022_v18, %v1506_v41  ;;  %v1496_v11 = vmul.f32 %v8031_v4, %v7989_v9 }
 0x182   : > { %1375 = vst.msk [vmem:[#allocation4 + $0x28] sm:$0xff] %vm1066_vm2, %v1367_v34  ;;  %v1490_v0 = vmul.f32 %v7991_v19, %v1489_v3  ;;  %v1469_v51 = vsub.f32 1.5, %v1468_v44  ;;  %v1518_v49 = vmul.f32 0.5, %v1517_v17  ;;  %vm1522_vm15 = vweird.f32 %v8018_v38 }
 0x183   : > { %v1480_v28 = vmul.f32 %v7043_v13, %v1479_v46  ;;  %7056 = vrsqrt.f32 %v8027_v37  ;;  %v1508_v59 = vmul.f32 0.5, %v1507_v24  ;;  %v1497_v23 = vmul.f32 %v8031_v4, %v1496_v11  ;;  %vm1523_vm6 = vmor %vm1521_vm4, %vm1522_vm15 }
 0x184   : > { %v1494_v10 = vsel %vm1493_vm1, %v7991_v19, %v1490_v0  ;;  %v1470_v25 = vmul.f32 %v8001_v35, %v1469_v51  ;;  %v1519_v5 = vsub.f32 1.5, %v1518_v49  ;;  %vm1512_vm5 = vweird.f32 %v8022_v18 }
 0x185   : > { %v8045_v8 = vpop.eup %7052  ;;  %v1547_v57 = vmul.f32 %v1494_v10, %v7582_v27  ;;  %v1484_v55 = vsel %vm1483_vm14, %v7043_v13, %v1480_v28  ;;  %v1509_v61 = vsub.f32 1.5, %v1508_v59  ;;  %v1498_v19 = vmul.f32 0.5, %v1497_v23  ;;  %vm1513_vm9 = vmor %vm1511_vm7, %vm1512_vm5 }
 0x186   : > { %v1546_v58 = vmul.f32 %v1484_v55, %v7584_v29  ;;  %v1601_v32 = vmul.f32 %v8045_v8, %v8006_v43  ;;  %v1474_v27 = vsel %vm1473_vm0, %v8001_v35, %v1470_v25  ;;  %v1520_v50 = vmul.f32 %v8018_v38, %v1519_v5 }
 0x187   : > { %1555 = vst.msk [vmem:[#allocation5 + $0x10] sm:$0xff] %vm1066_vm2, %v1547_v57  ;;  %v7055_v29 = vpop.eup %7054  ;;  %v1545_v1 = vmul.f32 %v1474_v27, %v7586_v30  ;;  %v1510_v40 = vmul.f32 %v8022_v18, %v1509_v61  ;;  %vm1501_vm8 = vweird.f32 %v7989_v9  ;;  %v1499_v12 = vsub.f32 1.5, %v1498_v19 }
 0x188   : > { %1554 = vst.msk [vmem:[#allocation5 + $0x8] sm:$0xff] %vm1066_vm2, %v1546_v58  ;;  %v1602_v14 = vmul.f32 %v8045_v8, %v1601_v32  ;;  %v1536_v2 = vmul.f32 %v7055_v29, %v8016_v31  ;;  %v1524_v30 = vsel %vm1523_vm6, %v8018_v38, %v1520_v50  ;;  %vm1502_vm10 = vweird.f32 %v8031_v4 }
 0x189   : > { %v7057_v13 = vpop.eup %7056  ;;  %1553 = vst.msk [vmem:[#allocation5] sm:$0xff] %vm1066_vm2, %v1545_v1  ;;  %v1550_v22 = vmul.f32 %v1524_v30, %v7612_v56  ;;  %v1514_v52 = vsel %vm1513_vm9, %v8022_v18, %v1510_v40  ;;  %v1500_v35 = vmul.f32 %v8031_v4, %v1499_v12  ;;  %vm1607_vm11 = vweird.f32 %v8045_v8  ;;  %vm1503_vm12 = vmor %vm1501_vm8, %vm1502_vm10 }
 0x18a   : > { %v1603_v6 = vmul.f32 0.5, %v1602_v14  ;;  %v1537_v36 = vmul.f32 %v7055_v29, %v1536_v2  ;;  %v1526_v45 = vmul.f32 %v7057_v13, %v8027_v37  ;;  %v1549_v62 = vmul.f32 %v1514_v52, %v7614_v60 }
 0x18b   : > { %1558 = vst.msk [vmem:[#allocation5 + $0x28] sm:$0xff] %vm1066_vm2, %v1550_v22  ;;  %v1504_v56 = vsel %vm1503_vm12, %v8031_v4, %v1500_v35  ;;  %vm1606_vm13 = vweird.f32 %v8006_v43  ;;  %vm1542_vm14 = vweird.f32 %v7055_v29  ;;  %vm1541_vm15 = vweird.f32 %v8016_v31 }
 0x18c   : > { %v1604_v33 = vsub.f32 1.5, %v1603_v6  ;;  %v1538_v53 = vmul.f32 0.5, %v1537_v36  ;;  %v1527_v42 = vmul.f32 %v7057_v13, %v1526_v45  ;;  %1557 = vst.msk [vmem:[#allocation5 + $0x20] sm:$0xff] %vm1066_vm2, %v1549_v62  ;;  %v1548_v60 = vmul.f32 %v1504_v56, %v7616_v63  ;;  %vm1608_vm1 = vmor %vm1606_vm13, %vm1607_vm11 }
 0x18d   : > { %vm1532_vm0 = vweird.f32 %v7057_v13  ;;  %vm1543_vm4 = vmor %vm1541_vm15, %vm1542_vm14  ;;  %vm1531_vm5 = vweird.f32 %v8027_v37 }
 0x18e   : > { %v1605_v15 = vmul.f32 %v8045_v8, %v1604_v33  ;;  %v1539_v47 = vsub.f32 1.5, %v1538_v53  ;;  %v1528_v26 = vmul.f32 0.5, %v1527_v42  ;;  %1556 = vst.msk [vmem:[#allocation5 + $0x18] sm:$0xff] %vm1066_vm2, %v1548_v60  ;;  %vm1533_vm6 = vmor %vm1531_vm5, %vm1532_vm0 }
 0x190   : > { %v1609_v38 = vsel %vm1608_vm1, %v8045_v8, %v1605_v15  ;;  %v1540_v54 = vmul.f32 %v7055_v29, %v1539_v47  ;;  %v1529_v48 = vsub.f32 1.5, %v1528_v26 }
 0x191   : > { %v1610_v9 = vmul.f32 %v1609_v38, %v7630_v7 }
 0x192   : > { %v1544_v43 = vsel %vm1543_vm4, %v7055_v29, %v1540_v54  ;;  %v1530_v63 = vmul.f32 %v7057_v13, %v1529_v48 }
 0x193   : > { %1611 = vst.msk [vmem:[#allocation6] sm:$0x7] %vm1595_vm3, %v1610_v9  ;;  %v1552_v21 = vmul.f32 %v1544_v43, %v7637_v16 }
 0x194   : > { %v1534_v18 = vsel %vm1533_vm6, %v7057_v13, %v1530_v63 }
 0x195   : > { %1560 = vst.msk [vmem:[#allocation5 + $0x38] sm:$0xff] %vm1066_vm2, %v1552_v21  ;;  %v1551_v31 = vmul.f32 %v1534_v18, %v7640_v20 }
 0x197   : > { %1559 = vst.msk [vmem:[#allocation5 + $0x30] sm:$0xff] %vm1066_vm2, %v1551_v31 }
 0x198 PF: > { %s12223_s28 = sld [smem:[#allocation39_spill]]  ;;  %v12139_v3 = vmov 0   ;;  %v1612_v14 = vld [vmem:[%s7290_s24] sm:$0xff] }
 0x199   : > { %7060 = vset.pattern.permute.xlu2 %v12139_v3  ;;  %7059 = vset.pattern.permute.xlu1 %v12139_v3  ;;  %s12224_s1 = sld [smem:[#allocation37_spill]]  ;;  %v1644_v30 = vperm.slane %v1612_v14, 0  ;;  %v1645_v12 = vperm.slane %v1612_v14, 2  ;;  %v1646_v6 = vperm.slane %v1612_v14, 4  ;;  %v1647_v22 = vperm.slane %v1612_v14, 6 }
 0x19a   : > { %7058 = vset.pattern.permute.xlu0 %v12139_v3  ;;  %s12225_s30 = sld [smem:[#allocation38_spill]]  ;;  %v1706_v33 = vperm.slane %v1612_v14, 1  ;;  %v1707_v53 = vperm.slane %v1612_v14, 3  ;;  %v1708_v42 = vperm.slane %v1612_v14, 5  ;;  %v1709_v56 = vperm.slane %v1612_v14, 7 }
 0x19b   : > { %s12227_s2 = sld [smem:[#allocation45_spill]]  ;;  %v8203_v52 = vperm.slane %v1644_v30, 0  ;;  %v8205_v36 = vperm.slane %v1645_v12, 0  ;;  %v8207_v45 = vperm.slane %v1646_v6, 0  ;;  %v8209_v62 = vperm.slane %v1647_v22, 0 }
 0x19c   : > { %s12229_s29 = sld [smem:[#allocation47_spill]]  ;;  %v8224_v48 = vperm.slane %v1706_v33, 1  ;;  %v8226_v43 = vperm.slane %v1707_v53, 1  ;;  %v8228_v63 = vperm.slane %v1708_v42, 1  ;;  %v8230_v21 = vperm.slane %v1709_v56, 1 }
 0x19d   : > { %s12231_s27 = sld [smem:[#allocation48_spill]] }
 0x19e   : > { %v1617_v7 = vld [vmem:[%s12223_s28 + $0x20] sm:$0xff]  ;;  %v1616_v34 = vld [vmem:[%s12223_s28 + $0x18] sm:$0xff]  ;;  %v1615_v16 = vld [vmem:[%s12223_s28 + $0x10] sm:$0xff]  ;;  %s12233_s8 = sld [smem:[#allocation50_spill]] }
 0x19f   : > { %1635 = vperm.xlu1 %7059, %v1616_v34   ;;  %1640 = vperm.xlu0 %7058, %v1617_v7   ;;  %v1679_v20 = vsub.f32 1.0, %v1616_v34  ;;  %v1680_v39 = vsub.f32 1.0, %v1617_v7  ;;  %v1678_v37 = vsub.f32 1.0, %v1615_v16  ;;  %v1614_v46 = vld [vmem:[%s12223_s28 + $0x8] sm:$0xff]  ;;  %v1762_v41 = vld [vmem:[%s12224_s1 + $0x20] sm:$0xff]  ;;  %v1761_v0 = vld [vmem:[%s12224_s1 + $0x18] sm:$0xff] }
 0x1a0   : > { %1630 = vperm.xlu2 %7060, %v1615_v16   ;;  %v1677_v44 = vsub.f32 1.0, %v1614_v46  ;;  %s12226_s9 = smov %s12225_s30  ;;  %v1812_v4 = vld [vmem:[%s12225_s30 + $0x20] sm:$0xff]  ;;  %v1760_v51 = vld [vmem:[%s12224_s1 + $0x10] sm:$0xff]  ;;  %v1759_v10 = vld [vmem:[%s12224_s1 + $0x8] sm:$0xff] }
 0x1a1   : > { %v1613_v17 = vld [vmem:[%s12223_s28] sm:$0xff]  ;;  %v1811_v24 = vld [vmem:[%s12226_s9 + $0x18] sm:$0xff]  ;;  %v1810_v11 = vld [vmem:[%s12226_s9 + $0x10] sm:$0xff]  ;;  %s12228_s3 = smov %s12227_s2 }
 0x1a2   : > { %v1676_v28 = vsub.f32 1.0, %v1613_v17  ;;  %v1758_v8 = vld [vmem:[%s12224_s1] sm:$0xff]  ;;  %v4973_v57 = vld [vmem:[%s12227_s2 + $0x38] sm:$0xff]  ;;  %v1809_v55 = vld [vmem:[%s12226_s9 + $0x8] sm:$0xff]  ;;  %s12230_s5 = smov %s12229_s29  ;;  %s12232_s1 = sld [smem:[#allocation49_spill]] }
 0x1a3   : > { %v1808_v49 = vld [vmem:[%s12226_s9] sm:$0xff]  ;;  %v4971_v25 = vld [vmem:[%s12228_s3 + $0x28] sm:$0xff]  ;;  %v4972_v58 = vld [vmem:[%s12228_s3 + $0x30] sm:$0xff] }
 0x1a4   : > { %v4970_v59 = vld [vmem:[%s12228_s3 + $0x20] sm:$0xff]  ;;  %v4968_v5 = vld [vmem:[%s12228_s3 + $0x10] sm:$0xff]  ;;  %v4967_v23 = vld [vmem:[%s12228_s3 + $0x8] sm:$0xff] }
 0x1a5   : > { %v4969_v32 = vld [vmem:[%s12228_s3 + $0x18] sm:$0xff]  ;;  %v5345_v61 = vld [vmem:[%s12230_s5 + $0x30] sm:$0xff]  ;;  %v4966_v29 = vld [vmem:[%s12228_s3] sm:$0xff] }
 0x1a6   : > { %v5346_v27 = vld [vmem:[%s12229_s29 + $0x38] sm:$0xff]  ;;  %v5343_v1 = vld [vmem:[%s12230_s5 + $0x20] sm:$0xff]  ;;  %v5344_v19 = vld [vmem:[%s12230_s5 + $0x28] sm:$0xff] }
 0x1a7   : > { %1698 = vperm.xlu1 %7059, %v1679_v20   ;;  %1703 = vperm.xlu0 %7058, %v1680_v39   ;;  %v5342_v50 = vld [vmem:[%s12230_s5 + $0x18] sm:$0xff]  ;;  %v5340_v40 = vld [vmem:[%s12230_s5 + $0x8] sm:$0xff]  ;;  %v5339_v2 = vld [vmem:[%s12230_s5] sm:$0xff] }
 0x1a8   : > { %1693 = vperm.xlu2 %7060, %v1678_v37   ;;  %v5341_v13 = vld [vmem:[%s12230_s5 + $0x10] sm:$0xff]  ;;  %v5717_v9 = vld [vmem:[%s12231_s27 + $0x28] sm:$0xff]  ;;  %v5719_v54 = vld [vmem:[%s12231_s27 + $0x38] sm:$0xff] }
 0x1a9   : > { %v5718_v38 = vld [vmem:[%s12231_s27 + $0x30] sm:$0xff]  ;;  %v5715_v20 = vld [vmem:[%s12231_s27 + $0x18] sm:$0xff]  ;;  %v5716_v37 = vld [vmem:[%s12231_s27 + $0x20] sm:$0xff] }
 0x1aa   : > { %v5714_v39 = vld [vmem:[%s12231_s27 + $0x10] sm:$0xff] }
 0x1ab   : > { %v6086_v33 = vld [vmem:[%s12232_s1 + $0x10] sm:$0xff] }
 0x1af   : > { %1625 = vperm.xlu1 %7059, %v1614_v46   ;;  %1785 = vperm.xlu0 %7058, %v1762_v41  }
 0x1b0   : > { %1688 = vperm.xlu2 %7060, %v1677_v44  }
 0x1b7   : > { %1835 = vperm.xlu1 %7059, %v1812_v4   ;;  %1780 = vperm.xlu0 %7058, %v1761_v0  }
 0x1b8   : > { %1620 = vperm.xlu2 %7060, %v1613_v17  }
 0x1bf   : > { %1775 = vperm.xlu1 %7059, %v1760_v51   ;;  %1683 = vperm.xlu0 %7058, %v1676_v28  }
 0x1c0   : > { %1830 = vperm.xlu2 %7060, %v1811_v24  }
 0x1c7   : > { %1825 = vperm.xlu1 %7059, %v1810_v11   ;;  %1770 = vperm.xlu0 %7058, %v1759_v10   ;;  %v5712_v11 = vld [vmem:[%s12231_s27] sm:$0xff]  ;;  %v5713_v10 = vld [vmem:[%s12231_s27 + $0x8] sm:$0xff] }
 0x1c8   : > { %1765 = vperm.xlu2 %7060, %v1758_v8   ;;  %v6091_v8 = vld [vmem:[%s12232_s1 + $0x38] sm:$0xff] }
 0x1cf   : > { %1815 = vperm.xlu1 %7059, %v1808_v49   ;;  %1820 = vperm.xlu0 %7058, %v1809_v55  }
 0x1d0   : > { %5011 = vperm.xlu2 %7060, %v4973_v57  }
 0x1d7   : > { %5001 = vperm.xlu1 %7059, %v4971_v25   ;;  %5006 = vperm.xlu0 %7058, %v4972_v58  }
 0x1d8   : > { %4996 = vperm.xlu2 %7060, %v4970_v59  }
 0x1df   : > { %4986 = vperm.xlu1 %7059, %v4968_v5   ;;  %4991 = vperm.xlu0 %7058, %v4969_v32  }
 0x1e0   : > { %4981 = vperm.xlu2 %7060, %v4967_v23  }
 0x1e7   : > { %5384 = vperm.xlu1 %7059, %v5346_v27   ;;  %4976 = vperm.xlu0 %7058, %v4966_v29  }
 0x1e8   : > { %5379 = vperm.xlu2 %7060, %v5345_v61  }
 0x1ef   : > { %5369 = vperm.xlu1 %7059, %v5343_v1   ;;  %5374 = vperm.xlu0 %7058, %v5344_v19   ;;  %v6089_v1 = vld [vmem:[%s12232_s1 + $0x28] sm:$0xff]  ;;  %v6090_v19 = vld [vmem:[%s12232_s1 + $0x30] sm:$0xff] }
 0x1f0   : > { %5364 = vperm.xlu2 %7060, %v5342_v50   ;;  %v6088_v50 = vld [vmem:[%s12232_s1 + $0x20] sm:$0xff] }
 0x1f7   : > { %5354 = vperm.xlu1 %7059, %v5340_v40   ;;  %5359 = vperm.xlu0 %7058, %v5341_v13  }
 0x1f8   : > { %5349 = vperm.xlu2 %7060, %v5339_v2  }
 0x1fa   : > { %v1631_v35 = vpop.permute.xlu2 %1630 }
 0x1fb   : > { %v1664_v15 = vmul.f32 %v8203_v52, %v1631_v35  ;;  %v1665_v60 = vmul.f32 %v8205_v36, %v1631_v35  ;;  %v1666_v47 = vmul.f32 %v8207_v45, %v1631_v35  ;;  %v1667_v26 = vmul.f32 %v8209_v62, %v1631_v35 }
 0x1ff   : > { %5752 = vperm.xlu1 %7059, %v5718_v38   ;;  %5757 = vperm.xlu0 %7058, %v5719_v54  }
 0x200   : > { %5747 = vperm.xlu2 %7060, %v5717_v9  }
 0x202   : > { %v1694_v18 = vpop.permute.xlu2 %1693 }
 0x203   : > { %v1726_v31 = vmul.f32 %v8224_v48, %v1694_v18  ;;  %v1727_v7 = vmul.f32 %v8226_v43, %v1694_v18  ;;  %v1728_v34 = vmul.f32 %v8228_v63, %v1694_v18  ;;  %v1729_v16 = vmul.f32 %v8230_v21, %v1694_v18 }
 0x205   : > { %v8245_v46 = vadd.f32 %v1726_v31, %v1664_v15  ;;  %v8247_v44 = vadd.f32 %v1727_v7, %v1665_v60  ;;  %v8249_v41 = vadd.f32 %v1728_v34, %v1666_v47  ;;  %v8251_v4 = vadd.f32 %v1729_v16, %v1667_v26  ;;  %v6085_v60 = vld [vmem:[%s12232_s1 + $0x8] sm:$0xff]  ;;  %v6087_v47 = vld [vmem:[%s12232_s1 + $0x18] sm:$0xff] }
 0x207   : > { %5737 = vperm.xlu1 %7059, %v5715_v20   ;;  %5742 = vperm.xlu0 %7058, %v5716_v37   ;;  %v6449_v20 = vld [vmem:[%s12233_s8] sm:$0x7] }
 0x208   : > { %5732 = vperm.xlu2 %7060, %v5714_v39  }
 0x20a   : > { %v1689_v0 = vpop.permute.xlu2 %1688 }
 0x20b   : > { %v1722_v17 = vmul.f32 %v8224_v48, %v1689_v0  ;;  %v1723_v28 = vmul.f32 %v8226_v43, %v1689_v0  ;;  %v1724_v51 = vmul.f32 %v8228_v63, %v1689_v0  ;;  %v1725_v24 = vmul.f32 %v8230_v21, %v1689_v0 }
 0x20f   : > { %5722 = vperm.xlu1 %7059, %v5712_v11   ;;  %5727 = vperm.xlu0 %7058, %v5713_v10  }
 0x210   : > { %6129 = vperm.xlu2 %7060, %v6091_v8   ;;  %v6084_v8 = vld [vmem:[%s12232_s1] sm:$0xff] }
 0x211   : > { %v1636_v49 = vpop.permute.xlu1 %1635  ;;  %v8266_v57 = vpop.permute.xlu0 %1640 }
 0x212   : > { %v1668_v55 = vmul.f32 %v8203_v52, %v1636_v49  ;;  %v1669_v25 = vmul.f32 %v8205_v36, %v1636_v49  ;;  %v1670_v59 = vmul.f32 %v8207_v45, %v1636_v49  ;;  %v1671_v58 = vmul.f32 %v8209_v62, %v1636_v49  ;;  %v1621_v23 = vpop.permute.xlu2 %1620 }
 0x213   : > { %v1675_v5 = vmul.f32 %v8209_v62, %v8266_v57  ;;  %v8275_v32 = vmul.f32 %v8203_v52, %v1621_v23  ;;  %v8278_v27 = vmul.f32 %v8205_v36, %v1621_v23  ;;  %v8281_v61 = vmul.f32 %v8207_v45, %v1621_v23 }
 0x214   : > { %v8284_v29 = vmul.f32 %v8209_v62, %v1621_v23  ;;  %v1674_v6 = vmul.f32 %v8207_v45, %v8266_v57 }
 0x217   : > { %6119 = vperm.xlu1 %7059, %v6089_v1   ;;  %6124 = vperm.xlu0 %7058, %v6090_v19   ;;  %v1673_v1 = vmul.f32 %v8205_v36, %v8266_v57 }
 0x218   : > { %6114 = vperm.xlu2 %7060, %v6088_v50  }
 0x219   : > { %v1699_v14 = vpop.permute.xlu1 %1698  ;;  %v1704_v40 = vpop.permute.xlu0 %1703 }
 0x21a   : > { %v1730_v2 = vmul.f32 %v8224_v48, %v1699_v14  ;;  %v1731_v13 = vmul.f32 %v8226_v43, %v1699_v14  ;;  %v1732_v30 = vmul.f32 %v8228_v63, %v1699_v14  ;;  %v1733_v12 = vmul.f32 %v8230_v21, %v1699_v14 }
 0x21b   : > { %v1736_v22 = vmul.f32 %v8228_v63, %v1704_v40  ;;  %v1737_v35 = vmul.f32 %v8230_v21, %v1704_v40 }
 0x21c   : > { %v1750_v53 = vadd.f32 %v1730_v2, %v1668_v55  ;;  %v1751_v42 = vadd.f32 %v1731_v13, %v1669_v25  ;;  %v1752_v56 = vadd.f32 %v1732_v30, %v1670_v59  ;;  %v1753_v15 = vadd.f32 %v1733_v12, %v1671_v58  ;;  %v1831_v25 = vpop.permute.xlu2 %1830 }
 0x21d   : > { %v1756_v26 = vadd.f32 %v1736_v22, %v1674_v6  ;;  %v1757_v38 = vadd.f32 %v1737_v35, %v1675_v5  ;;  %v1672_v58 = vmul.f32 %v8203_v52, %v8266_v57  ;;  %v1735_v5 = vmul.f32 %v8226_v43, %v1704_v40 }
 0x21f   : > { %6104 = vperm.xlu1 %7059, %v6086_v33   ;;  %6109 = vperm.xlu0 %7058, %v6087_v47   ;;  %v1755_v2 = vadd.f32 %v1735_v5, %v1673_v1 }
 0x220   : > { %6099 = vperm.xlu2 %7060, %v6085_v60  }
 0x221   : > { %v1626_v9 = vpop.permute.xlu1 %1625  ;;  %v1786_v54 = vpop.permute.xlu0 %1785 }
 0x222   : > { %v1660_v18 = vmul.f32 %v8203_v52, %v1626_v9  ;;  %v1661_v31 = vmul.f32 %v8205_v36, %v1626_v9  ;;  %v1662_v7 = vmul.f32 %v8207_v45, %v1626_v9  ;;  %v1663_v34 = vmul.f32 %v8209_v62, %v1626_v9 }
 0x223   : > { %v1807_v16 = vmul.f32 %v1786_v54, %v1757_v38  ;;  %v1805_v12 = vmul.f32 %v1786_v54, %v1755_v2  ;;  %v1806_v6 = vmul.f32 %v1786_v54, %v1756_v26 }
 0x224   : > { %v8319_v39 = vadd.f32 %v1722_v17, %v1660_v18  ;;  %v8321_v37 = vadd.f32 %v1723_v28, %v1661_v31  ;;  %v1744_v0 = vadd.f32 %v1724_v51, %v1662_v7  ;;  %v1745_v11 = vadd.f32 %v1725_v24, %v1663_v34 }
 0x225   : > { %v1734_v51 = vmul.f32 %v8224_v48, %v1704_v40 }
 0x227   : > { %6452 = vperm.xlu1 %7059, %v6449_v20   ;;  %6094 = vperm.xlu0 %7058, %v6084_v8   ;;  %v1754_v50 = vadd.f32 %v1734_v51, %v1672_v58 }
 0x229   : > { %v1836_v45 = vpop.permute.xlu1 %1835  ;;  %v1781_v10 = vpop.permute.xlu0 %1780  ;;  %v1804_v13 = vmul.f32 %v1786_v54, %v1754_v50 }
 0x22a   : > { %v8326_v62 = vadd.f32 %v1836_v45, %v1807_v16  ;;  %v1802_v49 = vmul.f32 %v1781_v10, %v1752_v56  ;;  %v1803_v55 = vmul.f32 %v1781_v10, %v1753_v15  ;;  %v1800_v23 = vmul.f32 %v1781_v10, %v1750_v53  ;;  %v8382_v54 = vpop.permute.xlu2 %1765 }
 0x22b   : > { %v1801_v19 = vmul.f32 %v1781_v10, %v1751_v42  ;;  %v8344_v22 = vadd.f32 %v1836_v45, %v1804_v13  ;;  %v8353_v40 = vadd.f32 %v1836_v45, %v1805_v12  ;;  %v8359_v15 = vadd.f32 %v1836_v45, %v1806_v6 }
 0x22c   : > { %v8328_v59 = vadd.f32 %v1831_v25, %v1802_v49  ;;  %v8330_v17 = vadd.f32 %v1831_v25, %v1803_v55  ;;  %v8342_v30 = vadd.f32 %v1831_v25, %v1800_v23  ;;  %v4806_v7 = vand.u32 2139095040, %v8326_v62 }
 0x22d   : > { %v8346_v35 = vadd.f32 %v1831_v25, %v1801_v19 }
 0x22e   : > { %12234 = vst [vmem:[#allocation12_spill] sm:$0xff] %v8328_v59  ;;  %v3721_v56 = vand.u32 2139095040, %v8342_v30  ;;  %v4186_v26 = vand.u32 2139095040, %v8330_v17  ;;  %v4807_v51 = vshrl.u32 %v4806_v7, 23 }
 0x22f   : > { %12235 = vst [vmem:[#allocation13_spill] sm:$0xff] %v8330_v17  ;;  %v3876_v47 = vand.u32 2139095040, %v8346_v35 }
 0x230   : > { %12236 = vst [vmem:[#allocation14_spill] sm:$0xff] %v8346_v35  ;;  %v3722_v31 = vshrl.u32 %v3721_v56, 23  ;;  %v6804_v2 = vadd.s32 4294967169, %v4807_v51 }
 0x231   : > { %v8332_v28 = vpop.permute.xlu1 %1775  ;;  %v1684_v24 = vpop.permute.xlu0 %1683  ;;  %v3877_v20 = vshrl.u32 %v3876_v47, 23 }
 0x232   : > { %v1798_v52 = vmul.f32 %v8332_v28, %v8249_v41  ;;  %v1799_v36 = vmul.f32 %v8332_v28, %v8251_v4  ;;  %v1718_v57 = vmul.f32 %v8224_v48, %v1684_v24  ;;  %v1719_v33 = vmul.f32 %v8226_v43, %v1684_v24 }
 0x233   : > { %v1720_v53 = vmul.f32 %v8228_v63, %v1684_v24  ;;  %v1721_v42 = vmul.f32 %v8230_v21, %v1684_v24  ;;  %v6783_v55 = vadd.s32 4294967169, %v3722_v31  ;;  %v6786_v24 = vadd.s32 4294967169, %v3877_v20 }
 0x234   : > { %v8362_v60 = vadd.f32 %v1718_v57, %v8275_v32  ;;  %v8370_v48 = vadd.f32 %v1719_v33, %v8278_v27  ;;  %v4031_v32 = vand.u32 2139095040, %v8328_v59  ;;  %v4341_v27 = vand.u32 2139095040, %v8344_v22 }
 0x235   : > { %v1740_v43 = vadd.f32 %v1720_v53, %v8281_v61  ;;  %v1741_v63 = vadd.f32 %v1721_v42, %v8284_v29  ;;  %v4496_v61 = vand.u32 2139095040, %v8353_v40  ;;  %v4651_v29 = vand.u32 2139095040, %v8359_v15 }
 0x236   : > { %v4342_v10 = vshrl.u32 %v4341_v27, 23  ;;  %v3728_v50 = vadd.s32 1, %v6783_v55  ;;  %v3883_v13 = vadd.s32 1, %v6786_v24  ;;  %v4813_v53 = vadd.s32 1, %v6804_v2 }
 0x237   : > { %v1790_v34 = vmul.f32 %v8382_v54, %v1740_v43  ;;  %v1791_v16 = vmul.f32 %v8382_v54, %v1741_v63  ;;  %v4497_v49 = vshrl.u32 %v4496_v61, 23  ;;  %v4652_v25 = vshrl.u32 %v4651_v29, 23 }
 0x238   : > { %v6795_v23 = vadd.s32 4294967169, %v4342_v10  ;;  %vm3729_vm2 = vcmp.gt.s32.totalorder %v3728_v50, 0  ;;  %vm3884_vm3 = vcmp.gt.s32.totalorder %v3883_v13, 0  ;;  %v1796_v43 = vmul.f32 %v8332_v28, %v8245_v46 }
 0x239   : > { %v8340_v14 = vpop.permute.xlu1 %1825  ;;  %v8367_v4 = vpop.permute.xlu0 %1770  ;;  %v6798_v1 = vadd.s32 4294967169, %v4497_v49  ;;  %v6801_v19 = vadd.s32 4294967169, %v4652_v25  ;;  %v3730_v63 = vsel %vm3729_vm2, %v3728_v50, 0  ;;  %v3885_v47 = vsel %vm3884_vm3, %v3883_v13, 0 }
 0x23a   : > { %v8365_v41 = vadd.f32 %v8340_v14, %v1798_v52  ;;  %v8375_v21 = vadd.f32 %v8340_v14, %v1799_v36  ;;  %v1794_v38 = vmul.f32 %v8367_v4, %v1744_v0  ;;  %v1795_v9 = vmul.f32 %v8367_v4, %v1745_v11 }
 0x23b   : > { %v4032_v0 = vshrl.u32 %v4031_v32, 23  ;;  %v4187_v11 = vshrl.u32 %v4186_v26, 23  ;;  %v4348_v36 = vadd.s32 1, %v6795_v23  ;;  %v4503_v57 = vadd.s32 1, %v6798_v1 }
 0x23c   : > { %12237 = vst [vmem:[#allocation15_spill] sm:$0xff] %v8365_v41  ;;  %v4658_v33 = vadd.s32 1, %v6801_v19  ;;  %vm4814_vm12 = vcmp.gt.s32.totalorder %v4813_v53, 0  ;;  %v8409_v32 = vadd.f32 %v8340_v14, %v1796_v43  ;;  %v8413_v27 = vand.u32 31, %v3730_v63 }
 0x23d   : > { %12238 = vst [vmem:[#allocation16_spill] sm:$0xff] %v8375_v21  ;;  %v6789_v58 = vadd.s32 4294967169, %v4032_v0  ;;  %v6792_v5 = vadd.s32 4294967169, %v4187_v11  ;;  %vm4349_vm9 = vcmp.gt.s32.totalorder %v4348_v36, 0  ;;  %vm4504_vm10 = vcmp.gt.s32.totalorder %v4503_v57, 0 }
 0x23e   : > { %vm4659_vm11 = vcmp.gt.s32.totalorder %v4658_v33, 0  ;;  %12244 = vst [vmem:[#allocation22_spill] sm:$0xff] %v8409_v32  ;;  %v4350_v61 = vsel %vm4349_vm9, %v4348_v36, 0  ;;  %v4505_v29 = vsel %vm4504_vm10, %v4503_v57, 0  ;;  %v8415_v31 = vand.u32 31, %v3885_v47 }
 0x23f   : > { %v4038_v6 = vadd.s32 1, %v6789_v58  ;;  %v4193_v52 = vadd.s32 1, %v6792_v5  ;;  %v4660_v46 = vsel %vm4659_vm11, %v4658_v33, 0  ;;  %v4815_v7 = vsel %vm4814_vm12, %v4813_v53, 0 }
 0x240   : > { %12245 = vst [vmem:[#allocation23_spill] sm:$0xff] %v8415_v31  ;;  %v3101_v11 = vand.u32 2139095040, %v8409_v32  ;;  %v4352_v49 = vand.u32 31, %v4350_v61  ;;  %v8434_v55 = vsub.s32 32, %v8413_v27  ;;  %v8438_v25 = vand.u32 31, %v4660_v46 }
 0x241   : > { %v8387_v18 = vpop.permute.xlu1 %1815  ;;  %v8398_v12 = vpop.permute.xlu0 %1820  ;;  %vm4039_vm7 = vcmp.gt.s32.totalorder %v4038_v6, 0  ;;  %vm4194_vm8 = vcmp.gt.s32.totalorder %v4193_v52, 0  ;;  %v8440_v51 = vand.u32 31, %v4815_v7  ;;  %v8443_v24 = vsub.s32 32, %v8415_v31 }
 0x242   : > { %v8393_v8 = vadd.f32 %v8387_v18, %v1790_v34  ;;  %v8396_v45 = vadd.f32 %v8387_v18, %v1791_v16  ;;  %12241 = vst [vmem:[#allocation19_spill] sm:$0xff] %v8398_v12  ;;  %v8401_v42 = vadd.f32 %v8398_v12, %v1794_v38  ;;  %v8404_v56 = vadd.f32 %v8398_v12, %v1795_v9 }
 0x243   : > { %v4040_v26 = vsel %vm4039_vm7, %v4038_v6, 0  ;;  %v4195_v38 = vsel %vm4194_vm8, %v4193_v52, 0  ;;  %v1797_v9 = vmul.f32 %v8332_v28, %v8247_v44  ;;  %v8420_v16 = vshrl.u32 %v3730_v63, 5  ;;  %12252 = vst [vmem:[#allocation30_spill] sm:$0xff] %v8443_v24 }
 0x244   : > { %12239 = vst [vmem:[#allocation17_spill] sm:$0xff] %v8393_v8  ;;  %v8422_v20 = vand.u32 31, %v4040_v26  ;;  %v8424_v0 = vand.u32 31, %v4195_v38  ;;  %v8427_v44 = vshrl.u32 %v3885_v47, 5  ;;  %v8429_v28 = vshrl.u32 %v4040_v26, 5 }
 0x245   : > { %12240 = vst [vmem:[#allocation18_spill] sm:$0xff] %v8396_v45  ;;  %v8418_v34 = vadd.f32 %v8340_v14, %v1797_v9  ;;  %v8431_v10 = vshrl.u32 %v4195_v38, 5  ;;  %v8436_v14 = vand.u32 31, %v4505_v29  ;;  %v8445_v58 = vshrl.u32 %v4350_v61, 5 }
 0x246   : > { %12242 = vst [vmem:[#allocation20_spill] sm:$0xff] %v8401_v42  ;;  %v3411_v23 = vand.u32 2139095040, %v8365_v41  ;;  %v8450_v1 = vsub.s32 32, %v8422_v20  ;;  %v8453_v50 = vsub.s32 32, %v8424_v0  ;;  %v3102_v19 = vshrl.u32 %v3101_v11, 23 }
 0x247   : > { %12243 = vst [vmem:[#allocation21_spill] sm:$0xff] %v8404_v56  ;;  %v3256_v5 = vand.u32 2139095040, %v8418_v34  ;;  %v3566_v2 = vand.u32 2139095040, %v8375_v21  ;;  %v4353_v13 = vsub.s32 32, %v4352_v49  ;;  %v8456_v6 = vshrl.u32 %v4505_v29, 5 }
 0x248   : > { %12246 = vst [vmem:[#allocation24_spill] sm:$0xff] %v8418_v34  ;;  %v8458_v52 = vshrl.u32 %v4660_v46, 5  ;;  %v8460_v36 = vshrl.u32 %v4815_v7, 5  ;;  %v8463_v57 = vsub.s32 32, %v8436_v14  ;;  %v8466_v33 = vsub.s32 32, %v8438_v25 }
 0x249   : > { %12247 = vst [vmem:[#allocation25_spill] sm:$0xff] %v8422_v20  ;;  %v8469_v53 = vsub.s32 32, %v8440_v51  ;;  %v3257_v43 = vshrl.u32 %v3256_v5, 23  ;;  %v3412_v63 = vshrl.u32 %v3411_v23, 23  ;;  %v8473_v47 = vmul.f32 %v8367_v4, %v8319_v39 }
 0x24a   : > { %12248 = vst [vmem:[#allocation26_spill] sm:$0xff] %v8424_v0  ;;  %v1788_v26 = vmul.f32 %v8382_v54, %v8362_v60  ;;  %v6771_v38 = vadd.s32 4294967169, %v3102_v19  ;;  %v3567_v9 = vshrl.u32 %v3566_v2, 23  ;;  %v12151_v61 = vand.u32 2147483647, %v8344_v22 }
 0x24b   : > { %12249 = vst [vmem:[#allocation27_spill] sm:$0xff] %v8427_v44  ;;  %v12145_v29 = vmov 683565275   ;;  %v12152_v7 = vmov 2475754826   ;;  %v1789_v5 = vmul.f32 %v8382_v54, %v8370_v48  ;;  %v6774_v23 = vadd.s32 4294967169, %v3257_v43 }
 0x24c   : > { %12250 = vst [vmem:[#allocation28_spill] sm:$0xff] %v8429_v28  ;;  %v4355_v46 = vshll.u32 %v12145_v29, %v4352_v49  ;;  %v4356_v11 = vshrl.u32 %v12152_v7, %v4353_v13  ;;  %v4345_v39 = vand.u32 8388607, %v12151_v61  ;;  %v4358_v60 = vshll.u32 %v12152_v7, %v4352_v49 }
 0x24d   : > { %12251 = vst [vmem:[#allocation29_spill] sm:$0xff] %v8431_v10  ;;  %v12154_v19 = vmov 2131351028   ;;  %v12161_v29 = vmov 2102212464   ;;  %v6777_v61 = vadd.s32 4294967169, %v3412_v63  ;;  %v8493_v7 = vadd.f32 %v8387_v18, %v1788_v26 }
 0x24e   : > { %12253 = vst [vmem:[#allocation31_spill] sm:$0xff] %v8450_v1  ;;  %v4357_v3 = vor.u32 %v4356_v11, %v4355_v46  ;;  %v4359_v2 = vshrl.u32 %v12154_v19, %v4353_v13  ;;  %v4346_v21 = vor.u32 8388608, %v4345_v39  ;;  %v4361_v41 = vshll.u32 %v12154_v19, %v4352_v49 }
 0x24f   : > { %12254 = vst [vmem:[#allocation32_spill] sm:$0xff] %v8453_v50  ;;  %v4362_v56 = vshrl.u32 %v12161_v29, %v4353_v13  ;;  %v4364_v34 = vshll.u32 %v12161_v29, %v4352_v49  ;;  %v12165_v48 = vmov 920167782   ;;  %v12163_v46 = vmov 1326507024  }
 0x250   : > { %12255 = vst [vmem:[#allocation33_spill] sm:$0xff] %v8473_v47  ;;  %v4360_v42 = vor.u32 %v4359_v2, %v4358_v60  ;;  %v4365_v54 = vshrl.u32 %v12165_v48, %v4353_v13  ;;  %v4367_v43 = vshll.u32 %v12165_v48, %v4352_v49  ;;  %v4368_v11 = vshrl.u32 %v12163_v46, %v4353_v13 }
 0x251   : > { %12256 = vst [vmem:[#allocation34_spill] sm:$0xff] %v8493_v7  ;;  %v12257_v39 = vmov 683565275   ;;  %v4363_v32 = vor.u32 %v4362_v56, %v4361_v41  ;;  %vm4370_vm13 = vcmp.lt.s32.totalorder %v8445_v58, 1  ;;  %vm4373_vm1 = vcmp.lt.s32.totalorder %v8445_v58, 4 }
 0x252   : > { %v4354_v19 = vshrl.u32 %v12257_v39, %v4353_v13  ;;  %v4366_v10 = vor.u32 %v4365_v54, %v4364_v34  ;;  %v4369_v0 = vor.u32 %v4368_v11, %v4367_v43  ;;  %v4378_v2 = vsel %vm4370_vm13, %v4357_v3, %v4360_v42 }
 0x253   : > { %v4375_v60 = vsel %vm4373_vm1, %v4363_v32, 2102212464  ;;  %v4382_v29 = vsel %vm4370_vm13, %v4360_v42, %v4363_v32  ;;  %v8498_v49 = vshll.u32 %v4346_v21, 8  ;;  %vm4371_vm14 = vcmp.lt.s32.totalorder %v8445_v58, 2 }
 0x254   : > { %vm4372_vm15 = vcmp.lt.s32.totalorder %v8445_v58, 3  ;;  %v4379_v63 = vsel %vm4373_vm1, %v4366_v10, 920167782  ;;  %v4383_v26 = vsel %vm4373_vm1, %v4369_v0, 1326507024  ;;  %v4374_v46 = vsel %vm4370_vm13, %v4354_v19, %v4357_v3 }
 0x255   : > { %v4376_v13 = vsel %vm4372_vm15, %v4360_v42, %v4375_v60  ;;  %v4380_v41 = vsel %vm4372_vm15, %v4363_v32, %v4379_v63  ;;  %v4384_v56 = vsel %vm4372_vm15, %v4366_v10, %v4383_v26  ;;  %v4387_v43 = vand.u32 65535, %v8498_v49 }
 0x256   : > { %v4381_v34 = vsel %vm4371_vm14, %v4378_v2, %v4380_v41  ;;  %v4385_v54 = vsel %vm4371_vm14, %v4382_v29, %v4384_v56  ;;  %v4388_v21 = vshrl.u32 %v8498_v49, 16  ;;  %v8508_v12 = vadd.s32 1, %v6771_v38 }
 0x257   : > { %v4389_v11 = vand.u32 65535, %v4385_v54  ;;  %v4390_v48 = vshrl.u32 %v4385_v54, 16  ;;  %v4411_v50 = vand.u32 65535, %v4381_v34  ;;  %v4412_v17 = vshrl.u32 %v4381_v34, 16 }
 0x258   : > { %v8510_v3 = vadd.s32 1, %v6774_v23  ;;  %v8512_v42 = vadd.s32 4294967169, %v3567_v9  ;;  %v8515_v32 = vadd.f32 %v8387_v18, %v1789_v5  ;;  %v8517_v0 = vadd.s32 1, %v6777_v61 }
 0x259   : > { %v8521_v10 = vsel %vm4371_vm14, %v4374_v46, %v4376_v13  ;;  %v4392_v29 = vmul.u32 %v4390_v48, %v4387_v43  ;;  %v4393_v19 = vmul.u32 %v4389_v11, %v4388_v21  ;;  %v4414_v60 = vmul.u32 %v4412_v17, %v4387_v43 }
 0x25a   : > { %12258 = vst [vmem:[#allocation35_spill] sm:$0xff] %v8515_v32  ;;  %v4415_v2 = vmul.u32 %v4411_v50, %v4388_v21  ;;  %v4510_v23 = vshll.u32 %v12257_v39, %v8436_v14  ;;  %v4391_v9 = vmul.u32 %v4389_v11, %v4387_v43  ;;  %v4394_v63 = vmul.u32 %v4390_v48, %v4388_v21 }
 0x25b   : > { %v4395_v26 = vshll.u32 %v4392_v29, 16  ;;  %v4413_v18 = vmul.u32 %v4411_v50, %v4387_v43  ;;  %v4396_v5 = vshrl.u32 %v4392_v29, 16  ;;  %v4397_v61 = vshll.u32 %v4393_v19, 16 }
 0x25c   : > { %v4416_v41 = vmul.u32 %v4412_v17, %v4388_v21  ;;  %v4417_v56 = vshll.u32 %v4414_v60, 16  ;;  %v4398_v58 = vshrl.u32 %v4393_v19, 16  ;;  %v4419_v13 = vshll.u32 %v4415_v2, 16 }
 0x25d   : > { %vm4399_vm0 = vc.u32 %v4391_v9, %v4395_v26  ;;  %v4401_v46 = vadd.s32 %v4395_v26, %v4391_v9  ;;  %v12259_v34 = vmov 0   ;;  %v12260_v38 = vmov 2475754826  }
 0x25e   : > { %v4400_v54 = vsel %vm4399_vm0, 1, %v12259_v34  ;;  %vm4421_vm4 = vc.u32 %v4413_v18, %v4417_v56  ;;  %v4423_v47 = vadd.s32 %v4417_v56, %v4413_v18  ;;  %v4511_v28 = vshrl.u32 %v12260_v38, %v8463_v57 }
 0x25f   : > { %v4402_v20 = vadd.s32 %v4400_v54, %v4394_v63  ;;  %vm4403_vm5 = vc.u32 %v4401_v46, %v4397_v61  ;;  %v4418_v48 = vshrl.u32 %v4414_v60, 16  ;;  %v4422_v50 = vsel %vm4421_vm4, 1, %v12259_v34 }
 0x260   : > { %v4404_v43 = vsel %vm4403_vm5, 1, %v12259_v34  ;;  %v4420_v17 = vshrl.u32 %v4415_v2, 16  ;;  %v4424_v21 = vadd.s32 %v4422_v50, %v4416_v41  ;;  %vm4425_vm6 = vc.u32 %v4423_v47, %v4419_v13 }
 0x261   : > { %v4406_v11 = vadd.s32 %v4404_v43, %v4402_v20  ;;  %v4426_v29 = vsel %vm4425_vm6, 1, %v12259_v34  ;;  %v12261_v19 = vand.u32 2147483647, %v8353_v40  ;;  %v4512_v26 = vor.u32 %v4511_v28, %v4510_v23 }
 0x262   : > { %v4428_v18 = vadd.s32 %v4426_v29, %v4424_v21  ;;  %v4513_v63 = vshll.u32 %v12260_v38, %v8436_v14  ;;  %v12262_v60 = vmov 2131351028   ;;  %v12263_v56 = vmov 2102212464  }
 0x263   : > { %v4500_v9 = vand.u32 8388607, %v12261_v19  ;;  %v4514_v61 = vshrl.u32 %v12262_v60, %v8463_v57  ;;  %v4517_v46 = vshrl.u32 %v12263_v56, %v8463_v57  ;;  %v4407_v2 = vadd.s32 %v4406_v11, %v4396_v5 }
 0x264   : > { %v4516_v20 = vshll.u32 %v12262_v60, %v8436_v14  ;;  %v4519_v41 = vshll.u32 %v12263_v56, %v8436_v14  ;;  %v12264_v54 = vmov 920167782   ;;  %v4429_v23 = vadd.s32 %v4428_v18, %v4418_v48 }
 0x265   : > { %v4520_v28 = vshrl.u32 %v12264_v54, %v8463_v57  ;;  %v4515_v50 = vor.u32 %v4514_v61, %v4513_v63  ;;  %v4522_v43 = vshll.u32 %v12264_v54, %v8436_v14  ;;  %v12265_v21 = vmov 1326507024  }
 0x266   : > { %v4523_v29 = vshrl.u32 %v12265_v21, %v8463_v57  ;;  %v8550_v19 = vadd.s32 %v4407_v2, %v4398_v58  ;;  %v8552_v5 = vadd.s32 %v4423_v47, %v4419_v13  ;;  %v4518_v11 = vor.u32 %v4517_v46, %v4516_v20 }
 0x267   : > { %v4521_v1 = vor.u32 %v4520_v28, %v4519_v41  ;;  %v4430_v44 = vadd.s32 %v4429_v23, %v4420_v17  ;;  %v4501_v31 = vor.u32 8388608, %v4500_v9  ;;  %v4431_v48 = vmul.u32 %v8498_v49, %v8521_v10 }
 0x268   : > { %v4524_v24 = vor.u32 %v4523_v29, %v4522_v43  ;;  %vm4433_vm2 = vc.u32 %v8550_v19, %v8552_v5  ;;  %vm4525_vm3 = vcmp.lt.s32.totalorder %v8456_v6, 1  ;;  %vm4528_vm7 = vcmp.lt.s32.totalorder %v8456_v6, 4 }
 0x269   : > { %v4434_v14 = vadd.s32 1, %v4430_v44  ;;  %vm4527_vm8 = vcmp.lt.s32.totalorder %v8456_v6, 3  ;;  %v4533_v47 = vsel %vm4525_vm3, %v4512_v26, %v4515_v50  ;;  %v4534_v58 = vsel %vm4528_vm7, %v4521_v1, 920167782 }
 0x26a   : > { %vm4526_vm9 = vcmp.lt.s32.totalorder %v8456_v6, 2  ;;  %v4535_v49 = vsel %vm4527_vm8, %v4518_v11, %v4534_v58  ;;  %v4537_v10 = vsel %vm4525_vm3, %v4515_v50, %v4518_v11  ;;  %v4538_v13 = vsel %vm4528_vm7, %v4524_v24, 1326507024 }
 0x26b   : > { %v4435_v17 = vsel %vm4433_vm2, %v4434_v14, %v4430_v44  ;;  %v4536_v9 = vsel %vm4526_vm9, %v4533_v47, %v4535_v49  ;;  %v4539_v18 = vsel %vm4527_vm8, %v4521_v1, %v4538_v13  ;;  %v8577_v63 = vshll.u32 %v4501_v31, 8 }
 0x26c   : > { %v8580_v61 = vadd.s32 1, %v8512_v42  ;;  %v4436_v46 = vadd.s32 %v4435_v17, %v4431_v48  ;;  %v4540_v2 = vsel %vm4526_vm9, %v4537_v10, %v4539_v18  ;;  %v4567_v20 = vshrl.u32 %v4536_v9, 16 }
 0x26d   : > { %v4542_v41 = vand.u32 65535, %v8577_v63  ;;  %v4543_v44 = vshrl.u32 %v8577_v63, 16  ;;  %v4544_v24 = vand.u32 65535, %v4540_v2  ;;  %v4545_v28 = vshrl.u32 %v4540_v2, 16 }
 0x26e   : > { %v4437_v43 = vadd.s32 536870912, %v4436_v46  ;;  %v4530_v31 = vsel %vm4528_vm7, %v4518_v11, 2102212464  ;;  %v4566_v1 = vand.u32 65535, %v4536_v9  ;;  %v4509_v29 = vshrl.u32 %v12257_v39, %v8463_v57 }
 0x26f   : > { %v4547_v48 = vmul.u32 %v4545_v28, %v4542_v41  ;;  %v4548_v14 = vmul.u32 %v4544_v24, %v4543_v44  ;;  %vm4340_vm10 = vcmp.lt.s32.totalorder %v8344_v22, 0  ;;  %v4569_v49 = vmul.u32 %v4567_v20, %v4542_v41 }
 0x270   : > { %v4438_v58 = vshrl.u32 %v4437_v43, 30  ;;  %v4529_v10 = vsel %vm4525_vm3, %v4509_v29, %v4512_v26  ;;  %v4531_v11 = vsel %vm4527_vm8, %v4515_v50, %v4530_v31  ;;  %v4546_v13 = vmul.u32 %v4544_v24, %v4542_v41 }
 0x271   : > { %v4550_v17 = vshll.u32 %v4547_v48, 16  ;;  %v4549_v18 = vmul.u32 %v4545_v28, %v4543_v44  ;;  %v4568_v2 = vmul.u32 %v4566_v1, %v4542_v41  ;;  %v4572_v57 = vshll.u32 %v4569_v49, 16 }
 0x272   : > { %v4439_v9 = vshll.u32 %v4438_v58, 30  ;;  %v4552_v42 = vshll.u32 %v4548_v14, 16  ;;  %v4570_v47 = vmul.u32 %v4566_v1, %v4543_v44  ;;  %v8600_v43 = vsel %vm4526_vm9, %v4529_v10, %v4531_v11 }
 0x273   : > { %vm4554_vm11 = vc.u32 %v4546_v13, %v4550_v17  ;;  %v4556_v23 = vadd.s32 %v4550_v17, %v4546_v13  ;;  %v4551_v45 = vshrl.u32 %v4547_v48, 16  ;;  %v4462_v29 = vsub.s32 4, %v4438_v58 }
 0x274   : > { %v4440_v59 = vsub.s32 %v4436_v46, %v4439_v9  ;;  %v4555_v26 = vsel %vm4554_vm11, 1, %v12259_v34  ;;  %vm4576_vm13 = vc.u32 %v4568_v2, %v4572_v57  ;;  %v4571_v28 = vmul.u32 %v4567_v20, %v4543_v44 }
 0x275   : > { %v4557_v50 = vadd.s32 %v4555_v26, %v4549_v18  ;;  %vm4558_vm12 = vc.u32 %v4556_v23, %v4552_v42  ;;  %v4574_v13 = vshll.u32 %v4570_v47, 16  ;;  %v4577_v46 = vsel %vm4576_vm13, 1, %v12259_v34 }
 0x276   : > { %vm4441_vm1 = vcmp.lt.s32.totalorder %v4440_v59, 0  ;;  %v4442_v24 = vsub.s32 0, %v4440_v59  ;;  %v4559_v41 = vsel %vm4558_vm12, 1, %v12259_v34  ;;  %v4578_v1 = vadd.s32 %v4572_v57, %v4568_v2 }
 0x277   : > { %v4561_v31 = vadd.s32 %v4559_v41, %v4557_v50  ;;  %v4553_v10 = vshrl.u32 %v4548_v14, 16  ;;  %v4579_v11 = vadd.s32 %v4577_v46, %v4571_v28  ;;  %v12184_v48 = vand.u32 2147483647, %v8359_v15 }
 0x278   : > { %v4443_v6 = vsel %vm4441_vm1, %v4442_v24, %v4440_v59  ;;  %vm3109_vm14 = vcmp.gt.s32.totalorder %v8508_v12, 0  ;;  %v4463_v23 = vsel %vm4340_vm10, %v4462_v29, %v4438_v58  ;;  %vm4580_vm15 = vc.u32 %v4578_v1, %v4574_v13 }
 0x279   : > { %v4444_v17 = vclz %v4443_v6  ;;  %v4562_v42 = vadd.s32 %v4561_v31, %v4551_v45  ;;  %vm3264_vm0 = vcmp.gt.s32.totalorder %v8510_v3, 0  ;;  %v12266_v20 = vand.u32 2139095040, %v8493_v7 }
 0x27a   : > { %v12268_v9 = vand.u32 2147483647, %v8344_v22  ;;  %v4581_v18 = vsel %vm4580_vm15, 1, %v12259_v34  ;;  %v4573_v58 = vshrl.u32 %v4569_v49, 16  ;;  %v4432_v26 = vadd.s32 %v8552_v5, %v8550_v19 }
 0x27b   : > { %v8612_v44 = vshrl.u32 %v12266_v20, 23  ;;  %v6796_v2 = vadd.s32 4294967294, %v4444_v17  ;;  %v8621_v57 = vadd.s32 %v4562_v42, %v4553_v10  ;;  %v4583_v45 = vadd.s32 %v4581_v18, %v4579_v11 }
 0x27c   : > { %vm8616_vm4 = vcmp.le.f32.partialorder %v12268_v9, 0.7853982  ;;  %v4575_v50 = vshrl.u32 %v4570_v47, 16  ;;  %v4586_v24 = vmul.u32 %v8577_v63, %v8600_v43  ;;  %v4582_v41 = vadd.s32 %v4578_v1, %v4574_v13 }
 0x27d   : > { %12267 = vst [vmem:[#allocation36_spill] sm:$0xff] %v8612_v44  ;;  %v4465_v29 = vsel %vm8616_vm4, 0, %v4463_v23  ;;  %vm6797_vm5 = vcmp.lt.s32.totalorder %v6796_v2, 0  ;;  %v4584_v28 = vadd.s32 %v4583_v45, %v4573_v58  ;;  %v4655_v31 = vand.u32 8388607, %v12184_v48 }
 0x27e   : > { %v4447_v46 = vsel %vm6797_vm5, 0, %v6796_v2  ;;  %v4666_v49 = vshrl.u32 %v12260_v38, %v8466_v33  ;;  %v4668_v19 = vshll.u32 %v12260_v38, %v8438_v25  ;;  %v4669_v5 = vshrl.u32 %v12262_v60, %v8466_v33 }
 0x27f   : > { %v4448_v47 = vsub.s32 32, %v4447_v46  ;;  %v4452_v6 = vsub.s32 4294967266, %v4447_v46  ;;  %v4585_v10 = vadd.s32 %v4584_v28, %v4575_v50  ;;  %vm4588_vm6 = vc.u32 %v8621_v57, %v4582_v41 }
 0x280   : > { %v4449_v63 = vshll.u32 %v4440_v59, %v4447_v46  ;;  %v4671_v43 = vshll.u32 %v12262_v60, %v8438_v25  ;;  %v4672_v13 = vshrl.u32 %v12263_v56, %v8466_v33  ;;  %v4674_v1 = vshll.u32 %v12263_v56, %v8438_v25 }
 0x281   : > { %v4450_v11 = vshrl.u32 %v4432_v26, %v4448_v47  ;;  %v4453_v17 = vadd.s32 127, %v4452_v6  ;;  %v4589_v23 = vadd.s32 1, %v4585_v10  ;;  %v4675_v42 = vshrl.u32 %v12264_v54, %v8466_v33 }
 0x282   : > { %v8646_v20 = vor.u32 %v4669_v5, %v4668_v19  ;;  %v4673_v9 = vor.u32 %v4672_v13, %v4671_v43  ;;  %v4677_v59 = vshll.u32 %v12264_v54, %v8438_v25  ;;  %v4678_v18 = vshrl.u32 %v12265_v21, %v8466_v33 }
 0x283   : > { %v4451_v2 = vor.u32 %v4450_v11, %v4449_v63  ;;  %v4454_v58 = vshll.u32 %v4453_v17, 23  ;;  %v4590_v45 = vsel %vm4588_vm6, %v4589_v23, %v4585_v10  ;;  %v4676_v50 = vor.u32 %v4675_v42, %v4674_v1 }
 0x284   : > { %v8655_v26 = vsel %vm3109_vm14, %v8508_v12, 0  ;;  %v4591_v28 = vadd.s32 %v4590_v45, %v4586_v24  ;;  %v4665_v46 = vshll.u32 %v12257_v39, %v8438_v25  ;;  %v4679_v19 = vor.u32 %v4678_v18, %v4677_v59 }
 0x285   : > { %v8662_v5 = vsel %vm3264_vm0, %v8510_v3, 0  ;;  %v4455_v47 = vor.u32 4788187, %v4454_v58  ;;  %v4482_v6 = vadd.s32 3, %v4465_v29  ;;  %v4656_v63 = vor.u32 8388608, %v4655_v31 }
 0x286   : > { %v4592_v10 = vadd.s32 536870912, %v4591_v28  ;;  %v4667_v43 = vor.u32 %v4666_v49, %v4665_v46  ;;  %vm4680_vm2 = vcmp.lt.s32.totalorder %v8458_v52, 1  ;;  %vm4683_vm3 = vcmp.lt.s32.totalorder %v8458_v52, 4 }
 0x287   : > { %v4456_v12 = vand.u32 2147483647, %v4455_v47  ;;  %v4458_v24 = vcvt.s32.f32 %v4451_v2  ;;  %v4689_v25 = vsel %vm4683_vm3, %v4676_v50, 920167782  ;;  %v4692_v13 = vsel %vm4680_vm2, %v8646_v20, %v4673_v9 }
 0x288   : > { %vm4495_vm7 = vcmp.lt.s32.totalorder %v8353_v40, 0  ;;  %v4593_v3 = vshrl.u32 %v4592_v10, 30  ;;  %vm4682_vm8 = vcmp.lt.s32.totalorder %v8458_v52, 3  ;;  %v4693_v29 = vsel %vm4683_vm3, %v4679_v19, 1326507024 }
 0x289   : > { %v4459_v31 = vmul.f32 %v4458_v24, %v4456_v12  ;;  %v12271_v49 = vand.u32 2147483647, %v8353_v40  ;;  %vm4681_vm11 = vcmp.lt.s32.totalorder %v8458_v52, 2  ;;  %v4694_v11 = vsel %vm4682_vm8, %v4676_v50, %v4693_v29 }
 0x28a   : > { %v8684_v17 = vshll.u32 %v4656_v63, 8  ;;  %v4594_v23 = vshll.u32 %v4593_v3, 30  ;;  %v4688_v42 = vsel %vm4680_vm2, %v4667_v43, %v8646_v20  ;;  %v4690_v59 = vsel %vm4682_vm8, %v4673_v9, %v4689_v25 }
 0x28b   : > { %vm8677_vm9 = vcmp.le.f32.partialorder %v12271_v49, 0.7853982  ;;  %v4695_v18 = vsel %vm4681_vm11, %v4692_v13, %v4694_v11  ;;  %v4460_v2 = vxor.u32 2147483648, %v4459_v31  ;;  %v8693_v58 = vand.u32 3, %v4482_v6 }
 0x28c   : > { %v4617_v45 = vsub.s32 4, %v4593_v3  ;;  %v4664_v50 = vshrl.u32 %v12257_v39, %v8466_v33  ;;  %v4587_v46 = vadd.s32 %v4582_v41, %v8621_v57  ;;  %v8698_v19 = vsub.s32 %v4591_v28, %v4594_v23 }
 0x28d   : > { %v4699_v47 = vand.u32 65535, %v4695_v18  ;;  %v4700_v63 = vshrl.u32 %v4695_v18, 16  ;;  %v4461_v10 = vsel %vm4340_vm10, %v4460_v2, %v4459_v31  ;;  %v4691_v6 = vsel %vm4681_vm11, %v4688_v42, %v4690_v59 }
 0x28e   : > { %v8704_v12 = vsel %vm4680_vm2, %v4664_v50, %v4667_v43  ;;  %v4697_v24 = vand.u32 65535, %v8684_v17  ;;  %v8712_v33 = vsel %vm8616_vm4, %v8344_v22, %v4461_v10  ;;  %vm4596_vm12 = vcmp.lt.s32.totalorder %v8698_v19, 0 }
 0x28f   : > { %v4597_v57 = vsub.s32 0, %v8698_v19  ;;  %v4698_v41 = vshrl.u32 %v8684_v17, 16  ;;  %v4466_v28 = vmul.f32 %v8712_v33, %v8712_v33  ;;  %v8721_v43 = vsel %vm4495_vm7, %v4617_v45, %v4593_v3 }
 0x290   : > { %v4685_v25 = vsel %vm4683_vm3, %v4673_v9, 2102212464  ;;  %v4702_v13 = vmul.u32 %v4700_v63, %v4697_v24  ;;  %v4701_v29 = vmul.u32 %v4699_v47, %v4697_v24  ;;  %v4722_v49 = vshrl.u32 %v4691_v6, 16 }
 0x291   : > { %v4598_v14 = vsel %vm4596_vm12, %v4597_v57, %v8698_v19  ;;  %v8726_v31 = vmul.u32 %v4699_v47, %v4698_v41  ;;  %v4467_v11 = vmul.f32 -0.001358992, %v4466_v28  ;;  %v4474_v23 = vmul.f32 -0.00019511016, %v4466_v28 }
 0x292   : > { %v4599_v42 = vclz %v4598_v14  ;;  %v4705_v59 = vshll.u32 %v4702_v13, 16  ;;  %v4620_v18 = vsel %vm8677_vm9, 0, %v8721_v43  ;;  %v4686_v3 = vsel %vm4682_vm8, %v8646_v20, %v4685_v25 }
 0x293   : > { %v4704_v9 = vmul.u32 %v4700_v63, %v4698_v41  ;;  %v4721_v2 = vand.u32 65535, %v4691_v6  ;;  %v4468_v45 = vadd.f32 0.041655596, %v4467_v11  ;;  %v4475_v50 = vadd.f32 0.008332121, %v4474_v23 }
 0x294   : > { %v6799_v10 = vadd.s32 4294967294, %v4599_v42  ;;  %vm4709_vm10 = vc.u32 %v4701_v29, %v4705_v59  ;;  %v4707_v47 = vshll.u32 %v8726_v31, 16  ;;  %v4711_v14 = vadd.s32 %v4705_v59, %v4701_v29 }
 0x295   : > { %v4710_v57 = vsel %vm4709_vm10, 1, %v12259_v34  ;;  %v4724_v48 = vmul.u32 %v4722_v49, %v4697_v24  ;;  %v4469_v7 = vmul.f32 %v4468_v45, %v4466_v28  ;;  %v4476_v8 = vmul.f32 %v4475_v50, %v4466_v28 }
 0x296   : > { %vm6800_vm13 = vcmp.lt.s32.totalorder %v6799_v10, 0  ;;  %v4712_v43 = vadd.s32 %v4710_v57, %v4704_v9  ;;  %vm4713_vm1 = vc.u32 %v4711_v14, %v4707_v47  ;;  %v4725_v44 = vmul.u32 %v4721_v2, %v4698_v41 }
 0x297   : > { %v4602_v32 = vsel %vm6800_vm13, 0, %v6799_v10  ;;  %v4727_v20 = vshll.u32 %v4724_v48, 16  ;;  %v4470_v63 = vadd.f32 -0.4999988, %v4469_v7  ;;  %v4477_v6 = vadd.f32 -0.16666654, %v4476_v8 }
 0x298   : > { %v4603_v25 = vsub.s32 32, %v4602_v32  ;;  %v4723_v11 = vmul.u32 %v4721_v2, %v4697_v24  ;;  %vm3419_vm14 = vcmp.gt.s32.totalorder %v8517_v0, 0  ;;  %v4604_v23 = vshll.u32 %v8698_v19, %v4602_v32 }
 0x299   : > { %v4607_v42 = vsub.s32 4294967266, %v4602_v32  ;;  %v4706_v35 = vshrl.u32 %v4702_v13, 16  ;;  %v4714_v29 = vsel %vm4713_vm1, 1, %v12259_v34  ;;  %v4471_v59 = vmul.f32 %v4470_v63, %v4466_v28 }
 0x29a   : > { %v4478_v45 = vmul.f32 %v4477_v6, %v4466_v28  ;;  %vm4484_vm15 = vcmp.lt.s32.totalorder %v8693_v58, 2  ;;  %v4605_v9 = vshrl.u32 %v4587_v46, %v4603_v25  ;;  %v4716_v50 = vadd.s32 %v4714_v29, %v4712_v43 }
 0x29b   : > { %vm4481_vm0 = vweird.f32 %v8344_v22  ;;  %v4608_v7 = vadd.s32 127, %v4607_v42  ;;  %v4729_v8 = vshll.u32 %v4725_v44, 16  ;;  %vm4731_vm4 = vc.u32 %v4723_v11, %v4727_v20 }
 0x29c   : > { %v4733_v24 = vadd.s32 %v4727_v20, %v4723_v11  ;;  %v4472_v2 = vadd.f32 1.0, %v4471_v59  ;;  %v4479_v10 = vadd.f32 1.0, %v4478_v45  ;;  %v4606_v47 = vor.u32 %v4605_v9, %v4604_v23 }
 0x29d   : > { %v4726_v19 = vmul.u32 %v4722_v49, %v4698_v41  ;;  %v4609_v32 = vshll.u32 %v4608_v7, 23  ;;  %v4717_v13 = vadd.s32 %v4716_v50, %v4706_v35  ;;  %v4732_v57 = vsel %vm4731_vm4, 1, %v12259_v34 }
 0x29e   : > { %vm4735_vm5 = vc.u32 %v4733_v24, %v4729_v8  ;;  %v4480_v28 = vmul.f32 %v4479_v10, %v8712_v33  ;;  %vm4485_vm6 = vcmp.eq.s32.totalorder %v8693_v58, 0  ;;  %vm4488_vm2 = vcmp.eq.s32.totalorder %v8693_v58, 2 }
 0x29f   : > { %v4489_v46 = vxor.u32 2147483648, %v4472_v2  ;;  %v4610_v14 = vor.u32 4788187, %v4609_v32  ;;  %v4708_v43 = vshrl.u32 %v8726_v31, 16  ;;  %v4734_v20 = vadd.s32 %v4732_v57, %v4726_v19 }
 0x2a0   : > { %v4736_v63 = vsel %vm4735_vm5, 1, %v12259_v34  ;;  %v4486_v6 = vxor.u32 2147483648, %v4480_v28  ;;  %v4637_v41 = vadd.s32 3, %v4620_v18  ;;  %v4687_v35 = vsel %vm4681_vm11, %v8704_v12, %v4686_v3 }
 0x2a1   : > { %v4728_v49 = vshrl.u32 %v4724_v48, 16  ;;  %v4611_v25 = vand.u32 2147483647, %v4610_v14  ;;  %v4613_v33 = vcvt.s32.f32 %v4606_v47  ;;  %v8750_v11 = vadd.s32 %v4717_v13, %v4708_v43 }
 0x2a2   : > { %v4738_v23 = vadd.s32 %v4736_v63, %v4734_v20  ;;  %v4487_v42 = vsel %vm4485_vm6, %v4472_v2, %v4486_v6  ;;  %v4490_v29 = vsel %vm4488_vm2, %v4489_v46, %v4480_v28  ;;  %v4730_v59 = vshrl.u32 %v4725_v44, 16 }
 0x2a3   : > { %v4803_v31 = vand.u32 2147483647, %v8326_v62  ;;  %v4491_v45 = vsel %vm4484_vm15, %v4487_v42, %v4490_v29  ;;  %v4614_v9 = vmul.f32 %v4613_v33, %v4611_v25  ;;  %v4737_v18 = vadd.s32 %v4733_v24, %v4729_v8 }
 0x2a4   : > { %v4739_v50 = vadd.s32 %v4738_v23, %v4728_v49  ;;  %v8758_v52 = vsel %vm3419_vm14, %v8517_v0, 0  ;;  %v4492_v48 = vsel %vm4481_vm0, nan, %v4491_v45  ;;  %v8762_v12 = vand.u32 3, %v4637_v41 }
 0x2a5   : > { %v4741_v44 = vmul.u32 %v8684_v17, %v4687_v35  ;;  %5050 = vmatpush.msra.mxu0 %v4492_v48  ;;  %v4615_v3 = vxor.u32 2147483648, %v4614_v9  ;;  %vm4743_vm3 = vc.u32 %v8750_v11, %v4737_v18  ;;  %v4821_v58 = vshrl.u32 %v12260_v38, %v8469_v53 }
 0x2a6   : > { %v4740_v7 = vadd.s32 %v4739_v50, %v4730_v59  ;;  %v4810_v8 = vand.u32 8388607, %v4803_v31  ;;  %v4824_v0 = vshrl.u32 %v12262_v60, %v8469_v53  ;;  %v4827_v22 = vshrl.u32 %v12263_v56, %v8469_v53 }
 0x2a7   : > { %v4830_v17 = vshrl.u32 %v12264_v54, %v8469_v53  ;;  %v4616_v24 = vsel %vm4495_vm7, %v4615_v3, %v4614_v9  ;;  %v4823_v10 = vshll.u32 %v12260_v38, %v8440_v51  ;;  %v4829_v47 = vshll.u32 %v12263_v56, %v8440_v51 }
 0x2a8   : > { %v4744_v2 = vadd.s32 1, %v4740_v7  ;;  %v8785_v19 = vsel %vm8677_vm9, %v8353_v40, %v4616_v24  ;;  %v4826_v32 = vshll.u32 %v12262_v60, %v8440_v51  ;;  %v4832_v13 = vshll.u32 %v12264_v54, %v8440_v51 }
 0x2a9   : > { %v4833_v57 = vshrl.u32 %v12265_v21, %v8469_v53  ;;  %v4621_v28 = vmul.f32 %v8785_v19, %v8785_v19  ;;  %v4820_v14 = vshll.u32 %v12257_v39, %v8440_v51  ;;  %v4831_v43 = vor.u32 %v4830_v17, %v4829_v47 }
 0x2aa   : > { %v4745_v46 = vsel %vm4743_vm3, %v4744_v2, %v4740_v7  ;;  %v4825_v20 = vor.u32 %v4824_v0, %v4823_v10  ;;  %v4828_v63 = vor.u32 %v4827_v22, %v4826_v32  ;;  %v4811_v49 = vor.u32 8388608, %v4810_v8 }
 0x2ab   : > { %v4746_v1 = vadd.s32 %v4745_v46, %v4741_v44  ;;  %v4834_v6 = vor.u32 %v4833_v57, %v4832_v13  ;;  %v4622_v41 = vmul.f32 -0.001358992, %v4621_v28  ;;  %v4629_v35 = vmul.f32 -0.00019511016, %v4621_v28 }
 0x2ac   : > { %v4822_v25 = vor.u32 %v4821_v58, %v4820_v14  ;;  %vm4835_vm7 = vcmp.lt.s32.totalorder %v8460_v36, 1  ;;  %vm4836_vm8 = vcmp.lt.s32.totalorder %v8460_v36, 2  ;;  %vm4838_vm9 = vcmp.lt.s32.totalorder %v8460_v36, 4 }
 0x2ad   : > { %v4747_v33 = vadd.s32 536870912, %v4746_v1  ;;  %v8802_v23 = vmul.f32 %v8367_v4, %v8321_v37  ;;  %v4623_v51 = vadd.f32 0.041655596, %v4622_v41  ;;  %v4630_v42 = vadd.f32 0.008332121, %v4629_v35 }
 0x2ae   : > { %v4844_v29 = vsel %vm4838_vm9, %v4831_v43, 920167782  ;;  %vm4837_vm11 = vcmp.lt.s32.totalorder %v8460_v36, 3  ;;  %v4847_v45 = vsel %vm4835_vm7, %v4825_v20, %v4828_v63  ;;  %v4848_v9 = vsel %vm4838_vm9, %v4834_v6, 1326507024 }
 0x2af   : > { %v4748_v59 = vshrl.u32 %v4747_v33, 30  ;;  %v4624_v50 = vmul.f32 %v4623_v51, %v4621_v28  ;;  %v4631_v48 = vmul.f32 %v4630_v42, %v4621_v28  ;;  %vm4650_vm12 = vcmp.lt.s32.totalorder %v8359_v15, 0 }
 0x2b0   : > { %v4849_v37 = vsel %vm4837_vm11, %v4831_v43, %v4848_v9  ;;  %v8814_v4 = vshll.u32 %v4811_v49, 8  ;;  %v4843_v3 = vsel %vm4835_vm7, %v4822_v25, %v4825_v20  ;;  %v4845_v7 = vsel %vm4837_vm11, %v4828_v63, %v4844_v29 }
 0x2b1   : > { %v4749_v44 = vshll.u32 %v4748_v59, 30  ;;  %v4850_v58 = vsel %vm4836_vm8, %v4847_v45, %v4849_v37  ;;  %v4625_v8 = vadd.f32 -0.4999988, %v4624_v50  ;;  %v4632_v0 = vadd.f32 -0.16666654, %v4631_v48 }
 0x2b2   : > { %vm4643_vm10 = vcmp.eq.s32.totalorder %v8762_v12, 2  ;;  %v4742_v22 = vadd.s32 %v4737_v18, %v8750_v11  ;;  %vm4640_vm13 = vcmp.eq.s32.totalorder %v8762_v12, 0  ;;  %v4819_v24 = vshrl.u32 %v12257_v39, %v8469_v53 }
 0x2b3   : > { %v8825_v17 = vsub.s32 %v4746_v1, %v4749_v44  ;;  %v4854_v2 = vand.u32 65535, %v4850_v58  ;;  %v4855_v10 = vshrl.u32 %v4850_v58, 16  ;;  %v4626_v47 = vmul.f32 %v4625_v8, %v4621_v28 }
 0x2b4   : > { %v4633_v32 = vmul.f32 %v4632_v0, %v4621_v28  ;;  %vm4639_vm1 = vcmp.lt.s32.totalorder %v8762_v12, 2  ;;  %v4846_v13 = vsel %vm4836_vm8, %v4843_v3, %v4845_v7  ;;  %v4852_v57 = vand.u32 65535, %v8814_v4 }
 0x2b5   : > { %vm4636_vm14 = vweird.f32 %v8353_v40  ;;  %vm4751_vm15 = vcmp.lt.s32.totalorder %v8825_v17, 0  ;;  %v4752_v11 = vsub.s32 0, %v8825_v17  ;;  %v4772_v18 = vsub.s32 4, %v4748_v59 }
 0x2b6   : > { %v4853_v53 = vshrl.u32 %v8814_v4, 16  ;;  %v4627_v46 = vadd.f32 1.0, %v4626_v47  ;;  %v4634_v14 = vadd.f32 1.0, %v4633_v32  ;;  %v4840_v28 = vsel %vm4838_vm9, %v4828_v63, 2102212464 }
 0x2b7   : > { %v4857_v43 = vmul.u32 %v4855_v10, %v4852_v57  ;;  %v4753_v1 = vsel %vm4751_vm15, %v4752_v11, %v8825_v17  ;;  %v4876_v41 = vand.u32 65535, %v4846_v13  ;;  %v4877_v35 = vshrl.u32 %v4846_v13, 16 }
 0x2b8   : > { %v4858_v6 = vmul.u32 %v4854_v2, %v4853_v53  ;;  %v4635_v49 = vmul.f32 %v4634_v14, %v8785_v19  ;;  %v4644_v33 = vxor.u32 2147483648, %v4627_v46  ;;  %v4754_v51 = vclz %v4753_v1 }
 0x2b9   : > { %v4860_v42 = vshll.u32 %v4857_v43, 16  ;;  %v4773_v29 = vsel %vm4650_vm12, %v4772_v18, %v4748_v59  ;;  %v4839_v45 = vsel %vm4835_vm7, %v4819_v24, %v4822_v25  ;;  %v4841_v63 = vsel %vm4837_vm11, %v4825_v20, %v4840_v28 }
 0x2ba   : > { %v4856_v9 = vmul.u32 %v4854_v2, %v4852_v57  ;;  %v4641_v50 = vxor.u32 2147483648, %v4635_v49  ;;  %v4645_v48 = vsel %vm4643_vm10, %v4644_v33, %v4635_v49  ;;  %v6802_v37 = vadd.s32 4294967294, %v4754_v51 }
 0x2bb   : > { %v4859_v44 = vmul.u32 %v4855_v10, %v4853_v53  ;;  %v4862_v19 = vshll.u32 %v4858_v6, 16  ;;  %v4879_v7 = vmul.u32 %v4877_v35, %v4852_v57  ;;  %v4880_v58 = vmul.u32 %v4876_v41, %v4853_v53 }
 0x2bc   : > { %vm4864_vm0 = vc.u32 %v4856_v9, %v4860_v42  ;;  %v4866_v3 = vadd.s32 %v4860_v42, %v4856_v9  ;;  %v4642_v59 = vsel %vm4640_vm13, %v4627_v46, %v4641_v50  ;;  %vm6803_vm4 = vcmp.lt.s32.totalorder %v6802_v37, 0 }
 0x2bd   : > { %v4865_v25 = vsel %vm4864_vm0, 1, %v12259_v34  ;;  %v4646_v20 = vsel %vm4639_vm1, %v4642_v59, %v4645_v48  ;;  %v4757_v8 = vsel %vm6803_vm4, 0, %v6802_v37  ;;  %v4878_v47 = vmul.u32 %v4876_v41, %v4852_v57 }
 0x2be   : > { %v4867_v0 = vadd.s32 %v4865_v25, %v4859_v44  ;;  %vm4868_vm5 = vc.u32 %v4866_v3, %v4862_v19  ;;  %v4647_v24 = vsel %vm4636_vm14, nan, %v4646_v20  ;;  %v4758_v2 = vsub.s32 32, %v4757_v8 }
 0x2bf   : > { %v4762_v10 = vsub.s32 4294967266, %v4757_v8  ;;  %5091 = vmatpush.msra.mxu1 %v4647_v24  ;;  %v4861_v32 = vshrl.u32 %v4857_v43, 16  ;;  %v4863_v13 = vshrl.u32 %v4858_v6, 16  ;;  %v4869_v11 = vsel %vm4868_vm5, 1, %v12259_v34 }
 0x2c0   : > { %v4882_v18 = vshll.u32 %v4879_v7, 16  ;;  %v4759_v46 = vshll.u32 %v8825_v17, %v4757_v8  ;;  %v4760_v14 = vshrl.u32 %v4742_v22, %v4758_v2  ;;  %v4871_v28 = vadd.s32 %v4869_v11, %v4867_v0 }
 0x2c1   : > { %v4763_v12 = vadd.s32 127, %v4762_v10  ;;  %v4881_v1 = vmul.u32 %v4877_v35, %v4853_v53  ;;  %v4884_v49 = vshll.u32 %v4880_v58, 16  ;;  %v12274_v43 = vand.u32 2147483647, %v8359_v15 }
 0x2c2   : > { %vm4886_vm6 = vc.u32 %v4878_v47, %v4882_v18  ;;  %v4888_v33 = vadd.s32 %v4882_v18, %v4878_v47  ;;  %v4761_v40 = vor.u32 %v4760_v14, %v4759_v46  ;;  %v4872_v42 = vadd.s32 %v4871_v28, %v4861_v32 }
 0x2c3   : > { %v4764_v51 = vshll.u32 %v4763_v12, 23  ;;  %v4887_v57 = vsel %vm4886_vm6, 1, %v12259_v34  ;;  %vm8861_vm2 = vcmp.le.f32.partialorder %v12274_v43, 0.7853982  ;;  %v4842_v22 = vsel %vm4836_vm8, %v4839_v45, %v4841_v63 }
 0x2c4   : > { %v4889_v17 = vadd.s32 %v4887_v57, %v4881_v1  ;;  %vm4890_vm3 = vc.u32 %v4888_v33, %v4884_v49  ;;  %v4775_v41 = vsel %vm8861_vm2, 0, %v4773_v29  ;;  %v8869_v35 = vadd.s32 %v4872_v42, %v4863_v13 }
 0x2c5   : > { %v4765_v53 = vor.u32 4788187, %v4764_v51  ;;  %v4891_v9 = vsel %vm4890_vm3, 1, %v12259_v34  ;;  %v8873_v50 = vshrl.u32 %v8655_v26, 5  ;;  %v4883_v48 = vshrl.u32 %v4879_v7, 16 }
 0x2c6   : > { %v4893_v37 = vadd.s32 %v4891_v9, %v4889_v17  ;;  %v3718_v44 = vand.u32 2147483647, %v8342_v30  ;;  %v8877_v36 = vand.u32 31, %v8655_v26  ;;  %v4768_v63 = vcvt.s32.f32 %v4761_v40 }
 0x2c7   : > { %v4766_v45 = vand.u32 2147483647, %v4765_v53  ;;  %v8879_v19 = vadd.s32 %v4888_v33, %v4884_v49  ;;  %v4792_v3 = vadd.s32 3, %v4775_v41  ;;  %v4885_v29 = vshrl.u32 %v4880_v58, 16 }
 0x2c8   : > { %v4894_v59 = vadd.s32 %v4893_v37, %v4883_v48  ;;  %v4896_v25 = vmul.u32 %v8814_v4, %v4842_v22  ;;  %v3736_v7 = vshrl.u32 %v12260_v38, %v8434_v55  ;;  %v3739_v26 = vshrl.u32 %v12262_v60, %v8434_v55 }
 0x2c9   : > { %v4769_v20 = vmul.f32 %v4768_v63, %v4766_v45  ;;  %vm4898_vm7 = vc.u32 %v8869_v35, %v8879_v19  ;;  %v3725_v0 = vand.u32 8388607, %v3718_v44  ;;  %v3735_v58 = vshll.u32 %v12257_v39, %v8413_v27 }
 0x2ca   : > { %v4895_v8 = vadd.s32 %v4894_v59, %v4885_v29  ;;  %v3742_v4 = vshrl.u32 %v12263_v56, %v8434_v55  ;;  %vm3574_vm8 = vcmp.gt.s32.totalorder %v8580_v61, 0  ;;  %v3738_v2 = vshll.u32 %v12260_v38, %v8413_v27 }
 0x2cb   : > { %v4770_v24 = vxor.u32 2147483648, %v4769_v20  ;;  %v3744_v10 = vshll.u32 %v12263_v56, %v8413_v27  ;;  %v3745_v47 = vshrl.u32 %v12264_v54, %v8434_v55  ;;  %v3741_v13 = vshll.u32 %v12262_v60, %v8413_v27 }
 0x2cc   : > { %v4899_v32 = vadd.s32 1, %v4895_v8  ;;  %v3747_v11 = vshll.u32 %v12264_v54, %v8413_v27  ;;  %v3748_v18 = vshrl.u32 %v12265_v21, %v8434_v55  ;;  %v8909_v14 = vor.u32 %v3736_v7, %v3735_v58 }
 0x2cd   : > { %v4771_v46 = vsel %vm4650_vm12, %v4770_v24, %v4769_v20  ;;  %v8911_v12 = vor.u32 %v3739_v26, %v3738_v2  ;;  %v3746_v28 = vor.u32 %v3745_v47, %v3744_v10  ;;  %v3743_v49 = vor.u32 %v3742_v4, %v3741_v13 }
 0x2ce   : > { %v8916_v1 = vsel %vm8861_vm2, %v8359_v15, %v4771_v46  ;;  %v4900_v27 = vsel %vm4898_vm7, %v4899_v32, %v4895_v8  ;;  %v3749_v33 = vor.u32 %v3748_v18, %v3747_v11  ;;  %v3726_v42 = vor.u32 8388608, %v3725_v0 }
 0x2cf   : > { %v4776_v40 = vmul.f32 %v8916_v1, %v8916_v1  ;;  %v4901_v51 = vadd.s32 %v4900_v27, %v4896_v25  ;;  %vm3753_vm9 = vcmp.lt.s32.totalorder %v8420_v16, 4  ;;  %v8925_v57 = vshrl.u32 %v8662_v5, 5 }
 0x2d0   : > { %v8927_v43 = vand.u32 3, %v4792_v3  ;;  %vm3750_vm11 = vcmp.lt.s32.totalorder %v8420_v16, 1  ;;  %v3759_v6 = vsel %vm3753_vm9, %v3746_v28, 920167782  ;;  %vm3752_vm12 = vcmp.lt.s32.totalorder %v8420_v16, 3 }
 0x2d1   : > { %v4777_v22 = vmul.f32 -0.001358992, %v4776_v40  ;;  %v4784_v17 = vmul.f32 -0.00019511016, %v4776_v40  ;;  %v4902_v53 = vadd.s32 536870912, %v4901_v51  ;;  %v3758_v41 = vsel %vm3750_vm11, %v8909_v14, %v8911_v12 }
 0x2d2   : > { %v3760_v9 = vsel %vm3752_vm12, %v3743_v49, %v3759_v6  ;;  %v3762_v48 = vsel %vm3750_vm11, %v8911_v12, %v3743_v49  ;;  %v3763_v37 = vsel %vm3753_vm9, %v3749_v33, 1326507024  ;;  %v8946_v29 = vshll.u32 %v3726_v42, 8 }
 0x2d3   : > { %v4778_v45 = vadd.f32 0.041655596, %v4777_v22  ;;  %v4785_v63 = vadd.f32 0.008332121, %v4784_v17  ;;  %v8944_v3 = vshrl.u32 %v4902_v53, 30  ;;  %v8949_v59 = vand.u32 31, %v8662_v5 }
 0x2d4   : > { %v8952_v25 = vshrl.u32 %v8758_v52, 5  ;;  %vm3751_vm10 = vcmp.lt.s32.totalorder %v8420_v16, 2  ;;  %v3764_v20 = vsel %vm3752_vm12, %v3746_v28, %v3763_v37  ;;  %v8963_v58 = vand.u32 31, %v8758_v52 }
 0x2d5   : > { %v4779_v7 = vmul.f32 %v4778_v45, %v4776_v40  ;;  %v4786_v26 = vmul.f32 %v4785_v63, %v4776_v40  ;;  %v4904_v8 = vshll.u32 %v8944_v3, 30  ;;  %v8960_v0 = vsel %vm3751_vm10, %v3758_v41, %v3760_v9 }
 0x2d6   : > { %v8968_v5 = vsel %vm3574_vm8, %v8580_v61, 0  ;;  %v3734_v4 = vshrl.u32 %v12257_v39, %v8434_v55  ;;  %v3765_v24 = vsel %vm3751_vm10, %v3762_v48, %v3764_v20  ;;  %vm4798_vm13 = vcmp.eq.s32.totalorder %v8927_v43, 2 }
 0x2d7   : > { %v4780_v2 = vadd.f32 -0.4999988, %v4779_v7  ;;  %v4787_v10 = vadd.f32 -0.16666654, %v4786_v26  ;;  %v8975_v47 = vsub.s32 %v4901_v51, %v4904_v8  ;;  %v3767_v52 = vand.u32 65535, %v8946_v29 }
 0x2d8   : > { %vm4795_vm1 = vcmp.eq.s32.totalorder %v8927_v43, 0  ;;  %v3768_v32 = vshrl.u32 %v8946_v29, 16  ;;  %v3769_v61 = vand.u32 65535, %v3765_v24  ;;  %v3770_v13 = vshrl.u32 %v3765_v24, 16 }
 0x2d9   : > { %v3792_v11 = vshrl.u32 %v8960_v0, 16  ;;  %v4781_v55 = vmul.f32 %v4780_v2, %v4776_v40  ;;  %v4788_v18 = vmul.f32 %v4787_v10, %v4776_v40  ;;  %vm4794_vm14 = vcmp.lt.s32.totalorder %v8927_v43, 2 }
 0x2da   : > { %vm4906_vm15 = vcmp.lt.s32.totalorder %v8975_v47, 0  ;;  %v4907_v46 = vsub.s32 0, %v8975_v47  ;;  %vm4791_vm0 = vweird.f32 %v8359_v15  ;;  %vm4805_vm4 = vcmp.lt.s32.totalorder %v8326_v62, 0 }
 0x2db   : > { %v4897_v28 = vadd.s32 %v8879_v19, %v8869_v35  ;;  %v3755_v27 = vsel %vm3753_vm9, %v3743_v49, 2102212464  ;;  %v3772_v33 = vmul.u32 %v3770_v13, %v3767_v52  ;;  %v3791_v51 = vand.u32 65535, %v8960_v0 }
 0x2dc   : > { %v4782_v40 = vadd.f32 1.0, %v4781_v55  ;;  %v4789_v42 = vadd.f32 1.0, %v4788_v18  ;;  %v4908_v6 = vsel %vm4906_vm15, %v4907_v46, %v8975_v47  ;;  %v3773_v22 = vmul.u32 %v3769_v61, %v3768_v32 }
 0x2dd   : > { %v4909_v17 = vclz %v4908_v6  ;;  %v3754_v53 = vsel %vm3750_vm11, %v3734_v4, %v8909_v14  ;;  %v3775_v41 = vshll.u32 %v3772_v33, 16  ;;  %v3794_v9 = vmul.u32 %v3792_v11, %v3767_v52 }
 0x2de   : > { %v4790_v35 = vmul.f32 %v4789_v42, %v8916_v1  ;;  %v4799_v19 = vxor.u32 2147483648, %v4782_v40  ;;  %v3756_v49 = vsel %vm3752_vm12, %v8911_v12, %v3755_v27  ;;  %v3771_v48 = vmul.u32 %v3769_v61, %v3767_v52 }
 0x2df   : > { %vm9001_vm5 = vcmp.le.f32.partialorder %v4803_v31, 0.7853982  ;;  %v6805_v45 = vadd.s32 4294967294, %v4909_v17  ;;  %v4927_v63 = vsub.s32 4, %v8944_v3  ;;  %v3774_v14 = vmul.u32 %v3770_v13, %v3768_v32 }
 0x2e0   : > { %v3795_v20 = vmul.u32 %v3791_v51, %v3768_v32  ;;  %v4796_v7 = vxor.u32 2147483648, %v4790_v35  ;;  %v3777_v26 = vshll.u32 %v3773_v22, 16  ;;  %vm3779_vm6 = vc.u32 %v3771_v48, %v3775_v41 }
 0x2e1   : > { %v3781_v1 = vadd.s32 %v3775_v41, %v3771_v48  ;;  %v4800_v8 = vsel %vm4798_vm13, %v4799_v19, %v4790_v35  ;;  %vm6806_vm2 = vcmp.lt.s32.totalorder %v6805_v45, 0  ;;  %v3780_v12 = vsel %vm3779_vm6, 1, %v12259_v34 }
 0x2e2   : > { %v3797_v0 = vshll.u32 %v3794_v9, 16  ;;  %v4797_v31 = vsel %vm4795_vm1, %v4782_v40, %v4796_v7  ;;  %v4912_v4 = vsel %vm6806_vm2, 0, %v6805_v45  ;;  %v3782_v24 = vadd.s32 %v3780_v12, %v3774_v14 }
 0x2e3   : > { %vm3783_vm3 = vc.u32 %v3781_v1, %v3777_v26  ;;  %v4801_v2 = vsel %vm4794_vm14, %v4797_v31, %v4800_v8  ;;  %v4913_v10 = vsub.s32 32, %v4912_v4  ;;  %v4917_v61 = vsub.s32 4294967266, %v4912_v4 }
 0x2e4   : > { %v3793_v13 = vmul.u32 %v3791_v51, %v3767_v52  ;;  %v4802_v55 = vsel %vm4791_vm0, nan, %v4801_v2  ;;  %v4928_v18 = vsel %vm4805_vm4, %v4927_v63, %v8944_v3  ;;  %v3776_v46 = vshrl.u32 %v3772_v33, 16  ;;  %v12280_v63 = vld [vmem:[#allocation36_spill] sm:$0xff]  ;;  %v12281_v2 = vld [vmem:[#allocation30_spill] sm:$0xff] }
 0x2e5   : > { %v3784_v27 = vsel %vm3783_vm3, 1, %v12259_v34  ;;  %5132 = vmatpush.msra.mxu2 %v4802_v55  ;;  %v4914_v40 = vshll.u32 %v8975_v47, %v4912_v4  ;;  %v4915_v42 = vshrl.u32 %v4897_v28, %v4913_v10  ;;  %v4918_v6 = vadd.s32 127, %v4917_v61 }
 0x2e6   : > { %v3786_v43 = vadd.s32 %v3784_v27, %v3782_v24  ;;  %v3796_v17 = vmul.u32 %v3792_v11, %v3768_v32  ;;  %v3799_v41 = vshll.u32 %v3795_v20, 16  ;;  %vm3801_vm7 = vc.u32 %v3793_v13, %v3797_v0  ;;  %v12279_v11 = vld [vmem:[#allocation14_spill] sm:$0xff] }
 0x2e7   : > { %v3803_v52 = vadd.s32 %v3797_v0, %v3793_v13  ;;  %v4916_v51 = vor.u32 %v4915_v42, %v4914_v40  ;;  %v4919_v15 = vshll.u32 %v4918_v6, 23  ;;  %v3802_v19 = vsel %vm3801_vm7, 1, %v12259_v34  ;;  %v12282_v13 = vld [vmem:[#allocation23_spill] sm:$0xff] }
 0x2e8   : > { %v3787_v35 = vadd.s32 %v3786_v43, %v3776_v46  ;;  %v4930_v3 = vsel %vm9001_vm5, 0, %v4928_v18  ;;  %v3778_v33 = vshrl.u32 %v3773_v22, 16  ;;  %v3804_v48 = vadd.s32 %v3802_v19, %v3796_v17 }
 0x2e9   : > { %vm3805_vm8 = vc.u32 %v3803_v52, %v3799_v41  ;;  %v4920_v45 = vor.u32 4788187, %v4919_v15  ;;  %v3757_v47 = vsel %vm3751_vm10, %v3754_v53, %v3756_v49  ;;  %v12194_v28 = vand.u32 2147483647, %v12279_v11 }
 0x2ea   : > { %v3806_v32 = vsel %vm3805_vm8, 1, %v12259_v34  ;;  %v9028_v14 = vadd.s32 4294967169, %v12280_v63  ;;  %v9030_v7 = vadd.s32 %v3787_v35, %v3778_v33  ;;  %v3798_v26 = vshrl.u32 %v3794_v9, 16 }
 0x2eb   : > { %v3808_v1 = vadd.s32 %v3806_v32, %v3804_v48  ;;  %v9033_v8 = vsub.s32 32, %v8877_v36  ;;  %v4921_v22 = vand.u32 2147483647, %v4920_v45  ;;  %v4923_v12 = vcvt.s32.f32 %v4916_v51 }
 0x2ec   : > { %v4947_v0 = vadd.s32 3, %v4930_v3  ;;  %v3800_v31 = vshrl.u32 %v3795_v20, 16  ;;  %v3807_v16 = vadd.s32 %v3803_v52, %v3799_v41  ;;  %v3811_v49 = vmul.u32 %v8946_v29, %v3757_v47  ;;  %v12283_v47 = vld [vmem:[#allocation27_spill] sm:$0xff] }
 0x2ed   : > { %v3809_v53 = vadd.s32 %v3808_v1, %v3798_v26  ;;  %v4924_v4 = vmul.f32 %v4923_v12, %v4921_v22  ;;  %v3880_v24 = vand.u32 8388607, %v12194_v28  ;;  %v3891_v10 = vshrl.u32 %v12260_v38, %v12281_v2 }
 0x2ee   : > { %v3894_v9 = vshrl.u32 %v12262_v60, %v12281_v2  ;;  %vm3813_vm9 = vc.u32 %v9030_v7, %v3807_v16  ;;  %v3890_v20 = vshll.u32 %v12257_v39, %v12282_v13  ;;  %v3897_v55 = vshrl.u32 %v12263_v56, %v12281_v2 }
 0x2ef   : > { %v3810_v61 = vadd.s32 %v3809_v53, %v3800_v31  ;;  %v4925_v29 = vxor.u32 2147483648, %v4924_v4  ;;  %v3893_v18 = vshll.u32 %v12260_v38, %v12282_v13  ;;  %v3899_v46 = vshll.u32 %v12263_v56, %v12282_v13 }
 0x2f0   : > { %v3900_v27 = vshrl.u32 %v12264_v54, %v12281_v2  ;;  %v3896_v42 = vshll.u32 %v12262_v60, %v12282_v13  ;;  %v3902_v6 = vshll.u32 %v12264_v54, %v12282_v13  ;;  %v3903_v43 = vshrl.u32 %v12265_v21, %v12281_v2 }
 0x2f1   : > { %v3814_v40 = vadd.s32 1, %v3810_v61  ;;  %v4926_v17 = vsel %vm4805_vm4, %v4925_v29, %v4924_v4  ;;  %v9061_v41 = vor.u32 %v3891_v10, %v3890_v20  ;;  %v9063_v52 = vor.u32 %v3894_v9, %v3893_v18 }
 0x2f2   : > { %v3901_v51 = vor.u32 %v3900_v27, %v3899_v46  ;;  %v9068_v15 = vsel %vm9001_vm5, %v8326_v62, %v4926_v17  ;;  %v3898_v19 = vor.u32 %v3897_v55, %v3896_v42  ;;  %v3904_v3 = vor.u32 %v3903_v43, %v3902_v6 }
 0x2f3   : > { %v3815_v35 = vsel %vm3813_vm9, %v3814_v40, %v3810_v61  ;;  %v4931_v33 = vmul.f32 %v9068_v15, %v9068_v15  ;;  %v3881_v45 = vor.u32 8388608, %v3880_v24  ;;  %vm3908_vm11 = vcmp.lt.s32.totalorder %v12283_v47, 4 }
 0x2f4   : > { %v3816_v48 = vadd.s32 %v3815_v35, %v3811_v49  ;;  %v9076_v32 = vsub.s32 32, %v8949_v59  ;;  %v9078_v63 = vand.u32 3, %v4947_v0  ;;  %vm3905_vm12 = vcmp.lt.s32.totalorder %v12283_v47, 1 }
 0x2f5   : > { %v3914_v37 = vsel %vm3908_vm11, %v3901_v51, 920167782  ;;  %v4932_v26 = vmul.f32 -0.001358992, %v4931_v33  ;;  %v4939_v1 = vmul.f32 -0.00019511016, %v4931_v33  ;;  %v3913_v12 = vsel %vm3905_vm12, %v9061_v41, %v9063_v52 }
 0x2f6   : > { %v3817_v22 = vadd.s32 536870912, %v3816_v48  ;;  %vm3907_vm10 = vcmp.lt.s32.totalorder %v12283_v47, 3  ;;  %v3917_v0 = vsel %vm3905_vm12, %v9063_v52, %v3898_v19  ;;  %v3918_v53 = vsel %vm3908_vm11, %v3904_v3, 1326507024 }
 0x2f7   : > { %v3915_v31 = vsel %vm3907_vm10, %v3898_v19, %v3914_v37  ;;  %v4933_v49 = vadd.f32 0.041655596, %v4932_v26  ;;  %v4940_v4 = vadd.f32 0.008332121, %v4939_v1  ;;  %v9097_v10 = vshll.u32 %v3881_v45, 8 }
 0x2f8   : > { %v9095_v24 = vshrl.u32 %v3817_v22, 30  ;;  %v9100_v9 = vshrl.u32 %v8968_v5, 5  ;;  %v9103_v61 = vand.u32 31, %v8968_v5  ;;  %vm3906_vm13 = vcmp.lt.s32.totalorder %v12283_v47, 2 }
 0x2f9   : > { %v3919_v13 = vsel %vm3907_vm10, %v3901_v51, %v3918_v53  ;;  %v4934_v20 = vmul.f32 %v4933_v49, %v4931_v33  ;;  %v4941_v55 = vmul.f32 %v4940_v4, %v4931_v33  ;;  %v9111_v18 = vsel %vm3906_vm13, %v3913_v12, %v3915_v31 }
 0x2fa   : > { %v3819_v29 = vshll.u32 %v9095_v24, 30  ;;  %v9114_v46 = vsub.s32 32, %v8963_v58  ;;  %v9117_v27 = vadd.s32 1, %v9028_v14  ;;  %v3812_v5 = vadd.s32 %v3807_v16, %v9030_v7 }
 0x2fb   : > { %v3920_v40 = vsel %vm3906_vm13, %v3917_v0, %v3919_v13  ;;  %v4935_v42 = vadd.f32 -0.4999988, %v4934_v20  ;;  %v4942_v6 = vadd.f32 -0.16666654, %v4941_v55  ;;  %vm4953_vm1 = vcmp.eq.s32.totalorder %v9078_v63, 2 }
 0x2fc   : > { %v9123_v43 = vsub.s32 %v3816_v48, %v3819_v29  ;;  %v3922_v17 = vand.u32 65535, %v9097_v10  ;;  %vm4950_vm14 = vcmp.eq.s32.totalorder %v9078_v63, 0  ;;  %v3923_v51 = vshrl.u32 %v9097_v10, 16 }
 0x2fd   : > { %v3924_v35 = vand.u32 65535, %v3920_v40  ;;  %v3925_v14 = vshrl.u32 %v3920_v40, 16  ;;  %v3947_v3 = vshrl.u32 %v9111_v18, 16  ;;  %v4936_v7 = vmul.f32 %v4935_v42, %v4931_v33 }
 0x2fe   : > { %v4943_v16 = vmul.f32 %v4942_v6, %v4931_v33  ;;  %vm4949_vm15 = vcmp.lt.s32.totalorder %v9078_v63, 2  ;;  %vm3821_vm0 = vcmp.lt.s32.totalorder %v9123_v43, 0  ;;  %v3822_v45 = vsub.s32 0, %v9123_v43 }
 0x2ff   : > { %vm4946_vm4 = vweird.f32 %v8326_v62  ;;  %vm3720_vm5 = vcmp.lt.s32.totalorder %v8342_v30, 0  ;;  %v3889_v48 = vshrl.u32 %v12257_v39, %v12281_v2  ;;  %v3910_v37 = vsel %vm3908_vm11, %v3898_v19, 2102212464 }
 0x300   : > { %v3927_v26 = vmul.u32 %v3925_v14, %v3922_v17  ;;  %v3946_v1 = vand.u32 65535, %v9111_v18  ;;  %v4937_v33 = vadd.f32 1.0, %v4936_v7  ;;  %v4944_v22 = vadd.f32 1.0, %v4943_v16 }
 0x301   : > { %v3823_v12 = vsel %vm3821_vm0, %v3822_v45, %v9123_v43  ;;  %v3928_v31 = vmul.u32 %v3924_v35, %v3923_v51  ;;  %v3909_v53 = vsel %vm3905_vm12, %v3889_v48, %v9061_v41  ;;  %v3949_v4 = vmul.u32 %v3947_v3, %v3922_v17 }
 0x302   : > { %v3824_v0 = vclz %v3823_v12  ;;  %v3930_v49 = vshll.u32 %v3927_v26, 16  ;;  %v4945_v2 = vmul.f32 %v4944_v22, %v9068_v15  ;;  %v4954_v13 = vxor.u32 2147483648, %v4937_v33 }
 0x303   : > { %v3911_v19 = vsel %vm3907_vm10, %v9063_v52, %v3910_v37  ;;  %v3926_v20 = vmul.u32 %v3924_v35, %v3922_v17  ;;  %vm9149_vm6 = vcmp.le.f32.partialorder %v3718_v44, 0.7853982  ;;  %v3842_v18 = vsub.s32 4, %v9095_v24 }
 0x304   : > { %v6784_v29 = vadd.s32 4294967294, %v3824_v0  ;;  %v3929_v41 = vmul.u32 %v3925_v14, %v3923_v51  ;;  %v3950_v40 = vmul.u32 %v3946_v1, %v3923_v51  ;;  %v4951_v42 = vxor.u32 2147483648, %v4945_v2 }
 0x305   : > { %v3932_v6 = vshll.u32 %v3928_v31, 16  ;;  %vm3934_vm2 = vc.u32 %v3926_v20, %v3930_v49  ;;  %v3936_v15 = vadd.s32 %v3930_v49, %v3926_v20  ;;  %v4955_v7 = vsel %vm4953_vm1, %v4954_v13, %v4945_v2 }
 0x306   : > { %vm6785_vm3 = vcmp.lt.s32.totalorder %v6784_v29, 0  ;;  %v3935_v52 = vsel %vm3934_vm2, 1, %v12259_v34  ;;  %v3952_v35 = vshll.u32 %v3949_v4, 16  ;;  %v4952_v44 = vsel %vm4950_vm14, %v4937_v33, %v4951_v42 }
 0x307   : > { %v3827_v16 = vsel %vm6785_vm3, 0, %v6784_v29  ;;  %v3937_v45 = vadd.s32 %v3935_v52, %v3929_v41  ;;  %vm3938_vm7 = vc.u32 %v3936_v15, %v3932_v6  ;;  %v4956_v14 = vsel %vm4949_vm15, %v4952_v44, %v4955_v7  ;;  %v12287_v7 = vld [vmem:[#allocation35_spill] sm:$0xff] }
 0x308   : > { %v3828_v48 = vsub.s32 32, %v3827_v16  ;;  %v3832_v37 = vsub.s32 4294967266, %v3827_v16  ;;  %v3948_v22 = vmul.u32 %v3946_v1, %v3922_v17  ;;  %v4957_v12 = vsel %vm4946_vm4, nan, %v4956_v14  ;;  %v12289_v14 = vld [vmem:[#allocation17_spill] sm:$0xff] }
 0x309   : > { %v3843_v0 = vsel %vm3720_vm5, %v3842_v18, %v9095_v24  ;;  %v3931_v49 = vshrl.u32 %v3927_v26, 16  ;;  %v3939_v2 = vsel %vm3938_vm7, 1, %v12259_v34  ;;  %5173 = vmatpush.msra.mxu3 %v4957_v12  ;;  %v3829_v33 = vshll.u32 %v9123_v43, %v3827_v16 }
 0x30a   : > { %v3830_v13 = vshrl.u32 %v3812_v5, %v3828_v48  ;;  %v3833_v20 = vadd.s32 127, %v3832_v37  ;;  %v3941_v63 = vadd.s32 %v3939_v2, %v3937_v45  ;;  %v3951_v29 = vmul.u32 %v3947_v3, %v3923_v51  ;;  %v12286_v51 = vld [vmem:[#allocation12_spill] sm:$0xff] }
 0x30b   : > { %v3954_v41 = vshll.u32 %v3950_v40, 16  ;;  %vm3956_vm8 = vc.u32 %v3948_v22, %v3952_v35  ;;  %v3958_v17 = vadd.s32 %v3952_v35, %v3948_v22  ;;  %v3845_v24 = vsel %vm9149_vm6, 0, %v3843_v0 }
 0x30c   : > { %v3831_v1 = vor.u32 %v3830_v13, %v3829_v33  ;;  %v3834_v62 = vshll.u32 %v3833_v20, 23  ;;  %v3942_v42 = vadd.s32 %v3941_v63, %v3931_v49  ;;  %v3957_v6 = vsel %vm3956_vm8, 1, %v12259_v34  ;;  %v12291_v33 = vld [vmem:[#allocation31_spill] sm:$0xff] }
 0x30d   : > { %v3933_v26 = vshrl.u32 %v3928_v31, 16  ;;  %v3959_v18 = vadd.s32 %v3957_v6, %v3951_v29  ;;  %vm3960_vm9 = vc.u32 %v3958_v17, %v3954_v41  ;;  %v3912_v5 = vsel %vm3906_vm13, %v3909_v53, %v3911_v19 }
 0x30e   : > { %v3835_v15 = vor.u32 4788187, %v3834_v62  ;;  %v3961_v43 = vsel %vm3960_vm9, 1, %v12259_v34  ;;  %v12193_v3 = vand.u32 2147483647, %v12286_v51  ;;  %v12288_v52 = vand.u32 2139095040, %v12287_v7 }
 0x30f   : > { %v9179_v44 = vadd.s32 %v3942_v42, %v3933_v26  ;;  %v3953_v16 = vshrl.u32 %v3949_v4, 16  ;;  %v3963_v45 = vadd.s32 %v3961_v43, %v3959_v18  ;;  %v12290_v31 = vand.u32 2139095040, %v12289_v14 }
 0x310   : > { %v9177_v35 = vshrl.u32 %v12288_v52, 23  ;;  %v3836_v37 = vand.u32 2147483647, %v3835_v15  ;;  %v3838_v22 = vcvt.s32.f32 %v3831_v1  ;;  %v3862_v47 = vadd.s32 3, %v3845_v24 }
 0x311   : > { %v9183_v48 = vshrl.u32 %v12290_v31, 23  ;;  %v3955_v53 = vshrl.u32 %v3950_v40, 16  ;;  %v9185_v19 = vadd.s32 %v3958_v17, %v3954_v41  ;;  %v3964_v12 = vadd.s32 %v3963_v45, %v3953_v16  ;;  %v12292_v40 = vld [vmem:[#allocation25_spill] sm:$0xff] }
 0x312   : > { %v3966_v0 = vmul.u32 %v9097_v10, %v3912_v5  ;;  %v3839_v49 = vmul.f32 %v3838_v22, %v3836_v37  ;;  %v4035_v2 = vand.u32 8388607, %v12193_v3  ;;  %v4049_v4 = vshrl.u32 %v12262_v60, %v12291_v33 }
 0x313   : > { %v4052_v13 = vshrl.u32 %v12263_v56, %v12291_v33  ;;  %v3965_v20 = vadd.s32 %v3964_v12, %v3955_v53  ;;  %vm3968_vm11 = vc.u32 %v9179_v44, %v9185_v19  ;;  %v4054_v63 = vshll.u32 %v12263_v56, %v12292_v40  ;;  %v12293_v53 = vld [vmem:[#allocation28_spill] sm:$0xff] }
 0x314   : > { %v4055_v10 = vshrl.u32 %v12264_v54, %v12291_v33  ;;  %v3840_v29 = vxor.u32 2147483648, %v3839_v49  ;;  %v4046_v41 = vshrl.u32 %v12260_v38, %v12291_v33  ;;  %v4048_v17 = vshll.u32 %v12260_v38, %v12292_v40 }
 0x315   : > { %v4051_v1 = vshll.u32 %v12262_v60, %v12292_v40  ;;  %v3969_v62 = vadd.s32 1, %v3965_v20  ;;  %v4057_v6 = vshll.u32 %v12264_v54, %v12292_v40  ;;  %v4058_v24 = vshrl.u32 %v12265_v21, %v12291_v33 }
 0x316   : > { %v4056_v42 = vor.u32 %v4055_v10, %v4054_v63  ;;  %v3841_v26 = vsel %vm3720_vm5, %v3840_v29, %v3839_v49  ;;  %v4045_v18 = vshll.u32 %v12257_v39, %v12292_v40  ;;  %v9214_v15 = vor.u32 %v4049_v4, %v4048_v17 }
 0x317   : > { %v9216_v5 = vor.u32 %v4052_v13, %v4051_v1  ;;  %v9221_v43 = vsel %vm9149_vm6, %v8342_v30, %v3841_v26  ;;  %v3970_v52 = vsel %vm3968_vm11, %v3969_v62, %v3965_v20  ;;  %v4036_v16 = vor.u32 8388608, %v4035_v2  ;;  %v12294_v20 = vld [vmem:[#allocation18_spill] sm:$0xff]  ;;  %v12297_v26 = vld [vmem:[#allocation33_spill] sm:$0xff] }
 0x318   : > { %v4059_v45 = vor.u32 %v4058_v24, %v4057_v6  ;;  %v3846_v31 = vmul.f32 %v9221_v43, %v9221_v43  ;;  %v3971_v37 = vadd.s32 %v3970_v52, %v3966_v0  ;;  %v9228_v22 = vor.u32 %v4046_v41, %v4045_v18  ;;  %v12298_v18 = vld [vmem:[#allocation19_spill] sm:$0xff] }
 0x319   : > { %vm4063_vm12 = vcmp.lt.s32.totalorder %v12293_v53, 4  ;;  %vm4060_vm10 = vcmp.lt.s32.totalorder %v12293_v53, 1  ;;  %vm4062_vm13 = vcmp.lt.s32.totalorder %v12293_v53, 3  ;;  %v9242_v13 = vsub.s32 32, %v9103_v61 }
 0x31a   : > { %v4069_v55 = vsel %vm4063_vm12, %v4056_v42, 920167782  ;;  %v4073_v12 = vsel %vm4063_vm12, %v4059_v45, 1326507024  ;;  %v3847_v49 = vmul.f32 -0.001358992, %v3846_v31  ;;  %v4072_v0 = vsel %vm4060_vm10, %v9214_v15, %v9216_v5 }
 0x31b   : > { %v3854_v2 = vmul.f32 -0.00019511016, %v3846_v31  ;;  %v3972_v4 = vadd.s32 536870912, %v3971_v37  ;;  %v12295_v40 = vand.u32 2139095040, %v12294_v20  ;;  %v4074_v10 = vsel %vm4062_vm13, %v4056_v42, %v4073_v12 }
 0x31c   : > { %v9250_v29 = vshll.u32 %v4036_v16, 8  ;;  %v3848_v41 = vadd.f32 0.041655596, %v3847_v49  ;;  %vm4061_vm1 = vcmp.lt.s32.totalorder %v12293_v53, 2  ;;  %v9255_v62 = vand.u32 3, %v3862_v47 }
 0x31d   : > { %v9246_v63 = vshrl.u32 %v12295_v40, 23  ;;  %v3855_v17 = vadd.f32 0.008332121, %v3854_v2  ;;  %v9252_v1 = vshrl.u32 %v3972_v4, 30  ;;  %v4068_v6 = vsel %vm4060_vm10, %v9228_v22, %v9214_v15 }
 0x31e   : > { %v4070_v24 = vsel %vm4062_vm13, %v9216_v5, %v4069_v55  ;;  %v4075_v42 = vsel %vm4061_vm1, %v4072_v0, %v4074_v10  ;;  %v9268_v52 = vadd.f32 %v12298_v18, %v12297_v26  ;;  %v3849_v16 = vmul.f32 %v3848_v41, %v3846_v31 }
 0x31f   : > { %12296 = vst [vmem:[#allocation14_spill] sm:$0xff] %v9246_v63  ;;  %v3856_v45 = vmul.f32 %v3855_v17, %v3846_v31  ;;  %v3974_v47 = vshll.u32 %v9252_v1, 30  ;;  %v4077_v12 = vand.u32 65535, %v9250_v29  ;;  %v9273_v49 = vshrl.u32 %v9250_v29, 16 }
 0x320   : > { %v4079_v2 = vand.u32 65535, %v4075_v42  ;;  %v4080_v4 = vshrl.u32 %v4075_v42, 16  ;;  %v3850_v40 = vadd.f32 -0.4999988, %v3849_v16  ;;  %v4071_v0 = vsel %vm4061_vm1, %v4068_v6, %v4070_v24 }
 0x321   : > { %v3857_v55 = vadd.f32 -0.16666654, %v3856_v45  ;;  %v9275_v3 = vsub.s32 %v3971_v37, %v3974_v47  ;;  %vm3865_vm14 = vcmp.eq.s32.totalorder %v9255_v62, 0  ;;  %vm3868_vm15 = vcmp.eq.s32.totalorder %v9255_v62, 2 }
 0x322   : > { %v4044_v10 = vshrl.u32 %v12257_v39, %v12291_v33  ;;  %v4082_v41 = vmul.u32 %v4080_v4, %v4077_v12  ;;  %v9284_v17 = vmul.u32 %v4079_v2, %v9273_v49  ;;  %v3851_v26 = vmul.f32 %v3850_v40, %v3846_v31 }
 0x323   : > { %v3858_v42 = vmul.f32 %v3857_v55, %v3846_v31  ;;  %vm3864_vm0 = vcmp.lt.s32.totalorder %v9255_v62, 2  ;;  %vm3976_vm4 = vcmp.lt.s32.totalorder %v9275_v3, 0  ;;  %v3977_v37 = vsub.s32 0, %v9275_v3 }
 0x324   : > { %vm3861_vm5 = vweird.f32 %v8342_v30  ;;  %vm3875_vm6 = vcmp.lt.s32.totalorder %v12279_v11, 0  ;;  %v3967_v6 = vadd.s32 %v9185_v19, %v9179_v44  ;;  %v4081_v33 = vmul.u32 %v4079_v2, %v4077_v12 }
 0x325   : > { %v4085_v24 = vshll.u32 %v4082_v41, 16  ;;  %v4101_v16 = vand.u32 65535, %v4071_v0  ;;  %v3852_v45 = vadd.f32 1.0, %v3851_v26  ;;  %v3859_v47 = vadd.f32 1.0, %v3858_v42 }
 0x326   : > { %v3978_v31 = vsel %vm3976_vm4, %v3977_v37, %v9275_v3  ;;  %v4102_v40 = vshrl.u32 %v4071_v0, 16  ;;  %v4084_v28 = vmul.u32 %v4080_v4, %v9273_v49  ;;  %v4087_v20 = vshll.u32 %v9284_v17, 16 }
 0x327   : > { %v3979_v55 = vclz %v3978_v31  ;;  %vm4089_vm2 = vc.u32 %v4081_v33, %v4085_v24  ;;  %v3860_v14 = vmul.f32 %v3859_v47, %v9221_v43  ;;  %v3869_v7 = vxor.u32 2147483648, %v3852_v45 }
 0x328   : > { %v4090_v63 = vsel %vm4089_vm2, 1, %v12259_v34  ;;  %v4091_v44 = vadd.s32 %v4085_v24, %v4081_v33  ;;  %v12299_v19 = vand.u32 2147483647, %v12279_v11  ;;  %v3997_v0 = vsub.s32 4, %v9252_v1 }
 0x329   : > { %v6787_v26 = vadd.s32 4294967294, %v3979_v55  ;;  %v4064_v4 = vsel %vm4060_vm10, %v4044_v10, %v9228_v22  ;;  %v4065_v43 = vsel %vm4063_vm12, %v9216_v5, 2102212464  ;;  %v3866_v42 = vxor.u32 2147483648, %v3860_v14 }
 0x32a   : > { %vm9300_vm3 = vcmp.le.f32.partialorder %v12299_v19, 0.7853982  ;;  %v4086_v37 = vshrl.u32 %v4082_v41, 16  ;;  %v4092_v33 = vadd.s32 %v4090_v63, %v4084_v28  ;;  %vm4093_vm7 = vc.u32 %v4091_v44, %v4087_v20 }
 0x32b   : > { %v3870_v24 = vsel %vm3868_vm15, %v3869_v7, %v3860_v14  ;;  %vm6788_vm8 = vcmp.lt.s32.totalorder %v6787_v26, 0  ;;  %v4094_v47 = vsel %vm4093_vm7, 1, %v12259_v34  ;;  %v4104_v31 = vmul.u32 %v4102_v40, %v4077_v12 }
 0x32c   : > { %v3867_v55 = vsel %vm3865_vm14, %v3852_v45, %v3866_v42  ;;  %v3982_v19 = vsel %vm6788_vm8, 0, %v6787_v26  ;;  %v4096_v22 = vadd.s32 %v4094_v47, %v4092_v33  ;;  %v4105_v10 = vmul.u32 %v4101_v16, %v9273_v49  ;;  %v12302_v47 = vld [vmem:[#allocation13_spill] sm:$0xff] }
 0x32d   : > { %v3871_v5 = vsel %vm3864_vm0, %v3867_v55, %v3870_v24  ;;  %v3983_v41 = vsub.s32 32, %v3982_v19  ;;  %v3987_v28 = vsub.s32 4294967266, %v3982_v19  ;;  %v4103_v20 = vmul.u32 %v4101_v16, %v4077_v12 }
 0x32e   : > { %v3872_v7 = vsel %vm3861_vm5, nan, %v3871_v5  ;;  %v3998_v14 = vsel %vm3875_vm6, %v3997_v0, %v9252_v1  ;;  %v4097_v63 = vadd.s32 %v4096_v22, %v4086_v37  ;;  %v4107_v44 = vshll.u32 %v4104_v31, 16 }
 0x32f   : > { %5051 = vmatpush.msra.mxu0 %v3872_v7  ;;  %v3984_v45 = vshll.u32 %v9275_v3, %v3982_v19  ;;  %v3985_v26 = vshrl.u32 %v3967_v6, %v3983_v41  ;;  %v3988_v42 = vadd.s32 127, %v3987_v28  ;;  %v4088_v62 = vshrl.u32 %v9284_v17, 16  ;;  %v12303_v7 = vld [vmem:[#allocation32_spill] sm:$0xff] }
 0x330   : > { %v4106_v33 = vmul.u32 %v4102_v40, %v9273_v49  ;;  %v4109_v24 = vshll.u32 %v4105_v10, 16  ;;  %vm4111_vm9 = vc.u32 %v4103_v20, %v4107_v44  ;;  %v4113_v12 = vadd.s32 %v4107_v44, %v4103_v20 }
 0x331   : > { %v3986_v30 = vor.u32 %v3985_v26, %v3984_v45  ;;  %v3989_v16 = vshll.u32 %v3988_v42, 23  ;;  %v4066_v1 = vsel %vm4062_vm13, %v9214_v15, %v4065_v43  ;;  %v4112_v0 = vsel %vm4111_vm9, 1, %v12259_v34 }
 0x332   : > { %v4000_v3 = vsel %vm9300_vm3, 0, %v3998_v14  ;;  %v9333_v6 = vadd.s32 %v4097_v63, %v4088_v62  ;;  %v4114_v37 = vadd.s32 %v4112_v0, %v4106_v33  ;;  %vm4115_vm11 = vc.u32 %v4113_v12, %v4109_v24 }
 0x333   : > { %v9337_v49 = vadd.f32 %v12298_v18, %v8802_v23  ;;  %v3990_v17 = vor.u32 4788187, %v3989_v16  ;;  %v4116_v40 = vsel %vm4115_vm11, 1, %v12259_v34  ;;  %v4183_v55 = vand.u32 2147483647, %v12302_v47 }
 0x334   : > { %v9342_v15 = vadd.s32 4294967169, %v9177_v35  ;;  %v4108_v43 = vshrl.u32 %v4104_v31, 16  ;;  %v9344_v19 = vadd.s32 %v4113_v12, %v4109_v24  ;;  %v4118_v22 = vadd.s32 %v4116_v40, %v4114_v37 }
 0x335   : > { %v3991_v5 = vand.u32 2147483647, %v3990_v17  ;;  %v3993_v41 = vcvt.s32.f32 %v3986_v30  ;;  %v4017_v28 = vadd.s32 3, %v4000_v3  ;;  %v4067_v20 = vsel %vm4061_vm1, %v4064_v4, %v4066_v1  ;;  %v12304_v4 = vld [vmem:[#allocation26_spill] sm:$0xff] }
 0x336   : > { %v4110_v23 = vshrl.u32 %v4105_v10, 16  ;;  %v4119_v18 = vadd.s32 %v4118_v22, %v4108_v43  ;;  %vm4123_vm12 = vc.u32 %v9333_v6, %v9344_v19  ;;  %v4204_v14 = vshrl.u32 %v12262_v60, %v12303_v7 }
 0x337   : > { %v3994_v35 = vmul.f32 %v3993_v41, %v3991_v5  ;;  %v4190_v31 = vand.u32 8388607, %v4183_v55  ;;  %v4201_v63 = vshrl.u32 %v12260_v38, %v12303_v7  ;;  %v4207_v44 = vshrl.u32 %v12263_v56, %v12303_v7 }
 0x338   : > { %v4120_v53 = vadd.s32 %v4119_v18, %v4110_v23  ;;  %v4203_v10 = vshll.u32 %v12260_v38, %v12304_v4  ;;  %v4206_v45 = vshll.u32 %v12262_v60, %v12304_v4  ;;  %v4210_v26 = vshrl.u32 %v12264_v54, %v12303_v7  ;;  %v12305_v18 = vld [vmem:[#allocation29_spill] sm:$0xff] }
 0x339   : > { %vm1869_vm10 = vcmp.gt.s32.totalorder %v9117_v27, 0  ;;  %v3995_v42 = vxor.u32 2147483648, %v3994_v35  ;;  %v4200_v62 = vshll.u32 %v12257_v39, %v12304_v4  ;;  %v4212_v33 = vshll.u32 %v12264_v54, %v12304_v4 }
 0x33a   : > { %v4213_v24 = vshrl.u32 %v12265_v21, %v12303_v7  ;;  %v4124_v12 = vadd.s32 1, %v4120_v53  ;;  %v9371_v30 = vor.u32 %v4204_v14, %v4203_v10  ;;  %v9373_v16 = vor.u32 %v4207_v44, %v4206_v45 }
 0x33b   : > { %v4209_v1 = vshll.u32 %v12263_v56, %v12304_v4  ;;  %v3996_v0 = vsel %vm3875_vm6, %v3995_v42, %v3994_v35  ;;  %v4121_v3 = vmul.u32 %v9250_v29, %v4067_v20  ;;  %v4191_v37 = vor.u32 8388608, %v4190_v31 }
 0x33c   : > { %v4214_v17 = vor.u32 %v4213_v24, %v4212_v33  ;;  %v9383_v40 = vsel %vm9300_vm3, %v12279_v11, %v3996_v0  ;;  %v4125_v43 = vsel %vm4123_vm12, %v4124_v12, %v4120_v53  ;;  %v9388_v22 = vor.u32 %v4201_v63, %v4200_v62 }
 0x33d   : > { %v4211_v5 = vor.u32 %v4210_v26, %v4209_v1  ;;  %v4001_v41 = vmul.f32 %v9383_v40, %v9383_v40  ;;  %v4126_v23 = vadd.s32 %v4125_v43, %v4121_v3  ;;  %vm4215_vm13 = vcmp.lt.s32.totalorder %v12305_v18, 1 }
 0x33e   : > { %vm4218_vm1 = vcmp.lt.s32.totalorder %v12305_v18, 4  ;;  %v9394_v29 = vand.u32 3, %v4017_v28  ;;  %vm4216_vm14 = vcmp.lt.s32.totalorder %v12305_v18, 2  ;;  %v4227_v2 = vsel %vm4215_vm13, %v9371_v30, %v9373_v16 }
 0x33f   : > { %v4228_v20 = vsel %vm4218_vm1, %v4214_v17, 1326507024  ;;  %v4002_v14 = vmul.f32 -0.001358992, %v4001_v41  ;;  %v4009_v35 = vmul.f32 -0.00019511016, %v4001_v41  ;;  %v4223_v28 = vsel %vm4215_vm13, %v9388_v22, %v9371_v30 }
 0x340   : > { %v4127_v31 = vadd.s32 536870912, %v4126_v23  ;;  %vm4217_vm15 = vcmp.lt.s32.totalorder %v12305_v18, 3  ;;  %v4224_v63 = vsel %vm4218_vm1, %v4211_v5, 920167782  ;;  %v9412_v53 = vshll.u32 %v4191_v37, 8 }
 0x341   : > { %v4229_v44 = vsel %vm4217_vm15, %v4211_v5, %v4228_v20  ;;  %v4003_v4 = vadd.f32 0.041655596, %v4002_v14  ;;  %v4010_v10 = vadd.f32 0.008332121, %v4009_v35  ;;  %v4225_v3 = vsel %vm4217_vm15, %v9373_v16, %v4224_v63 }
 0x342   : > { %v9414_v45 = vshrl.u32 %v4127_v31, 30  ;;  %v4230_v26 = vsel %vm4216_vm14, %v4227_v2, %v4229_v44  ;;  %v9419_v42 = vand.u32 65535, %v9412_v53  ;;  %v9422_v62 = vshrl.u32 %v9412_v53, 16 }
 0x343   : > { %v4234_v33 = vand.u32 65535, %v4230_v26  ;;  %v4235_v24 = vshrl.u32 %v4230_v26, 16  ;;  %v4004_v12 = vmul.f32 %v4003_v4, %v4001_v41  ;;  %v4011_v1 = vmul.f32 %v4010_v10, %v4001_v41 }
 0x344   : > { %v4129_v0 = vshll.u32 %v9414_v45, 30  ;;  %v9431_v37 = vsel %vm1869_vm10, %v9117_v27, 0  ;;  %v9434_v17 = vadd.s32 4294967169, %v9183_v48  ;;  %v2481_v2 = vand.u32 2139095040, %v9268_v52 }
 0x345   : > { %v4237_v43 = vmul.u32 %v4235_v24, %v9419_v42  ;;  %v9438_v5 = vmul.u32 %v4234_v33, %v9422_v62  ;;  %v4005_v20 = vadd.f32 -0.4999988, %v4004_v12  ;;  %v4012_v14 = vadd.f32 -0.16666654, %v4011_v1 }
 0x346   : > { %v9441_v35 = vsub.s32 %v4126_v23, %v4129_v0  ;;  %vm4020_vm0 = vcmp.eq.s32.totalorder %v9394_v29, 0  ;;  %v4199_v27 = vshrl.u32 %v12257_v39, %v12303_v7  ;;  %v4226_v48 = vsel %vm4216_vm14, %v4223_v28, %v4225_v3 }
 0x347   : > { %v4236_v31 = vmul.u32 %v4234_v33, %v9419_v42  ;;  %v4240_v63 = vshll.u32 %v4237_v43, 16  ;;  %v4006_v44 = vmul.f32 %v4005_v20, %v4001_v41  ;;  %v4013_v4 = vmul.f32 %v4012_v14, %v4001_v41 }
 0x348   : > { %vm4019_vm4 = vcmp.lt.s32.totalorder %v9394_v29, 2  ;;  %vm4030_vm5 = vcmp.lt.s32.totalorder %v12286_v51, 0  ;;  %vm4131_vm6 = vcmp.lt.s32.totalorder %v9441_v35, 0  ;;  %v4132_v23 = vsub.s32 0, %v9441_v35 }
 0x349   : > { %vm4016_vm2 = vweird.f32 %v12279_v11  ;;  %v4239_v7 = vmul.u32 %v4235_v24, %v9422_v62  ;;  %v4242_v10 = vshll.u32 %v9438_v5, 16  ;;  %vm4244_vm3 = vc.u32 %v4236_v31, %v4240_v63 }
 0x34a   : > { %v4246_v28 = vadd.s32 %v4240_v63, %v4236_v31  ;;  %v4007_v26 = vadd.f32 1.0, %v4006_v44  ;;  %v4014_v33 = vadd.f32 1.0, %v4013_v4  ;;  %v4133_v41 = vsel %vm4131_vm6, %v4132_v23, %v9441_v35 }
 0x34b   : > { %v4245_v12 = vsel %vm4244_vm3, 1, %v12259_v34  ;;  %v4134_v1 = vclz %v4133_v41  ;;  %v4220_v0 = vsel %vm4218_vm1, %v9373_v16, 2102212464  ;;  %v12306_v14 = vand.u32 2147483647, %v12286_v51 }
 0x34c   : > { %v4247_v3 = vadd.s32 %v4245_v12, %v4239_v7  ;;  %vm4248_vm7 = vc.u32 %v4246_v28, %v4242_v10  ;;  %v4015_v20 = vmul.f32 %v4014_v33, %v9383_v40  ;;  %v4024_v24 = vxor.u32 2147483648, %v4007_v26 }
 0x34d   : > { %vm9464_vm8 = vcmp.le.f32.partialorder %v12306_v14, 0.7853982  ;;  %v4249_v63 = vsel %vm4248_vm7, 1, %v12259_v34  ;;  %v4256_v44 = vand.u32 65535, %v4226_v48  ;;  %vm4023_vm9 = vcmp.eq.s32.totalorder %v9394_v29, 2 }
 0x34e   : > { %v4122_v4 = vadd.s32 %v9344_v19, %v9333_v6  ;;  %v6790_v16 = vadd.s32 4294967294, %v4134_v1  ;;  %v4152_v23 = vsub.s32 4, %v9414_v45  ;;  %v4021_v7 = vxor.u32 2147483648, %v4015_v20 }
 0x34f   : > { %v4219_v40 = vsel %vm4215_vm13, %v4199_v27, %v9388_v22  ;;  %v4251_v10 = vadd.s32 %v4249_v63, %v4247_v3  ;;  %v4257_v28 = vshrl.u32 %v4226_v48, 16  ;;  %v4025_v33 = vsel %vm4023_vm9, %v4024_v24, %v4015_v20 }
 0x350   : > { %vm6791_vm11 = vcmp.lt.s32.totalorder %v6790_v16, 0  ;;  %v4221_v41 = vsel %vm4217_vm15, %v9371_v30, %v4220_v0  ;;  %v4241_v12 = vshrl.u32 %v4237_v43, 16  ;;  %v4022_v6 = vsel %vm4020_vm0, %v4007_v26, %v4021_v7 }
 0x351   : > { %v4137_v19 = vsel %vm6791_vm11, 0, %v6790_v16  ;;  %v4259_v1 = vmul.u32 %v4257_v28, %v9419_v42  ;;  %v4260_v14 = vmul.u32 %v4256_v44, %v9422_v62  ;;  %v4026_v22 = vsel %vm4019_vm4, %v4022_v6, %v4025_v33 }
 0x352   : > { %v4138_v27 = vsub.s32 32, %v4137_v19  ;;  %v4142_v48 = vsub.s32 4294967266, %v4137_v19  ;;  %v4153_v3 = vsel %vm4030_vm5, %v4152_v23, %v9414_v45  ;;  %v4027_v30 = vsel %vm4016_vm2, nan, %v4026_v22 }
 0x353   : > { %v4252_v43 = vadd.s32 %v4251_v10, %v4241_v12  ;;  %v4258_v26 = vmul.u32 %v4256_v44, %v9419_v42  ;;  %v4262_v0 = vshll.u32 %v4259_v1, 16  ;;  %5092 = vmatpush.msra.mxu1 %v4027_v30  ;;  %v4139_v20 = vshll.u32 %v9441_v35, %v4137_v19  ;;  %v12309_v35 = vld [vmem:[#allocation22_spill] sm:$0xff] }
 0x354   : > { %v4140_v24 = vshrl.u32 %v4122_v4, %v4138_v27  ;;  %v4143_v63 = vadd.s32 127, %v4142_v48  ;;  %v4243_v29 = vshrl.u32 %v9438_v5, 16  ;;  %v4261_v16 = vmul.u32 %v4257_v28, %v9422_v62 }
 0x355   : > { %v4264_v7 = vshll.u32 %v4260_v14, 16  ;;  %vm4266_vm12 = vc.u32 %v4258_v26, %v4262_v0  ;;  %v4268_v33 = vadd.s32 %v4262_v0, %v4258_v26  ;;  %v4155_v11 = vsel %vm9464_vm8, 0, %v4153_v3 }
 0x356   : > { %v4141_v45 = vor.u32 %v4140_v24, %v4139_v20  ;;  %v4144_v23 = vshll.u32 %v4143_v63, 23  ;;  %v4267_v42 = vsel %vm4266_vm12, 1, %v12259_v34  ;;  %v9497_v44 = vadd.s32 %v4252_v43, %v4243_v29 }
 0x357   : > { %v4269_v10 = vadd.s32 %v4267_v42, %v4261_v16  ;;  %vm4270_vm10 = vc.u32 %v4268_v33, %v4264_v7  ;;  %v12195_v4 = vand.u32 2147483647, %v12309_v35  ;;  %v9502_v5 = vshrl.u32 %v2481_v2, 23 }
 0x358   : > { %v4145_v28 = vor.u32 4788187, %v4144_v23  ;;  %v4271_v12 = vsel %vm4270_vm10, 1, %v12259_v34  ;;  %v4222_v6 = vsel %vm4216_vm14, %v4219_v40, %v4221_v41  ;;  %v4263_v19 = vshrl.u32 %v4259_v1, 16 }
 0x359   : > { %v9508_v22 = vadd.s32 %v4268_v33, %v4264_v7  ;;  %v4273_v27 = vadd.s32 %v4271_v12, %v4269_v10  ;;  %v4148_v3 = vcvt.s32.f32 %v4141_v45  ;;  %v4172_v30 = vadd.s32 3, %v4155_v11 }
 0x35a   : > { %v4146_v48 = vand.u32 2147483647, %v4145_v28  ;;  %v4265_v43 = vshrl.u32 %v4260_v14, 16  ;;  %v3105_v2 = vand.u32 8388607, %v12195_v4  ;;  %v3119_v0 = vshrl.u32 %v12262_v60, %v9033_v8 }
 0x35b   : > { %v4274_v26 = vadd.s32 %v4273_v27, %v4263_v19  ;;  %vm4278_vm13 = vc.u32 %v9497_v44, %v9508_v22  ;;  %v3116_v40 = vshrl.u32 %v12260_v38, %v9033_v8  ;;  %v3118_v41 = vshll.u32 %v12260_v38, %v8877_v36 }
 0x35c   : > { %v4149_v18 = vmul.f32 %v4148_v3, %v4146_v48  ;;  %v3122_v1 = vshrl.u32 %v12263_v56, %v9033_v8  ;;  %v3121_v20 = vshll.u32 %v12262_v60, %v8877_v36  ;;  %v3124_v24 = vshll.u32 %v12263_v56, %v8877_v36 }
 0x35d   : > { %v4275_v14 = vadd.s32 %v4274_v26, %v4265_v43  ;;  %v3125_v63 = vshrl.u32 %v12264_v54, %v9033_v8  ;;  %v3115_v16 = vshll.u32 %v12257_v39, %v8877_v36  ;;  %v3127_v7 = vshll.u32 %v12264_v54, %v8877_v36 }
 0x35e   : > { %v4150_v29 = vxor.u32 2147483648, %v4149_v18  ;;  %v3128_v33 = vshrl.u32 %v12265_v21, %v9033_v8  ;;  %v9534_v23 = vor.u32 %v3119_v0, %v3118_v41  ;;  %v9536_v11 = vor.u32 %v3122_v1, %v3121_v20 }
 0x35f   : > { %v4279_v45 = vadd.s32 1, %v4275_v14  ;;  %v3126_v42 = vor.u32 %v3125_v63, %v3124_v24  ;;  %v4276_v28 = vmul.u32 %v9412_v53, %v4222_v6  ;;  %v3106_v12 = vor.u32 8388608, %v3105_v2 }
 0x360   : > { %v4151_v10 = vsel %vm4030_vm5, %v4150_v29, %v4149_v18  ;;  %v3129_v19 = vor.u32 %v3128_v33, %v3127_v7  ;;  %v9549_v48 = vor.u32 %v3116_v40, %v3115_v16  ;;  %vm3133_vm1 = vcmp.lt.s32.totalorder %v8873_v50, 4 }
 0x361   : > { %v9544_v36 = vsel %vm9464_vm8, %v12286_v51, %v4151_v10  ;;  %v4280_v27 = vsel %vm4278_vm13, %v4279_v45, %v4275_v14  ;;  %vm3130_vm14 = vcmp.lt.s32.totalorder %v8873_v50, 1  ;;  %v3139_v53 = vsel %vm3133_vm1, %v3126_v42, 920167782 }
 0x362   : > { %v4156_v3 = vmul.f32 %v9544_v36, %v9544_v36  ;;  %v4281_v43 = vadd.s32 %v4280_v27, %v4276_v28  ;;  %v9557_v31 = vand.u32 3, %v4172_v30  ;;  %vm3131_vm15 = vcmp.lt.s32.totalorder %v8873_v50, 2 }
 0x363   : > { %v3142_v6 = vsel %vm3130_vm14, %v9534_v23, %v9536_v11  ;;  %v3143_v26 = vsel %vm3133_vm1, %v3129_v19, 1326507024  ;;  %vm3132_vm0 = vcmp.lt.s32.totalorder %v8873_v50, 3  ;;  %v3138_v30 = vsel %vm3130_vm14, %v9549_v48, %v9534_v23  ;;  %v12310_v19 = vld [vmem:[#allocation20_spill] sm:$0xff] }
 0x364   : > { %v4157_v2 = vmul.f32 -0.001358992, %v4156_v3  ;;  %v4164_v0 = vmul.f32 -0.00019511016, %v4156_v3  ;;  %v4282_v18 = vadd.s32 536870912, %v4281_v43  ;;  %v3140_v40 = vsel %vm3132_vm0, %v9536_v11, %v3139_v53 }
 0x365   : > { %v3144_v41 = vsel %vm3132_vm0, %v3126_v42, %v3143_v26  ;;  %v9576_v1 = vshll.u32 %v3106_v12, 8  ;;  %v3141_v42 = vsel %vm3131_vm15, %v3138_v30, %v3140_v40  ;;  %v9589_v12 = vadd.s32 4294967169, %v9502_v5 }
 0x366   : > { %v4158_v14 = vadd.f32 0.041655596, %v4157_v2  ;;  %v4165_v20 = vadd.f32 0.008332121, %v4164_v0  ;;  %v4283_v24 = vshrl.u32 %v4282_v18, 30  ;;  %v3145_v63 = vsel %vm3131_vm15, %v3142_v6, %v3144_v41 }
 0x367   : > { %v9581_v29 = vand.u32 65535, %v9576_v1  ;;  %v9584_v16 = vshrl.u32 %v9576_v1, 16  ;;  %v3149_v7 = vand.u32 65535, %v3145_v63  ;;  %v3150_v33 = vshrl.u32 %v3145_v63, 16 }
 0x368   : > { %v4159_v45 = vmul.f32 %v4158_v14, %v4156_v3  ;;  %v4166_v10 = vmul.f32 %v4165_v20, %v4156_v3  ;;  %v4284_v28 = vshll.u32 %v4283_v24, 30  ;;  %vm4185_vm4 = vcmp.lt.s32.totalorder %v12302_v47, 0 }
 0x369   : > { %v3152_v53 = vmul.u32 %v3150_v33, %v9581_v29  ;;  %v9594_v6 = vmul.u32 %v3149_v7, %v9584_v16  ;;  %vm4175_vm5 = vcmp.eq.s32.totalorder %v9557_v31, 0  ;;  %v3114_v18 = vshrl.u32 %v12257_v39, %v9033_v8 }
 0x36a   : > { %v4160_v26 = vadd.f32 -0.4999988, %v4159_v45  ;;  %v4167_v2 = vadd.f32 -0.16666654, %v4166_v10  ;;  %v9597_v0 = vsub.s32 %v4281_v43, %v4284_v28  ;;  %v3151_v5 = vmul.u32 %v3149_v7, %v9581_v29 }
 0x36b   : > { %v3155_v30 = vshll.u32 %v3152_v53, 16  ;;  %v3172_v40 = vshrl.u32 %v3141_v42, 16  ;;  %vm4174_vm6 = vcmp.lt.s32.totalorder %v9557_v31, 2  ;;  %vm4171_vm3 = vweird.f32 %v12286_v51 }
 0x36c   : > { %v4161_v41 = vmul.f32 %v4160_v26, %v4156_v3  ;;  %v4168_v14 = vmul.f32 %v4167_v2, %v4156_v3  ;;  %vm4286_vm2 = vcmp.lt.s32.totalorder %v9597_v0, 0  ;;  %v4287_v20 = vsub.s32 0, %v9597_v0 }
 0x36d   : > { %v3154_v43 = vmul.u32 %v3150_v33, %v9584_v16  ;;  %v3157_v63 = vshll.u32 %v9594_v6, 16  ;;  %vm3159_vm7 = vc.u32 %v3151_v5, %v3155_v30  ;;  %v3161_v8 = vadd.s32 %v3155_v30, %v3151_v5 }
 0x36e   : > { %v4162_v45 = vadd.f32 1.0, %v4161_v41  ;;  %v4169_v7 = vadd.f32 1.0, %v4168_v14  ;;  %v4288_v10 = vsel %vm4286_vm2, %v4287_v20, %v9597_v0  ;;  %v3160_v3 = vsel %vm3159_vm7, 1, %v12259_v34 }
 0x36f   : > { %v4289_v28 = vclz %v4288_v10  ;;  %v4307_v26 = vsub.s32 4, %v4283_v24  ;;  %v3162_v2 = vadd.s32 %v3160_v3, %v3154_v43  ;;  %vm3163_vm8 = vc.u32 %v3161_v8, %v3157_v63 }
 0x370   : > { %v4170_v4 = vmul.f32 %v4169_v7, %v9544_v36  ;;  %v4179_v27 = vxor.u32 2147483648, %v4162_v45  ;;  %v3164_v62 = vsel %vm3163_vm8, 1, %v12259_v34  ;;  %v3171_v33 = vand.u32 65535, %v3141_v42 }
 0x371   : > { %vm4178_vm9 = vcmp.eq.s32.totalorder %v9557_v31, 2  ;;  %vm9616_vm11 = vcmp.le.f32.partialorder %v4183_v55, 0.7853982  ;;  %v4277_v30 = vadd.s32 %v9508_v22, %v9497_v44  ;;  %v6793_v41 = vadd.s32 4294967294, %v4289_v28 }
 0x372   : > { %v3134_v36 = vsel %vm3130_vm14, %v3114_v18, %v9549_v48  ;;  %v4176_v14 = vxor.u32 2147483648, %v4170_v4  ;;  %v3135_v42 = vsel %vm3133_vm1, %v9536_v11, 2102212464  ;;  %v3166_v20 = vadd.s32 %v3164_v62, %v3162_v2 }
 0x373   : > { %v3174_v43 = vmul.u32 %v3172_v40, %v9581_v29  ;;  %v4180_v55 = vsel %vm4178_vm9, %v4179_v27, %v4170_v4  ;;  %vm6794_vm12 = vcmp.lt.s32.totalorder %v6793_v41, 0  ;;  %v4308_v63 = vsel %vm4185_vm4, %v4307_v26, %v4283_v24 }
 0x374   : > { %v3156_v8 = vshrl.u32 %v3152_v53, 16  ;;  %v4177_v44 = vsel %vm4175_vm5, %v4162_v45, %v4176_v14  ;;  %v4292_v22 = vsel %vm6794_vm12, 0, %v6793_v41  ;;  %v3175_v48 = vmul.u32 %v3171_v33, %v9584_v16  ;;  %v12313_v41 = vld [vmem:[#allocation24_spill] sm:$0xff] }
 0x375   : > { %v3177_v18 = vshll.u32 %v3174_v43, 16  ;;  %v4181_v7 = vsel %vm4174_vm6, %v4177_v44, %v4180_v55  ;;  %v4293_v11 = vsub.s32 32, %v4292_v22  ;;  %v4297_v62 = vsub.s32 4294967266, %v4292_v22 }
 0x376   : > { %v3173_v10 = vmul.u32 %v3171_v33, %v9581_v29  ;;  %v4182_v4 = vsel %vm4171_vm3, nan, %v4181_v7  ;;  %v3158_v24 = vshrl.u32 %v9594_v6, 16  ;;  %v3167_v27 = vadd.s32 %v3166_v20, %v3156_v8 }
 0x377   : > { %v3176_v53 = vmul.u32 %v3172_v40, %v9584_v16  ;;  %5133 = vmatpush.msra.mxu2 %v4182_v4  ;;  %v4294_v45 = vshll.u32 %v9597_v0, %v4292_v22  ;;  %v4295_v3 = vshrl.u32 %v4277_v30, %v4293_v11  ;;  %v4298_v28 = vadd.s32 127, %v4297_v62  ;;  %v12314_v16 = vld [vmem:[#allocation21_spill] sm:$0xff] }
 0x378   : > { %vm3181_vm10 = vc.u32 %v3173_v10, %v3177_v18  ;;  %v3179_v31 = vshll.u32 %v3175_v48, 16  ;;  %v3183_v2 = vadd.s32 %v3177_v18, %v3173_v10  ;;  %v3253_v29 = vand.u32 2147483647, %v12313_v41 }
 0x379   : > { %v3182_v26 = vsel %vm3181_vm10, 1, %v12259_v34  ;;  %v4296_v33 = vor.u32 %v4295_v3, %v4294_v45  ;;  %v4299_v51 = vshll.u32 %v4298_v28, 23  ;;  %v3136_v6 = vsel %vm3132_vm0, %v9534_v23, %v3135_v42 }
 0x37a   : > { %v3184_v14 = vadd.s32 %v3182_v26, %v3176_v53  ;;  %v2946_v40 = vand.u32 2139095040, %v12314_v16  ;;  %v4310_v0 = vsel %vm9616_vm11, 0, %v4308_v63  ;;  %v9650_v30 = vadd.s32 %v3167_v27, %v3158_v24 }
 0x37b   : > { %vm3185_vm13 = vc.u32 %v3183_v2, %v3179_v31  ;;  %v9653_v20 = vadd.s32 1, %v9589_v12  ;;  %v4300_v55 = vor.u32 4788187, %v4299_v51  ;;  %v3260_v44 = vand.u32 8388607, %v3253_v29 }
 0x37c   : > { %v3186_v8 = vsel %vm3185_vm13, 1, %v12259_v34  ;;  %v3137_v23 = vsel %vm3131_vm15, %v3134_v36, %v3136_v6  ;;  %v3178_v42 = vshrl.u32 %v3174_v43, 16  ;;  %v9660_v22 = vadd.s32 %v3183_v2, %v3179_v31 }
 0x37d   : > { %v3188_v18 = vadd.s32 %v3186_v8, %v3184_v14  ;;  %v4301_v63 = vand.u32 2147483647, %v4300_v55  ;;  %v4303_v7 = vcvt.s32.f32 %v4296_v33  ;;  %v4327_v11 = vadd.s32 3, %v4310_v0 }
 0x37e   : > { %v3180_v62 = vshrl.u32 %v3175_v48, 16  ;;  %vm3193_vm1 = vc.u32 %v9650_v30, %v9660_v22  ;;  %v3274_v12 = vshrl.u32 %v12262_v60, %v9076_v32  ;;  %v3277_v4 = vshrl.u32 %v12263_v56, %v9076_v32 }
 0x37f   : > { %v3189_v10 = vadd.s32 %v3188_v18, %v3178_v42  ;;  %v4304_v50 = vmul.f32 %v4303_v7, %v4301_v63  ;;  %v3261_v36 = vor.u32 8388608, %v3260_v44  ;;  %v3279_v43 = vshll.u32 %v12263_v56, %v8949_v59 }
 0x380   : > { %v3280_v24 = vshrl.u32 %v12264_v54, %v9076_v32  ;;  %v3271_v48 = vshrl.u32 %v12260_v38, %v9076_v32  ;;  %v3273_v53 = vshll.u32 %v12260_v38, %v8949_v59  ;;  %v3276_v45 = vshll.u32 %v12262_v60, %v8949_v59 }
 0x381   : > { %v3190_v27 = vadd.s32 %v3189_v10, %v3180_v62  ;;  %v4305_v3 = vxor.u32 2147483648, %v4304_v50  ;;  %v3282_v31 = vshll.u32 %v12264_v54, %v8949_v59  ;;  %v3283_v26 = vshrl.u32 %v12265_v21, %v9076_v32 }
 0x382   : > { %v3281_v28 = vor.u32 %v3280_v24, %v3279_v43  ;;  %v3270_v33 = vshll.u32 %v12257_v39, %v8949_v59  ;;  %v9684_v51 = vor.u32 %v3274_v12, %v3273_v53  ;;  %v3278_v6 = vor.u32 %v3277_v4, %v3276_v45 }
 0x383   : > { %v3194_v2 = vadd.s32 1, %v3190_v27  ;;  %v12315_v14 = vand.u32 2139095040, %v9337_v49  ;;  %v4306_v55 = vsel %vm4185_vm4, %v4305_v3, %v4304_v50  ;;  %v3191_v8 = vmul.u32 %v9576_v1, %v3137_v23 }
 0x384   : > { %v3284_v44 = vor.u32 %v3283_v26, %v3282_v31  ;;  %v9696_v42 = vsel %vm9616_vm11, %v12302_v47, %v4306_v55  ;;  %v9701_v18 = vor.u32 %v3271_v48, %v3270_v33  ;;  %vm3288_vm14 = vcmp.lt.s32.totalorder %v8925_v57, 4 }
 0x385   : > { %v9688_v0 = vshrl.u32 %v12315_v14, 23  ;;  %v3195_v59 = vsel %vm3193_vm1, %v3194_v2, %v3190_v27  ;;  %v4311_v63 = vmul.f32 %v9696_v42, %v9696_v42  ;;  %vm3285_vm15 = vcmp.lt.s32.totalorder %v8925_v57, 1 }
 0x386   : > { %v3196_v7 = vadd.s32 %v3195_v59, %v3191_v8  ;;  %v3294_v1 = vsel %vm3288_vm14, %v3281_v28, 920167782  ;;  %v9709_v5 = vand.u32 3, %v4327_v11  ;;  %v3297_v23 = vsel %vm3285_vm15, %v9684_v51, %v3278_v6 }
 0x387   : > { %v3298_v62 = vsel %vm3288_vm14, %v3284_v44, 1326507024  ;;  %v9716_v10 = vshll.u32 %v3261_v36, 8  ;;  %v4312_v12 = vmul.f32 -0.001358992, %v4311_v63  ;;  %vm3287_vm0 = vcmp.lt.s32.totalorder %v8925_v57, 3 }
 0x388   : > { %v4319_v4 = vmul.f32 -0.00019511016, %v4311_v63  ;;  %v3197_v50 = vadd.s32 536870912, %v3196_v7  ;;  %vm3286_vm4 = vcmp.lt.s32.totalorder %v8925_v57, 2  ;;  %v3293_v11 = vsel %vm3285_vm15, %v9701_v18, %v9684_v51 }
 0x389   : > { %v3295_v43 = vsel %vm3287_vm0, %v3278_v6, %v3294_v1  ;;  %v3299_v24 = vsel %vm3287_vm0, %v3281_v28, %v3298_v62  ;;  %v4313_v36 = vadd.f32 0.041655596, %v4312_v12  ;;  %v3302_v45 = vand.u32 65535, %v9716_v10 }
 0x38a   : > { %v4320_v27 = vadd.f32 0.008332121, %v4319_v4  ;;  %v9728_v48 = vshrl.u32 %v3197_v50, 30  ;;  %v3300_v53 = vsel %vm3286_vm4, %v3297_v23, %v3299_v24  ;;  %v3303_v3 = vshrl.u32 %v9716_v10, 16 }
 0x38b   : > { %v3304_v31 = vand.u32 65535, %v3300_v53  ;;  %v3305_v26 = vshrl.u32 %v3300_v53, 16  ;;  %v4314_v2 = vmul.f32 %v4313_v36, %v4311_v63  ;;  %v3296_v28 = vsel %vm3286_vm4, %v3293_v11, %v3295_v43 }
 0x38c   : > { %v4321_v33 = vmul.f32 %v4320_v27, %v4311_v63  ;;  %v3199_v14 = vshll.u32 %v9728_v48, 30  ;;  %v12316_v55 = vand.u32 2139095040, %v12310_v19  ;;  %v3269_v44 = vshrl.u32 %v12257_v39, %v9076_v32 }
 0x38d   : > { %v3307_v59 = vmul.u32 %v3305_v26, %v3302_v45  ;;  %v9743_v1 = vmul.u32 %v3304_v31, %v3303_v3  ;;  %v4315_v23 = vadd.f32 -0.4999988, %v4314_v2  ;;  %v3290_v4 = vsel %vm3288_vm14, %v3278_v6, 2102212464 }
 0x38e   : > { %v9739_v8 = vshrl.u32 %v12316_v55, 23  ;;  %v4322_v62 = vadd.f32 -0.16666654, %v4321_v33  ;;  %v9745_v12 = vsub.s32 %v3196_v7, %v3199_v14  ;;  %vm4330_vm5 = vcmp.eq.s32.totalorder %v9709_v5, 0 }
 0x38f   : > { %vm4333_vm6 = vcmp.eq.s32.totalorder %v9709_v5, 2  ;;  %v3306_v50 = vmul.u32 %v3304_v31, %v3302_v45  ;;  %v3310_v11 = vshll.u32 %v3307_v59, 16  ;;  %v3326_v43 = vand.u32 65535, %v3296_v28 }
 0x390   : > { %v3327_v24 = vshrl.u32 %v3296_v28, 16  ;;  %v4316_v36 = vmul.f32 %v4315_v23, %v4311_v63  ;;  %v4323_v32 = vmul.f32 %v4322_v62, %v4311_v63  ;;  %vm4329_vm2 = vcmp.lt.s32.totalorder %v9709_v5, 2 }
 0x391   : > { %vm3201_vm3 = vcmp.lt.s32.totalorder %v9745_v12, 0  ;;  %v3202_v7 = vsub.s32 0, %v9745_v12  ;;  %vm4326_vm7 = vweird.f32 %v12302_v47  ;;  %v3309_v27 = vmul.u32 %v3305_v26, %v3303_v3 }
 0x392   : > { %v3312_v6 = vshll.u32 %v9743_v1, 16  ;;  %vm3314_vm8 = vc.u32 %v3306_v50, %v3310_v11  ;;  %v3316_v53 = vadd.s32 %v3310_v11, %v3306_v50  ;;  %v4317_v2 = vadd.f32 1.0, %v4316_v36 }
 0x393   : > { %v4324_v31 = vadd.f32 1.0, %v4323_v32  ;;  %v3203_v33 = vsel %vm3201_vm3, %v3202_v7, %v9745_v12  ;;  %v3315_v14 = vsel %vm3314_vm8, 1, %v12259_v34  ;;  %vm3100_vm9 = vcmp.lt.s32.totalorder %v12309_v35, 0 }
 0x394   : > { %v3192_v63 = vadd.s32 %v9660_v22, %v9650_v30  ;;  %v3204_v28 = vclz %v3203_v33  ;;  %v3317_v55 = vadd.s32 %v3315_v14, %v3309_v27  ;;  %vm3318_vm11 = vc.u32 %v3316_v53, %v3312_v6 }
 0x395   : > { %v4325_v26 = vmul.f32 %v4324_v31, %v9696_v42  ;;  %v4334_v23 = vxor.u32 2147483648, %v4317_v2  ;;  %v3319_v62 = vsel %vm3318_vm11, 1, %v12259_v34  ;;  %v3329_v50 = vmul.u32 %v3327_v24, %v3302_v45 }
 0x396   : > { %v6772_v11 = vadd.s32 4294967294, %v3204_v28  ;;  %v3289_v36 = vsel %vm3285_vm15, %v3269_v44, %v9701_v18  ;;  %v3291_v32 = vsel %vm3287_vm0, %v9684_v51, %v3290_v4  ;;  %v3328_v7 = vmul.u32 %v3326_v43, %v3302_v45 }
 0x397   : > { %v4331_v30 = vxor.u32 2147483648, %v4325_v26  ;;  %v3222_v22 = vsub.s32 4, %v9728_v48  ;;  %v3321_v27 = vadd.s32 %v3319_v62, %v3317_v55  ;;  %v3330_v6 = vmul.u32 %v3326_v43, %v3303_v3 }
 0x398   : > { %vm6773_vm12 = vcmp.lt.s32.totalorder %v6772_v11, 0  ;;  %v3311_v42 = vshrl.u32 %v3307_v59, 16  ;;  %v3313_v53 = vshrl.u32 %v9743_v1, 16  ;;  %v3332_v31 = vshll.u32 %v3329_v50, 16 }
 0x399   : > { %v4332_v33 = vsel %vm4330_vm5, %v4317_v2, %v4331_v30  ;;  %v4335_v18 = vsel %vm4333_vm6, %v4334_v23, %v4325_v26  ;;  %v3207_v44 = vsel %vm6773_vm12, 0, %v6772_v11  ;;  %v3331_v14 = vmul.u32 %v3327_v24, %v3303_v3  ;;  %v12317_v24 = vld [vmem:[#allocation15_spill] sm:$0xff] }
 0x39a   : > { %v4336_v51 = vsel %vm4329_vm2, %v4332_v33, %v4335_v18  ;;  %v3208_v45 = vsub.s32 32, %v3207_v44  ;;  %v3212_v4 = vsub.s32 4294967266, %v3207_v44  ;;  %v3322_v28 = vadd.s32 %v3321_v27, %v3311_v42 }
 0x39b   : > { %v4337_v59 = vsel %vm4326_vm7, nan, %v4336_v51  ;;  %v3209_v1 = vshll.u32 %v9745_v12, %v3207_v44  ;;  %v3334_v43 = vshll.u32 %v3330_v6, 16  ;;  %vm3336_vm10 = vc.u32 %v3328_v7, %v3332_v31 }
 0x39c   : > { %5174 = vmatpush.msra.mxu3 %v4337_v59  ;;  %v3210_v2 = vshrl.u32 %v3192_v63, %v3208_v45  ;;  %v3213_v55 = vadd.s32 127, %v3212_v4  ;;  %v3337_v26 = vsel %vm3336_vm10, 1, %v12259_v34  ;;  %v3338_v23 = vadd.s32 %v3332_v31, %v3328_v7 }
 0x39d   : > { %vm2489_vm13 = vcmp.gt.s32.totalorder %v9653_v20, 0  ;;  %v3223_v5 = vsel %vm3100_vm9, %v3222_v22, %v9728_v48  ;;  %v3339_v3 = vadd.s32 %v3337_v26, %v3331_v14  ;;  %v12196_v47 = vand.u32 2147483647, %v12317_v24 }
 0x39e   : > { %v3211_v62 = vor.u32 %v3210_v2, %v3209_v1  ;;  %v3214_v11 = vshll.u32 %v3213_v55, 23  ;;  %v9786_v12 = vadd.s32 %v3322_v28, %v3313_v53  ;;  %vm3340_vm1 = vc.u32 %v3338_v23, %v3334_v43 }
 0x39f   : > { %v9789_v63 = vadd.s32 4294967169, %v9688_v0  ;;  %v12318_v30 = vand.u32 2147483647, %v12309_v35  ;;  %v3292_v48 = vsel %vm3286_vm4, %v3289_v36, %v3291_v32  ;;  %v3341_v22 = vsel %vm3340_vm1, 1, %v12259_v34 }
 0x3a0   : > { %v3215_v27 = vor.u32 4788187, %v3214_v11  ;;  %v3333_v42 = vshrl.u32 %v3329_v50, 16  ;;  %v9800_v31 = vadd.s32 %v3338_v23, %v3334_v43  ;;  %v3343_v53 = vadd.s32 %v3341_v22, %v3339_v3 }
 0x3a1   : > { %vm9793_vm14 = vcmp.le.f32.partialorder %v12318_v30, 0.7853982  ;;  %v3218_v33 = vcvt.s32.f32 %v3211_v62  ;;  %v3335_v18 = vshrl.u32 %v3330_v6, 16  ;;  %v3415_v44 = vand.u32 8388607, %v12196_v47 }
 0x3a2   : > { %v3225_v0 = vsel %vm9793_vm14, 0, %v3223_v5  ;;  %v3216_v14 = vand.u32 2147483647, %v3215_v27  ;;  %v3344_v51 = vadd.s32 %v3343_v53, %v3333_v42  ;;  %vm3348_vm15 = vc.u32 %v9786_v12, %v9800_v31 }
 0x3a3   : > { %v3426_v57 = vshrl.u32 %v12260_v38, %v9114_v46  ;;  %v3428_v50 = vshll.u32 %v12260_v38, %v8963_v58  ;;  %v3429_v36 = vshrl.u32 %v12262_v60, %v9114_v46  ;;  %v3431_v32 = vshll.u32 %v12262_v60, %v8963_v58 }
 0x3a4   : > { %v3432_v6 = vshrl.u32 %v12263_v56, %v9114_v46  ;;  %v3219_v45 = vmul.f32 %v3218_v33, %v3216_v14  ;;  %v3345_v4 = vadd.s32 %v3344_v51, %v3335_v18  ;;  %v3434_v28 = vshll.u32 %v12263_v56, %v8963_v58 }
 0x3a5   : > { %v3435_v59 = vshrl.u32 %v12264_v54, %v9114_v46  ;;  %v3425_v1 = vshll.u32 %v12257_v39, %v8963_v58  ;;  %v9824_v43 = vor.u32 %v3429_v36, %v3428_v50  ;;  %v3437_v2 = vshll.u32 %v12264_v54, %v8963_v58 }
 0x3a6   : > { %v3438_v55 = vshrl.u32 %v12265_v21, %v9114_v46  ;;  %v3220_v26 = vxor.u32 2147483648, %v3219_v45  ;;  %v3349_v23 = vadd.s32 1, %v3345_v4  ;;  %v9830_v5 = vor.u32 %v3432_v6, %v3431_v32 }
 0x3a7   : > { %v3436_v3 = vor.u32 %v3435_v59, %v3434_v28  ;;  %v9835_v62 = vsel %vm2489_vm13, %v9653_v20, 0  ;;  %v3346_v11 = vmul.u32 %v9716_v10, %v3292_v48  ;;  %v3416_v30 = vor.u32 8388608, %v3415_v44 }
 0x3a8   : > { %v3439_v22 = vor.u32 %v3438_v55, %v3437_v2  ;;  %v3221_v58 = vsel %vm3100_vm9, %v3220_v26, %v3219_v45  ;;  %v3242_v27 = vadd.s32 3, %v3225_v0  ;;  %v3350_v42 = vsel %vm3348_vm15, %v3349_v23, %v3345_v4 }
 0x3a9   : > { %v9843_v53 = vor.u32 %v3426_v57, %v3425_v1  ;;  %v9848_v33 = vsel %vm9793_vm14, %v12309_v35, %v3221_v58  ;;  %v3351_v20 = vadd.s32 %v3350_v42, %v3346_v11  ;;  %vm3440_vm0 = vcmp.lt.s32.totalorder %v8952_v25, 1 }
 0x3aa   : > { %vm3443_vm4 = vcmp.lt.s32.totalorder %v8952_v25, 4  ;;  %v3226_v10 = vmul.f32 %v9848_v33, %v9848_v33  ;;  %vm3441_vm5 = vcmp.lt.s32.totalorder %v8952_v25, 2  ;;  %v3452_v7 = vsel %vm3440_vm0, %v9824_v43, %v9830_v5 }
 0x3ab   : > { %v3449_v48 = vsel %vm3443_vm4, %v3436_v3, 920167782  ;;  %v3352_v0 = vadd.s32 536870912, %v3351_v20  ;;  %vm3442_vm6 = vcmp.lt.s32.totalorder %v8952_v25, 3  ;;  %v3453_v18 = vsel %vm3443_vm4, %v3439_v22, 1326507024 }
 0x3ac   : > { %v9864_v44 = vshll.u32 %v3416_v30, 8  ;;  %v3227_v14 = vmul.f32 -0.001358992, %v3226_v10  ;;  %v3234_v51 = vmul.f32 -0.00019511016, %v3226_v10  ;;  %v3448_v57 = vsel %vm3440_vm0, %v9843_v53, %v9824_v43 }
 0x3ad   : > { %v3454_v50 = vsel %vm3442_vm6, %v3436_v3, %v3453_v18  ;;  %v3353_v36 = vshrl.u32 %v3352_v0, 30  ;;  %v3450_v32 = vsel %vm3442_vm6, %v9830_v5, %v3449_v48  ;;  %v9879_v2 = vadd.s32 4294967169, %v9739_v8 }
 0x3ae   : > { %v3455_v6 = vsel %vm3441_vm5, %v3452_v7, %v3454_v50  ;;  %v3457_v45 = vand.u32 65535, %v9864_v44  ;;  %v3228_v4 = vadd.f32 0.041655596, %v3227_v14  ;;  %v3235_v28 = vadd.f32 0.008332121, %v3234_v51 }
 0x3af   : > { %v3459_v59 = vand.u32 65535, %v3455_v6  ;;  %v3460_v1 = vshrl.u32 %v3455_v6, 16  ;;  %v3243_v55 = vand.u32 3, %v3242_v27  ;;  %v3354_v26 = vshll.u32 %v3353_v36, 30 }
 0x3b0   : > { %v3458_v23 = vshrl.u32 %v9864_v44, 16  ;;  %v9884_v3 = vshrl.u32 %v2946_v40, 23  ;;  %v3229_v11 = vmul.f32 %v3228_v4, %v3226_v10  ;;  %v3236_v30 = vmul.f32 %v3235_v28, %v3226_v10 }
 0x3b1   : > { %v3462_v22 = vmul.u32 %v3460_v1, %v3457_v45  ;;  %v9887_v58 = vshrl.u32 %v9835_v62, 5  ;;  %v9889_v42 = vsub.s32 %v3351_v20, %v3354_v26  ;;  %v3451_v8 = vsel %vm3441_vm5, %v3448_v57, %v3450_v32 }
 0x3b2   : > { %v9893_v48 = vmul.u32 %v3459_v59, %v3458_v23  ;;  %v3230_v27 = vadd.f32 -0.4999988, %v3229_v11  ;;  %v3237_v7 = vadd.f32 -0.16666654, %v3236_v30  ;;  %vm3255_vm2 = vcmp.lt.s32.totalorder %v12313_v41, 0 }
 0x3b3   : > { %v3465_v0 = vshll.u32 %v3462_v22, 16  ;;  %vm3245_vm3 = vcmp.eq.s32.totalorder %v3243_v55, 0  ;;  %vm3248_vm7 = vcmp.eq.s32.totalorder %v3243_v55, 2  ;;  %vm3356_vm8 = vcmp.lt.s32.totalorder %v9889_v42, 0 }
 0x3b4   : > { %v3357_v40 = vsub.s32 0, %v9889_v42  ;;  %v3377_v18 = vsub.s32 4, %v3353_v36  ;;  %v3461_v14 = vmul.u32 %v3459_v59, %v3457_v45  ;;  %v3231_v20 = vmul.f32 %v3230_v27, %v3226_v10 }
 0x3b5   : > { %v3238_v51 = vmul.f32 %v3237_v7, %v3226_v10  ;;  %vm3244_vm9 = vcmp.lt.s32.totalorder %v3243_v55, 2  ;;  %v3464_v50 = vmul.u32 %v3460_v1, %v3458_v23  ;;  %v3482_v57 = vshrl.u32 %v3451_v8, 16 }
 0x3b6   : > { %vm3241_vm11 = vweird.f32 %v12309_v35  ;;  %v3358_v32 = vsel %vm3356_vm8, %v3357_v40, %v9889_v42  ;;  %v3467_v6 = vshll.u32 %v9893_v48, 16  ;;  %vm3469_vm12 = vc.u32 %v3461_v14, %v3465_v0 }
 0x3b7   : > { %v3471_v4 = vadd.s32 %v3465_v0, %v3461_v14  ;;  %v3232_v28 = vadd.f32 1.0, %v3231_v20  ;;  %v3239_v26 = vadd.f32 1.0, %v3238_v51  ;;  %v3359_v11 = vclz %v3358_v32 }
 0x3b8   : > { %v3470_v30 = vsel %vm3469_vm12, 1, %v12259_v34  ;;  %v3347_v59 = vadd.s32 %v9800_v31, %v9786_v12  ;;  %v3424_v10 = vshrl.u32 %v12257_v39, %v9114_v46  ;;  %v3481_v27 = vand.u32 65535, %v3451_v8 }
 0x3b9   : > { %v3472_v1 = vadd.s32 %v3470_v30, %v3464_v50  ;;  %v3240_v7 = vmul.f32 %v3239_v26, %v9848_v33  ;;  %v3249_v40 = vxor.u32 2147483648, %v3232_v28  ;;  %vm9909_vm10 = vcmp.le.f32.partialorder %v3253_v29, 0.7853982 }
 0x3ba   : > { %v6775_v14 = vadd.s32 4294967294, %v3359_v11  ;;  %vm3473_vm13 = vc.u32 %v3471_v4, %v3467_v6  ;;  %v3378_v20 = vsel %vm3255_vm2, %v3377_v18, %v3353_v36  ;;  %v3445_v46 = vsel %vm3443_vm4, %v9830_v5, 2102212464 }
 0x3bb   : > { %v3474_v12 = vsel %vm3473_vm13, 1, %v12259_v34  ;;  %v3484_v31 = vmul.u32 %v3482_v57, %v3457_v45  ;;  %v3246_v33 = vxor.u32 2147483648, %v3240_v7  ;;  %v3466_v8 = vshrl.u32 %v3462_v22, 16 }
 0x3bc   : > { %vm6776_vm1 = vcmp.lt.s32.totalorder %v6775_v14, 0  ;;  %v3476_v51 = vadd.s32 %v3474_v12, %v3472_v1  ;;  %v3483_v50 = vmul.u32 %v3481_v27, %v3457_v45  ;;  %v3485_v32 = vmul.u32 %v3481_v27, %v3458_v23 }
 0x3bd   : > { %v3362_v29 = vsel %vm6776_vm1, 0, %v6775_v14  ;;  %v3487_v26 = vshll.u32 %v3484_v31, 16  ;;  %v3247_v6 = vsel %vm3245_vm3, %v3232_v28, %v3246_v33  ;;  %v3250_v4 = vsel %vm3248_vm7, %v3249_v40, %v3240_v7 }
 0x3be   : > { %v3363_v36 = vsub.s32 32, %v3362_v29  ;;  %v3367_v18 = vsub.s32 4294967266, %v3362_v29  ;;  %v3251_v11 = vsel %vm3244_vm9, %v3247_v6, %v3250_v4  ;;  %v3364_v5 = vshll.u32 %v9889_v42, %v3362_v29 }
 0x3bf   : > { %v3477_v30 = vadd.s32 %v3476_v51, %v3466_v8  ;;  %v3486_v47 = vmul.u32 %v3482_v57, %v3458_v23  ;;  %v3252_v22 = vsel %vm3241_vm11, nan, %v3251_v11  ;;  %vm3491_vm14 = vc.u32 %v3483_v50, %v3487_v26  ;;  %v12323_v8 = vld [vmem:[#allocation16_spill] sm:$0xff] }
 0x3c0   : > { %v3365_v1 = vshrl.u32 %v3347_v59, %v3363_v36  ;;  %v3368_v14 = vadd.s32 127, %v3367_v18  ;;  %5052 = vmatpush.msra.mxu0 %v3252_v22  ;;  %v3468_v45 = vshrl.u32 %v9893_v48, 16  ;;  %v3489_v28 = vshll.u32 %v3485_v32, 16 }
 0x3c1   : > { %v3492_v27 = vsel %vm3491_vm14, 1, %v12259_v34  ;;  %v3493_v7 = vadd.s32 %v3487_v26, %v3483_v50  ;;  %v3444_v42 = vsel %vm3440_vm0, %v3424_v10, %v9843_v53  ;;  %v3380_v35 = vsel %vm9909_vm10, 0, %v3378_v20 }
 0x3c2   : > { %v3366_v40 = vor.u32 %v3365_v1, %v3364_v5  ;;  %v3369_v55 = vshll.u32 %v3368_v14, 23  ;;  %v3494_v23 = vadd.s32 %v3492_v27, %v3486_v47  ;;  %v3446_v57 = vsel %vm3442_vm6, %v9824_v43, %v3445_v46 }
 0x3c3   : > { %v9935_v59 = vadd.s32 %v3477_v30, %v3468_v45  ;;  %vm3495_vm15 = vc.u32 %v3493_v7, %v3489_v28  ;;  %v9938_v48 = vand.u32 31, %v9835_v62  ;;  %v3563_v51 = vand.u32 2147483647, %v12323_v8 }
 0x3c4   : > { %v3370_v12 = vor.u32 4788187, %v3369_v55  ;;  %v3496_v33 = vsel %vm3495_vm15, 1, %v12259_v34  ;;  %v9943_v47 = vadd.s32 1, %v9789_v63  ;;  %v3488_v53 = vshrl.u32 %v3484_v31, 16 }
 0x3c5   : > { %v9945_v10 = vadd.s32 %v3493_v7, %v3489_v28  ;;  %v3498_v20 = vadd.s32 %v3496_v33, %v3494_v23  ;;  %v3373_v43 = vcvt.s32.f32 %v3366_v40  ;;  %v3397_v46 = vadd.s32 3, %v3380_v35 }
 0x3c6   : > { %v3371_v29 = vand.u32 2147483647, %v3370_v12  ;;  %v3447_v50 = vsel %vm3441_vm5, %v3444_v42, %v3446_v57  ;;  %v3490_v62 = vshrl.u32 %v3485_v32, 16  ;;  %v3584_v6 = vshrl.u32 %v12262_v60, %v9242_v13 }
 0x3c7   : > { %v3499_v26 = vadd.s32 %v3498_v20, %v3488_v53  ;;  %vm3503_vm0 = vc.u32 %v9935_v59, %v9945_v10  ;;  %v3570_v31 = vand.u32 8388607, %v3563_v51  ;;  %v3581_v4 = vshrl.u32 %v12260_v38, %v9242_v13 }
 0x3c8   : > { %v3374_v63 = vmul.f32 %v3373_v43, %v3371_v29  ;;  %v3587_v36 = vshrl.u32 %v12263_v56, %v9242_v13  ;;  %v3583_v32 = vshll.u32 %v12260_v38, %v9103_v61  ;;  %v3586_v18 = vshll.u32 %v12262_v60, %v9103_v61 }
 0x3c9   : > { %v3500_v25 = vadd.s32 %v3499_v26, %v3490_v62  ;;  %v3590_v11 = vshrl.u32 %v12264_v54, %v9242_v13  ;;  %v3580_v30 = vshll.u32 %v12257_v39, %v9103_v61  ;;  %v3592_v22 = vshll.u32 %v12264_v54, %v9103_v61 }
 0x3ca   : > { %v3375_v5 = vxor.u32 2147483648, %v3374_v63  ;;  %v3593_v1 = vshrl.u32 %v12265_v21, %v9242_v13  ;;  %v9971_v45 = vor.u32 %v3584_v6, %v3583_v32  ;;  %v9973_v28 = vor.u32 %v3587_v36, %v3586_v18 }
 0x3cb   : > { %v3504_v14 = vadd.s32 1, %v3500_v25  ;;  %v3589_v27 = vshll.u32 %v12263_v56, %v9103_v61  ;;  %v3501_v40 = vmul.u32 %v9864_v44, %v3447_v50  ;;  %v3571_v55 = vor.u32 8388608, %v3570_v31 }
 0x3cc   : > { %v3376_v7 = vsel %vm3255_vm2, %v3375_v5, %v3374_v63  ;;  %v3594_v42 = vor.u32 %v3593_v1, %v3592_v22  ;;  %v9988_v57 = vor.u32 %v3581_v4, %v3580_v30  ;;  %vm3595_vm4 = vcmp.lt.s32.totalorder %v9100_v9, 1 }
 0x3cd   : > { %v9983_v23 = vsel %vm9909_vm10, %v12313_v41, %v3376_v7  ;;  %v3505_v35 = vsel %vm3503_vm0, %v3504_v14, %v3500_v25  ;;  %v3591_v12 = vor.u32 %v3590_v11, %v3589_v27  ;;  %vm3598_vm5 = vcmp.lt.s32.totalorder %v9100_v9, 4 }
 0x3ce   : > { %v3381_v61 = vmul.f32 %v9983_v23, %v9983_v23  ;;  %v3506_v33 = vadd.s32 %v3505_v35, %v3501_v40  ;;  %v9994_v44 = vand.u32 3, %v3397_v46  ;;  %vm3596_vm6 = vcmp.lt.s32.totalorder %v9100_v9, 2 }
 0x3cf   : > { %v3607_v0 = vsel %vm3595_vm4, %v9971_v45, %v9973_v28  ;;  %v3608_v53 = vsel %vm3598_vm5, %v3594_v42, 1326507024  ;;  %vm3597_vm2 = vcmp.lt.s32.totalorder %v9100_v9, 3  ;;  %v3603_v46 = vsel %vm3595_vm4, %v9988_v57, %v9971_v45 }
 0x3d0   : > { %v3382_v20 = vmul.f32 -0.001358992, %v3381_v61  ;;  %v3389_v29 = vmul.f32 -0.00019511016, %v3381_v61  ;;  %v3507_v43 = vadd.s32 536870912, %v3506_v33  ;;  %v3609_v62 = vsel %vm3597_vm2, %v3591_v12, %v3608_v53 }
 0x3d1   : > { %v3604_v50 = vsel %vm3598_vm5, %v3591_v12, 920167782  ;;  %v10012_v26 = vshll.u32 %v3571_v55, 8  ;;  %v3610_v4 = vsel %vm3596_vm6, %v3607_v0, %v3609_v62  ;;  %v10029_v1 = vadd.s32 1, %v9879_v2 }
 0x3d2   : > { %v3383_v6 = vadd.f32 0.041655596, %v3382_v20  ;;  %v3390_v63 = vadd.f32 0.008332121, %v3389_v29  ;;  %v10014_v31 = vshrl.u32 %v3507_v43, 30  ;;  %v3614_v32 = vand.u32 65535, %v3610_v4 }
 0x3d3   : > { %v10019_v36 = vand.u32 65535, %v10012_v26  ;;  %v10022_v25 = vshrl.u32 %v10012_v26, 16  ;;  %v3615_v18 = vshrl.u32 %v3610_v4, 16  ;;  %v3605_v22 = vsel %vm3597_vm2, %v9973_v28, %v3604_v50 }
 0x3d4   : > { %v3384_v11 = vmul.f32 %v3383_v6, %v3381_v61  ;;  %v3391_v5 = vmul.f32 %v3390_v63, %v3381_v61  ;;  %v3509_v30 = vshll.u32 %v10014_v31, 30  ;;  %v10032_v14 = vadd.s32 4294967169, %v9884_v3 }
 0x3d5   : > { %v3617_v27 = vmul.u32 %v3615_v18, %v10019_v36  ;;  %v10036_v7 = vmul.u32 %v3614_v32, %v10022_v25  ;;  %v10039_v40 = vsub.s32 32, %v9938_v48  ;;  %vm3400_vm3 = vcmp.eq.s32.totalorder %v9994_v44, 0 }
 0x3d6   : > { %v3385_v55 = vadd.f32 -0.4999988, %v3384_v11  ;;  %v3392_v42 = vadd.f32 -0.16666654, %v3391_v5  ;;  %v10041_v35 = vsub.s32 %v3506_v33, %v3509_v30  ;;  %v3579_v2 = vshrl.u32 %v12257_v39, %v9242_v13 }
 0x3d7   : > { %v3606_v3 = vsel %vm3596_vm6, %v3603_v46, %v3605_v22  ;;  %v3616_v12 = vmul.u32 %v3614_v32, %v10019_v36  ;;  %v3620_v0 = vshll.u32 %v3617_v27, 16  ;;  %vm3399_vm7 = vcmp.lt.s32.totalorder %v9994_v44, 2 }
 0x3d8   : > { %v3386_v53 = vmul.f32 %v3385_v55, %v3381_v61  ;;  %v3393_v20 = vmul.f32 %v3392_v42, %v3381_v61  ;;  %vm3410_vm8 = vcmp.lt.s32.totalorder %v12317_v24, 0  ;;  %vm3511_vm9 = vcmp.lt.s32.totalorder %v10041_v35, 0 }
 0x3d9   : > { %v3512_v33 = vsub.s32 0, %v10041_v35  ;;  %vm3396_vm11 = vweird.f32 %v12313_v41  ;;  %v3619_v13 = vmul.u32 %v3615_v18, %v10022_v25  ;;  %v3622_v29 = vshll.u32 %v10036_v7, 16 }
 0x3da   : > { %vm3624_vm12 = vc.u32 %v3616_v12, %v3620_v0  ;;  %v3626_v43 = vadd.s32 %v3620_v0, %v3616_v12  ;;  %v3387_v46 = vadd.f32 1.0, %v3386_v53  ;;  %v3394_v50 = vadd.f32 1.0, %v3393_v20 }
 0x3db   : > { %v3513_v61 = vsel %vm3511_vm9, %v3512_v33, %v10041_v35  ;;  %v3625_v62 = vsel %vm3624_vm12, 1, %v12259_v34  ;;  %v3600_v63 = vsel %vm3598_vm5, %v9973_v28, 2102212464  ;;  %vm2644_vm13 = vcmp.gt.s32.totalorder %v9943_v47, 0 }
 0x3dc   : > { %v3514_v6 = vclz %v3513_v61  ;;  %v3627_v4 = vadd.s32 %v3625_v62, %v3619_v13  ;;  %vm3628_vm10 = vc.u32 %v3626_v43, %v3622_v29  ;;  %vm2799_vm1 = vcmp.gt.s32.totalorder %v10029_v1, 0 }
 0x3dd   : > { %v3395_v32 = vmul.f32 %v3394_v50, %v9983_v23  ;;  %v3404_v18 = vxor.u32 2147483648, %v3387_v46  ;;  %v12324_v11 = vand.u32 2147483647, %v12317_v24  ;;  %v3629_v30 = vsel %vm3628_vm10, 1, %v12259_v34 }
 0x3de   : > { %v3636_v22 = vand.u32 65535, %v3606_v3  ;;  %vm3403_vm15 = vcmp.eq.s32.totalorder %v9994_v44, 2  ;;  %v3502_v28 = vadd.s32 %v9945_v10, %v9935_v59  ;;  %v6778_v55 = vadd.s32 4294967294, %v3514_v6 }
 0x3df   : > { %vm10066_vm14 = vcmp.le.f32.partialorder %v12324_v11, 0.7853982  ;;  %v3532_v42 = vsub.s32 4, %v10014_v31  ;;  %v3401_v12 = vxor.u32 2147483648, %v3395_v32  ;;  %v3599_v23 = vsel %vm3595_vm4, %v3579_v2, %v9988_v57 }
 0x3e0   : > { %v3631_v0 = vadd.s32 %v3629_v30, %v3627_v4  ;;  %v3637_v53 = vshrl.u32 %v3606_v3, 16  ;;  %v3405_v20 = vsel %vm3403_vm15, %v3404_v18, %v3395_v32  ;;  %vm6779_vm0 = vcmp.lt.s32.totalorder %v6778_v55, 0 }
 0x3e1   : > { %v3601_v33 = vsel %vm3597_vm2, %v9971_v45, %v3600_v63  ;;  %v3621_v13 = vshrl.u32 %v3617_v27, 16  ;;  %v3402_v59 = vsel %vm3400_vm3, %v3387_v46, %v3401_v12  ;;  %v3517_v10 = vsel %vm6779_vm0, 0, %v6778_v55 }
 0x3e2   : > { %v3639_v29 = vmul.u32 %v3637_v53, %v10019_v36  ;;  %v3640_v43 = vmul.u32 %v3636_v22, %v10022_v25  ;;  %v3406_v57 = vsel %vm3399_vm7, %v3402_v59, %v3405_v20  ;;  %v3518_v2 = vsub.s32 32, %v3517_v10 }
 0x3e3   : > { %v3522_v3 = vsub.s32 4294967266, %v3517_v10  ;;  %v3533_v50 = vsel %vm3410_vm8, %v3532_v42, %v10014_v31  ;;  %v3407_v45 = vsel %vm3396_vm11, nan, %v3406_v57  ;;  %v3632_v27 = vadd.s32 %v3631_v0, %v3621_v13 }
 0x3e4   : > { %v3638_v46 = vmul.u32 %v3636_v22, %v10019_v36  ;;  %v3642_v61 = vshll.u32 %v3639_v29, 16  ;;  %5093 = vmatpush.msra.mxu1 %v3407_v45  ;;  %v3519_v62 = vshll.u32 %v10041_v35, %v3517_v10  ;;  %v3520_v6 = vshrl.u32 %v3502_v28, %v3518_v2 }
 0x3e5   : > { %v3523_v63 = vadd.s32 127, %v3522_v3  ;;  %v3623_v44 = vshrl.u32 %v10036_v7, 16  ;;  %v3641_v4 = vmul.u32 %v3637_v53, %v10022_v25  ;;  %v3644_v32 = vshll.u32 %v3640_v43, 16 }
 0x3e6   : > { %vm3646_vm4 = vc.u32 %v3638_v46, %v3642_v61  ;;  %v3648_v18 = vadd.s32 %v3642_v61, %v3638_v46  ;;  %v3521_v31 = vor.u32 %v3520_v6, %v3519_v62  ;;  %v3535_v41 = vsel %vm10066_vm14, 0, %v3533_v50 }
 0x3e7   : > { %v3524_v11 = vshll.u32 %v3523_v63, 23  ;;  %v3647_v36 = vsel %vm3646_vm4, 1, %v12259_v34  ;;  %v10099_v30 = vadd.s32 %v3632_v27, %v3623_v44  ;;  %v2478_v35 = vand.u32 2147483647, %v9268_v52 }
 0x3e8   : > { %v3649_v22 = vadd.s32 %v3647_v36, %v3641_v4  ;;  %vm3650_vm5 = vc.u32 %v3648_v18, %v3644_v32  ;;  %v10105_v25 = vsel %vm2644_vm13, %v9943_v47, 0  ;;  %v10110_v7 = vsel %vm2799_vm1, %v10029_v1, 0 }
 0x3e9   : > { %v3525_v28 = vor.u32 4788187, %v3524_v11  ;;  %v3651_v55 = vsel %vm3650_vm5, 1, %v12259_v34  ;;  %v3602_v42 = vsel %vm3596_vm6, %v3599_v23, %v3601_v33  ;;  %v3643_v12 = vshrl.u32 %v3639_v29, 16 }
 0x3ea   : > { %v10115_v0 = vadd.s32 %v3648_v18, %v3644_v32  ;;  %v3653_v53 = vadd.s32 %v3651_v55, %v3649_v22  ;;  %v3528_v13 = vcvt.s32.f32 %v3521_v31  ;;  %v3552_v59 = vadd.s32 3, %v3535_v41 }
 0x3eb   : > { %v3526_v20 = vand.u32 2147483647, %v3525_v28  ;;  %v3645_v47 = vshrl.u32 %v3640_v43, 16  ;;  %v2485_v1 = vand.u32 8388607, %v2478_v35  ;;  %v2499_v57 = vshrl.u32 %v12262_v60, %v10039_v40 }
 0x3ec   : > { %v3654_v10 = vadd.s32 %v3653_v53, %v3643_v12  ;;  %vm3658_vm2 = vc.u32 %v10099_v30, %v10115_v0  ;;  %v2496_v23 = vshrl.u32 %v12260_v38, %v10039_v40  ;;  %v2498_v33 = vshll.u32 %v12260_v38, %v9938_v48 }
 0x3ed   : > { %v3529_v9 = vmul.f32 %v3528_v13, %v3526_v20  ;;  %v2502_v29 = vshrl.u32 %v12263_v56, %v10039_v40  ;;  %v2501_v2 = vshll.u32 %v12262_v60, %v9938_v48  ;;  %v2504_v3 = vshll.u32 %v12263_v56, %v9938_v48 }
 0x3ee   : > { %v3655_v43 = vadd.s32 %v3654_v10, %v3645_v47  ;;  %v2505_v50 = vshrl.u32 %v12264_v54, %v10039_v40  ;;  %v2495_v27 = vshll.u32 %v12257_v39, %v9938_v48  ;;  %v2507_v46 = vshll.u32 %v12264_v54, %v9938_v48 }
 0x3ef   : > { %v3530_v45 = vxor.u32 2147483648, %v3529_v9  ;;  %v2508_v61 = vshrl.u32 %v12265_v21, %v10039_v40  ;;  %v10141_v6 = vor.u32 %v2499_v57, %v2498_v33  ;;  %v10143_v63 = vor.u32 %v2502_v29, %v2501_v2 }
 0x3f0   : > { %v3659_v62 = vadd.s32 1, %v3655_v43  ;;  %v2506_v44 = vor.u32 %v2505_v50, %v2504_v3  ;;  %v3656_v32 = vmul.u32 %v10012_v26, %v3602_v42  ;;  %v2486_v18 = vor.u32 8388608, %v2485_v1 }
 0x3f1   : > { %v3531_v4 = vsel %vm3410_vm8, %v3530_v45, %v3529_v9  ;;  %v2509_v31 = vor.u32 %v2508_v61, %v2507_v46  ;;  %v10156_v41 = vor.u32 %v2496_v23, %v2495_v27  ;;  %vm2513_vm6 = vcmp.lt.s32.totalorder %v9887_v58, 4 }
 0x3f2   : > { %v10151_v48 = vsel %vm10066_vm14, %v12317_v24, %v3531_v4  ;;  %v3660_v11 = vsel %vm3658_vm2, %v3659_v62, %v3655_v43  ;;  %vm2510_vm3 = vcmp.lt.s32.totalorder %v9887_v58, 1  ;;  %v2519_v26 = vsel %vm2513_vm6, %v2506_v44, 920167782 }
 0x3f3   : > { %v3536_v36 = vmul.f32 %v10151_v48, %v10151_v48  ;;  %v3661_v22 = vadd.s32 %v3660_v11, %v3656_v32  ;;  %v10164_v5 = vand.u32 3, %v3552_v59  ;;  %vm2511_vm7 = vcmp.lt.s32.totalorder %v9887_v58, 2 }
 0x3f4   : > { %v2522_v28 = vsel %vm2510_vm3, %v10141_v6, %v10143_v63  ;;  %v2523_v55 = vsel %vm2513_vm6, %v2509_v31, 1326507024  ;;  %vm2512_vm8 = vcmp.lt.s32.totalorder %v9887_v58, 3  ;;  %v2518_v20 = vsel %vm2510_vm3, %v10156_v41, %v10141_v6 }
 0x3f5   : > { %v3537_v42 = vmul.f32 -0.001358992, %v3536_v36  ;;  %v3544_v12 = vmul.f32 -0.00019511016, %v3536_v36  ;;  %v3662_v53 = vadd.s32 536870912, %v3661_v22  ;;  %v2520_v13 = vsel %vm2512_vm8, %v10143_v63, %v2519_v26 }
 0x3f6   : > { %v2524_v59 = vsel %vm2512_vm8, %v2506_v44, %v2523_v55  ;;  %v10183_v47 = vshll.u32 %v2486_v18, 8  ;;  %v2521_v45 = vsel %vm2511_vm7, %v2518_v20, %v2520_v13  ;;  %v10196_v27 = vand.u32 31, %v10105_v25 }
 0x3f7   : > { %v3538_v10 = vadd.f32 0.041655596, %v3537_v42  ;;  %v3545_v1 = vadd.f32 0.008332121, %v3544_v12  ;;  %v3663_v57 = vshrl.u32 %v3662_v53, 30  ;;  %v2525_v9 = vsel %vm2511_vm7, %v2522_v28, %v2524_v59 }
 0x3f8   : > { %v10188_v23 = vand.u32 65535, %v10183_v47  ;;  %v10191_v33 = vshrl.u32 %v10183_v47, 16  ;;  %v2529_v29 = vand.u32 65535, %v2525_v9  ;;  %v2530_v43 = vshrl.u32 %v2525_v9, 16 }
 0x3f9   : > { %v3539_v2 = vmul.f32 %v3538_v10, %v3536_v36  ;;  %v3546_v3 = vmul.f32 %v3545_v1, %v3536_v36  ;;  %v3664_v50 = vshll.u32 %v3663_v57, 30  ;;  %v10199_v46 = vadd.s32 1, %v10032_v14 }
 0x3fa   : > { %v2532_v61 = vmul.u32 %v2530_v43, %v10188_v23  ;;  %v10203_v62 = vmul.u32 %v2529_v29, %v10191_v33  ;;  %vm3565_vm9 = vcmp.lt.s32.totalorder %v12323_v8, 0  ;;  %vm3555_vm11 = vcmp.eq.s32.totalorder %v10164_v5, 0 }
 0x3fb   : > { %v3540_v44 = vadd.f32 -0.4999988, %v3539_v2  ;;  %v3547_v4 = vadd.f32 -0.16666654, %v3546_v3  ;;  %v10206_v32 = vsub.s32 %v3661_v22, %v3664_v50  ;;  %v2494_v18 = vshrl.u32 %v12257_v39, %v10039_v40 }
 0x3fc   : > { %v2531_v31 = vmul.u32 %v2529_v29, %v10188_v23  ;;  %v2535_v14 = vshll.u32 %v2532_v61, 16  ;;  %v2552_v11 = vshrl.u32 %v2521_v45, 16  ;;  %vm3554_vm12 = vcmp.lt.s32.totalorder %v10164_v5, 2 }
 0x3fd   : > { %v3541_v26 = vmul.f32 %v3540_v44, %v3536_v36  ;;  %v3548_v28 = vmul.f32 %v3547_v4, %v3536_v36  ;;  %vm3666_vm10 = vcmp.lt.s32.totalorder %v10206_v32, 0  ;;  %v3667_v55 = vsub.s32 0, %v10206_v32 }
 0x3fe   : > { %vm3551_vm13 = vweird.f32 %v12317_v24  ;;  %v2534_v22 = vmul.u32 %v2530_v43, %v10191_v33  ;;  %v2537_v42 = vshll.u32 %v10203_v62, 16  ;;  %vm2539_vm1 = vc.u32 %v2531_v31, %v2535_v14 }
 0x3ff   : > { %v2541_v40 = vadd.s32 %v2535_v14, %v2531_v31  ;;  %v3542_v12 = vadd.f32 1.0, %v3541_v26  ;;  %v3549_v53 = vadd.f32 1.0, %v3548_v28  ;;  %v3668_v20 = vsel %vm3666_vm10, %v3667_v55, %v10206_v32 }
 0x400   : > { %v2540_v36 = vsel %vm2539_vm1, 1, %v12259_v34  ;;  %v3669_v13 = vclz %v3668_v20  ;;  %v3687_v59 = vsub.s32 4, %v3663_v57  ;;  %v2551_v43 = vand.u32 65535, %v2521_v45 }
 0x401   : > { %v2542_v10 = vadd.s32 %v2540_v36, %v2534_v22  ;;  %vm2543_vm14 = vc.u32 %v2541_v40, %v2537_v42  ;;  %v3550_v1 = vmul.f32 %v3549_v53, %v10151_v48  ;;  %v3559_v9 = vxor.u32 2147483648, %v3542_v12 }
 0x402   : > { %v2544_v29 = vsel %vm2543_vm14, 1, %v12259_v34  ;;  %vm3558_vm15 = vcmp.eq.s32.totalorder %v10164_v5, 2  ;;  %vm10225_vm0 = vcmp.le.f32.partialorder %v3563_v51, 0.7853982  ;;  %v3657_v3 = vadd.s32 %v10115_v0, %v10099_v30 }
 0x403   : > { %v6781_v50 = vadd.s32 4294967294, %v3669_v13  ;;  %v2514_v48 = vsel %vm2510_vm3, %v2494_v18, %v10156_v41  ;;  %v3556_v44 = vxor.u32 2147483648, %v3550_v1  ;;  %v2515_v45 = vsel %vm2513_vm6, %v10143_v63, 2102212464 }
 0x404   : > { %v2546_v4 = vadd.s32 %v2544_v29, %v2542_v10  ;;  %v2554_v31 = vmul.u32 %v2552_v11, %v10188_v23  ;;  %v3560_v51 = vsel %vm3558_vm15, %v3559_v9, %v3550_v1  ;;  %v3688_v14 = vsel %vm3565_vm9, %v3687_v59, %v3663_v57 }
 0x405   : > { %vm6782_vm4 = vcmp.lt.s32.totalorder %v6781_v50, 0  ;;  %v2536_v26 = vshrl.u32 %v2532_v61, 16  ;;  %v3557_v30 = vsel %vm3555_vm11, %v3542_v12, %v3556_v44  ;;  %v2555_v41 = vmul.u32 %v2551_v43, %v10191_v33 }
 0x406   : > { %v3672_v0 = vsel %vm6782_vm4, 0, %v6781_v50  ;;  %v2557_v18 = vshll.u32 %v2554_v31, 16  ;;  %v3561_v28 = vsel %vm3554_vm12, %v3557_v30, %v3560_v51  ;;  %v2553_v22 = vmul.u32 %v2551_v43, %v10188_v23 }
 0x407   : > { %v3673_v63 = vsub.s32 32, %v3672_v0  ;;  %v3677_v55 = vsub.s32 4294967266, %v3672_v0  ;;  %v3562_v42 = vsel %vm3551_vm13, nan, %v3561_v28  ;;  %v2538_v57 = vshrl.u32 %v10203_v62, 16 }
 0x408   : > { %v2547_v61 = vadd.s32 %v2546_v4, %v2536_v26  ;;  %v2556_v40 = vmul.u32 %v2552_v11, %v10191_v33  ;;  %5134 = vmatpush.msra.mxu2 %v3562_v42  ;;  %v3674_v12 = vshll.u32 %v10206_v32, %v3672_v0  ;;  %vm2561_vm5 = vc.u32 %v2553_v22, %v2557_v18 }
 0x409   : > { %v3675_v53 = vshrl.u32 %v3657_v3, %v3673_v63  ;;  %v3678_v20 = vadd.s32 127, %v3677_v55  ;;  %v2559_v5 = vshll.u32 %v2555_v41, 16  ;;  %v2562_v36 = vsel %vm2561_vm5, 1, %v12259_v34 }
 0x40a   : > { %v2563_v13 = vadd.s32 %v2557_v18, %v2553_v22  ;;  %v2633_v23 = vand.u32 2147483647, %v9337_v49  ;;  %v2516_v62 = vsel %vm2512_vm8, %v10141_v6, %v2515_v45  ;;  %v2564_v10 = vadd.s32 %v2562_v36, %v2556_v40 }
 0x40b   : > { %v3676_v59 = vor.u32 %v3675_v53, %v3674_v12  ;;  %v3679_v24 = vshll.u32 %v3678_v20, 23  ;;  %v10257_v33 = vsub.s32 32, %v10196_v27  ;;  %v3690_v32 = vsel %vm10225_vm0, 0, %v3688_v14 }
 0x40c   : > { %v10261_v11 = vadd.s32 %v2547_v61, %v2538_v57  ;;  %vm2565_vm2 = vc.u32 %v2563_v13, %v2559_v5  ;;  %v10264_v1 = vshrl.u32 %v10105_v25, 5  ;;  %v2640_v43 = vand.u32 8388607, %v2633_v23 }
 0x40d   : > { %v3680_v9 = vor.u32 4788187, %v3679_v24  ;;  %v2566_v29 = vsel %vm2565_vm2, 1, %v12259_v34  ;;  %v2517_v6 = vsel %vm2511_vm7, %v2514_v48, %v2516_v62  ;;  %v2558_v3 = vshrl.u32 %v2554_v31, 16 }
 0x40e   : > { %v10271_v50 = vadd.s32 %v2563_v13, %v2559_v5  ;;  %v2568_v44 = vadd.s32 %v2566_v29, %v2564_v10  ;;  %v3683_v4 = vcvt.s32.f32 %v3676_v59  ;;  %v3707_v51 = vadd.s32 3, %v3690_v32 }
 0x40f   : > { %v3681_v45 = vand.u32 2147483647, %v3680_v9  ;;  %v2560_v14 = vshrl.u32 %v2555_v41, 16  ;;  %v2654_v25 = vshrl.u32 %v12262_v60, %v10257_v33  ;;  %v2657_v30 = vshrl.u32 %v12263_v56, %v10257_v33 }
 0x410   : > { %v2569_v26 = vadd.s32 %v2568_v44, %v2558_v3  ;;  %vm2573_vm6 = vc.u32 %v10261_v11, %v10271_v50  ;;  %v2641_v48 = vor.u32 8388608, %v2640_v43  ;;  %v2659_v31 = vshll.u32 %v12263_v56, %v10196_v27 }
 0x411   : > { %v3684_v58 = vmul.f32 %v3683_v4, %v3681_v45  ;;  %v2660_v0 = vshrl.u32 %v12264_v54, %v10257_v33  ;;  %v2651_v41 = vshrl.u32 %v12260_v38, %v10257_v33  ;;  %v2653_v28 = vshll.u32 %v12260_v38, %v10196_v27 }
 0x412   : > { %v2570_v18 = vadd.s32 %v2569_v26, %v2560_v14  ;;  %v2656_v63 = vshll.u32 %v12262_v60, %v10196_v27  ;;  %v2662_v42 = vshll.u32 %v12264_v54, %v10196_v27  ;;  %v2663_v57 = vshrl.u32 %v12265_v21, %v10257_v33 }
 0x413   : > { %v3685_v55 = vxor.u32 2147483648, %v3684_v58  ;;  %v2661_v22 = vor.u32 %v2660_v0, %v2659_v31  ;;  %v2650_v40 = vshll.u32 %v12257_v39, %v10196_v27  ;;  %v10295_v12 = vor.u32 %v2654_v25, %v2653_v28 }
 0x414   : > { %v2574_v61 = vadd.s32 1, %v2570_v18  ;;  %v2658_v53 = vor.u32 %v2657_v30, %v2656_v63  ;;  %v10298_v20 = vshrl.u32 %v10110_v7, 5  ;;  %v2571_v36 = vmul.u32 %v10183_v47, %v2517_v6 }
 0x415   : > { %v3686_v5 = vsel %vm3565_vm9, %v3685_v55, %v3684_v58  ;;  %v2664_v13 = vor.u32 %v2663_v57, %v2662_v42  ;;  %v10311_v24 = vor.u32 %v2651_v41, %v2650_v40  ;;  %vm2668_vm3 = vcmp.lt.s32.totalorder %v10264_v1, 4 }
 0x416   : > { %v10306_v59 = vsel %vm10225_vm0, %v12323_v8, %v3686_v5  ;;  %v2575_v27 = vsel %vm2573_vm6, %v2574_v61, %v2570_v18  ;;  %vm2665_vm7 = vcmp.lt.s32.totalorder %v10264_v1, 1  ;;  %v2674_v47 = vsel %vm2668_vm3, %v2661_v22, 920167782 }
 0x417   : > { %v3691_v62 = vmul.f32 %v10306_v59, %v10306_v59  ;;  %v2576_v10 = vadd.s32 %v2575_v27, %v2571_v36  ;;  %v10319_v2 = vand.u32 3, %v3707_v51  ;;  %v2677_v32 = vsel %vm2665_vm7, %v10295_v12, %v2658_v53 }
 0x418   : > { %v2678_v9 = vsel %vm2668_vm3, %v2664_v13, 1326507024  ;;  %v10326_v29 = vshll.u32 %v2641_v48, 8  ;;  %vm2667_vm8 = vcmp.lt.s32.totalorder %v10264_v1, 3  ;;  %vm2666_vm9 = vcmp.lt.s32.totalorder %v10264_v1, 2 }
 0x419   : > { %v3692_v43 = vmul.f32 -0.001358992, %v3691_v62  ;;  %v3699_v6 = vmul.f32 -0.00019511016, %v3691_v62  ;;  %v2577_v3 = vadd.s32 536870912, %v2576_v10  ;;  %v2673_v44 = vsel %vm2665_vm7, %v10311_v24, %v10295_v12 }
 0x41a   : > { %v2675_v45 = vsel %vm2667_vm8, %v2658_v53, %v2674_v47  ;;  %v2679_v4 = vsel %vm2667_vm8, %v2661_v22, %v2678_v9  ;;  %v2682_v30 = vand.u32 65535, %v10326_v29  ;;  %v2683_v58 = vshrl.u32 %v10326_v29, 16 }
 0x41b   : > { %v3693_v51 = vadd.f32 0.041655596, %v3692_v43  ;;  %v3700_v14 = vadd.f32 0.008332121, %v3699_v6  ;;  %v10338_v26 = vshrl.u32 %v2577_v3, 30  ;;  %v2680_v25 = vsel %vm2666_vm9, %v2677_v32, %v2679_v4 }
 0x41c   : > { %v2684_v48 = vand.u32 65535, %v2680_v25  ;;  %v2685_v31 = vshrl.u32 %v2680_v25, 16  ;;  %v2676_v28 = vsel %vm2666_vm9, %v2673_v44, %v2675_v45  ;;  %v10348_v63 = vand.u32 31, %v10110_v7 }
 0x41d   : > { %v3694_v0 = vmul.f32 %v3693_v51, %v3691_v62  ;;  %v3701_v18 = vmul.f32 %v3700_v14, %v3691_v62  ;;  %v2579_v41 = vshll.u32 %v10338_v26, 30  ;;  %v2649_v55 = vshrl.u32 %v12257_v39, %v10257_v33 }
 0x41e   : > { %v2687_v22 = vmul.u32 %v2685_v31, %v2682_v30  ;;  %v10352_v42 = vmul.u32 %v2684_v48, %v2683_v58  ;;  %v2670_v5 = vsel %vm2668_vm3, %v2658_v53, 2102212464  ;;  %vm3710_vm11 = vcmp.eq.s32.totalorder %v10319_v2, 0 }
 0x41f   : > { %v3695_v57 = vadd.f32 -0.4999988, %v3694_v0  ;;  %v3702_v61 = vadd.f32 -0.16666654, %v3701_v18  ;;  %v10354_v40 = vsub.s32 %v2576_v10, %v2579_v41  ;;  %vm3713_vm12 = vcmp.eq.s32.totalorder %v10319_v2, 2 }
 0x420   : > { %v2686_v36 = vmul.u32 %v2684_v48, %v2682_v30  ;;  %v2690_v7 = vshll.u32 %v2687_v22, 16  ;;  %v2706_v13 = vand.u32 65535, %v2676_v28  ;;  %v2707_v27 = vshrl.u32 %v2676_v28, 16 }
 0x421   : > { %v3696_v47 = vmul.f32 %v3695_v57, %v3691_v62  ;;  %v3703_v33 = vmul.f32 %v3702_v61, %v3691_v62  ;;  %vm3709_vm10 = vcmp.lt.s32.totalorder %v10319_v2, 2  ;;  %vm2581_vm13 = vcmp.lt.s32.totalorder %v10354_v40, 0 }
 0x422   : > { %v2582_v10 = vsub.s32 0, %v10354_v40  ;;  %vm3706_vm1 = vweird.f32 %v12323_v8  ;;  %v2689_v32 = vmul.u32 %v2685_v31, %v2683_v58  ;;  %v2692_v53 = vshll.u32 %v10352_v42, 16 }
 0x423   : > { %vm2694_vm14 = vc.u32 %v2686_v36, %v2690_v7  ;;  %v2696_v9 = vadd.s32 %v2690_v7, %v2686_v36  ;;  %v3697_v43 = vadd.f32 1.0, %v3696_v47  ;;  %v3704_v6 = vadd.f32 1.0, %v3703_v33 }
 0x424   : > { %v2583_v3 = vsel %vm2581_vm13, %v2582_v10, %v10354_v40  ;;  %v2695_v44 = vsel %vm2694_vm14, 1, %v12259_v34  ;;  %vm2954_vm15 = vcmp.gt.s32.totalorder %v10199_v46, 0  ;;  %vm2480_vm0 = vcmp.lt.s32.totalorder %v9268_v52, 0 }
 0x425   : > { %v2572_v62 = vadd.s32 %v10271_v50, %v10261_v11  ;;  %v2584_v45 = vclz %v2583_v3  ;;  %v2697_v4 = vadd.s32 %v2695_v44, %v2689_v32  ;;  %vm2698_vm4 = vc.u32 %v2696_v9, %v2692_v53 }
 0x426   : > { %v3705_v51 = vmul.f32 %v3704_v6, %v10306_v59  ;;  %v3714_v14 = vxor.u32 2147483648, %v3697_v43  ;;  %v2699_v25 = vsel %vm2698_vm4, 1, %v12259_v34  ;;  %v2709_v48 = vmul.u32 %v2707_v27, %v2682_v30 }
 0x427   : > { %v6760_v31 = vadd.s32 4294967294, %v2584_v45  ;;  %v2669_v0 = vsel %vm2665_vm7, %v2649_v55, %v10311_v24  ;;  %v2671_v18 = vsel %vm2667_vm8, %v10295_v12, %v2670_v5  ;;  %v2708_v41 = vmul.u32 %v2706_v13, %v2682_v30 }
 0x428   : > { %v3711_v11 = vxor.u32 2147483648, %v3705_v51  ;;  %v2602_v50 = vsub.s32 4, %v10338_v26  ;;  %v2701_v28 = vadd.s32 %v2699_v25, %v2697_v4  ;;  %v2710_v57 = vmul.u32 %v2706_v13, %v2683_v58 }
 0x429   : > { %vm6761_vm5 = vcmp.lt.s32.totalorder %v6760_v31, 0  ;;  %v2691_v59 = vshrl.u32 %v2687_v22, 16  ;;  %v2693_v61 = vshrl.u32 %v10352_v42, 16  ;;  %v2712_v36 = vshll.u32 %v2709_v48, 16 }
 0x42a   : > { %v3712_v7 = vsel %vm3710_vm11, %v3697_v43, %v3711_v11  ;;  %v3715_v24 = vsel %vm3713_vm12, %v3714_v14, %v3705_v51  ;;  %v2587_v55 = vsel %vm6761_vm5, 0, %v6760_v31  ;;  %v2711_v47 = vmul.u32 %v2707_v27, %v2683_v58 }
 0x42b   : > { %v3716_v12 = vsel %vm3709_vm10, %v3712_v7, %v3715_v24  ;;  %v2588_v30 = vsub.s32 32, %v2587_v55  ;;  %v2592_v5 = vsub.s32 4294967266, %v2587_v55  ;;  %v2702_v33 = vadd.s32 %v2701_v28, %v2691_v59 }
 0x42c   : > { %v3717_v22 = vsel %vm3706_vm1, nan, %v3716_v12  ;;  %v2589_v42 = vshll.u32 %v10354_v40, %v2587_v55  ;;  %v2714_v13 = vshll.u32 %v2710_v57, 16  ;;  %vm2716_vm2 = vc.u32 %v2708_v41, %v2712_v36 }
 0x42d   : > { %5175 = vmatpush.msra.mxu3 %v3717_v22  ;;  %v2590_v10 = vshrl.u32 %v2572_v62, %v2588_v30  ;;  %v2593_v32 = vadd.s32 127, %v2592_v5  ;;  %v2717_v53 = vsel %vm2716_vm2, 1, %v12259_v34  ;;  %v2718_v9 = vadd.s32 %v2712_v36, %v2708_v41 }
 0x42e   : > { %v10392_v58 = vsub.s32 32, %v10348_v63  ;;  %v2603_v2 = vsel %vm2480_vm0, %v2602_v50, %v10338_v26  ;;  %v2719_v27 = vadd.s32 %v2717_v53, %v2711_v47  ;;  %v2788_v8 = vand.u32 2147483647, %v12310_v19 }
 0x42f   : > { %v2591_v43 = vor.u32 %v2590_v10, %v2589_v42  ;;  %v2594_v40 = vshll.u32 %v2593_v32, 23  ;;  %v10398_v6 = vadd.s32 %v2702_v33, %v2693_v61  ;;  %vm2720_vm6 = vc.u32 %v2718_v9, %v2714_v13 }
 0x430   : > { %v10403_v3 = vsel %vm2954_vm15, %v10199_v46, 0  ;;  %vm10407_vm3 = vcmp.le.f32.partialorder %v2478_v35, 0.7853982  ;;  %v2672_v26 = vsel %vm2666_vm9, %v2669_v0, %v2671_v18  ;;  %v2721_v62 = vsel %vm2720_vm6, 1, %v12259_v34 }
 0x431   : > { %v2595_v45 = vor.u32 4788187, %v2594_v40  ;;  %v2713_v4 = vshrl.u32 %v2709_v48, 16  ;;  %v10414_v51 = vadd.s32 %v2718_v9, %v2714_v13  ;;  %v2723_v14 = vadd.s32 %v2721_v62, %v2719_v27 }
 0x432   : > { %v2598_v25 = vcvt.s32.f32 %v2591_v43  ;;  %v2605_v46 = vsel %vm10407_vm3, 0, %v2603_v2  ;;  %v2715_v31 = vshrl.u32 %v2710_v57, 16  ;;  %v2795_v35 = vand.u32 8388607, %v2788_v8 }
 0x433   : > { %v2596_v41 = vand.u32 2147483647, %v2595_v45  ;;  %v2724_v11 = vadd.s32 %v2723_v14, %v2713_v4  ;;  %vm2728_vm7 = vc.u32 %v10398_v6, %v10414_v51  ;;  %v2806_v1 = vshrl.u32 %v12260_v38, %v10392_v58 }
 0x434   : > { %v2808_v48 = vshll.u32 %v12260_v38, %v10348_v63  ;;  %v2809_v0 = vshrl.u32 %v12262_v60, %v10392_v58  ;;  %v2811_v18 = vshll.u32 %v12262_v60, %v10348_v63  ;;  %v2812_v50 = vshrl.u32 %v12263_v56, %v10392_v58 }
 0x435   : > { %v2599_v28 = vmul.f32 %v2598_v25, %v2596_v41  ;;  %v2725_v57 = vadd.s32 %v2724_v11, %v2715_v31  ;;  %v2814_v59 = vshll.u32 %v12263_v56, %v10348_v63  ;;  %v2815_v61 = vshrl.u32 %v12264_v54, %v10392_v58 }
 0x436   : > { %v2805_v36 = vshll.u32 %v12257_v39, %v10348_v63  ;;  %v10438_v7 = vor.u32 %v2809_v0, %v2808_v48  ;;  %v2817_v24 = vshll.u32 %v12264_v54, %v10348_v63  ;;  %v2818_v55 = vshrl.u32 %v12265_v21, %v10392_v58  ;;  %v12331_v0 = vld [vmem:[#allocation14_spill] sm:$0xff] }
 0x437   : > { %v2600_v47 = vxor.u32 2147483648, %v2599_v28  ;;  %v2729_v12 = vadd.s32 1, %v2725_v57  ;;  %v10444_v30 = vor.u32 %v2812_v50, %v2811_v18  ;;  %v2816_v5 = vor.u32 %v2815_v61, %v2814_v59 }
 0x438   : > { %v10447_v33 = vand.u32 31, %v10403_v3  ;;  %v2726_v22 = vmul.u32 %v10326_v29, %v2672_v26  ;;  %v2796_v42 = vor.u32 8388608, %v2795_v35  ;;  %v2819_v13 = vor.u32 %v2818_v55, %v2817_v24 }
 0x439   : > { %v2601_v10 = vsel %vm2480_vm0, %v2600_v47, %v2599_v28  ;;  %v2622_v32 = vadd.s32 3, %v2605_v46  ;;  %v2730_v63 = vsel %vm2728_vm7, %v2729_v12, %v2725_v57  ;;  %v10455_v53 = vor.u32 %v2806_v1, %v2805_v36 }
 0x43a   : > { %v10460_v9 = vsel %vm10407_vm3, %v9268_v52, %v2601_v10  ;;  %v2731_v2 = vadd.s32 %v2730_v63, %v2726_v22  ;;  %vm2820_vm8 = vcmp.lt.s32.totalorder %v10298_v20, 1  ;;  %vm2823_vm9 = vcmp.lt.s32.totalorder %v10298_v20, 4 }
 0x43b   : > { %v2606_v29 = vmul.f32 %v10460_v9, %v10460_v9  ;;  %vm2821_vm11 = vcmp.lt.s32.totalorder %v10298_v20, 2  ;;  %v2829_v27 = vsel %vm2823_vm9, %v2816_v5, 920167782  ;;  %v2832_v43 = vsel %vm2820_vm8, %v10438_v7, %v10444_v30 }
 0x43c   : > { %v2732_v40 = vadd.s32 536870912, %v2731_v2  ;;  %vm2822_vm12 = vcmp.lt.s32.totalorder %v10298_v20, 3  ;;  %v2833_v44 = vsel %vm2823_vm9, %v2819_v13, 1326507024  ;;  %v10476_v26 = vshll.u32 %v2796_v42, 8 }
 0x43d   : > { %v2607_v62 = vmul.f32 -0.001358992, %v2606_v29  ;;  %v2614_v45 = vmul.f32 -0.00019511016, %v2606_v29  ;;  %v2828_v4 = vsel %vm2820_vm8, %v10455_v53, %v10438_v7  ;;  %v2834_v14 = vsel %vm2822_vm12, %v2816_v5, %v2833_v44 }
 0x43e   : > { %v2733_v25 = vshrl.u32 %v2732_v40, 30  ;;  %v2830_v46 = vsel %vm2822_vm12, %v10444_v30, %v2829_v27  ;;  %v2835_v31 = vsel %vm2821_vm11, %v2832_v43, %v2834_v14  ;;  %v2837_v35 = vand.u32 65535, %v10476_v26 }
 0x43f   : > { %v2608_v41 = vadd.f32 0.041655596, %v2607_v62  ;;  %v2615_v11 = vadd.f32 0.008332121, %v2614_v45  ;;  %v2839_v1 = vand.u32 65535, %v2835_v31  ;;  %v2840_v48 = vshrl.u32 %v2835_v31, 16 }
 0x440   : > { %v10491_v18 = vadd.s32 4294967169, %v12331_v0  ;;  %v2623_v50 = vand.u32 3, %v2622_v32  ;;  %v2734_v28 = vshll.u32 %v2733_v25, 30  ;;  %v2838_v57 = vshrl.u32 %v10476_v26, 16 }
 0x441   : > { %v10495_v59 = vshrl.u32 %v9431_v37, 5  ;;  %v2609_v61 = vmul.f32 %v2608_v41, %v2606_v29  ;;  %v2616_v36 = vmul.f32 %v2615_v11, %v2606_v29  ;;  %v2842_v24 = vmul.u32 %v2840_v48, %v2837_v35 }
 0x442   : > { %v10498_v55 = vsub.s32 32, %v10447_v33  ;;  %v10500_v47 = vsub.s32 %v2731_v2, %v2734_v28  ;;  %v2831_v12 = vsel %vm2821_vm11, %v2828_v4, %v2830_v46  ;;  %v10504_v5 = vmul.u32 %v2839_v1, %v2838_v57 }
 0x443   : > { %v2610_v22 = vadd.f32 -0.4999988, %v2609_v61  ;;  %v2617_v42 = vadd.f32 -0.16666654, %v2616_v36  ;;  %vm2635_vm10 = vcmp.lt.s32.totalorder %v9337_v49, 0  ;;  %v2845_v13 = vshll.u32 %v2842_v24, 16 }
 0x444   : > { %vm2625_vm13 = vcmp.eq.s32.totalorder %v2623_v50, 0  ;;  %vm2628_vm1 = vcmp.eq.s32.totalorder %v2623_v50, 2  ;;  %vm2736_vm14 = vcmp.lt.s32.totalorder %v10500_v47, 0  ;;  %v2737_v10 = vsub.s32 0, %v10500_v47 }
 0x445   : > { %v2757_v32 = vsub.s32 4, %v2733_v25  ;;  %v2841_v63 = vmul.u32 %v2839_v1, %v2837_v35  ;;  %v2611_v2 = vmul.f32 %v2610_v22, %v2606_v29  ;;  %v2618_v27 = vmul.f32 %v2617_v42, %v2606_v29 }
 0x446   : > { %vm2624_vm15 = vcmp.lt.s32.totalorder %v2623_v50, 2  ;;  %v2844_v43 = vmul.u32 %v2840_v48, %v2838_v57  ;;  %v2862_v40 = vshrl.u32 %v2831_v12, 16  ;;  %vm2621_vm0 = vweird.f32 %v9268_v52 }
 0x447   : > { %v2738_v44 = vsel %vm2736_vm14, %v2737_v10, %v10500_v47  ;;  %v2847_v62 = vshll.u32 %v10504_v5, 16  ;;  %vm2849_vm4 = vc.u32 %v2841_v63, %v2845_v13  ;;  %v2851_v45 = vadd.s32 %v2845_v13, %v2841_v63 }
 0x448   : > { %v2612_v4 = vadd.f32 1.0, %v2611_v2  ;;  %v2619_v14 = vadd.f32 1.0, %v2618_v27  ;;  %v2739_v46 = vclz %v2738_v44  ;;  %v2850_v31 = vsel %vm2849_vm4, 1, %v12259_v34 }
 0x449   : > { %v2727_v41 = vadd.s32 %v10414_v51, %v10398_v6  ;;  %v2804_v29 = vshrl.u32 %v12257_v39, %v10392_v58  ;;  %v2852_v11 = vadd.s32 %v2850_v31, %v2844_v43  ;;  %v2861_v1 = vand.u32 65535, %v2831_v12 }
 0x44a   : > { %v2620_v48 = vmul.f32 %v2619_v14, %v10460_v9  ;;  %v2629_v0 = vxor.u32 2147483648, %v2612_v4  ;;  %vm10520_vm5 = vcmp.le.f32.partialorder %v2633_v23, 0.7853982  ;;  %v6763_v61 = vadd.s32 4294967294, %v2739_v46 }
 0x44b   : > { %vm2853_vm2 = vc.u32 %v2851_v45, %v2847_v62  ;;  %v2758_v36 = vsel %vm2635_vm10, %v2757_v32, %v2733_v25  ;;  %v2825_v58 = vsel %vm2823_vm9, %v10444_v30, 2102212464  ;;  %v2864_v51 = vmul.u32 %v2862_v40, %v2837_v35 }
 0x44c   : > { %v2854_v6 = vsel %vm2853_vm2, 1, %v12259_v34  ;;  %v2626_v9 = vxor.u32 2147483648, %v2620_v48  ;;  %vm6764_vm6 = vcmp.lt.s32.totalorder %v6763_v61, 0  ;;  %v2846_v12 = vshrl.u32 %v2842_v24, 16 }
 0x44d   : > { %v2856_v22 = vadd.s32 %v2854_v6, %v2852_v11  ;;  %v2742_v23 = vsel %vm6764_vm6, 0, %v6763_v61  ;;  %v2863_v42 = vmul.u32 %v2861_v1, %v2837_v35  ;;  %v2865_v13 = vmul.u32 %v2861_v1, %v2838_v57 }
 0x44e   : > { %v2867_v10 = vshll.u32 %v2864_v51, 16  ;;  %v2627_v63 = vsel %vm2625_vm13, %v2612_v4, %v2626_v9  ;;  %v2630_v2 = vsel %vm2628_vm1, %v2629_v0, %v2620_v48  ;;  %v2743_v25 = vsub.s32 32, %v2742_v23 }
 0x44f   : > { %v2747_v32 = vsub.s32 4294967266, %v2742_v23  ;;  %v2631_v27 = vsel %vm2624_vm15, %v2627_v63, %v2630_v2  ;;  %v2744_v30 = vshll.u32 %v10500_v47, %v2742_v23  ;;  %v2857_v43 = vadd.s32 %v2856_v22, %v2846_v12 }
 0x450   : > { %v2866_v44 = vmul.u32 %v2862_v40, %v2838_v57  ;;  %v2632_v24 = vsel %vm2621_vm0, nan, %v2631_v27  ;;  %v2745_v62 = vshrl.u32 %v2727_v41, %v2743_v25  ;;  %vm2871_vm3 = vc.u32 %v2863_v42, %v2867_v10 }
 0x451   : > { %v2748_v45 = vadd.s32 127, %v2747_v32  ;;  %5053 = vmatpush.msra.mxu0 %v2632_v24  ;;  %v2848_v35 = vshrl.u32 %v10504_v5, 16  ;;  %v2869_v4 = vshll.u32 %v2865_v13, 16  ;;  %v2872_v14 = vsel %vm2871_vm3, 1, %v12259_v34 }
 0x452   : > { %v2873_v46 = vadd.s32 %v2867_v10, %v2863_v42  ;;  %v2746_v31 = vor.u32 %v2745_v62, %v2744_v30  ;;  %v2824_v47 = vsel %vm2820_vm8, %v2804_v29, %v10455_v53  ;;  %v2874_v57 = vadd.s32 %v2872_v14, %v2866_v44 }
 0x453   : > { %v2749_v50 = vshll.u32 %v2748_v45, 23  ;;  %v2760_v52 = vsel %vm10520_vm5, 0, %v2758_v36  ;;  %v2826_v40 = vsel %vm2822_vm12, %v10438_v7, %v2825_v58  ;;  %v10546_v41 = vadd.s32 %v2857_v43, %v2848_v35 }
 0x454   : > { %vm2875_vm7 = vc.u32 %v2873_v46, %v2869_v4  ;;  %v10549_v5 = vand.u32 31, %v9431_v37  ;;  %v2943_v48 = vand.u32 2147483647, %v12314_v16  ;;  %v10554_v53 = vshrl.u32 %v10403_v3, 5 }
 0x455   : > { %v2750_v11 = vor.u32 4788187, %v2749_v50  ;;  %v2876_v1 = vsel %vm2875_vm7, 1, %v12259_v34  ;;  %v2868_v29 = vshrl.u32 %v2864_v51, 16  ;;  %v10556_v0 = vadd.s32 %v2873_v46, %v2869_v4 }
 0x456   : > { %v2878_v61 = vadd.s32 %v2876_v1, %v2874_v57  ;;  %v2753_v7 = vcvt.s32.f32 %v2746_v31  ;;  %v2777_v58 = vadd.s32 3, %v2760_v52  ;;  %v2827_v6 = vsel %vm2821_vm11, %v2824_v47, %v2826_v40 }
 0x457   : > { %v2751_v36 = vand.u32 2147483647, %v2750_v11  ;;  %v2870_v37 = vshrl.u32 %v2865_v13, 16  ;;  %vm2883_vm8 = vc.u32 %v10546_v41, %v10556_v0  ;;  %v2964_v12 = vshrl.u32 %v12262_v60, %v10498_v55 }
 0x458   : > { %v2879_v9 = vadd.s32 %v2878_v61, %v2868_v29  ;;  %v2950_v51 = vand.u32 8388607, %v2943_v48  ;;  %v2961_v22 = vshrl.u32 %v12260_v38, %v10498_v55  ;;  %v2967_v23 = vshrl.u32 %v12263_v56, %v10498_v55 }
 0x459   : > { %v2754_v3 = vmul.f32 %v2753_v7, %v2751_v36  ;;  %v2963_v42 = vshll.u32 %v12260_v38, %v10447_v33  ;;  %v2966_v13 = vshll.u32 %v12262_v60, %v10447_v33  ;;  %v2970_v10 = vshrl.u32 %v12264_v54, %v10498_v55 }
 0x45a   : > { %v2880_v20 = vadd.s32 %v2879_v9, %v2870_v37  ;;  %v2960_v2 = vshll.u32 %v12257_v39, %v10447_v33  ;;  %v2972_v25 = vshll.u32 %v12264_v54, %v10447_v33  ;;  %v2973_v32 = vshrl.u32 %v12265_v21, %v10498_v55 }
 0x45b   : > { %v2755_v63 = vxor.u32 2147483648, %v2754_v3  ;;  %v10582_v30 = vor.u32 %v2964_v12, %v2963_v42  ;;  %v10584_v43 = vor.u32 %v2967_v23, %v2966_v13  ;;  %v2969_v44 = vshll.u32 %v12263_v56, %v10447_v33 }
 0x45c   : > { %v2884_v27 = vadd.s32 1, %v2880_v20  ;;  %v2881_v62 = vmul.u32 %v10476_v26, %v2827_v6  ;;  %v2951_v45 = vor.u32 8388608, %v2950_v51  ;;  %v2974_v35 = vor.u32 %v2973_v32, %v2972_v25 }
 0x45d   : > { %v2756_v24 = vsel %vm2635_vm10, %v2755_v63, %v2754_v3  ;;  %v10599_v46 = vor.u32 %v2961_v22, %v2960_v2  ;;  %v2971_v31 = vor.u32 %v2970_v10, %v2969_v44  ;;  %vm2975_vm9 = vcmp.lt.s32.totalorder %v10554_v53, 1 }
 0x45e   : > { %v10594_v4 = vsel %vm10520_vm5, %v9337_v49, %v2756_v24  ;;  %v2885_v14 = vsel %vm2883_vm8, %v2884_v27, %v2880_v20  ;;  %vm2978_vm11 = vcmp.lt.s32.totalorder %v10554_v53, 4  ;;  %v10605_v26 = vand.u32 3, %v2777_v58 }
 0x45f   : > { %v2761_v33 = vmul.f32 %v10594_v4, %v10594_v4  ;;  %v2886_v50 = vadd.s32 %v2885_v14, %v2881_v62  ;;  %vm2976_vm12 = vcmp.lt.s32.totalorder %v10554_v53, 2  ;;  %v2987_v28 = vsel %vm2975_vm9, %v10582_v30, %v10584_v43 }
 0x460   : > { %v2988_v47 = vsel %vm2978_vm11, %v2974_v35, 1326507024  ;;  %vm2977_vm10 = vcmp.lt.s32.totalorder %v10554_v53, 3  ;;  %v2983_v11 = vsel %vm2975_vm9, %v10599_v46, %v10582_v30  ;;  %v2984_v1 = vsel %vm2978_vm11, %v2971_v31, 920167782 }
 0x461   : > { %v2762_v57 = vmul.f32 -0.001358992, %v2761_v33  ;;  %v2769_v52 = vmul.f32 -0.00019511016, %v2761_v33  ;;  %v2887_v40 = vadd.s32 536870912, %v2886_v50  ;;  %v2989_v29 = vsel %vm2977_vm10, %v2971_v31, %v2988_v47 }
 0x462   : > { %v10623_v61 = vshll.u32 %v2951_v45, 8  ;;  %v2990_v6 = vsel %vm2976_vm12, %v2987_v28, %v2989_v29  ;;  %v2985_v20 = vsel %vm2977_vm10, %v10584_v43, %v2984_v1  ;;  %v10640_v42 = vadd.s32 1, %v9342_v15 }
 0x463   : > { %v2763_v36 = vadd.f32 0.041655596, %v2762_v57  ;;  %v2770_v7 = vadd.f32 0.008332121, %v2769_v52  ;;  %v10625_v58 = vshrl.u32 %v2887_v40, 30  ;;  %v2994_v12 = vand.u32 65535, %v2990_v6 }
 0x464   : > { %v10630_v37 = vand.u32 65535, %v10623_v61  ;;  %v10633_v9 = vshrl.u32 %v10623_v61, 16  ;;  %v2995_v3 = vshrl.u32 %v2990_v6, 16  ;;  %v10643_v13 = vadd.s32 1, %v9434_v17 }
 0x465   : > { %v2764_v51 = vmul.f32 %v2763_v36, %v2761_v33  ;;  %v2771_v22 = vmul.f32 %v2770_v7, %v2761_v33  ;;  %v2889_v23 = vshll.u32 %v10625_v58, 30  ;;  %v10650_v2 = vsub.s32 32, %v10549_v5 }
 0x466   : > { %v2997_v10 = vmul.u32 %v2995_v3, %v10630_v37  ;;  %v10647_v63 = vmul.u32 %v2994_v12, %v10633_v9  ;;  %vm2780_vm13 = vcmp.eq.s32.totalorder %v10605_v26, 0  ;;  %v2959_v15 = vshrl.u32 %v12257_v39, %v10498_v55 }
 0x467   : > { %v2765_v25 = vadd.f32 -0.4999988, %v2764_v51  ;;  %v2772_v32 = vadd.f32 -0.16666654, %v2771_v22  ;;  %v10652_v27 = vsub.s32 %v2886_v50, %v2889_v23  ;;  %v2986_v17 = vsel %vm2976_vm12, %v2983_v11, %v2985_v20 }
 0x468   : > { %v2996_v44 = vmul.u32 %v2994_v12, %v10630_v37  ;;  %v3000_v24 = vshll.u32 %v2997_v10, 16  ;;  %vm2779_vm1 = vcmp.lt.s32.totalorder %v10605_v26, 2  ;;  %vm2790_vm14 = vcmp.lt.s32.totalorder %v12310_v19, 0 }
 0x469   : > { %v2766_v62 = vmul.f32 %v2765_v25, %v2761_v33  ;;  %v2773_v45 = vmul.f32 %v2772_v32, %v2761_v33  ;;  %vm2891_vm15 = vcmp.lt.s32.totalorder %v10652_v27, 0  ;;  %v2892_v35 = vsub.s32 0, %v10652_v27 }
 0x46a   : > { %vm2776_vm0 = vweird.f32 %v9337_v49  ;;  %v2999_v55 = vmul.u32 %v2995_v3, %v10633_v9  ;;  %v3002_v14 = vshll.u32 %v10647_v63, 16  ;;  %vm3004_vm4 = vc.u32 %v2996_v44, %v3000_v24 }
 0x46b   : > { %v3006_v31 = vadd.s32 %v3000_v24, %v2996_v44  ;;  %v2767_v50 = vadd.f32 1.0, %v2766_v62  ;;  %v2774_v28 = vadd.f32 1.0, %v2773_v45  ;;  %v2893_v33 = vsel %vm2891_vm15, %v2892_v35, %v10652_v27 }
 0x46c   : > { %v3005_v47 = vsel %vm3004_vm4, 1, %v12259_v34  ;;  %v2894_v57 = vclz %v2893_v33  ;;  %v2980_v52 = vsel %vm2978_vm11, %v10584_v43, 2102212464  ;;  %vm2024_vm2 = vcmp.gt.s32.totalorder %v10640_v42, 0 }
 0x46d   : > { %v3007_v40 = vadd.s32 %v3005_v47, %v2999_v55  ;;  %vm3008_vm5 = vc.u32 %v3006_v31, %v3002_v14  ;;  %v2775_v11 = vmul.f32 %v2774_v28, %v10594_v4  ;;  %v2784_v1 = vxor.u32 2147483648, %v2767_v50 }
 0x46e   : > { %vm10676_vm6 = vcmp.le.f32.partialorder %v2788_v8, 0.7853982  ;;  %v3009_v36 = vsel %vm3008_vm5, 1, %v12259_v34  ;;  %v3016_v7 = vand.u32 65535, %v2986_v17  ;;  %vm2783_vm3 = vcmp.eq.s32.totalorder %v10605_v26, 2 }
 0x46f   : > { %v2882_v43 = vadd.s32 %v10556_v0, %v10546_v41  ;;  %v6766_v6 = vadd.s32 4294967294, %v2894_v57  ;;  %v2912_v12 = vsub.s32 4, %v10625_v58  ;;  %v2781_v3 = vxor.u32 2147483648, %v2775_v11 }
 0x470   : > { %v2979_v4 = vsel %vm2975_vm9, %v2959_v15, %v10599_v46  ;;  %v3011_v8 = vadd.s32 %v3009_v36, %v3007_v40  ;;  %v3017_v51 = vshrl.u32 %v2986_v17, 16  ;;  %v2785_v22 = vsel %vm2783_vm3, %v2784_v1, %v2775_v11 }
 0x471   : > { %vm6767_vm7 = vcmp.lt.s32.totalorder %v6766_v6, 0  ;;  %v2981_v23 = vsel %vm2977_vm10, %v10582_v30, %v2980_v52  ;;  %v3001_v20 = vshrl.u32 %v2997_v10, 16  ;;  %v2782_v41 = vsel %vm2780_vm13, %v2767_v50, %v2781_v3 }
 0x472   : > { %v2897_v0 = vsel %vm6767_vm7, 0, %v6766_v6  ;;  %v3019_v25 = vmul.u32 %v3017_v51, %v10630_v37  ;;  %v3020_v32 = vmul.u32 %v3016_v7, %v10633_v9  ;;  %v2786_v46 = vsel %vm2779_vm1, %v2782_v41, %v2785_v22 }
 0x473   : > { %v2898_v15 = vsub.s32 32, %v2897_v0  ;;  %v2902_v17 = vsub.s32 4294967266, %v2897_v0  ;;  %v2913_v44 = vsel %vm2790_vm14, %v2912_v12, %v10625_v58  ;;  %v2787_v30 = vsel %vm2776_vm0, nan, %v2786_v46 }
 0x474   : > { %v3012_v10 = vadd.s32 %v3011_v8, %v3001_v20  ;;  %v3018_v24 = vmul.u32 %v3016_v7, %v10630_v37  ;;  %v3022_v62 = vshll.u32 %v3019_v25, 16  ;;  %5094 = vmatpush.msra.mxu1 %v2787_v30  ;;  %v2899_v45 = vshll.u32 %v10652_v27, %v2897_v0  ;;  %v12336_v27 = vld [vmem:[#allocation34_spill] sm:$0xff] }
 0x475   : > { %v2900_v35 = vshrl.u32 %v2882_v43, %v2898_v15  ;;  %v2903_v55 = vadd.s32 127, %v2902_v17  ;;  %v3003_v26 = vshrl.u32 %v10647_v63, 16  ;;  %v3021_v14 = vmul.u32 %v3017_v51, %v10633_v9 }
 0x476   : > { %v3024_v31 = vshll.u32 %v3020_v32, 16  ;;  %vm3026_vm8 = vc.u32 %v3018_v24, %v3022_v62  ;;  %v3028_v50 = vadd.s32 %v3022_v62, %v3018_v24  ;;  %v2915_v49 = vsel %vm10676_vm6, 0, %v2913_v44 }
 0x477   : > { %v2901_v58 = vor.u32 %v2900_v35, %v2899_v45  ;;  %v2904_v28 = vshll.u32 %v2903_v55, 23  ;;  %v3027_v37 = vsel %vm3026_vm8, 1, %v12259_v34  ;;  %v10709_v33 = vadd.s32 %v3012_v10, %v3003_v26 }
 0x478   : > { %v3029_v47 = vadd.s32 %v3027_v37, %v3021_v14  ;;  %vm3030_vm9 = vc.u32 %v3028_v50, %v3024_v31  ;;  %v1858_v57 = vand.u32 2147483647, %v12336_v27  ;;  %v10715_v9 = vsel %vm2024_vm2, %v10640_v42, 0 }
 0x479   : > { %v10718_v63 = vadd.s32 1, %v10491_v18  ;;  %v2905_v52 = vor.u32 4788187, %v2904_v28  ;;  %v3031_v40 = vsel %vm3030_vm9, 1, %v12259_v34  ;;  %v2982_v11 = vsel %vm2976_vm12, %v2979_v4, %v2981_v23 }
 0x47a   : > { %v3023_v1 = vshrl.u32 %v3019_v25, 16  ;;  %v10723_v36 = vadd.s32 %v3028_v50, %v3024_v31  ;;  %v3033_v7 = vadd.s32 %v3031_v40, %v3029_v47  ;;  %v2908_v6 = vcvt.s32.f32 %v2901_v58 }
 0x47b   : > { %v2906_v43 = vand.u32 2147483647, %v2905_v52  ;;  %v2932_v12 = vadd.s32 3, %v2915_v49  ;;  %v3025_v3 = vshrl.u32 %v3020_v32, 16  ;;  %v1865_v18 = vand.u32 8388607, %v1858_v57 }
 0x47c   : > { %v3034_v8 = vadd.s32 %v3033_v7, %v3023_v1  ;;  %vm3038_vm11 = vc.u32 %v10709_v33, %v10723_v36  ;;  %v1879_v42 = vshrl.u32 %v12262_v60, %v10650_v2  ;;  %v1876_v4 = vshrl.u32 %v12260_v38, %v10650_v2 }
 0x47d   : > { %v2909_v53 = vmul.f32 %v2908_v6, %v2906_v43  ;;  %v1878_v51 = vshll.u32 %v12260_v38, %v10549_v5  ;;  %v1882_v22 = vshrl.u32 %v12263_v56, %v10650_v2  ;;  %v1881_v20 = vshll.u32 %v12262_v60, %v10549_v5 }
 0x47e   : > { %v3035_v23 = vadd.s32 %v3034_v8, %v3025_v3  ;;  %v1884_v41 = vshll.u32 %v12263_v56, %v10549_v5  ;;  %v1885_v0 = vshrl.u32 %v12264_v54, %v10650_v2  ;;  %vm2179_vm12 = vcmp.gt.s32.totalorder %v10643_v13, 0 }
 0x47f   : > { %v2910_v25 = vxor.u32 2147483648, %v2909_v53  ;;  %v1875_v32 = vshll.u32 %v12257_v39, %v10549_v5  ;;  %v1887_v46 = vshll.u32 %v12264_v54, %v10549_v5  ;;  %v1888_v15 = vshrl.u32 %v12265_v21, %v10650_v2 }
 0x480   : > { %v3039_v17 = vadd.s32 1, %v3035_v23  ;;  %v10750_v44 = vor.u32 %v1879_v42, %v1878_v51  ;;  %v10752_v30 = vor.u32 %v1882_v22, %v1881_v20  ;;  %v1886_v10 = vor.u32 %v1885_v0, %v1884_v41 }
 0x481   : > { %v2911_v24 = vsel %vm2790_vm14, %v2910_v25, %v2909_v53  ;;  %v3036_v62 = vmul.u32 %v10623_v61, %v2982_v11  ;;  %v1866_v45 = vor.u32 8388608, %v1865_v18  ;;  %v1889_v35 = vor.u32 %v1888_v15, %v1887_v46 }
 0x482   : > { %v10760_v5 = vsel %vm10676_vm6, %v12310_v19, %v2911_v24  ;;  %v3040_v55 = vsel %vm3038_vm11, %v3039_v17, %v3035_v23  ;;  %v10765_v26 = vor.u32 %v1876_v4, %v1875_v32  ;;  %vm1893_vm10 = vcmp.lt.s32.totalorder %v10495_v59, 4 }
 0x483   : > { %v2916_v14 = vmul.f32 %v10760_v5, %v10760_v5  ;;  %v3041_v31 = vadd.s32 %v3040_v55, %v3036_v62  ;;  %vm1890_vm13 = vcmp.lt.s32.totalorder %v10495_v59, 1  ;;  %v1899_v61 = vsel %vm1893_vm10, %v1886_v10, 920167782 }
 0x484   : > { %v10773_v29 = vand.u32 3, %v2932_v12  ;;  %vm1891_vm1 = vcmp.lt.s32.totalorder %v10495_v59, 2  ;;  %v1902_v50 = vsel %vm1890_vm13, %v10750_v44, %v10752_v30  ;;  %v1903_v58 = vsel %vm1893_vm10, %v1889_v35, 1326507024 }
 0x485   : > { %v2917_v28 = vmul.f32 -0.001358992, %v2916_v14  ;;  %v2924_v49 = vmul.f32 -0.00019511016, %v2916_v14  ;;  %v3042_v37 = vadd.s32 536870912, %v3041_v31  ;;  %vm1892_vm14 = vcmp.lt.s32.totalorder %v10495_v59, 3 }
 0x486   : > { %v1898_v47 = vsel %vm1890_vm13, %v10765_v26, %v10750_v44  ;;  %v1900_v52 = vsel %vm1892_vm14, %v10752_v30, %v1899_v61  ;;  %v1904_v40 = vsel %vm1892_vm14, %v1886_v10, %v1903_v58  ;;  %v10792_v11 = vshll.u32 %v1866_v45, 8 }
 0x487   : > { %v2918_v1 = vadd.f32 0.041655596, %v2917_v28  ;;  %v2925_v7 = vadd.f32 0.008332121, %v2924_v49  ;;  %v3043_v43 = vshrl.u32 %v3042_v37, 30  ;;  %v1905_v6 = vsel %vm1891_vm1, %v1902_v50, %v1904_v40 }
 0x488   : > { %v10797_v12 = vand.u32 65535, %v10792_v11  ;;  %v10800_v3 = vshrl.u32 %v10792_v11, 16  ;;  %v1909_v8 = vand.u32 65535, %v1905_v6  ;;  %v1910_v18 = vshrl.u32 %v1905_v6, 16 }
 0x489   : > { %v2919_v42 = vmul.f32 %v2918_v1, %v2916_v14  ;;  %v2926_v53 = vmul.f32 %v2925_v7, %v2916_v14  ;;  %v3044_v4 = vshll.u32 %v3043_v43, 30  ;;  %v1901_v51 = vsel %vm1891_vm1, %v1898_v47, %v1900_v52 }
 0x48a   : > { %v10805_v22 = vand.u32 31, %v10715_v9  ;;  %v10810_v23 = vsel %vm2179_vm12, %v10643_v13, 0  ;;  %v1912_v20 = vmul.u32 %v1910_v18, %v10797_v12  ;;  %v10814_v41 = vmul.u32 %v1909_v8, %v10800_v3 }
 0x48b   : > { %v2920_v0 = vadd.f32 -0.4999988, %v2919_v42  ;;  %v2927_v25 = vadd.f32 -0.16666654, %v2926_v53  ;;  %vm2945_vm15 = vcmp.lt.s32.totalorder %v12314_v16, 0  ;;  %v10817_v32 = vsub.s32 %v3041_v31, %v3044_v4 }
 0x48c   : > { %vm2935_vm0 = vcmp.eq.s32.totalorder %v10773_v29, 0  ;;  %v1874_v46 = vshrl.u32 %v12257_v39, %v10650_v2  ;;  %v1911_v15 = vmul.u32 %v1909_v8, %v10797_v12  ;;  %v1915_v13 = vshll.u32 %v1912_v20, 16 }
 0x48d   : > { %v1932_v17 = vshrl.u32 %v1901_v51, 16  ;;  %v2921_v10 = vmul.f32 %v2920_v0, %v2916_v14  ;;  %v2928_v24 = vmul.f32 %v2927_v25, %v2916_v14  ;;  %vm2934_vm4 = vcmp.lt.s32.totalorder %v10773_v29, 2 }
 0x48e   : > { %vm3046_vm5 = vcmp.lt.s32.totalorder %v10817_v32, 0  ;;  %v3047_v62 = vsub.s32 0, %v10817_v32  ;;  %vm2931_vm2 = vweird.f32 %v12310_v19  ;;  %v1914_v45 = vmul.u32 %v1910_v18, %v10800_v3 }
 0x48f   : > { %v1917_v35 = vshll.u32 %v10814_v41, 16  ;;  %vm1919_vm6 = vc.u32 %v1911_v15, %v1915_v13  ;;  %v1921_v2 = vadd.s32 %v1915_v13, %v1911_v15  ;;  %v2922_v55 = vadd.f32 1.0, %v2921_v10 }
 0x490   : > { %v2929_v31 = vadd.f32 1.0, %v2928_v24  ;;  %v3048_v61 = vsel %vm3046_vm5, %v3047_v62, %v10817_v32  ;;  %v1920_v14 = vsel %vm1919_vm6, 1, %v12259_v34  ;;  %v3067_v58 = vsub.s32 4, %v3043_v43 }
 0x491   : > { %v3049_v50 = vclz %v3048_v61  ;;  %v1922_v28 = vadd.s32 %v1920_v14, %v1914_v45  ;;  %vm1923_vm3 = vc.u32 %v1921_v2, %v1917_v35  ;;  %v2939_v37 = vxor.u32 2147483648, %v2922_v55  ;;  %v12339_v2 = vld [vmem:[#allocation35_spill] sm:$0xff] }
 0x492   : > { %v2930_v49 = vmul.f32 %v2929_v31, %v10760_v5  ;;  %v1924_v47 = vsel %vm1923_vm3, 1, %v12259_v34  ;;  %v1931_v52 = vand.u32 65535, %v1901_v51  ;;  %vm2938_vm7 = vcmp.eq.s32.totalorder %v10773_v29, 2 }
 0x493   : > { %vm10836_vm8 = vcmp.le.f32.partialorder %v2943_v48, 0.7853982  ;;  %v3037_v1 = vadd.s32 %v10723_v36, %v10709_v33  ;;  %v6769_v7 = vadd.s32 4294967294, %v3049_v50  ;;  %v1894_v5 = vsel %vm1890_vm13, %v1874_v46, %v10765_v26 }
 0x494   : > { %v2936_v6 = vxor.u32 2147483648, %v2930_v49  ;;  %v1895_v8 = vsel %vm1893_vm10, %v10752_v30, 2102212464  ;;  %v1926_v18 = vadd.s32 %v1924_v47, %v1922_v28  ;;  %v1934_v42 = vmul.u32 %v1932_v17, %v10797_v12 }
 0x495   : > { %v2940_v48 = vsel %vm2938_vm7, %v2939_v37, %v2930_v49  ;;  %vm6770_vm9 = vcmp.lt.s32.totalorder %v6769_v7, 0  ;;  %v3068_v53 = vsel %vm2945_vm15, %v3067_v58, %v3043_v43  ;;  %v1916_v4 = vshrl.u32 %v1912_v20, 16 }
 0x496   : > { %v2937_v33 = vsel %vm2935_vm0, %v2922_v55, %v2936_v6  ;;  %v3052_v36 = vsel %vm6770_vm9, 0, %v6769_v7  ;;  %v1935_v26 = vmul.u32 %v1931_v52, %v10800_v3  ;;  %v1937_v51 = vshll.u32 %v1934_v42, 16 }
 0x497   : > { %v2941_v0 = vsel %vm2934_vm4, %v2937_v33, %v2940_v48  ;;  %v3053_v30 = vsub.s32 32, %v3052_v36  ;;  %v3057_v25 = vsub.s32 4294967266, %v3052_v36  ;;  %v1933_v46 = vmul.u32 %v1931_v52, %v10797_v12 }
 0x498   : > { %v2942_v15 = vsel %vm2931_vm2, nan, %v2941_v0  ;;  %v1918_v43 = vshrl.u32 %v10814_v41, 16  ;;  %v1927_v20 = vadd.s32 %v1926_v18, %v1916_v4  ;;  %v1936_v13 = vmul.u32 %v1932_v17, %v10800_v3 }
 0x499   : > { %5135 = vmatpush.msra.mxu2 %v2942_v15  ;;  %v3054_v10 = vshll.u32 %v10817_v32, %v3052_v36  ;;  %v3055_v24 = vshrl.u32 %v3037_v1, %v3053_v30  ;;  %v3058_v62 = vadd.s32 127, %v3057_v25  ;;  %vm1941_vm11 = vc.u32 %v1933_v46, %v1937_v51 }
 0x49a   : > { %v1939_v29 = vshll.u32 %v1935_v26, 16  ;;  %v1942_v45 = vsel %vm1941_vm11, 1, %v12259_v34  ;;  %v1943_v35 = vadd.s32 %v1937_v51, %v1933_v46  ;;  %v2013_v12 = vand.u32 2147483647, %v12339_v2 }
 0x49b   : > { %v3056_v55 = vor.u32 %v3055_v24, %v3054_v10  ;;  %v3059_v19 = vshll.u32 %v3058_v62, 23  ;;  %v1896_v41 = vsel %vm1892_vm14, %v10750_v44, %v1895_v8  ;;  %v1944_v31 = vadd.s32 %v1942_v45, %v1936_v13 }
 0x49c   : > { %v10868_v3 = vsub.s32 32, %v10805_v22  ;;  %v3070_v32 = vsel %vm10836_vm8, 0, %v3068_v53  ;;  %v10872_v17 = vadd.s32 %v1927_v20, %v1918_v43  ;;  %vm1945_vm12 = vc.u32 %v1943_v35, %v1939_v29 }
 0x49d   : > { %v10875_v61 = vshrl.u32 %v10715_v9, 5  ;;  %v3060_v14 = vor.u32 4788187, %v3059_v19  ;;  %v1946_v50 = vsel %vm1945_vm12, 1, %v12259_v34  ;;  %v2020_v58 = vand.u32 8388607, %v2013_v12 }
 0x49e   : > { %v1897_v44 = vsel %vm1891_vm1, %v1894_v5, %v1896_v41  ;;  %v1938_v28 = vshrl.u32 %v1934_v42, 16  ;;  %v10882_v49 = vadd.s32 %v1943_v35, %v1939_v29  ;;  %v1948_v37 = vadd.s32 %v1946_v50, %v1944_v31 }
 0x49f   : > { %v3061_v47 = vand.u32 2147483647, %v3060_v14  ;;  %v3063_v52 = vcvt.s32.f32 %v3056_v55  ;;  %v3087_v1 = vadd.s32 3, %v3070_v32  ;;  %v1940_v7 = vshrl.u32 %v1935_v26, 16 }
 0x4a0   : > { %v1949_v6 = vadd.s32 %v1948_v37, %v1938_v28  ;;  %vm1953_vm10 = vc.u32 %v10872_v17, %v10882_v49  ;;  %v2034_v9 = vshrl.u32 %v12262_v60, %v10868_v3  ;;  %v2037_v8 = vshrl.u32 %v12263_v56, %v10868_v3 }
 0x4a1   : > { %v3064_v59 = vmul.f32 %v3063_v52, %v3061_v47  ;;  %v2021_v5 = vor.u32 8388608, %v2020_v58  ;;  %v2039_v18 = vshll.u32 %v12263_v56, %v10805_v22  ;;  %v2040_v42 = vshrl.u32 %v12264_v54, %v10868_v3 }
 0x4a2   : > { %v1950_v48 = vadd.s32 %v1949_v6, %v1940_v7  ;;  %v2031_v53 = vshrl.u32 %v12260_v38, %v10868_v3  ;;  %v2033_v4 = vshll.u32 %v12260_v38, %v10805_v22  ;;  %v2036_v33 = vshll.u32 %v12262_v60, %v10805_v22 }
 0x4a3   : > { %v3065_v36 = vxor.u32 2147483648, %v3064_v59  ;;  %v2041_v26 = vor.u32 %v2040_v42, %v2039_v18  ;;  %v2042_v51 = vshll.u32 %v12264_v54, %v10805_v22  ;;  %v2043_v0 = vshrl.u32 %v12265_v21, %v10868_v3 }
 0x4a4   : > { %v1954_v30 = vadd.s32 1, %v1950_v48  ;;  %v2030_v25 = vshll.u32 %v12257_v39, %v10805_v22  ;;  %v10906_v46 = vor.u32 %v2034_v9, %v2033_v4  ;;  %v2038_v15 = vor.u32 %v2037_v8, %v2036_v33 }
 0x4a5   : > { %v10909_v43 = vshrl.u32 %v10810_v23, 5  ;;  %v3066_v20 = vsel %vm2945_vm15, %v3065_v36, %v3064_v59  ;;  %v1951_v13 = vmul.u32 %v10792_v11, %v1897_v44  ;;  %v2044_v10 = vor.u32 %v2043_v0, %v2042_v51 }
 0x4a6   : > { %v10917_v24 = vsel %vm10836_vm8, %v12314_v16, %v3066_v20  ;;  %v1955_v22 = vsel %vm1953_vm10, %v1954_v30, %v1950_v48  ;;  %v10922_v62 = vor.u32 %v2031_v53, %v2030_v25  ;;  %vm2048_vm13 = vcmp.lt.s32.totalorder %v10875_v61, 4 }
 0x4a7   : > { %v3071_v29 = vmul.f32 %v10917_v24, %v10917_v24  ;;  %v1956_v45 = vadd.s32 %v1955_v22, %v1951_v13  ;;  %vm2045_vm1 = vcmp.lt.s32.totalorder %v10875_v61, 1  ;;  %v2054_v11 = vsel %vm2048_vm13, %v2041_v26, 920167782 }
 0x4a8   : > { %v10930_v40 = vand.u32 3, %v3087_v1  ;;  %v2057_v35 = vsel %vm2045_vm1, %v10906_v46, %v2038_v15  ;;  %v2058_v55 = vsel %vm2048_vm13, %v2044_v10, 1326507024  ;;  %v10937_v19 = vshll.u32 %v2021_v5, 8 }
 0x4a9   : > { %v3072_v41 = vmul.f32 -0.001358992, %v3071_v29  ;;  %v3079_v31 = vmul.f32 -0.00019511016, %v3071_v29  ;;  %v1957_v32 = vadd.s32 536870912, %v1956_v45  ;;  %vm2047_vm14 = vcmp.lt.s32.totalorder %v10875_v61, 3 }
 0x4aa   : > { %vm2046_vm15 = vcmp.lt.s32.totalorder %v10875_v61, 2  ;;  %v2053_v14 = vsel %vm2045_vm1, %v10922_v62, %v10906_v46  ;;  %v2055_v50 = vsel %vm2047_vm14, %v2038_v15, %v2054_v11  ;;  %v2059_v58 = vsel %vm2047_vm14, %v2041_v26, %v2058_v55 }
 0x4ab   : > { %v3073_v44 = vadd.f32 0.041655596, %v3072_v41  ;;  %v3080_v28 = vadd.f32 0.008332121, %v3079_v31  ;;  %v10949_v37 = vshrl.u32 %v1957_v32, 30  ;;  %v2060_v47 = vsel %vm2046_vm15, %v2057_v35, %v2059_v58 }
 0x4ac   : > { %v2062_v52 = vand.u32 65535, %v10937_v19  ;;  %v2063_v1 = vshrl.u32 %v10937_v19, 16  ;;  %v2064_v7 = vand.u32 65535, %v2060_v47  ;;  %v2065_v6 = vshrl.u32 %v2060_v47, 16 }
 0x4ad   : > { %v3074_v9 = vmul.f32 %v3073_v44, %v3071_v29  ;;  %v3081_v8 = vmul.f32 %v3080_v28, %v3071_v29  ;;  %v1959_v59 = vshll.u32 %v10949_v37, 30  ;;  %v2056_v5 = vsel %vm2046_vm15, %v2053_v14, %v2055_v50 }
 0x4ae   : > { %v10959_v18 = vand.u32 31, %v10810_v23  ;;  %v2029_v42 = vshrl.u32 %v12257_v39, %v10868_v3  ;;  %v2067_v48 = vmul.u32 %v2065_v6, %v2062_v52  ;;  %v10963_v53 = vmul.u32 %v2064_v7, %v2063_v1 }
 0x4af   : > { %v3075_v4 = vadd.f32 -0.4999988, %v3074_v9  ;;  %v3082_v33 = vadd.f32 -0.16666654, %v3081_v8  ;;  %v10965_v36 = vsub.s32 %v1956_v45, %v1959_v59  ;;  %v2050_v26 = vsel %vm2048_vm13, %v2038_v15, 2102212464 }
 0x4b0   : > { %vm3090_vm0 = vcmp.eq.s32.totalorder %v10930_v40, 0  ;;  %vm3093_vm4 = vcmp.eq.s32.totalorder %v10930_v40, 2  ;;  %v2066_v51 = vmul.u32 %v2064_v7, %v2062_v52  ;;  %v2070_v23 = vshll.u32 %v2067_v48, 16 }
 0x4b1   : > { %v2086_v0 = vand.u32 65535, %v2056_v5  ;;  %v2087_v30 = vshrl.u32 %v2056_v5, 16  ;;  %v3076_v25 = vmul.f32 %v3075_v4, %v3071_v29  ;;  %v3083_v3 = vmul.f32 %v3082_v33, %v3071_v29 }
 0x4b2   : > { %vm3089_vm5 = vcmp.lt.s32.totalorder %v10930_v40, 2  ;;  %vm1961_vm2 = vcmp.lt.s32.totalorder %v10965_v36, 0  ;;  %v1962_v20 = vsub.s32 0, %v10965_v36  ;;  %vm3086_vm6 = vweird.f32 %v12314_v16  ;;  %v12340_v16 = vld [vmem:[#allocation17_spill] sm:$0xff] }
 0x4b3   : > { %v2069_v13 = vmul.u32 %v2065_v6, %v2063_v1  ;;  %v2072_v15 = vshll.u32 %v10963_v53, 16  ;;  %vm2074_vm3 = vc.u32 %v2066_v51, %v2070_v23  ;;  %v2076_v10 = vadd.s32 %v2070_v23, %v2066_v51 }
 0x4b4   : > { %v3077_v22 = vadd.f32 1.0, %v3076_v25  ;;  %v3084_v45 = vadd.f32 1.0, %v3083_v3  ;;  %v1963_v11 = vsel %vm1961_vm2, %v1962_v20, %v10965_v36  ;;  %v2075_v35 = vsel %vm2074_vm3, 1, %v12259_v34 }
 0x4b5   : > { %vm2334_vm7 = vcmp.gt.s32.totalorder %v10718_v63, 0  ;;  %vm1860_vm8 = vcmp.lt.s32.totalorder %v12336_v27, 0  ;;  %v1952_v29 = vadd.s32 %v10882_v49, %v10872_v17  ;;  %v1964_v55 = vclz %v1963_v11 }
 0x4b6   : > { %v2077_v41 = vadd.s32 %v2075_v35, %v2069_v13  ;;  %vm2078_vm9 = vc.u32 %v2076_v10, %v2072_v15  ;;  %v3085_v31 = vmul.f32 %v3084_v45, %v10917_v24  ;;  %v3094_v32 = vxor.u32 2147483648, %v3077_v22 }
 0x4b7   : > { %v2079_v14 = vsel %vm2078_vm9, 1, %v12259_v34  ;;  %v2089_v50 = vmul.u32 %v2087_v30, %v2062_v52  ;;  %v6748_v58 = vadd.s32 4294967294, %v1964_v55  ;;  %v2049_v44 = vsel %vm2045_vm1, %v2029_v42, %v10922_v62 }
 0x4b8   : > { %v2051_v28 = vsel %vm2047_vm14, %v10906_v46, %v2050_v26  ;;  %v2088_v47 = vmul.u32 %v2086_v0, %v2062_v52  ;;  %v3091_v17 = vxor.u32 2147483648, %v3085_v31  ;;  %v1982_v49 = vsub.s32 4, %v10949_v37 }
 0x4b9   : > { %v2081_v7 = vadd.s32 %v2079_v14, %v2077_v41  ;;  %v2090_v6 = vmul.u32 %v2086_v0, %v2063_v1  ;;  %vm6749_vm11 = vcmp.lt.s32.totalorder %v6748_v58, 0  ;;  %v2071_v24 = vshrl.u32 %v2067_v48, 16 }
 0x4ba   : > { %v2073_v9 = vshrl.u32 %v10963_v53, 16  ;;  %v2092_v8 = vshll.u32 %v2089_v50, 16  ;;  %v3092_v59 = vsel %vm3090_vm0, %v3077_v22, %v3091_v17  ;;  %v3095_v62 = vsel %vm3093_vm4, %v3094_v32, %v3085_v31 }
 0x4bb   : > { %v1967_v5 = vsel %vm6749_vm11, 0, %v6748_v58  ;;  %v2091_v42 = vmul.u32 %v2087_v30, %v2063_v1  ;;  %v3096_v46 = vsel %vm3089_vm5, %v3092_v59, %v3095_v62  ;;  %v2082_v33 = vadd.s32 %v2081_v7, %v2071_v24 }
 0x4bc   : > { %v1968_v52 = vsub.s32 32, %v1967_v5  ;;  %v1972_v4 = vsub.s32 4294967266, %v1967_v5  ;;  %v3097_v48 = vsel %vm3086_vm6, nan, %v3096_v46  ;;  %v1969_v53 = vshll.u32 %v10965_v36, %v1967_v5 }
 0x4bd   : > { %v2094_v26 = vshll.u32 %v2090_v6, 16  ;;  %vm2096_vm12 = vc.u32 %v2088_v47, %v2092_v8  ;;  %5176 = vmatpush.msra.mxu3 %v3097_v48  ;;  %v2098_v25 = vadd.s32 %v2092_v8, %v2088_v47  ;;  %v11003_v1 = vsub.s32 32, %v10959_v18 }
 0x4be   : > { %v1970_v51 = vshrl.u32 %v1952_v29, %v1968_v52  ;;  %v1973_v23 = vadd.s32 127, %v1972_v4  ;;  %v2097_v0 = vsel %vm2096_vm12, 1, %v12259_v34  ;;  %v1983_v40 = vsel %vm1860_vm8, %v1982_v49, %v10949_v37 }
 0x4bf   : > { %v2099_v30 = vadd.s32 %v2097_v0, %v2091_v42  ;;  %v2168_v3 = vand.u32 2147483647, %v12340_v16  ;;  %v11009_v13 = vadd.s32 %v2082_v33, %v2073_v9  ;;  %vm2100_vm10 = vc.u32 %v2098_v25, %v2094_v26 }
 0x4c0   : > { %v1971_v20 = vor.u32 %v1970_v51, %v1969_v53  ;;  %v1974_v36 = vshll.u32 %v1973_v23, 23  ;;  %v11014_v15 = vsel %vm2334_vm7, %v10718_v63, 0  ;;  %vm11018_vm13 = vcmp.le.f32.partialorder %v1858_v57, 0.7853982 }
 0x4c1   : > { %v2052_v37 = vsel %vm2046_vm15, %v2049_v44, %v2051_v28  ;;  %v2101_v22 = vsel %vm2100_vm10, 1, %v12259_v34  ;;  %v2093_v11 = vshrl.u32 %v2089_v50, 16  ;;  %v11025_v35 = vadd.s32 %v2098_v25, %v2094_v26 }
 0x4c2   : > { %v1975_v45 = vor.u32 4788187, %v1974_v36  ;;  %v2103_v29 = vadd.s32 %v2101_v22, %v2099_v30  ;;  %v1978_v55 = vcvt.s32.f32 %v1971_v20  ;;  %v1985_v63 = vsel %vm11018_vm13, 0, %v1983_v40 }
 0x4c3   : > { %v2095_v41 = vshrl.u32 %v2090_v6, 16  ;;  %v2175_v57 = vand.u32 8388607, %v2168_v3  ;;  %vm2108_vm1 = vc.u32 %v11009_v13, %v11025_v35  ;;  %v2186_v61 = vshrl.u32 %v12260_v38, %v11003_v1 }
 0x4c4   : > { %v1976_v31 = vand.u32 2147483647, %v1975_v45  ;;  %v2104_v32 = vadd.s32 %v2103_v29, %v2093_v11  ;;  %v2188_v14 = vshll.u32 %v12260_v38, %v10959_v18  ;;  %v2189_v50 = vshrl.u32 %v12262_v60, %v11003_v1 }
 0x4c5   : > { %v2191_v58 = vshll.u32 %v12262_v60, %v10959_v18  ;;  %v2192_v44 = vshrl.u32 %v12263_v56, %v11003_v1  ;;  %v2194_v17 = vshll.u32 %v12263_v56, %v10959_v18  ;;  %v2195_v49 = vshrl.u32 %v12264_v54, %v11003_v1 }
 0x4c6   : > { %v1979_v28 = vmul.f32 %v1978_v55, %v1976_v31  ;;  %v2105_v47 = vadd.s32 %v2104_v32, %v2095_v41  ;;  %v2185_v7 = vshll.u32 %v12257_v39, %v10959_v18  ;;  %v11049_v6 = vor.u32 %v2189_v50, %v2188_v14 }
 0x4c7   : > { %v2197_v24 = vshll.u32 %v12264_v54, %v10959_v18  ;;  %v2198_v9 = vshrl.u32 %v12265_v21, %v11003_v1  ;;  %v11055_v62 = vor.u32 %v2192_v44, %v2191_v58  ;;  %v2196_v5 = vor.u32 %v2195_v49, %v2194_v17 }
 0x4c8   : > { %v1980_v8 = vxor.u32 2147483648, %v1979_v28  ;;  %v2109_v59 = vadd.s32 1, %v2105_v47  ;;  %v11058_v42 = vand.u32 31, %v11014_v15  ;;  %v2106_v46 = vmul.u32 %v10937_v19, %v2052_v37 }
 0x4c9   : > { %v2176_v52 = vor.u32 8388608, %v2175_v57  ;;  %v2199_v4 = vor.u32 %v2198_v9, %v2197_v24  ;;  %v2002_v48 = vadd.s32 3, %v1985_v63  ;;  %v11066_v53 = vor.u32 %v2186_v61, %v2185_v7 }
 0x4ca   : > { %v1981_v33 = vsel %vm1860_vm8, %v1980_v8, %v1979_v28  ;;  %v2110_v18 = vsel %vm2108_vm1, %v2109_v59, %v2105_v47  ;;  %vm2200_vm14 = vcmp.lt.s32.totalorder %v10909_v43, 1  ;;  %vm2203_vm15 = vcmp.lt.s32.totalorder %v10909_v43, 4 }
 0x4cb   : > { %v1984_v26 = vsel %vm11018_vm13, %v12336_v27, %v1981_v33  ;;  %v2111_v51 = vadd.s32 %v2110_v18, %v2106_v46  ;;  %vm2201_vm0 = vcmp.lt.s32.totalorder %v10909_v43, 2  ;;  %v2209_v23 = vsel %vm2203_vm15, %v2196_v5, 920167782 }
 0x4cc   : > { %v1986_v19 = vmul.f32 %v1984_v26, %v1984_v26  ;;  %v2212_v0 = vsel %vm2200_vm14, %v11049_v6, %v11055_v62  ;;  %vm2202_vm4 = vcmp.lt.s32.totalorder %v10909_v43, 3  ;;  %v2213_v40 = vsel %vm2203_vm15, %v2199_v4, 1326507024 }
 0x4cd   : > { %v2112_v25 = vadd.s32 536870912, %v2111_v51  ;;  %v11083_v30 = vshll.u32 %v2176_v52, 8  ;;  %v2208_v10 = vsel %vm2200_vm14, %v11066_v53, %v11049_v6  ;;  %v2214_v37 = vsel %vm2202_vm4, %v2196_v5, %v2213_v40 }
 0x4ce   : > { %v1987_v20 = vmul.f32 -0.001358992, %v1986_v19  ;;  %v1994_v36 = vmul.f32 -0.00019511016, %v1986_v19  ;;  %v2210_v45 = vsel %vm2202_vm4, %v11055_v62, %v2209_v23  ;;  %v2215_v11 = vsel %vm2201_vm0, %v2212_v0, %v2214_v37 }
 0x4cf   : > { %v11091_v22 = vshrl.u32 %v2112_v25, 30  ;;  %v2217_v29 = vand.u32 65535, %v11083_v30  ;;  %v2219_v41 = vand.u32 65535, %v2215_v11  ;;  %v2220_v57 = vshrl.u32 %v2215_v11, 16 }
 0x4d0   : > { %v1988_v55 = vadd.f32 0.041655596, %v1987_v20  ;;  %v1995_v63 = vadd.f32 0.008332121, %v1994_v36  ;;  %v2003_v31 = vand.u32 3, %v2002_v48  ;;  %v2218_v61 = vshrl.u32 %v11083_v30, 16 }
 0x4d1   : > { %v2114_v32 = vshll.u32 %v11091_v22, 30  ;;  %v2222_v58 = vmul.u32 %v2220_v57, %v2217_v29  ;;  %v2211_v28 = vsel %vm2201_vm0, %v2208_v10, %v2210_v45  ;;  %v11108_v17 = vsub.s32 32, %v11058_v42 }
 0x4d2   : > { %v1989_v14 = vmul.f32 %v1988_v55, %v1986_v19  ;;  %v1996_v50 = vmul.f32 %v1995_v63, %v1986_v19  ;;  %v11105_v47 = vmul.u32 %v2219_v41, %v2218_v61  ;;  %vm2005_vm5 = vcmp.eq.s32.totalorder %v2003_v31, 0 }
 0x4d3   : > { %v11101_v44 = vsub.s32 %v2111_v51, %v2114_v32  ;;  %v2225_v24 = vshll.u32 %v2222_v58, 16  ;;  %v2221_v8 = vmul.u32 %v2219_v41, %v2217_v29  ;;  %vm2004_vm6 = vcmp.lt.s32.totalorder %v2003_v31, 2 }
 0x4d4   : > { %v1990_v49 = vadd.f32 -0.4999988, %v1989_v14  ;;  %v1997_v7 = vadd.f32 -0.16666654, %v1996_v50  ;;  %v2224_v46 = vmul.u32 %v2220_v57, %v2218_v61  ;;  %v2242_v52 = vshrl.u32 %v2211_v28, 16 }
 0x4d5   : > { %vm2116_vm2 = vcmp.lt.s32.totalorder %v11101_v44, 0  ;;  %v2117_v9 = vsub.s32 0, %v11101_v44  ;;  %vm2001_vm3 = vweird.f32 %v12336_v27  ;;  %v2227_v33 = vshll.u32 %v11105_v47, 16 }
 0x4d6   : > { %v1991_v59 = vmul.f32 %v1990_v49, %v1986_v19  ;;  %v1998_v5 = vmul.f32 %v1997_v7, %v1986_v19  ;;  %vm2229_vm7 = vc.u32 %v2221_v8, %v2225_v24  ;;  %v2231_v48 = vadd.s32 %v2225_v24, %v2221_v8 }
 0x4d7   : > { %v2118_v4 = vsel %vm2116_vm2, %v2117_v9, %v11101_v44  ;;  %v2230_v0 = vsel %vm2229_vm7, 1, %v12259_v34  ;;  %vm2008_vm8 = vcmp.eq.s32.totalorder %v2003_v31, 2  ;;  %v2107_v19 = vadd.s32 %v11025_v35, %v11009_v13 }
 0x4d8   : > { %v1992_v18 = vadd.f32 1.0, %v1991_v59  ;;  %v1999_v51 = vadd.f32 1.0, %v1998_v5  ;;  %v2119_v23 = vclz %v2118_v4  ;;  %v2232_v25 = vadd.s32 %v2230_v0, %v2224_v46 }
 0x4d9   : > { %v2241_v40 = vand.u32 65535, %v2211_v28  ;;  %vm2015_vm9 = vcmp.lt.s32.totalorder %v12339_v2, 0  ;;  %vm2233_vm11 = vc.u32 %v2231_v48, %v2227_v33  ;;  %v2137_v37 = vsub.s32 4, %v11091_v22 }
 0x4da   : > { %v2000_v20 = vmul.f32 %v1999_v51, %v1984_v26  ;;  %v2009_v36 = vxor.u32 2147483648, %v1992_v18  ;;  %v6751_v10 = vadd.s32 4294967294, %v2119_v23  ;;  %v2205_v45 = vsel %vm2203_vm15, %v11055_v62, 2102212464 }
 0x4db   : > { %v2234_v11 = vsel %vm2233_vm11, 1, %v12259_v34  ;;  %v2244_v55 = vmul.u32 %v2242_v52, %v2217_v29  ;;  %v2226_v13 = vshrl.u32 %v2222_v58, 16  ;;  %v2243_v26 = vmul.u32 %v2241_v40, %v2217_v29 }
 0x4dc   : > { %v2006_v63 = vxor.u32 2147483648, %v2000_v20  ;;  %vm6752_vm12 = vcmp.lt.s32.totalorder %v6751_v10, 0  ;;  %v2236_v35 = vadd.s32 %v2234_v11, %v2232_v25  ;;  %v2245_v57 = vmul.u32 %v2241_v40, %v2218_v61 }
 0x4dd   : > { %v2122_v41 = vsel %vm6752_vm12, 0, %v6751_v10  ;;  %v2247_v32 = vshll.u32 %v2244_v55, 16  ;;  %v2010_v50 = vsel %vm2008_vm8, %v2009_v36, %v2000_v20  ;;  %v2246_v9 = vmul.u32 %v2242_v52, %v2218_v61 }
 0x4de   : > { %v2007_v14 = vsel %vm2005_vm5, %v1992_v18, %v2006_v63  ;;  %v2123_v28 = vsub.s32 32, %v2122_v41  ;;  %v2127_v49 = vsub.s32 4294967266, %v2122_v41  ;;  %v2124_v62 = vshll.u32 %v11101_v44, %v2122_v41 }
 0x4df   : > { %v2011_v7 = vsel %vm2004_vm6, %v2007_v14, %v2010_v50  ;;  %v2237_v24 = vadd.s32 %v2236_v35, %v2226_v13  ;;  %vm2251_vm10 = vc.u32 %v2243_v26, %v2247_v32  ;;  %v2184_v29 = vshrl.u32 %v12257_v39, %v11003_v1 }
 0x4e0   : > { %v2012_v58 = vsel %vm2001_vm3, nan, %v2011_v7  ;;  %v2125_v8 = vshrl.u32 %v2107_v19, %v2123_v28  ;;  %v2128_v59 = vadd.s32 127, %v2127_v49  ;;  %v2249_v5 = vshll.u32 %v2245_v57, 16 }
 0x4e1   : > { %5054 = vmatpush.msra.mxu0 %v2012_v58  ;;  %v2252_v46 = vsel %vm2251_vm10, 1, %v12259_v34  ;;  %v2253_v4 = vadd.s32 %v2247_v32, %v2243_v26  ;;  %v2228_v44 = vshrl.u32 %v11105_v47, 16  ;;  %v2138_v27 = vsel %vm2015_vm9, %v2137_v37, %v11091_v22  ;;  %v12343_v47 = vld [vmem:[#allocation18_spill] sm:$0xff] }
 0x4e2   : > { %v2126_v31 = vor.u32 %v2125_v8, %v2124_v62  ;;  %v2129_v33 = vshll.u32 %v2128_v59, 23  ;;  %v2254_v48 = vadd.s32 %v2252_v46, %v2246_v9  ;;  %v2204_v61 = vsel %vm2200_vm14, %v2184_v29, %v11066_v53 }
 0x4e3   : > { %v2206_v1 = vsel %vm2202_vm4, %v11049_v6, %v2205_v45  ;;  %vm2255_vm13 = vc.u32 %v2253_v4, %v2249_v5  ;;  %v11143_v18 = vadd.s32 %v2237_v24, %v2228_v44  ;;  %v2323_v23 = vand.u32 2147483647, %v12343_v47 }
 0x4e4   : > { %v2130_v52 = vor.u32 4788187, %v2129_v33  ;;  %v2256_v51 = vsel %vm2255_vm13, 1, %v12259_v34  ;;  %v11148_v0 = vshrl.u32 %v11014_v15, 5  ;;  %vm11152_vm1 = vcmp.le.f32.partialorder %v2013_v12, 0.7853982 }
 0x4e5   : > { %v2248_v53 = vshrl.u32 %v2244_v55, 16  ;;  %v2258_v19 = vadd.s32 %v2256_v51, %v2254_v48  ;;  %v2133_v25 = vcvt.s32.f32 %v2126_v31  ;;  %v2207_v40 = vsel %vm2201_vm0, %v2204_v61, %v2206_v1 }
 0x4e6   : > { %v2131_v6 = vand.u32 2147483647, %v2130_v52  ;;  %v11158_v20 = vadd.s32 %v2253_v4, %v2249_v5  ;;  %v2140_v36 = vsel %vm11152_vm1, 0, %v2138_v27  ;;  %v2250_v15 = vshrl.u32 %v2245_v57, 16 }
 0x4e7   : > { %v2259_v10 = vadd.s32 %v2258_v19, %v2248_v53  ;;  %v2344_v12 = vshrl.u32 %v12262_v60, %v11108_v17  ;;  %v2330_v45 = vand.u32 8388607, %v2323_v23  ;;  %v2347_v43 = vshrl.u32 %v12263_v56, %v11108_v17 }
 0x4e8   : > { %v2134_v37 = vmul.f32 %v2133_v25, %v2131_v6  ;;  %vm2263_vm14 = vc.u32 %v11143_v18, %v11158_v20  ;;  %v2343_v55 = vshll.u32 %v12260_v38, %v11058_v42  ;;  %v2346_v63 = vshll.u32 %v12262_v60, %v11058_v42 }
 0x4e9   : > { %v2260_v11 = vadd.s32 %v2259_v10, %v2250_v15  ;;  %v2350_v13 = vshrl.u32 %v12264_v54, %v11108_v17  ;;  %v2341_v41 = vshrl.u32 %v12260_v38, %v11108_v17  ;;  %v2352_v26 = vshll.u32 %v12264_v54, %v11058_v42 }
 0x4ea   : > { %v2135_v35 = vxor.u32 2147483648, %v2134_v37  ;;  %v2353_v57 = vshrl.u32 %v12265_v21, %v11108_v17  ;;  %v11182_v14 = vor.u32 %v2344_v12, %v2343_v55  ;;  %v11184_v50 = vor.u32 %v2347_v43, %v2346_v63 }
 0x4eb   : > { %v2264_v32 = vadd.s32 1, %v2260_v11  ;;  %v2349_v60 = vshll.u32 %v12263_v56, %v11058_v42  ;;  %v2261_v49 = vmul.u32 %v11083_v30, %v2207_v40  ;;  %v2340_v38 = vshll.u32 %v12257_v39, %v11058_v42 }
 0x4ec   : > { %v2136_v28 = vsel %vm2015_vm9, %v2135_v35, %v2134_v37  ;;  %v2354_v54 = vor.u32 %v2353_v57, %v2352_v26  ;;  %v2331_v62 = vor.u32 8388608, %v2330_v45  ;;  %vm2355_vm15 = vcmp.lt.s32.totalorder %v11148_v0, 1 }
 0x4ed   : > { %v2139_v21 = vsel %vm11152_vm1, %v12339_v2, %v2136_v28  ;;  %v2265_v7 = vsel %vm2263_vm14, %v2264_v32, %v2260_v11  ;;  %v2351_v24 = vor.u32 %v2350_v13, %v2349_v60  ;;  %vm2358_vm0 = vcmp.lt.s32.totalorder %v11148_v0, 4 }
 0x4ee   : > { %v2141_v56 = vmul.f32 %v2139_v21, %v2139_v21  ;;  %v2266_v9 = vadd.s32 %v2265_v7, %v2261_v49  ;;  %v2157_v30 = vadd.s32 3, %v2140_v36  ;;  %v11201_v58 = vor.u32 %v2341_v41, %v2340_v38 }
 0x4ef   : > { %v2367_v42 = vsel %vm2355_vm15, %v11182_v14, %v11184_v50  ;;  %v2368_v8 = vsel %vm2358_vm0, %v2354_v54, 1326507024  ;;  %vm2357_vm4 = vcmp.lt.s32.totalorder %v11148_v0, 3  ;;  %vm2356_vm5 = vcmp.lt.s32.totalorder %v11148_v0, 2 }
 0x4f0   : > { %v2142_v59 = vmul.f32 -0.001358992, %v2141_v56  ;;  %v2149_v29 = vmul.f32 -0.00019511016, %v2141_v56  ;;  %v2267_v5 = vadd.s32 536870912, %v2266_v9  ;;  %v2369_v4 = vsel %vm2357_vm4, %v2351_v24, %v2368_v8 }
 0x4f1   : > { %v2364_v46 = vsel %vm2358_vm0, %v2351_v24, 920167782  ;;  %v11215_v31 = vshll.u32 %v2331_v62, 8  ;;  %v2370_v27 = vsel %vm2356_vm5, %v2367_v42, %v2369_v4  ;;  %v2363_v6 = vsel %vm2355_vm15, %v11201_v58, %v11182_v14 }
 0x4f2   : > { %v2143_v33 = vadd.f32 0.041655596, %v2142_v59  ;;  %v2150_v44 = vadd.f32 0.008332121, %v2149_v29  ;;  %v11217_v48 = vshrl.u32 %v2267_v5, 30  ;;  %v2374_v52 = vand.u32 65535, %v2370_v27 }
 0x4f3   : > { %v2372_v61 = vand.u32 65535, %v11215_v31  ;;  %v2373_v1 = vshrl.u32 %v11215_v31, 16  ;;  %v2375_v51 = vshrl.u32 %v2370_v27, 16  ;;  %v2365_v12 = vsel %vm2357_vm4, %v11184_v50, %v2364_v46 }
 0x4f4   : > { %v2144_v22 = vmul.f32 %v2143_v33, %v2141_v56  ;;  %v2151_v53 = vmul.f32 %v2150_v44, %v2141_v56  ;;  %v2269_v19 = vshll.u32 %v11217_v48, 30  ;;  %v2158_v37 = vand.u32 3, %v2157_v30 }
 0x4f5   : > { %v2377_v25 = vmul.u32 %v2375_v51, %v2372_v61  ;;  %v11228_v40 = vmul.u32 %v2374_v52, %v2373_v1  ;;  %v2376_v45 = vmul.u32 %v2374_v52, %v2372_v61  ;;  %v2366_v13 = vsel %vm2356_vm5, %v2363_v6, %v2365_v12 }
 0x4f6   : > { %v2145_v36 = vadd.f32 -0.4999988, %v2144_v22  ;;  %v2152_v15 = vadd.f32 -0.16666654, %v2151_v53  ;;  %v2270_v10 = vsub.s32 %v2266_v9, %v2269_v19  ;;  %v2379_v49 = vmul.u32 %v2375_v51, %v2373_v1 }
 0x4f7   : > { %v2380_v43 = vshll.u32 %v2377_v25, 16  ;;  %v2382_v35 = vshll.u32 %v11228_v40, 16  ;;  %v2396_v7 = vand.u32 65535, %v2366_v13  ;;  %vm2156_vm7 = vweird.f32 %v12339_v2 }
 0x4f8   : > { %v2146_v11 = vmul.f32 %v2145_v36, %v2141_v56  ;;  %v2153_v55 = vmul.f32 %v2152_v15, %v2141_v56  ;;  %vm2271_vm2 = vcmp.lt.s32.totalorder %v2270_v10, 0  ;;  %v2272_v63 = vsub.s32 0, %v2270_v10 }
 0x4f9   : > { %vm2384_vm6 = vc.u32 %v2376_v45, %v2380_v43  ;;  %v2386_v41 = vadd.s32 %v2380_v43, %v2376_v45  ;;  %vm2159_vm8 = vcmp.lt.s32.totalorder %v2158_v37, 2  ;;  %vm2163_vm9 = vcmp.eq.s32.totalorder %v2158_v37, 2 }
 0x4fa   : > { %v2147_v26 = vadd.f32 1.0, %v2146_v11  ;;  %v2154_v57 = vadd.f32 1.0, %v2153_v55  ;;  %v2273_v32 = vsel %vm2271_vm2, %v2272_v63, %v2270_v10  ;;  %v2385_v60 = vsel %vm2384_vm6, 1, %v12259_v34 }
 0x4fb   : > { %v2274_v28 = vclz %v2273_v32  ;;  %vm2388_vm3 = vc.u32 %v2386_v41, %v2382_v35  ;;  %v2387_v24 = vadd.s32 %v2385_v60, %v2379_v49  ;;  %v2397_v30 = vshrl.u32 %v2366_v13, 16  ;;  %v4960_v60 = vld [vmem:[#allocation2 + $0x10] sm:$0xff] }
 0x4fc   : > { %v2155_v38 = vmul.f32 %v2154_v57, %v2139_v21  ;;  %v2164_v54 = vxor.u32 2147483648, %v2147_v26  ;;  %v2389_v9 = vsel %vm2388_vm3, 1, %v12259_v34  ;;  %vm2160_vm11 = vcmp.eq.s32.totalorder %v2158_v37, 0 }
 0x4fd   : > { %v6754_v62 = vadd.s32 4294967294, %v2274_v28  ;;  %v2262_v8 = vadd.s32 %v11158_v20, %v11143_v18  ;;  %v2399_v29 = vmul.u32 %v2397_v30, %v2372_v61  ;;  %v2400_v5 = vmul.u32 %v2396_v7, %v2373_v1 }
 0x4fe   : > { %v2161_v56 = vxor.u32 2147483648, %v2155_v38  ;;  %v2165_v42 = vsel %vm2163_vm9, %v2164_v54, %v2155_v38  ;;  %v2391_v44 = vadd.s32 %v2389_v9, %v2387_v24  ;;  %v2398_v52 = vmul.u32 %v2396_v7, %v2372_v61 }
 0x4ff   : > { %vm6755_vm12 = vcmp.lt.s32.totalorder %v6754_v62, 0  ;;  %v2402_v51 = vshll.u32 %v2399_v29, 16  ;;  %v2381_v6 = vshrl.u32 %v2377_v25, 16  ;;  %v2401_v18 = vmul.u32 %v2397_v30, %v2373_v1 }
 0x500   : > { %v2162_v59 = vsel %vm2160_vm11, %v2147_v26, %v2161_v56  ;;  %v2277_v21 = vsel %vm6755_vm12, 0, %v6754_v62  ;;  %v2404_v20 = vshll.u32 %v2400_v5, 16  ;;  %v2339_v2 = vshrl.u32 %v12257_v39, %v11108_v17 }
 0x501   : > { %v2166_v46 = vsel %vm2159_vm8, %v2162_v59, %v2165_v42  ;;  %v2278_v4 = vsub.s32 32, %v2277_v21  ;;  %v2282_v33 = vsub.s32 4294967266, %v2277_v21  ;;  %v2279_v22 = vshll.u32 %v2270_v10, %v2277_v21 }
 0x502   : > { %v2167_v27 = vsel %vm2156_vm7, nan, %v2166_v46  ;;  %vm2406_vm10 = vc.u32 %v2398_v52, %v2402_v51  ;;  %v2408_v36 = vadd.s32 %v2402_v51, %v2398_v52  ;;  %v2392_v37 = vadd.s32 %v2391_v44, %v2381_v6 }
 0x503   : > { %5095 = vmatpush.msra.mxu1 %v2167_v27  ;;  %v2280_v53 = vshrl.u32 %v2262_v8, %v2278_v4  ;;  %v2283_v19 = vadd.s32 127, %v2282_v33  ;;  %v2407_v45 = vsel %vm2406_vm10, 1, %v12259_v34  ;;  %v2360_v61 = vsel %vm2358_vm0, %v11184_v50, 2102212464 }
 0x504   : > { %v2409_v10 = vadd.s32 %v2407_v45, %v2401_v18  ;;  %vm2410_vm13 = vc.u32 %v2408_v36, %v2404_v20  ;;  %v2383_v1 = vshrl.u32 %v11228_v40, 16  ;;  %v2359_v11 = vsel %vm2355_vm15, %v2339_v2, %v11201_v58 }
 0x505   : > { %v2281_v15 = vor.u32 %v2280_v53, %v2279_v22  ;;  %v2284_v12 = vshll.u32 %v2283_v19, 23  ;;  %v2411_v25 = vsel %vm2410_vm13, 1, %v12259_v34  ;;  %v2403_v55 = vshrl.u32 %v2399_v29, 16 }
 0x506   : > { %v2413_v63 = vadd.s32 %v2411_v25, %v2409_v10  ;;  %v2361_v39 = vsel %vm2357_vm4, %v11182_v14, %v2360_v61  ;;  %v2393_v17 = vadd.s32 %v2392_v37, %v2383_v1  ;;  %v2405_v50 = vshrl.u32 %v2400_v5, 16 }
 0x507   : > { %v2285_v43 = vor.u32 4788187, %v2284_v12  ;;  %v2288_v35 = vcvt.s32.f32 %v2281_v15  ;;  %v2412_v57 = vadd.s32 %v2408_v36, %v2404_v20  ;;  %v2362_v34 = vsel %vm2356_vm5, %v2359_v11, %v2361_v39 }
 0x508   : > { %v2414_v41 = vadd.s32 %v2413_v63, %v2403_v55  ;;  %vm2170_vm14 = vcmp.lt.s32.totalorder %v12340_v16, 0  ;;  %vm11262_vm15 = vcmp.le.f32.partialorder %v2168_v3, 0.7853982  ;;  %v2416_v28 = vmul.u32 %v11215_v31, %v2362_v34  ;;  %v4958_v63 = vld [vmem:[#allocation2] sm:$0xff] }
 0x509   : > { %v2286_v13 = vand.u32 2147483647, %v2285_v43  ;;  %vm2418_vm1 = vc.u32 %v2393_v17, %v2412_v57  ;;  %v2292_v49 = vsub.s32 4, %v11217_v48  ;;  %vm2311_vm4 = vweird.f32 %v12340_v16 }
 0x50a   : > { %v2415_v40 = vadd.s32 %v2414_v41, %v2405_v50  ;;  %v2417_v45 = vadd.s32 %v2412_v57, %v2393_v17  ;;  %vm5014_vm7 = vcmask 326656   ;;  %v4959_v17 = vld [vmem:[#allocation2 + $0x8] sm:$0xff]  ;;  %vm2325_vm8 = vcmp.lt.s32.totalorder %v12343_v47, 0 }
 0x50b   : > { %v2289_v26 = vmul.f32 %v2288_v35, %v2286_v13  ;;  %v2293_v3 = vsel %vm2170_vm14, %v2292_v49, %v11217_v48  ;;  %6807 = vmatmul.msk.f32.vlgmr.msra.gmra.mxu0 %vm5014_vm7, %v4958_v63  ;;  %6815 = vmatmul.msk.f32.vlgmr.msra.gmra.mxu1 %vm5014_vm7, %v4958_v63  ;;  %vm11284_vm9 = vcmp.le.f32.partialorder %v2323_v23, 0.7853982  ;;  %vm2466_vm13 = vweird.f32 %v12343_v47 }
 0x50c   : > { %v2419_v58 = vadd.s32 1, %v2415_v40  ;;  %v2295_v31 = vsel %vm11262_vm15, 0, %v2293_v3  ;;  %v4961_v3 = vld [vmem:[#allocation2 + $0x18] sm:$0xff] }
 0x50d   : > { %v2290_v32 = vxor.u32 2147483648, %v2289_v26  ;;  %v2312_v4 = vadd.s32 3, %v2295_v31 }
 0x50e   : > { %v2420_v38 = vsel %vm2418_vm1, %v2419_v58, %v2415_v40 }
 0x50f   : > { %v2291_v14 = vsel %vm2170_vm14, %v2290_v32, %v2289_v26  ;;  %v2421_v7 = vadd.s32 %v2420_v38, %v2416_v28  ;;  %v2313_v22 = vand.u32 3, %v2312_v4 }
 0x510   : > { %v2294_v0 = vsel %vm11262_vm15, %v12340_v16, %v2291_v14 }
 0x511   : > { %v2296_v54 = vmul.f32 %v2294_v0, %v2294_v0  ;;  %v2422_v56 = vadd.s32 536870912, %v2421_v7  ;;  %vm2315_vm5 = vcmp.eq.s32.totalorder %v2313_v22, 0  ;;  %vm2318_vm2 = vcmp.eq.s32.totalorder %v2313_v22, 2 }
 0x512   : > { %vm2314_vm3 = vcmp.lt.s32.totalorder %v2313_v22, 2 }
 0x513   : > { %v2297_v62 = vmul.f32 -0.001358992, %v2296_v54  ;;  %v2304_v24 = vmul.f32 -0.00019511016, %v2296_v54  ;;  %v11272_v42 = vshrl.u32 %v2422_v56, 30  ;;  %6808 = vmatmul.msk.f32.gmra.mxu0 %vm5014_vm7, %v4959_v17  ;;  %6816 = vmatmul.msk.f32.gmra.mxu1 %vm5014_vm7, %v4959_v17 }
 0x515   : > { %v2298_v9 = vadd.f32 0.041655596, %v2297_v62  ;;  %v2305_v30 = vadd.f32 0.008332121, %v2304_v24  ;;  %v2424_v21 = vshll.u32 %v11272_v42, 30  ;;  %v2447_v57 = vsub.s32 4, %v11272_v42 }
 0x517   : > { %v2299_v8 = vmul.f32 %v2298_v9, %v2296_v54  ;;  %v2306_v59 = vmul.f32 %v2305_v30, %v2296_v54  ;;  %v2425_v46 = vsub.s32 %v2421_v7, %v2424_v21  ;;  %v2448_v23 = vsel %vm2325_vm8, %v2447_v57, %v11272_v42 }
 0x518   : > { %v2450_v49 = vsel %vm11284_vm9, 0, %v2448_v23 }
 0x519   : > { %v2300_v29 = vadd.f32 -0.4999988, %v2299_v8  ;;  %v2307_v5 = vadd.f32 -0.16666654, %v2306_v59  ;;  %vm2426_vm0 = vcmp.lt.s32.totalorder %v2425_v46, 0  ;;  %v2427_v27 = vsub.s32 0, %v2425_v46 }
 0x51a   : > { %v2467_v62 = vadd.s32 3, %v2450_v49 }
 0x51b   : > { %v2301_v33 = vmul.f32 %v2300_v29, %v2296_v54  ;;  %v2308_v44 = vmul.f32 %v2307_v5, %v2296_v54  ;;  %v2428_v51 = vsel %vm2426_vm0, %v2427_v27, %v2425_v46  ;;  %6809 = vmatmul.msk.f32.gmra.mxu0 %vm5014_vm7, %v4960_v60  ;;  %6817 = vmatmul.msk.f32.gmra.mxu1 %vm5014_vm7, %v4960_v60 }
 0x51c   : > { %v2429_v53 = vclz %v2428_v51  ;;  %v2468_v42 = vand.u32 3, %v2467_v62 }
 0x51d   : > { %v2302_v48 = vadd.f32 1.0, %v2301_v33  ;;  %v2309_v52 = vadd.f32 1.0, %v2308_v44  ;;  %v4963_v33 = vld [vmem:[#allocation2 + $0x28] sm:$0xff]  ;;  %v4965_v44 = vld [vmem:[#allocation2 + $0x38] sm:$0xff] }
 0x51e   : > { %v6757_v18 = vadd.s32 4294967294, %v2429_v53  ;;  %vm2470_vm11 = vcmp.eq.s32.totalorder %v2468_v42, 0  ;;  %vm2473_vm12 = vcmp.eq.s32.totalorder %v2468_v42, 2  ;;  %vm2469_vm10 = vcmp.lt.s32.totalorder %v2468_v42, 2 }
 0x51f   : > { %v2310_v19 = vmul.f32 %v2309_v52, %v2294_v0  ;;  %v2319_v6 = vxor.u32 2147483648, %v2302_v48 }
 0x520   : > { %vm6758_vm6 = vcmp.lt.s32.totalorder %v6757_v18, 0 }
 0x521   : > { %v2316_v20 = vxor.u32 2147483648, %v2310_v19  ;;  %v2320_v15 = vsel %vm2318_vm2, %v2319_v6, %v2310_v19  ;;  %v2432_v12 = vsel %vm6758_vm6, 0, %v6757_v18 }
 0x522   : > { %v2433_v2 = vsub.s32 32, %v2432_v12  ;;  %v2437_v61 = vsub.s32 4294967266, %v2432_v12  ;;  %v2434_v43 = vshll.u32 %v2425_v46, %v2432_v12  ;;  %v4962_v46 = vld [vmem:[#allocation2 + $0x20] sm:$0xff]  ;;  %v11327_v12 = vpop.permute.xlu0 %5006 }
 0x523   : > { %v2317_v36 = vsel %vm2315_vm5, %v2302_v48, %v2316_v20  ;;  %6810 = vmatmul.msk.f32.gmra.mxu0 %vm5014_vm7, %v4961_v3  ;;  %6818 = vmatmul.msk.f32.gmra.mxu1 %vm5014_vm7, %v4961_v3 }
 0x524   : > { %v2321_v37 = vsel %vm2314_vm3, %v2317_v36, %v2320_v15  ;;  %v2435_v1 = vshrl.u32 %v2417_v45, %v2433_v2  ;;  %v2438_v25 = vadd.s32 127, %v2437_v61  ;;  %v11325_v15 = vpop.permute.xlu2 %5011 }
 0x525   : > { %v2322_v10 = vsel %vm2311_vm4, nan, %v2321_v37 }
 0x526   : > { %5136 = vmatpush.msra.mxu2 %v2322_v10  ;;  %v2436_v11 = vor.u32 %v2435_v1, %v2434_v43  ;;  %v2439_v55 = vshll.u32 %v2438_v25, 23 }
 0x527   : > { %6823 = vmatmul.msk.f32.vlgmr.msra.gmra.mxu2 %vm5014_vm7, %v4958_v63 }
 0x528   : > { %v2440_v16 = vor.u32 4788187, %v2439_v55  ;;  %v2443_v35 = vcvt.s32.f32 %v2436_v11  ;;  %v11335_v55 = vpop.permute.xlu1 %5001 }
 0x52a   : > { %v2441_v13 = vand.u32 2147483647, %v2440_v16  ;;  %v11333_v1 = vpop.permute.xlu0 %4991 }
 0x52b   : > { %6811 = vmatmul.msk.f32.gmra.mxu0 %vm5014_vm7, %v4962_v46  ;;  %6819 = vmatmul.msk.f32.gmra.mxu1 %vm5014_vm7, %v4962_v46 }
 0x52c   : > { %v2444_v39 = vmul.f32 %v2443_v35, %v2441_v13  ;;  %v11331_v10 = vpop.permute.xlu2 %4996 }
 0x52e   : > { %v2445_v50 = vxor.u32 2147483648, %v2444_v39 }
 0x52f   : > { %6824 = vmatmul.msk.f32.gmra.mxu2 %vm5014_vm7, %v4959_v17 }
 0x530   : > { %v2446_v26 = vsel %vm2325_vm8, %v2445_v50, %v2444_v39 }
 0x531   : > { %v2449_v34 = vsel %vm11284_vm9, %v12343_v47, %v2446_v26  ;;  %v4964_v47 = vld [vmem:[#allocation2 + $0x30] sm:$0xff]  ;;  %v11349_v26 = vpop.permute.xlu1 %4986 }
 0x532   : > { %v2451_v40 = vmul.f32 %v2449_v34, %v2449_v34 }
 0x533   : > { %6812 = vmatmul.msk.f32.gmra.mxu0 %vm5014_vm7, %v4963_v33  ;;  %6820 = vmatmul.msk.f32.gmra.mxu1 %vm5014_vm7, %v4963_v33 }
 0x534   : > { %v2452_v32 = vmul.f32 -0.001358992, %v2451_v40  ;;  %v2459_v58 = vmul.f32 -0.00019511016, %v2451_v40  ;;  %v11339_v39 = vpop.permute.xlu2 %4981 }
 0x536   : > { %v2453_v14 = vadd.f32 0.041655596, %v2452_v32  ;;  %v2460_v28 = vadd.f32 0.008332121, %v2459_v58 }
 0x537   : > { %6825 = vmatmul.msk.f32.gmra.mxu2 %vm5014_vm7, %v4960_v60 }
 0x538   : > { %v2454_v0 = vmul.f32 %v2453_v14, %v2451_v40  ;;  %v2461_v38 = vmul.f32 %v2460_v28, %v2451_v40 }
 0x53a   : > { %v2455_v54 = vadd.f32 -0.4999988, %v2454_v0  ;;  %v2462_v7 = vadd.f32 -0.16666654, %v2461_v38 }
 0x53b   : > { %6813 = vmatmul.msk.f32.gmra.mxu0 %vm5014_vm7, %v4964_v47  ;;  %6821 = vmatmul.msk.f32.gmra.mxu1 %vm5014_vm7, %v4964_v47 }
 0x53c   : > { %v2456_v24 = vmul.f32 %v2455_v54, %v2451_v40  ;;  %v2463_v56 = vmul.f32 %v2462_v7, %v2451_v40 }
 0x53e   : > { %v2457_v9 = vadd.f32 1.0, %v2456_v24  ;;  %v2464_v30 = vadd.f32 1.0, %v2463_v56 }
 0x53f   : > { %6826 = vmatmul.msk.f32.gmra.mxu2 %vm5014_vm7, %v4961_v3 }
 0x540   : > { %v2465_v31 = vmul.f32 %v2464_v30, %v2449_v34  ;;  %v2474_v8 = vxor.u32 2147483648, %v2457_v9 }
 0x542   : > { %v2471_v59 = vxor.u32 2147483648, %v2465_v31  ;;  %v2475_v29 = vsel %vm2473_vm12, %v2474_v8, %v2465_v31 }
 0x543   : > { %6814 = vmatmul.msk.f32.gmra.mxu0 %vm5014_vm7, %v4965_v44  ;;  %6822 = vmatmul.msk.f32.gmra.mxu1 %vm5014_vm7, %v4965_v44 }
 0x544   : > { %v2472_v21 = vsel %vm2470_vm11, %v2457_v9, %v2471_v59 }
 0x545   : > { %v2476_v5 = vsel %vm2469_vm10, %v2472_v21, %v2475_v29 }
 0x546   : > { %v2477_v4 = vsel %vm2466_vm13, nan, %v2476_v5 }
 0x547   : > { %5177 = vmatpush.msra.mxu3 %v2477_v4  ;;  %6827 = vmatmul.msk.f32.gmra.mxu2 %vm5014_vm7, %v4962_v46 }
 0x548   : > { %6831 = vmatmul.msk.f32.vlgmr.msra.gmra.mxu3 %vm5014_vm7, %v4958_v63 }
 0x54f   : > { %6828 = vmatmul.msk.f32.gmra.mxu2 %vm5014_vm7, %v4963_v33 }
 0x550   : > { %6832 = vmatmul.msk.f32.gmra.mxu3 %vm5014_vm7, %v4959_v17  ;;  %v11341_v17 = vpop.permute.xlu0 %4976 }
 0x557   : > { %6829 = vmatmul.msk.f32.gmra.mxu2 %vm5014_vm7, %v4964_v47 }
 0x558   : > { %6833 = vmatmul.msk.f32.gmra.mxu3 %vm5014_vm7, %v4960_v60 }
 0x55f   : > { %6830 = vmatmul.msk.f32.gmra.mxu2 %vm5014_vm7, %v4965_v44 }
 0x560   : > { %6834 = vmatmul.msk.f32.gmra.mxu3 %vm5014_vm7, %v4961_v3 }
 0x568   : > { %6835 = vmatmul.msk.f32.gmra.mxu3 %vm5014_vm7, %v4962_v46 }
 0x570   : > { %6836 = vmatmul.msk.f32.gmra.mxu3 %vm5014_vm7, %v4963_v33 }
 0x578   : > { %6837 = vmatmul.msk.f32.gmra.mxu3 %vm5014_vm7, %v4964_v47 }
 0x580   : > { %6838 = vmatmul.msk.f32.gmra.mxu3 %vm5014_vm7, %v4965_v44 }
 0x588   : > { %v5056_v27 = vpop.f32.mrf.mxu0  ;;  %v5097_v48 = vpop.f32.mrf.mxu1 }
 0x589   : > { %v11344_v50 = vadd.f32 %v5056_v27, %v11341_v17  ;;  %v11361_v32 = vadd.f32 %v5097_v48, %v11341_v17 }
 0x58b   : > { %v11382_v54 = vmul.f32 0.2, %v11344_v50  ;;  %vm5203_vm13 = vcmp.ge.f32.partialorder %v11344_v50, 0.0  ;;  %vm5204_vm11 = vcmp.ge.f32.partialorder %v11361_v32, 0.0 }
 0x590   : > { %v5059_v51 = vpop.f32.mrf.mxu0  ;;  %v5100_v22 = vpop.f32.mrf.mxu1 }
 0x591   : > { %v11347_v41 = vadd.f32 %v5059_v51, %v11339_v39  ;;  %v11352_v57 = vadd.f32 %v5100_v22, %v11339_v39 }
 0x593   : > { %v11379_v38 = vmul.f32 0.2, %v11347_v41  ;;  %v11392_v3 = vmul.f32 0.2, %v11352_v57  ;;  %vm5208_vm12 = vcmp.ge.f32.partialorder %v11352_v57, 0.0 }
 0x598   : > { %v5062_v19 = vpop.f32.mrf.mxu0  ;;  %v5103_v6 = vpop.f32.mrf.mxu1 }
 0x599   : > { %v11355_v34 = vadd.f32 %v5062_v19, %v11349_v26  ;;  %v11358_v40 = vadd.f32 %v5103_v6, %v11349_v26 }
 0x59b   : > { %v11397_v31 = vmul.f32 0.2, %v11355_v34  ;;  %v11400_v8 = vmul.f32 0.2, %v11358_v40  ;;  %vm5211_vm3 = vcmp.ge.f32.partialorder %v11355_v34, 0.0  ;;  %vm5212_vm9 = vcmp.ge.f32.partialorder %v11358_v40, 0.0 }
 0x5a0   : > { %v5065_v20 = vpop.f32.mrf.mxu0  ;;  %v5106_v36 = vpop.f32.mrf.mxu1 }
 0x5a1   : > { %v11369_v60 = vadd.f32 %v5065_v20, %v11333_v1  ;;  %v11376_v49 = vadd.f32 %v5106_v36, %v11333_v1 }
 0x5a3   : > { %v11407_v5 = vmul.f32 0.2, %v11369_v60  ;;  %v11412_v33 = vmul.f32 0.2, %v11376_v49  ;;  %vm5215_vm15 = vcmp.ge.f32.partialorder %v11369_v60, 0.0  ;;  %vm5216_vm4 = vcmp.ge.f32.partialorder %v11376_v49, 0.0 }
 0x5a8   : > { %v5068_v45 = vpop.f32.mrf.mxu0  ;;  %v5109_v2 = vpop.f32.mrf.mxu1 }
 0x5a9   : > { %v5069_v14 = vadd.f32 %v5068_v45, %v11331_v10  ;;  %v11388_v62 = vadd.f32 %v5109_v2, %v11331_v10 }
 0x5aa   : > { %v5138_v52 = vpop.f32.mrf.mxu2 }
 0x5ab   : > { %v11364_v58 = vadd.f32 %v5138_v52, %v11341_v17  ;;  %v5251_v29 = vmul.f32 0.2, %v5069_v14  ;;  %vm5219_vm1 = vcmp.ge.f32.partialorder %v5069_v14, 0.0  ;;  %vm5220_vm14 = vcmp.ge.f32.partialorder %v11388_v62, 0.0 }
 0x5ac   : > { %v5252_v27 = vmul.f32 0.2, %v11388_v62 }
 0x5b0   : > { %v5071_v25 = vpop.f32.mrf.mxu0  ;;  %v5112_v11 = vpop.f32.mrf.mxu1 }
 0x5b1   : > { %v5072_v24 = vadd.f32 %v5071_v25, %v11335_v55  ;;  %v5113_v21 = vadd.f32 %v5112_v11, %v11335_v55 }
 0x5b2   : > { %v5141_v53 = vpop.f32.mrf.mxu2 }
 0x5b3   : > { %v11373_v28 = vadd.f32 %v5141_v53, %v11339_v39  ;;  %v5255_v44 = vmul.f32 0.2, %v5072_v24  ;;  %vm5223_vm0 = vcmp.ge.f32.partialorder %v5072_v24, 0.0  ;;  %vm5224_vm6 = vcmp.ge.f32.partialorder %v5113_v21, 0.0 }
 0x5b4   : > { %v5283_v53 = vsel %vm5219_vm1, %v5069_v14, %v5251_v29  ;;  %v5256_v45 = vmul.f32 0.2, %v5113_v21 }
 0x5b8   : > { %v5074_v13 = vpop.f32.mrf.mxu0  ;;  %v5115_v35 = vpop.f32.mrf.mxu1 }
 0x5b9   : > { %v5075_v9 = vadd.f32 %v5074_v13, %v11327_v12  ;;  %v5116_v30 = vadd.f32 %v5115_v35, %v11327_v12 }
 0x5ba   : > { %v5144_v18 = vpop.f32.mrf.mxu2 }
 0x5bb   : > { %v11385_v7 = vadd.f32 %v5144_v18, %v11349_v26  ;;  %v5259_v52 = vmul.f32 0.2, %v5075_v9  ;;  %v5260_v51 = vmul.f32 0.2, %v5116_v30  ;;  %vm5227_vm5 = vcmp.ge.f32.partialorder %v5075_v9, 0.0 }
 0x5bc   : > { %vm5228_vm2 = vcmp.ge.f32.partialorder %v5116_v30, 0.0 }
 0x5bd   : > { %v5292_v25 = vsel %vm5228_vm2, %v5116_v30, %v5260_v51 }
 0x5c0   : > { %v5077_v56 = vpop.f32.mrf.mxu0  ;;  %v5118_v42 = vpop.f32.mrf.mxu1 }
 0x5c1   : > { %v5078_v46 = vadd.f32 %v5077_v56, %v11325_v15  ;;  %v5119_v4 = vadd.f32 %v5118_v42, %v11325_v15  ;;  %v5288_v56 = vsel %vm5224_vm6, %v5113_v21, %v5256_v45  ;;  %v5324_v42 = vmul.f32 1.4142135, %v5292_v25 }
 0x5c2   : > { %v5147_v37 = vpop.f32.mrf.mxu2  ;;  %v5241_v45 = vmul.f32 0.2, %v11373_v28  ;;  %vm5205_vm6 = vcmp.ge.f32.partialorder %v11364_v58, 0.0 }
 0x5c3   : > { %v11403_v59 = vadd.f32 %v5147_v37, %v11333_v1  ;;  %vm5231_vm7 = vcmp.ge.f32.partialorder %v5078_v46, 0.0  ;;  %v5263_v18 = vmul.f32 0.2, %v5078_v46  ;;  %vm5232_vm8 = vcmp.ge.f32.partialorder %v5119_v4, 0.0 }
 0x5c4   : > { %v5264_v36 = vmul.f32 0.2, %v5119_v4  ;;  %v5287_v37 = vsel %vm5223_vm0, %v5072_v24, %v5255_v44 }
 0x5c5   : > { %v5295_v2 = vsel %vm5231_vm7, %v5078_v46, %v5263_v18  ;;  %v5319_v44 = vmul.f32 1.4142135, %v5287_v37  ;;  %v5249_v21 = vmul.f32 0.2, %v11403_v59  ;;  %vm5217_vm2 = vcmp.ge.f32.partialorder %v11403_v59, 0.0 }
 0x5c6   : > { %v5296_v13 = vsel %vm5232_vm8, %v5119_v4, %v5264_v36 }
 0x5c7   : > { %v5328_v14 = vmul.f32 1.4142135, %v5296_v13 }
 0x5c9   : > { %5461 = vmatpush.msrb.mxu1 %v5328_v14 }
 0x5ca   : > { %v5150_v43 = vpop.f32.mrf.mxu2 }
 0x5cb   : > { %v11329_v61 = vpop.f32.mrf.mxu3  ;;  %v11415_v47 = vadd.f32 %v5150_v43, %v11331_v10  ;;  %v5291_v43 = vsel %vm5227_vm5, %v5075_v9, %v5259_v52  ;;  %v5284_v52 = vsel %vm5220_vm14, %v11388_v62, %v5252_v27  ;;  %5462 = vmatpush.msrb.mxu1 %v5324_v42  ;;  %v5280_v62 = vsel %vm5216_vm4, %v11376_v49, %v11412_v33 }
 0x5cc   : > { %v5323_v24 = vmul.f32 1.4142135, %v5291_v43  ;;  %v5316_v36 = vmul.f32 1.4142135, %v5284_v52  ;;  %vm5213_vm14 = vcmp.ge.f32.partialorder %v11385_v7, 0.0  ;;  %v5276_v49 = vsel %vm5212_vm9, %v11358_v40, %v11400_v8 }
 0x5cd   : > { %v5253_v30 = vmul.f32 0.2, %v11415_v47  ;;  %vm5221_vm5 = vcmp.ge.f32.partialorder %v11415_v47, 0.0  ;;  %v5236_v33 = vmul.f32 0.2, %v11361_v32  ;;  %v5272_v40 = vsel %vm5208_vm12, %v11352_v57, %v11392_v3 }
 0x5ce   : > { %v5312_v37 = vmul.f32 1.4142135, %v5280_v62  ;;  %vm5209_vm4 = vcmp.ge.f32.partialorder %v11373_v28, 0.0  ;;  %v5237_v43 = vmul.f32 0.2, %v11364_v58 }
 0x5cf   : > { %v5285_v27 = vsel %vm5221_vm5, %v11415_v47, %v5253_v30  ;;  %v5281_v47 = vsel %vm5217_vm2, %v11403_v59, %v5249_v21  ;;  %v5308_v59 = vmul.f32 1.4142135, %v5276_v49  ;;  %v5268_v57 = vsel %vm5204_vm11, %v11361_v32, %v5236_v33  ;;  %v5336_v49 = vld [vmem:[#allocation3 + $0x28] sm:$0xff]  ;;  %v5337_v33 = vld [vmem:[#allocation3 + $0x30] sm:$0xff] }
 0x5d0   : > { %v5300_v13 = vmul.f32 1.4142135, %v5268_v57  ;;  %v5269_v32 = vsel %vm5205_vm6, %v11364_v58, %v5237_v43 }
 0x5d2   : > { %v5153_v16 = vpop.f32.mrf.mxu2 }
 0x5d3   : > { %v11337_v63 = vpop.f32.mrf.mxu3  ;;  %v5154_v48 = vadd.f32 %v5153_v16, %v11335_v55  ;;  %v5327_v16 = vmul.f32 1.4142135, %v5295_v2 }
 0x5d5   : > { %v5257_v11 = vmul.f32 0.2, %v5154_v48  ;;  %vm5225_vm0 = vcmp.ge.f32.partialorder %v5154_v48, 0.0  ;;  %5420 = vmatpush.msrb.mxu0 %v5327_v16  ;;  %v11495_v16 = vld [vmem:[#allocation3] sm:$0xff] }
 0x5d7   : > { %5421 = vmatpush.msrb.mxu0 %v5323_v24  ;;  %v5289_v51 = vsel %vm5225_vm0, %v5154_v48, %v5257_v11  ;;  %v5245_v48 = vmul.f32 0.2, %v11385_v7 }
 0x5d9   : > { %5422 = vmatpush.msrb.mxu0 %v5319_v44  ;;  %v5277_v8 = vsel %vm5213_vm14, %v11385_v7, %v5245_v48  ;;  %v5304_v7 = vmul.f32 1.4142135, %v5272_v40 }
 0x5da   : > { %v5156_v0 = vpop.f32.mrf.mxu2  ;;  %v5309_v3 = vmul.f32 1.4142135, %v5277_v8 }
 0x5db   : > { %v11366_v23 = vpop.f32.mrf.mxu3  ;;  %v5157_v19 = vadd.f32 %v5156_v0, %v11327_v12 }
 0x5dd   : > { %vm5229_vm1 = vcmp.ge.f32.partialorder %v5157_v19, 0.0  ;;  %v5261_v0 = vmul.f32 0.2, %v5157_v19 }
 0x5df   : > { %v5293_v46 = vsel %vm5229_vm1, %v5157_v19, %v5261_v0  ;;  %v5279_v19 = vsel %vm5215_vm15, %v11369_v60, %v11407_v5  ;;  %v5275_v60 = vsel %vm5211_vm3, %v11355_v34, %v11397_v31  ;;  %v5321_v5 = vmul.f32 1.4142135, %v5289_v51  ;;  %v11504_v0 = vld [vmem:[#allocation3 + $0x8] sm:$0xff] }
 0x5e0   : > { %v5325_v18 = vmul.f32 1.4142135, %v5293_v46  ;;  %vm12350_vm15 = vcmp.ge.f32.partialorder %v11347_v41, 0.0  ;;  %v5317_v31 = vmul.f32 1.4142135, %v5285_v27  ;;  %vm5387_vm3 = vcmask 523264  }
 0x5e1   : > { %v5271_v34 = vsel %vm12350_vm15, %v11347_v41, %v11379_v38  ;;  %v5307_v2 = vmul.f32 1.4142135, %v5275_v60  ;;  %v5267_v41 = vsel %vm5203_vm13, %v11344_v50, %v11382_v54  ;;  %v5313_v38 = vmul.f32 1.4142135, %v5281_v47  ;;  %v5338_v47 = vld [vmem:[#allocation3 + $0x38] sm:$0xff] }
 0x5e2   : > { %v5159_v6 = vpop.f32.mrf.mxu2  ;;  %v5303_v11 = vmul.f32 1.4142135, %v5271_v34  ;;  %v5273_v50 = vsel %vm5209_vm4, %v11373_v28, %v5241_v45  ;;  %v5299_v54 = vmul.f32 1.4142135, %v5267_v41  ;;  %v5301_v28 = vmul.f32 1.4142135, %v5269_v32 }
 0x5e3   : > { %v11422_v22 = vpop.f32.mrf.mxu3  ;;  %v5160_v20 = vadd.f32 %v5159_v6, %v11325_v15  ;;  %v5320_v6 = vmul.f32 1.4142135, %v5288_v56 }
 0x5e5   : > { %vm5233_vm10 = vcmp.ge.f32.partialorder %v5160_v20, 0.0  ;;  %v5265_v35 = vmul.f32 0.2, %v5160_v20  ;;  %5463 = vmatpush.msrb.mxu1 %v5320_v6 }
 0x5e7   : > { %v5297_v9 = vsel %vm5233_vm10, %v5160_v20, %v5265_v35  ;;  %v5315_v20 = vmul.f32 1.4142135, %v5283_v53  ;;  %v5311_v53 = vmul.f32 1.4142135, %v5279_v19  ;;  %5464 = vmatpush.msrb.mxu1 %v5316_v36  ;;  %v5305_v35 = vmul.f32 1.4142135, %v5273_v50 }
 0x5e8   : > { %v5329_v29 = vmul.f32 1.4142135, %v5297_v9 }
 0x5e9   : > { %5423 = vmatpush.msrb.mxu0 %v5315_v20  ;;  %5465 = vmatpush.msrb.mxu1 %v5312_v37 }
 0x5ea   : > { %5502 = vmatpush.msrb.mxu2 %v5329_v29  ;;  %v5189_v29 = vadd.f32 %v11422_v22, %v11333_v1  ;;  %v5183_v1 = vadd.f32 %v11337_v63, %v11339_v39 }
 0x5eb   : > { %v11439_v4 = vpop.f32.mrf.mxu3  ;;  %5424 = vmatpush.msrb.mxu0 %v5311_v53  ;;  %5466 = vmatpush.msrb.mxu1 %v5308_v59 }
 0x5ec   : > { %5503 = vmatpush.msrb.mxu2 %v5325_v18  ;;  %v5192_v9 = vadd.f32 %v11439_v4, %v11331_v10  ;;  %v5250_v51 = vmul.f32 0.2, %v5189_v29  ;;  %vm5218_vm12 = vcmp.ge.f32.partialorder %v5189_v29, 0.0  ;;  %v5334_v18 = vld [vmem:[#allocation3 + $0x18] sm:$0xff]  ;;  %v5242_v62 = vmul.f32 0.2, %v5183_v1 }
 0x5ed   : > { %5425 = vmatpush.msrb.mxu0 %v5307_v2  ;;  %5467 = vmatpush.msrb.mxu1 %v5304_v7  ;;  %vm5210_vm13 = vcmp.ge.f32.partialorder %v5183_v1, 0.0 }
 0x5ee   : > { %5504 = vmatpush.msrb.mxu2 %v5321_v5  ;;  %vm5222_vm11 = vcmp.ge.f32.partialorder %v5192_v9, 0.0  ;;  %v5282_v20 = vsel %vm5218_vm12, %v5189_v29, %v5250_v51  ;;  %v5335_v5 = vld [vmem:[#allocation3 + $0x20] sm:$0xff] }
 0x5ef   : > { %5426 = vmatpush.msrb.mxu0 %v5303_v11  ;;  %5468 = vmatpush.msrb.mxu1 %v5300_v13  ;;  %v11567_v11 = vpop.permute.xlu1 %5384 }
 0x5f0   : > { %5505 = vmatpush.msrb.mxu2 %v5317_v31  ;;  %6847 = vmatmul.msk.f32.vlgmr.msrb.gmra.mxu1 %vm5387_vm3, %v11495_v16 }
 0x5f1   : > { %5427 = vmatpush.msrb.mxu0 %v5299_v54 }
 0x5f2   : > { %5506 = vmatpush.msrb.mxu2 %v5313_v38  ;;  %6839 = vmatmul.msk.f32.vlgmr.msrb.gmra.mxu0 %vm5387_vm3, %v11495_v16  ;;  %v11563_v38 = vpop.permute.xlu2 %5379 }
 0x5f3   : > { %v5194_v25 = vpop.f32.mrf.mxu3 }
 0x5f4   : > { %5507 = vmatpush.msrb.mxu2 %v5309_v3  ;;  %v5195_v24 = vadd.f32 %v5194_v25, %v11335_v55  ;;  %v5186_v55 = vadd.f32 %v11366_v23, %v11349_v26  ;;  %v5180_v26 = vadd.f32 %v11329_v61, %v11341_v17  ;;  %v5314_v61 = vmul.f32 1.4142135, %v5282_v20 }
 0x5f5   : > { %v5274_v17 = vsel %vm5210_vm13, %v5183_v1, %v5242_v62 }
 0x5f6   : > { %5508 = vmatpush.msrb.mxu2 %v5305_v35  ;;  %v5258_v44 = vmul.f32 0.2, %v5195_v24  ;;  %vm5226_vm9 = vcmp.ge.f32.partialorder %v5195_v24, 0.0  ;;  %v5246_v6 = vmul.f32 0.2, %v5186_v55  ;;  %vm5214_vm10 = vcmp.ge.f32.partialorder %v5186_v55, 0.0 }
 0x5f7   : > { %v5238_v27 = vmul.f32 0.2, %v5180_v26  ;;  %vm5206_vm1 = vcmp.ge.f32.partialorder %v5180_v26, 0.0  ;;  %v5306_v60 = vmul.f32 1.4142135, %v5274_v17  ;;  %v11573_v54 = vpop.permute.xlu1 %5369 }
 0x5f8   : > { %5509 = vmatpush.msrb.mxu2 %v5301_v28  ;;  %6848 = vmatmul.msk.f32.gmra.mxu1 %vm5387_vm3, %v11504_v0  ;;  %v5290_v22 = vsel %vm5226_vm9, %v5195_v24, %v5258_v44  ;;  %v5278_v39 = vsel %vm5214_vm10, %v5186_v55, %v5246_v6 }
 0x5f9   : > { %6855 = vmatmul.msk.f32.vlgmr.msrb.gmra.mxu2 %vm5387_vm3, %v11495_v16  ;;  %v5322_v19 = vmul.f32 1.4142135, %v5290_v22  ;;  %v5310_v48 = vmul.f32 1.4142135, %v5278_v39  ;;  %v5270_v36 = vsel %vm5206_vm1, %v5180_v26, %v5238_v27 }
 0x5fa   : > { %6840 = vmatmul.msk.f32.gmra.mxu0 %vm5387_vm3, %v11504_v0  ;;  %v5302_v53 = vmul.f32 1.4142135, %v5270_v36  ;;  %v11571_v50 = vpop.permute.xlu2 %5364 }
 0x5fb   : > { %v5197_v14 = vpop.f32.mrf.mxu3 }
 0x5fc   : > { %v5198_v58 = vadd.f32 %v5197_v14, %v11327_v12  ;;  %v11517_v12 = vld [vmem:[#allocation3 + $0x10] sm:$0xff] }
 0x5fe   : > { %v5262_v42 = vmul.f32 0.2, %v5198_v58  ;;  %vm5230_vm7 = vcmp.ge.f32.partialorder %v5198_v58, 0.0 }
 0x600   : > { %v5294_v4 = vsel %vm5230_vm7, %v5198_v58, %v5262_v42  ;;  %6849 = vmatmul.msk.f32.gmra.mxu1 %vm5387_vm3, %v11517_v12  ;;  %v11584_v58 = vpop.permute.xlu1 %5354 }
 0x601   : > { %6856 = vmatmul.msk.f32.gmra.mxu2 %vm5387_vm3, %v11504_v0  ;;  %v5326_v21 = vmul.f32 1.4142135, %v5294_v4 }
 0x602   : > { %6841 = vmatmul.msk.f32.gmra.mxu0 %vm5387_vm3, %v11517_v12  ;;  %v11581_v14 = vpop.permute.xlu2 %5349 }
 0x603   : > { %v5200_v56 = vpop.f32.mrf.mxu3 }
 0x604   : > { %v5201_v30 = vadd.f32 %v5200_v56, %v11325_v15  ;;  %v5254_v15 = vmul.f32 0.2, %v5192_v9 }
 0x606   : > { %vm5234_vm8 = vcmp.ge.f32.partialorder %v5201_v30, 0.0  ;;  %v5266_v46 = vmul.f32 0.2, %v5201_v30  ;;  %v5286_v23 = vsel %vm5222_vm11, %v5192_v9, %v5254_v15 }
 0x607   : > { %v5318_v63 = vmul.f32 1.4142135, %v5286_v23 }
 0x608   : > { %v5298_v10 = vsel %vm5234_vm8, %v5201_v30, %v5266_v46  ;;  %6850 = vmatmul.msk.f32.gmra.mxu1 %vm5387_vm3, %v5334_v18 }
 0x609   : > { %v5330_v52 = vmul.f32 1.4142135, %v5298_v10  ;;  %6857 = vmatmul.msk.f32.gmra.mxu2 %vm5387_vm3, %v11517_v12 }
 0x60a   : > { %6842 = vmatmul.msk.f32.gmra.mxu0 %vm5387_vm3, %v5334_v18 }
 0x60b   : > { %5543 = vmatpush.msrb.mxu3 %v5330_v52 }
 0x60d   : > { %5544 = vmatpush.msrb.mxu3 %v5326_v21 }
 0x60f   : > { %5545 = vmatpush.msrb.mxu3 %v5322_v19 }
 0x610   : > { %6851 = vmatmul.msk.f32.gmra.mxu1 %vm5387_vm3, %v5335_v5 }
 0x611   : > { %5546 = vmatpush.msrb.mxu3 %v5318_v63  ;;  %6858 = vmatmul.msk.f32.gmra.mxu2 %vm5387_vm3, %v5334_v18 }
 0x612   : > { %6843 = vmatmul.msk.f32.gmra.mxu0 %vm5387_vm3, %v5335_v5 }
 0x613   : > { %5547 = vmatpush.msrb.mxu3 %v5314_v61 }
 0x615   : > { %5548 = vmatpush.msrb.mxu3 %v5310_v48 }
 0x617   : > { %5549 = vmatpush.msrb.mxu3 %v5306_v60 }
 0x618   : > { %6852 = vmatmul.msk.f32.gmra.mxu1 %vm5387_vm3, %v5336_v49 }
 0x619   : > { %5550 = vmatpush.msrb.mxu3 %v5302_v53  ;;  %6859 = vmatmul.msk.f32.gmra.mxu2 %vm5387_vm3, %v5335_v5 }
 0x61a   : > { %6863 = vmatmul.msk.f32.vlgmr.msrb.gmra.mxu3 %vm5387_vm3, %v11495_v16  ;;  %6844 = vmatmul.msk.f32.gmra.mxu0 %vm5387_vm3, %v5336_v49  ;;  %v11575_v16 = vpop.permute.xlu0 %5374 }
 0x620   : > { %6853 = vmatmul.msk.f32.gmra.mxu1 %vm5387_vm3, %v5337_v33 }
 0x621   : > { %6860 = vmatmul.msk.f32.gmra.mxu2 %vm5387_vm3, %v5336_v49 }
 0x622   : > { %6864 = vmatmul.msk.f32.gmra.mxu3 %vm5387_vm3, %v11504_v0  ;;  %6845 = vmatmul.msk.f32.gmra.mxu0 %vm5387_vm3, %v5337_v33  ;;  %v11589_v42 = vpop.permute.xlu0 %5359 }
 0x628   : > { %6854 = vmatmul.msk.f32.gmra.mxu1 %vm5387_vm3, %v5338_v47 }
 0x629   : > { %6861 = vmatmul.msk.f32.gmra.mxu2 %vm5387_vm3, %v5337_v33 }
 0x62a   : > { %6865 = vmatmul.msk.f32.gmra.mxu3 %vm5387_vm3, %v11517_v12  ;;  %6846 = vmatmul.msk.f32.gmra.mxu0 %vm5387_vm3, %v5338_v47 }
 0x631   : > { %6862 = vmatmul.msk.f32.gmra.mxu2 %vm5387_vm3, %v5338_v47 }
 0x632   : > { %6866 = vmatmul.msk.f32.gmra.mxu3 %vm5387_vm3, %v5334_v18 }
 0x63a   : > { %6867 = vmatmul.msk.f32.gmra.mxu3 %vm5387_vm3, %v5335_v5 }
 0x642   : > { %6868 = vmatmul.msk.f32.gmra.mxu3 %vm5387_vm3, %v5336_v49 }
 0x64a   : > { %6869 = vmatmul.msk.f32.gmra.mxu3 %vm5387_vm3, %v5337_v33 }
 0x652   : > { %6870 = vmatmul.msk.f32.gmra.mxu3 %vm5387_vm3, %v5338_v47 }
 0x66d   : > { %v5470_v34 = vpop.f32.mrf.mxu1 }
 0x66e   : > { %v11592_v29 = vadd.f32 %v5470_v34, %v11581_v14 }
 0x66f   : > { %v5429_v37 = vpop.f32.mrf.mxu0 }
 0x670   : > { %v5430_v0 = vadd.f32 %v5429_v37, %v11581_v14  ;;  %v11606_v1 = vmul.f32 0.2, %v11592_v29  ;;  %vm5577_vm13 = vcmp.ge.f32.partialorder %v11592_v29, 0.0 }
 0x672   : > { %v5608_v12 = vmul.f32 0.2, %v5430_v0  ;;  %vm5576_vm0 = vcmp.ge.f32.partialorder %v5430_v0, 0.0 }
 0x674   : > { %v11612_v21 = vsel %vm5576_vm0, %v5430_v0, %v5608_v12 }
 0x675   : > { %v5473_v45 = vpop.f32.mrf.mxu1 }
 0x676   : > { %v11595_v46 = vadd.f32 %v5473_v45, %v11584_v58 }
 0x677   : > { %v5432_v31 = vpop.f32.mrf.mxu0 }
 0x678   : > { %v5433_v24 = vadd.f32 %v5432_v31, %v11584_v58  ;;  %v11609_v22 = vmul.f32 0.2, %v11595_v46  ;;  %vm5581_vm11 = vcmp.ge.f32.partialorder %v11595_v46, 0.0 }
 0x67a   : > { %v5612_v10 = vmul.f32 0.2, %v5433_v24  ;;  %vm5580_vm5 = vcmp.ge.f32.partialorder %v5433_v24, 0.0 }
 0x67c   : > { %v11559_v2 = vpop.f32.mrf.mxu2  ;;  %v11628_v39 = vsel %vm5580_vm5, %v5433_v24, %v5612_v10 }
 0x67d   : > { %v5476_v8 = vpop.f32.mrf.mxu1 }
 0x67e   : > { %v11617_v23 = vadd.f32 %v5476_v8, %v11589_v42 }
 0x67f   : > { %v5435_v40 = vpop.f32.mrf.mxu0 }
 0x680   : > { %v11598_v55 = vadd.f32 %v5435_v40, %v11589_v42  ;;  %vm5585_vm4 = vcmp.ge.f32.partialorder %v11617_v23, 0.0 }
 0x682   : > { %vm5584_vm2 = vcmp.ge.f32.partialorder %v11598_v55, 0.0  ;;  %v5616_v26 = vmul.f32 0.2, %v11598_v55 }
 0x684   : > { %v11561_v59 = vpop.f32.mrf.mxu2 }
 0x685   : > { %v5479_v43 = vpop.f32.mrf.mxu1 }
 0x686   : > { %v11622_v18 = vadd.f32 %v5479_v43, %v11571_v50 }
 0x687   : > { %v5438_v41 = vpop.f32.mrf.mxu0 }
 0x688   : > { %v11601_v4 = vadd.f32 %v5438_v41, %v11571_v50  ;;  %vm5589_vm0 = vcmp.ge.f32.partialorder %v11622_v18, 0.0 }
 0x68a   : > { %v5620_v19 = vmul.f32 0.2, %v11601_v4  ;;  %vm5588_vm1 = vcmp.ge.f32.partialorder %v11601_v4, 0.0 }
 0x68c   : > { %v11565_v25 = vpop.f32.mrf.mxu2 }
 0x68d   : > { %v5482_v7 = vpop.f32.mrf.mxu1 }
 0x68e   : > { %v5483_v27 = vadd.f32 %v5482_v7, %v11573_v54 }
 0x68f   : > { %v5441_v57 = vpop.f32.mrf.mxu0 }
 0x690   : > { %v5442_v15 = vadd.f32 %v5441_v57, %v11573_v54  ;;  %v5625_v34 = vmul.f32 0.2, %v5483_v27  ;;  %vm5593_vm10 = vcmp.ge.f32.partialorder %v5483_v27, 0.0 }
 0x692   : > { %vm5592_vm14 = vcmp.ge.f32.partialorder %v5442_v15, 0.0  ;;  %v5624_v36 = vmul.f32 0.2, %v5442_v15  ;;  %v5657_v10 = vsel %vm5593_vm10, %v5483_v27, %v5625_v34 }
 0x694   : > { %v11569_v3 = vpop.f32.mrf.mxu2  ;;  %v5656_v12 = vsel %vm5592_vm14, %v5442_v15, %v5624_v36 }
 0x695   : > { %v5485_v35 = vpop.f32.mrf.mxu1 }
 0x696   : > { %v5486_v62 = vadd.f32 %v5485_v35, %v11575_v16 }
 0x697   : > { %v5444_v32 = vpop.f32.mrf.mxu0 }
 0x698   : > { %v5445_v6 = vadd.f32 %v5444_v32, %v11575_v16  ;;  %v5629_v47 = vmul.f32 0.2, %v5486_v62  ;;  %vm5597_vm12 = vcmp.ge.f32.partialorder %v5486_v62, 0.0  ;;  %v5621_v32 = vmul.f32 0.2, %v11622_v18 }
 0x69a   : > { %v5628_v49 = vmul.f32 0.2, %v5445_v6  ;;  %vm5596_vm8 = vcmp.ge.f32.partialorder %v5445_v6, 0.0  ;;  %v5661_v24 = vsel %vm5597_vm12, %v5486_v62, %v5629_v47  ;;  %v5648_v62 = vsel %vm5584_vm2, %v11598_v55, %v5616_v26 }
 0x69b   : > { %v5693_v27 = vmul.f32 1.4142135, %v5661_v24  ;;  %v5680_v47 = vmul.f32 1.4142135, %v5648_v62 }
 0x69c   : > { %v11579_v28 = vpop.f32.mrf.mxu2  ;;  %v5660_v7 = vsel %vm5596_vm8, %v5445_v6, %v5628_v49 }
 0x69d   : > { %v11577_v13 = vpop.f32.mrf.mxu3  ;;  %v5488_v30 = vpop.f32.mrf.mxu1  ;;  %v5692_v6 = vmul.f32 1.4142135, %v5660_v7 }
 0x69e   : > { %v5489_v51 = vadd.f32 %v5488_v30, %v11563_v38 }
 0x69f   : > { %v5447_v9 = vpop.f32.mrf.mxu0 }
 0x6a0   : > { %v5448_v52 = vadd.f32 %v5447_v9, %v11563_v38  ;;  %v5633_v60 = vmul.f32 0.2, %v5489_v51  ;;  %vm5601_vm6 = vcmp.ge.f32.partialorder %v5489_v51, 0.0 }
 0x6a2   : > { %v5632_v61 = vmul.f32 0.2, %v5448_v52  ;;  %vm5600_vm15 = vcmp.ge.f32.partialorder %v5448_v52, 0.0  ;;  %v5665_v41 = vsel %vm5601_vm6, %v5489_v51, %v5633_v60 }
 0x6a3   : > { %v5697_v30 = vmul.f32 1.4142135, %v5665_v41 }
 0x6a4   : > { %v5526_v44 = vpop.f32.mrf.mxu2  ;;  %v5664_v45 = vsel %vm5600_vm15, %v5448_v52, %v5632_v61  ;;  %v5617_v52 = vmul.f32 0.2, %v11617_v23 }
 0x6a5   : > { %v11587_v56 = vpop.f32.mrf.mxu3  ;;  %v5491_v48 = vpop.f32.mrf.mxu1  ;;  %v5696_v0 = vmul.f32 1.4142135, %v5664_v45  ;;  %v5527_v9 = vadd.f32 %v5526_v44, %v11575_v16  ;;  %v5524_v44 = vadd.f32 %v11579_v28, %v11573_v54  ;;  %v5518_v28 = vadd.f32 %v11565_v25, %v11589_v42 }
 0x6a6   : > { %v5492_v5 = vadd.f32 %v5491_v48, %v11567_v11  ;;  %v5689_v48 = vmul.f32 1.4142135, %v5657_v10  ;;  %v5649_v60 = vsel %vm5585_vm4, %v11617_v23, %v5617_v52  ;;  %v5645_v25 = vsel %vm5581_vm11, %v11595_v46, %v11609_v22  ;;  %v11695_v10 = vld [vmem:[#allocation4 + $0x8] sm:$0xff] }
 0x6a7   : > { %v5450_v63 = vpop.f32.mrf.mxu0  ;;  %v5630_v55 = vmul.f32 0.2, %v5527_v9  ;;  %vm5598_vm14 = vcmp.ge.f32.partialorder %v5527_v9, 0.0  ;;  %vm5594_vm15 = vcmp.ge.f32.partialorder %v5524_v44, 0.0  ;;  %v5515_v23 = vadd.f32 %v11561_v59, %v11584_v58 }
 0x6a8   : > { %v5451_v17 = vadd.f32 %v5450_v63, %v11567_v11  ;;  %vm5605_vm9 = vcmp.ge.f32.partialorder %v5492_v5, 0.0  ;;  %v5637_v37 = vmul.f32 0.2, %v5492_v5  ;;  %v5652_v63 = vsel %vm5588_vm1, %v11601_v4, %v5620_v19 }
 0x6a9   : > { %v5653_v4 = vsel %vm5589_vm0, %v11622_v18, %v5621_v32  ;;  %v5521_v19 = vadd.f32 %v11569_v3, %v11571_v50  ;;  %v5684_v36 = vmul.f32 1.4142135, %v5652_v63  ;;  %v5681_v34 = vmul.f32 1.4142135, %v5649_v60  ;;  %v11703_v63 = vld [vmem:[#allocation4 + $0x10] sm:$0xff] }
 0x6aa   : > { %vm5604_vm7 = vcmp.ge.f32.partialorder %v5451_v17, 0.0  ;;  %v5636_v33 = vmul.f32 0.2, %v5451_v17  ;;  %v5669_v8 = vsel %vm5605_vm9, %v5492_v5, %v5637_v37  ;;  %v5626_v5 = vmul.f32 0.2, %v5524_v44 }
 0x6ab   : > { %v5701_v43 = vmul.f32 1.4142135, %v5669_v8  ;;  %v5685_v18 = vmul.f32 1.4142135, %v5653_v4  ;;  %v5622_v37 = vmul.f32 0.2, %v5521_v19  ;;  %v5512_v46 = vadd.f32 %v11559_v2, %v11581_v14 }
 0x6ac   : > { %v5529_v53 = vpop.f32.mrf.mxu2  ;;  %v5668_v31 = vsel %vm5604_vm7, %v5451_v17, %v5636_v33  ;;  %v5688_v17 = vmul.f32 1.4142135, %v5656_v12  ;;  %vm5590_vm4 = vcmp.ge.f32.partialorder %v5521_v19, 0.0  ;;  %v5676_v45 = vmul.f32 1.4142135, %v11628_v39  ;;  %v11687_v39 = vld [vmem:[#allocation4] sm:$0xff] }
 0x6ad   : > { %v11624_v20 = vpop.f32.mrf.mxu3  ;;  %v5700_v40 = vmul.f32 1.4142135, %v5668_v31  ;;  %v5530_v57 = vadd.f32 %v5529_v53, %v11563_v38  ;;  %5833 = vmatpush.msra.mxu1 %v5701_v43  ;;  %v5662_v31 = vsel %vm5598_vm14, %v5527_v9, %v5630_v55  ;;  %v5618_v59 = vmul.f32 0.2, %v5518_v28  ;;  %v5707_v4 = vld [vmem:[#allocation4 + $0x18] sm:$0xff] }
 0x6ae   : > { %v5677_v22 = vmul.f32 1.4142135, %v5645_v25  ;;  %v5658_v41 = vsel %vm5594_vm15, %v5524_v44, %v5626_v5  ;;  %vm5586_vm6 = vcmp.ge.f32.partialorder %v5518_v28, 0.0  ;;  %v5672_v43 = vmul.f32 1.4142135, %v11612_v21 }
 0x6af   : > { %5792 = vmatpush.msra.mxu0 %v5700_v40  ;;  %v5634_v61 = vmul.f32 0.2, %v5530_v57  ;;  %5834 = vmatpush.msra.mxu1 %v5697_v30  ;;  %vm5602_vm5 = vcmp.ge.f32.partialorder %v5530_v57, 0.0  ;;  %v5641_v40 = vsel %vm5577_vm13, %v11592_v29, %v11606_v1  ;;  %v5614_v7 = vmul.f32 0.2, %v5515_v23 }
 0x6b0   : > { %v5673_v29 = vmul.f32 1.4142135, %v5641_v40  ;;  %v5654_v1 = vsel %vm5590_vm4, %v5521_v19, %v5622_v37  ;;  %vm5582_vm7 = vcmp.ge.f32.partialorder %v5515_v23, 0.0  ;;  %v5690_v2 = vmul.f32 1.4142135, %v5658_v41  ;;  %v5709_v37 = vld [vmem:[#allocation4 + $0x28] sm:$0xff] }
 0x6b1   : > { %5793 = vmatpush.msra.mxu0 %v5696_v0  ;;  %5835 = vmatpush.msra.mxu1 %v5693_v27  ;;  %v5666_v3 = vsel %vm5602_vm5, %v5530_v57, %v5634_v61  ;;  %v5694_v57 = vmul.f32 1.4142135, %v5662_v31  ;;  %v5610_v32 = vmul.f32 0.2, %v5512_v46  ;;  %v5650_v21 = vsel %vm5586_vm6, %v5518_v28, %v5618_v59  ;;  %v5711_v31 = vld [vmem:[#allocation4 + $0x38] sm:$0xff] }
 0x6b2   : > { %v5698_v8 = vmul.f32 1.4142135, %v5666_v3  ;;  %vm5578_vm8 = vcmp.ge.f32.partialorder %v5512_v46, 0.0  ;;  %v5686_v24 = vmul.f32 1.4142135, %v5654_v1  ;;  %v5646_v9 = vsel %vm5582_vm7, %v5515_v23, %v5614_v7  ;;  %v11756_v7 = vpop.permute.xlu1 %5752 }
 0x6b3   : > { %5794 = vmatpush.msra.mxu0 %v5692_v6  ;;  %5836 = vmatpush.msra.mxu1 %v5689_v48  ;;  %v5682_v30 = vmul.f32 1.4142135, %v5650_v21  ;;  %v5642_v12 = vsel %vm5578_vm8, %v5512_v46, %v5610_v32  ;;  %v5678_v52 = vmul.f32 1.4142135, %v5646_v9  ;;  %v5559_v19 = vadd.f32 %v11624_v20, %v11589_v42 }
 0x6b4   : > { %v5532_v51 = vpop.f32.mrf.mxu2  ;;  %v5556_v28 = vadd.f32 %v11587_v56, %v11584_v58  ;;  %v5553_v42 = vadd.f32 %v11577_v13, %v11581_v14 }
 0x6b5   : > { %v11642_v35 = vpop.f32.mrf.mxu3  ;;  %v5533_v15 = vadd.f32 %v5532_v51, %v11567_v11  ;;  %5795 = vmatpush.msra.mxu0 %v5688_v17  ;;  %5837 = vmatpush.msra.mxu1 %v5685_v18  ;;  %v5674_v51 = vmul.f32 1.4142135, %v5642_v12  ;;  %v5619_v20 = vmul.f32 0.2, %v5559_v19  ;;  %vm5587_vm1 = vcmp.ge.f32.partialorder %v5559_v19, 0.0  ;;  %v5708_v18 = vld [vmem:[#allocation4 + $0x20] sm:$0xff]  ;;  %v11768_v12 = vpop.permute.xlu2 %5747 }
 0x6b6   : > { %v5615_v56 = vmul.f32 0.2, %v5556_v28  ;;  %vm5583_vm0 = vcmp.ge.f32.partialorder %v5556_v28, 0.0  ;;  %v5611_v3 = vmul.f32 0.2, %v5553_v42  ;;  %vm5579_vm5 = vcmp.ge.f32.partialorder %v5553_v42, 0.0 }
 0x6b7   : > { %vm5606_vm2 = vcmp.ge.f32.partialorder %v5533_v15, 0.0  ;;  %v5638_v26 = vmul.f32 0.2, %v5533_v15  ;;  %5796 = vmatpush.msra.mxu0 %v5684_v36  ;;  %5838 = vmatpush.msra.mxu1 %v5681_v34  ;;  %v5710_v34 = vld [vmem:[#allocation4 + $0x30] sm:$0xff] }
 0x6b8   : > { %v5647_v13 = vsel %vm5583_vm0, %v5556_v28, %v5615_v56 }
 0x6b9   : > { %v5670_v53 = vsel %vm5606_vm2, %v5533_v15, %v5638_v26  ;;  %5797 = vmatpush.msra.mxu0 %v5680_v47  ;;  %5839 = vmatpush.msra.mxu1 %v5677_v22  ;;  %v5643_v47 = vsel %vm5579_vm5, %v5553_v42, %v5611_v3  ;;  %v5679_v25 = vmul.f32 1.4142135, %v5647_v13 }
 0x6ba   : > { %v5702_v33 = vmul.f32 1.4142135, %v5670_v53  ;;  %v5675_v23 = vmul.f32 1.4142135, %v5643_v47  ;;  %v11762_v21 = vpop.permute.xlu1 %5737 }
 0x6bb   : > { %5798 = vmatpush.msra.mxu0 %v5676_v45  ;;  %5840 = vmatpush.msra.mxu1 %v5673_v29  ;;  %v11758_v29 = vpop.permute.xlu0 %5757 }
 0x6bc   : > { %5874 = vmatpush.msra.mxu2 %v5702_v33  ;;  %6879 = vmatmul.msk.f32.vlgmr.msra.gmra.mxu1 %vm5387_vm3, %v11687_v39 }
 0x6bd   : > { %v11669_v49 = vpop.f32.mrf.mxu3  ;;  %5799 = vmatpush.msra.mxu0 %v5672_v43 }
 0x6be   : > { %5875 = vmatpush.msra.mxu2 %v5698_v8  ;;  %6871 = vmatmul.msk.f32.vlgmr.msra.gmra.mxu0 %vm5387_vm3, %v11687_v39  ;;  %v5565_v15 = vadd.f32 %v11669_v49, %v11573_v54  ;;  %v5651_v49 = vsel %vm5587_vm1, %v5559_v19, %v5619_v20 }
 0x6bf   : > { %v5683_v14 = vmul.f32 1.4142135, %v5651_v49 }
 0x6c0   : > { %5876 = vmatpush.msra.mxu2 %v5694_v57  ;;  %v5627_v55 = vmul.f32 0.2, %v5565_v15  ;;  %vm5595_vm10 = vcmp.ge.f32.partialorder %v5565_v15, 0.0 }
 0x6c2   : > { %5877 = vmatpush.msra.mxu2 %v5690_v2 }
 0x6c4   : > { %5878 = vmatpush.msra.mxu2 %v5686_v24  ;;  %6880 = vmatmul.msk.f32.gmra.mxu1 %vm5387_vm3, %v11695_v10 }
 0x6c5   : > { %v5567_v0 = vpop.f32.mrf.mxu3 }
 0x6c6   : > { %5879 = vmatpush.msra.mxu2 %v5682_v30  ;;  %6872 = vmatmul.msk.f32.gmra.mxu0 %vm5387_vm3, %v11695_v10  ;;  %v5568_v44 = vadd.f32 %v5567_v0, %v11575_v16  ;;  %v11764_v0 = vpop.permute.xlu0 %5742 }
 0x6c8   : > { %5880 = vmatpush.msra.mxu2 %v5678_v52  ;;  %v5631_v16 = vmul.f32 0.2, %v5568_v44  ;;  %vm5599_vm12 = vcmp.ge.f32.partialorder %v5568_v44, 0.0 }
 0x6ca   : > { %5881 = vmatpush.msra.mxu2 %v5674_v51  ;;  %v5663_v60 = vsel %vm5599_vm12, %v5568_v44, %v5631_v16 }
 0x6cb   : > { %6887 = vmatmul.msk.f32.vlgmr.msra.gmra.mxu2 %vm5387_vm3, %v11687_v39  ;;  %v5695_v58 = vmul.f32 1.4142135, %v5663_v60 }
 0x6cc   : > { %6881 = vmatmul.msk.f32.gmra.mxu1 %vm5387_vm3, %v11703_v63 }
 0x6cd   : > { %v5570_v6 = vpop.f32.mrf.mxu3 }
 0x6ce   : > { %v5571_v62 = vadd.f32 %v5570_v6, %v11563_v38  ;;  %6873 = vmatmul.msk.f32.gmra.mxu0 %vm5387_vm3, %v11703_v63  ;;  %v5562_v38 = vadd.f32 %v11642_v35, %v11571_v50  ;;  %v5659_v35 = vsel %vm5595_vm10, %v5565_v15, %v5627_v55  ;;  %v11774_v6 = vpop.permute.xlu1 %5722 }
 0x6cf   : > { %v5691_v53 = vmul.f32 1.4142135, %v5659_v35 }
 0x6d0   : > { %v5635_v27 = vmul.f32 0.2, %v5571_v62  ;;  %vm5603_vm9 = vcmp.ge.f32.partialorder %v5571_v62, 0.0  ;;  %v5623_v36 = vmul.f32 0.2, %v5562_v38  ;;  %vm5591_vm13 = vcmp.ge.f32.partialorder %v5562_v38, 0.0 }
 0x6d2   : > { %v5667_v26 = vsel %vm5603_vm9, %v5571_v62, %v5635_v27  ;;  %v5655_v5 = vsel %vm5591_vm13, %v5562_v38, %v5623_v36  ;;  %v11776_v62 = vpop.permute.xlu0 %5727 }
 0x6d3   : > { %6888 = vmatmul.msk.f32.gmra.mxu2 %vm5387_vm3, %v11695_v10  ;;  %v5699_v50 = vmul.f32 1.4142135, %v5667_v26  ;;  %v5687_v33 = vmul.f32 1.4142135, %v5655_v5 }
 0x6d4   : > { %6882 = vmatmul.msk.f32.gmra.mxu1 %vm5387_vm3, %v5707_v4 }
 0x6d5   : > { %v5573_v61 = vpop.f32.mrf.mxu3 }
 0x6d6   : > { %v5574_v17 = vadd.f32 %v5573_v61, %v11567_v11  ;;  %6874 = vmatmul.msk.f32.gmra.mxu0 %vm5387_vm3, %v5707_v4 }
 0x6d8   : > { %vm5607_vm11 = vcmp.ge.f32.partialorder %v5574_v17, 0.0  ;;  %v5639_v48 = vmul.f32 0.2, %v5574_v17 }
 0x6da   : > { %v5671_v54 = vsel %vm5607_vm11, %v5574_v17, %v5639_v48 }
 0x6db   : > { %v5703_v11 = vmul.f32 1.4142135, %v5671_v54  ;;  %6889 = vmatmul.msk.f32.gmra.mxu2 %vm5387_vm3, %v11703_v63 }
 0x6dc   : > { %6883 = vmatmul.msk.f32.gmra.mxu1 %vm5387_vm3, %v5708_v18 }
 0x6dd   : > { %5915 = vmatpush.msra.mxu3 %v5703_v11 }
 0x6de   : > { %6875 = vmatmul.msk.f32.gmra.mxu0 %vm5387_vm3, %v5708_v18 }
 0x6df   : > { %5916 = vmatpush.msra.mxu3 %v5699_v50 }
 0x6e1   : > { %5917 = vmatpush.msra.mxu3 %v5695_v58 }
 0x6e3   : > { %5918 = vmatpush.msra.mxu3 %v5691_v53  ;;  %6890 = vmatmul.msk.f32.gmra.mxu2 %vm5387_vm3, %v5707_v4 }
 0x6e4   : > { %6884 = vmatmul.msk.f32.gmra.mxu1 %vm5387_vm3, %v5709_v37 }
 0x6e5   : > { %5919 = vmatpush.msra.mxu3 %v5687_v33 }
 0x6e6   : > { %6876 = vmatmul.msk.f32.gmra.mxu0 %vm5387_vm3, %v5709_v37 }
 0x6e7   : > { %5920 = vmatpush.msra.mxu3 %v5683_v14 }
 0x6e9   : > { %5921 = vmatpush.msra.mxu3 %v5679_v25 }
 0x6eb   : > { %5922 = vmatpush.msra.mxu3 %v5675_v23  ;;  %6891 = vmatmul.msk.f32.gmra.mxu2 %vm5387_vm3, %v5708_v18 }
 0x6ec   : > { %6895 = vmatmul.msk.f32.vlgmr.msra.gmra.mxu3 %vm5387_vm3, %v11687_v39  ;;  %6885 = vmatmul.msk.f32.gmra.mxu1 %vm5387_vm3, %v5710_v34 }
 0x6ee   : > { %6877 = vmatmul.msk.f32.gmra.mxu0 %vm5387_vm3, %v5710_v34 }
 0x6f3   : > { %6892 = vmatmul.msk.f32.gmra.mxu2 %vm5387_vm3, %v5709_v37 }
 0x6f4   : > { %6896 = vmatmul.msk.f32.gmra.mxu3 %vm5387_vm3, %v11695_v10  ;;  %6886 = vmatmul.msk.f32.gmra.mxu1 %vm5387_vm3, %v5711_v31 }
 0x6f6   : > { %6878 = vmatmul.msk.f32.gmra.mxu0 %vm5387_vm3, %v5711_v31 }
 0x6fb   : > { %6893 = vmatmul.msk.f32.gmra.mxu2 %vm5387_vm3, %v5710_v34 }
 0x6fc   : > { %6897 = vmatmul.msk.f32.gmra.mxu3 %vm5387_vm3, %v11703_v63 }
 0x703   : > { %6894 = vmatmul.msk.f32.gmra.mxu2 %vm5387_vm3, %v5711_v31 }
 0x704   : > { %6898 = vmatmul.msk.f32.gmra.mxu3 %vm5387_vm3, %v5707_v4  ;;  %v11795_v4 = vpop.permute.xlu2 %5732 }
 0x70c   : > { %6899 = vmatmul.msk.f32.gmra.mxu3 %vm5387_vm3, %v5708_v18 }
 0x714   : > { %6900 = vmatmul.msk.f32.gmra.mxu3 %vm5387_vm3, %v5709_v37 }
 0x71c   : > { %6901 = vmatmul.msk.f32.gmra.mxu3 %vm5387_vm3, %v5710_v34 }
 0x724   : > { %6902 = vmatmul.msk.f32.gmra.mxu3 %vm5387_vm3, %v5711_v31 }
 0x739   : > { %v5842_v40 = vpop.f32.mrf.mxu1 }
 0x73a   : > { %v11782_v61 = vadd.f32 %v5842_v40, %v11774_v6 }
 0x73b   : > { %v5801_v45 = vpop.f32.mrf.mxu0 }
 0x73c   : > { %v11779_v44 = vadd.f32 %v5801_v45, %v11774_v6  ;;  %v11798_v19 = vmul.f32 0.2, %v11782_v61 }
 0x73e   : > { %v11789_v17 = vmul.f32 0.2, %v11779_v44  ;;  %vm5948_vm8 = vcmp.ge.f32.partialorder %v11779_v44, 0.0 }
 0x741   : > { %v5845_v46 = vpop.f32.mrf.mxu1 }
 0x742   : > { %v11804_v54 = vadd.f32 %v5845_v46, %v11776_v62 }
 0x743   : > { %v5804_v8 = vpop.f32.mrf.mxu0 }
 0x744   : > { %v11785_v15 = vadd.f32 %v5804_v8, %v11776_v62  ;;  %vm5953_vm5 = vcmp.ge.f32.partialorder %v11804_v54, 0.0 }
 0x746   : > { %v11801_v55 = vmul.f32 0.2, %v11785_v15  ;;  %vm5952_vm0 = vcmp.ge.f32.partialorder %v11785_v15, 0.0 }
 0x749   : > { %v5848_v41 = vpop.f32.mrf.mxu1 }
 0x74a   : > { %v11811_v28 = vadd.f32 %v5848_v41, %v11795_v4 }
 0x74b   : > { %v5807_v59 = vpop.f32.mrf.mxu0 }
 0x74c   : > { %v11808_v11 = vadd.f32 %v5807_v59, %v11795_v4  ;;  %vm5957_vm1 = vcmp.ge.f32.partialorder %v11811_v28, 0.0 }
 0x74e   : > { %v11752_v22 = vpop.f32.mrf.mxu2  ;;  %vm5956_vm13 = vcmp.ge.f32.partialorder %v11808_v11, 0.0 }
 0x751   : > { %v5851_v57 = vpop.f32.mrf.mxu1 }
 0x752   : > { %v5852_v20 = vadd.f32 %v5851_v57, %v11762_v21 }
 0x753   : > { %v5810_v43 = vpop.f32.mrf.mxu0 }
 0x754   : > { %v5811_v36 = vadd.f32 %v5810_v43, %v11762_v21  ;;  %v5993_v59 = vmul.f32 0.2, %v5852_v20  ;;  %vm5961_vm10 = vcmp.ge.f32.partialorder %v5852_v20, 0.0 }
 0x756   : > { %v11754_v39 = vpop.f32.mrf.mxu2  ;;  %v5992_v40 = vmul.f32 0.2, %v5811_v36  ;;  %vm5960_vm12 = vcmp.ge.f32.partialorder %v5811_v36, 0.0 }
 0x759   : > { %v5854_v32 = vpop.f32.mrf.mxu1 }
 0x75a   : > { %v5855_v35 = vadd.f32 %v5854_v32, %v11764_v0 }
 0x75b   : > { %v5813_v1 = vpop.f32.mrf.mxu0 }
 0x75c   : > { %v5814_v16 = vadd.f32 %v5813_v1, %v11764_v0  ;;  %v5997_v23 = vmul.f32 0.2, %v5855_v35  ;;  %vm5965_vm11 = vcmp.ge.f32.partialorder %v5855_v35, 0.0  ;;  %v5988_v1 = vmul.f32 0.2, %v11808_v11 }
 0x75e   : > { %v11760_v2 = vpop.f32.mrf.mxu2  ;;  %vm5964_vm2 = vcmp.ge.f32.partialorder %v5814_v16, 0.0  ;;  %v5996_v14 = vmul.f32 0.2, %v5814_v16 }
 0x761   : > { %v5857_v30 = vpop.f32.mrf.mxu1 }
 0x762   : > { %v5858_v60 = vadd.f32 %v5857_v30, %v11768_v12  ;;  %v5989_v30 = vmul.f32 0.2, %v11811_v28 }
 0x763   : > { %v5816_v24 = vpop.f32.mrf.mxu0 }
 0x764   : > { %v5817_v26 = vadd.f32 %v5816_v24, %v11768_v12  ;;  %v6001_v33 = vmul.f32 0.2, %v5858_v60  ;;  %vm5969_vm9 = vcmp.ge.f32.partialorder %v5858_v60, 0.0  ;;  %v6028_v24 = vsel %vm5964_vm2, %v5814_v16, %v5996_v14 }
 0x765   : > { %v6060_v16 = vmul.f32 1.4142135, %v6028_v24  ;;  %vm5949_vm2 = vcmp.ge.f32.partialorder %v11782_v61, 0.0 }
 0x766   : > { %v11766_v9 = vpop.f32.mrf.mxu2  ;;  %v6000_v3 = vmul.f32 0.2, %v5817_v26  ;;  %vm5968_vm6 = vcmp.ge.f32.partialorder %v5817_v26, 0.0  ;;  %v6033_v57 = vsel %vm5969_vm9, %v5858_v60, %v6001_v33  ;;  %v6025_v60 = vsel %vm5961_vm10, %v5852_v20, %v5993_v59 }
 0x767   : > { %v5884_v59 = vadd.f32 %v11752_v22, %v11774_v6 }
 0x768   : > { %v6032_v46 = vsel %vm5968_vm6, %v5817_v26, %v6000_v3  ;;  %v6024_v26 = vsel %vm5960_vm12, %v5811_v36, %v5992_v40  ;;  %v5887_v40 = vadd.f32 %v11754_v39, %v11776_v62 }
 0x769   : > { %v5860_v63 = vpop.f32.mrf.mxu1  ;;  %v6056_v36 = vmul.f32 1.4142135, %v6024_v26 }
 0x76a   : > { %v5861_v48 = vadd.f32 %v5860_v63, %v11756_v7  ;;  %v6029_v63 = vsel %vm5965_vm11, %v5855_v35, %v5997_v23  ;;  %vm5954_vm9 = vcmp.ge.f32.partialorder %v5887_v40, 0.0  ;;  %vm5950_vm11 = vcmp.ge.f32.partialorder %v5884_v59, 0.0 }
 0x76b   : > { %v5819_v52 = vpop.f32.mrf.mxu0  ;;  %v6061_v35 = vmul.f32 1.4142135, %v6029_v63 }
 0x76c   : > { %v5820_v27 = vadd.f32 %v5819_v52, %v11756_v7  ;;  %v6005_v53 = vmul.f32 0.2, %v5861_v48  ;;  %vm5973_vm15 = vcmp.ge.f32.partialorder %v5861_v48, 0.0  ;;  %v6064_v52 = vmul.f32 1.4142135, %v6032_v46 }
 0x76e   : > { %v11772_v51 = vpop.f32.mrf.mxu2  ;;  %v6004_v58 = vmul.f32 0.2, %v5820_v27  ;;  %vm5972_vm14 = vcmp.ge.f32.partialorder %v5820_v27, 0.0  ;;  %v6037_v45 = vsel %vm5973_vm15, %v5861_v48, %v6005_v53  ;;  %v6065_v48 = vmul.f32 1.4142135, %v6033_v57 }
 0x76f   : > { %v11770_v10 = vpop.f32.mrf.mxu3  ;;  %v6069_v32 = vmul.f32 1.4142135, %v6037_v45  ;;  %v6057_v53 = vmul.f32 1.4142135, %v6025_v60  ;;  %v5986_v57 = vmul.f32 0.2, %v5887_v40 }
 0x770   : > { %v6036_v25 = vsel %vm5972_vm14, %v5820_v27, %v6004_v58  ;;  %v5985_v27 = vmul.f32 0.2, %v11804_v54  ;;  %v6020_v58 = vsel %vm5956_vm13, %v11808_v11, %v5988_v1  ;;  %v11890_v60 = vld [vmem:[#allocation5 + $0x10] sm:$0xff] }
 0x771   : > { %v5863_v5 = vpop.f32.mrf.mxu1  ;;  %v6068_v43 = vmul.f32 1.4142135, %v6036_v25  ;;  %v5890_v25 = vadd.f32 %v11760_v2, %v11795_v4  ;;  %v6018_v22 = vsel %vm5954_vm9, %v5887_v40, %v5986_v57  ;;  %v11950_v57 = vpop.permute.xlu0 %6124 }
 0x772   : > { %v5864_v18 = vadd.f32 %v5863_v5, %v11758_v29  ;;  %v6021_v5 = vsel %vm5957_vm1, %v11811_v28, %v5989_v30  ;;  %v6017_v11 = vsel %vm5953_vm5, %v11804_v54, %v5985_v27  ;;  %v6012_v28 = vsel %vm5948_vm8, %v11779_v44, %v11789_v17 }
 0x773   : > { %v5822_v50 = vpop.f32.mrf.mxu0  ;;  %v6053_v33 = vmul.f32 1.4142135, %v6021_v5  ;;  %v6049_v14 = vmul.f32 1.4142135, %v6017_v11  ;;  %v5893_v44 = vadd.f32 %v11766_v9, %v11762_v21  ;;  %vm5958_vm8 = vcmp.ge.f32.partialorder %v5890_v25, 0.0 }
 0x774   : > { %v5823_v56 = vadd.f32 %v5822_v50, %v11758_v29  ;;  %vm5977_vm7 = vcmp.ge.f32.partialorder %v5864_v18, 0.0  ;;  %v6009_v13 = vmul.f32 0.2, %v5864_v18  ;;  %v5982_v30 = vmul.f32 0.2, %v5884_v59 }
 0x776   : > { %v11815_v42 = vpop.f32.mrf.mxu2  ;;  %vm5976_vm4 = vcmp.ge.f32.partialorder %v5823_v56, 0.0  ;;  %v6008_v49 = vmul.f32 0.2, %v5823_v56  ;;  %v6041_v31 = vsel %vm5977_vm7, %v5864_v18, %v6009_v13  ;;  %v6016_v18 = vsel %vm5952_vm0, %v11785_v15, %v11801_v55 }
 0x777   : > { %v11791_v38 = vpop.f32.mrf.mxu3  ;;  %v6073_v8 = vmul.f32 1.4142135, %v6041_v31  ;;  %v5899_v20 = vadd.f32 %v11815_v42, %v11768_v12  ;;  %v6013_v42 = vsel %vm5949_vm2, %v11782_v61, %v11798_v19  ;;  %v5896_v15 = vadd.f32 %v11772_v51, %v11764_v0  ;;  %v11870_v19 = vld [vmem:[#allocation5] sm:$0xff] }
 0x778   : > { %v6040_v47 = vsel %vm5976_vm4, %v5823_v56, %v6008_v49  ;;  %v6052_v49 = vmul.f32 1.4142135, %v6020_v58  ;;  %v6048_v13 = vmul.f32 1.4142135, %v6016_v18  ;;  %v6044_v61 = vmul.f32 1.4142135, %v6012_v28 }
 0x779   : > { %v6072_v34 = vmul.f32 1.4142135, %v6040_v47  ;;  %6205 = vmatpush.msrb.mxu1 %v6073_v8  ;;  %v6002_v17 = vmul.f32 0.2, %v5899_v20  ;;  %vm5970_vm4 = vcmp.ge.f32.partialorder %v5899_v20, 0.0  ;;  %vm5966_vm6 = vcmp.ge.f32.partialorder %v5896_v15, 0.0 }
 0x77a   : > { %v6045_v51 = vmul.f32 1.4142135, %v6013_v42  ;;  %v5998_v23 = vmul.f32 0.2, %v5896_v15  ;;  %v5994_v8 = vmul.f32 0.2, %v5893_v44  ;;  %v6014_v26 = vsel %vm5950_vm11, %v5884_v59, %v5982_v30 }
 0x77b   : > { %6164 = vmatpush.msrb.mxu0 %v6072_v34  ;;  %6206 = vmatpush.msrb.mxu1 %v6069_v32  ;;  %v6034_v46 = vsel %vm5970_vm4, %v5899_v20, %v6002_v17  ;;  %vm5962_vm7 = vcmp.ge.f32.partialorder %v5893_v44, 0.0  ;;  %v11884_v32 = vld [vmem:[#allocation5 + $0x8] sm:$0xff] }
 0x77c   : > { %v6066_v39 = vmul.f32 1.4142135, %v6034_v46  ;;  %v6026_v1 = vsel %vm5962_vm7, %v5893_v44, %v5994_v8 }
 0x77d   : > { %6165 = vmatpush.msrb.mxu0 %v6068_v43  ;;  %6207 = vmatpush.msrb.mxu1 %v6065_v48  ;;  %v6030_v43 = vsel %vm5966_vm6, %v5896_v15, %v5998_v23  ;;  %v6058_v27 = vmul.f32 1.4142135, %v6026_v1  ;;  %v6080_v15 = vld [vmem:[#allocation5 + $0x20] sm:$0xff] }
 0x77e   : > { %v5901_v41 = vpop.f32.mrf.mxu2  ;;  %v6062_v24 = vmul.f32 1.4142135, %v6030_v43 }
 0x77f   : > { %v11822_v37 = vpop.f32.mrf.mxu3  ;;  %6166 = vmatpush.msrb.mxu0 %v6064_v52  ;;  %v5902_v50 = vadd.f32 %v5901_v41, %v11756_v7  ;;  %6208 = vmatpush.msrb.mxu1 %v6061_v35  ;;  %v5990_v41 = vmul.f32 0.2, %v5890_v25 }
 0x781   : > { %6167 = vmatpush.msrb.mxu0 %v6060_v16  ;;  %v6006_v55 = vmul.f32 0.2, %v5902_v50  ;;  %6209 = vmatpush.msrb.mxu1 %v6057_v53  ;;  %vm5974_vm14 = vcmp.ge.f32.partialorder %v5902_v50, 0.0  ;;  %v6022_v52 = vsel %vm5958_vm8, %v5890_v25, %v5990_v41  ;;  %v6050_v16 = vmul.f32 1.4142135, %v6018_v22  ;;  %v11960_v22 = vpop.permute.xlu1 %6119 }
 0x782   : > { %v6054_v48 = vmul.f32 1.4142135, %v6022_v52 }
 0x783   : > { %6168 = vmatpush.msrb.mxu0 %v6056_v36  ;;  %6210 = vmatpush.msrb.mxu1 %v6053_v33  ;;  %v6038_v31 = vsel %vm5974_vm14, %v5902_v50, %v6006_v55  ;;  %v6046_v50 = vmul.f32 1.4142135, %v6014_v26  ;;  %v11899_v36 = vld [vmem:[#allocation5 + $0x18] sm:$0xff]  ;;  %v5928_v55 = vadd.f32 %v11791_v38, %v11776_v62 }
 0x784   : > { %v6070_v2 = vmul.f32 1.4142135, %v6038_v31  ;;  %v6083_v31 = vld [vmem:[#allocation5 + $0x38] sm:$0xff] }
 0x785   : > { %6169 = vmatpush.msrb.mxu0 %v6052_v49  ;;  %6211 = vmatpush.msrb.mxu1 %v6049_v14  ;;  %v5987_v62 = vmul.f32 0.2, %v5928_v55  ;;  %vm5955_vm2 = vcmp.ge.f32.partialorder %v5928_v55, 0.0 }
 0x786   : > { %v5904_v3 = vpop.f32.mrf.mxu2 }
 0x787   : > { %v11843_v56 = vpop.f32.mrf.mxu3  ;;  %v5905_v54 = vadd.f32 %v5904_v3, %v11758_v29  ;;  %6170 = vmatpush.msrb.mxu0 %v6048_v13  ;;  %6212 = vmatpush.msrb.mxu1 %v6045_v51 }
 0x788   : > { %6911 = vmatmul.msk.f32.vlgmr.msrb.gmra.mxu1 %vm5387_vm3, %v11870_v19 }
 0x789   : > { %vm5978_vm15 = vcmp.ge.f32.partialorder %v5905_v54, 0.0  ;;  %v6010_v47 = vmul.f32 0.2, %v5905_v54  ;;  %6171 = vmatpush.msrb.mxu0 %v6044_v61 }
 0x78a   : > { %6903 = vmatmul.msk.f32.vlgmr.msrb.gmra.mxu0 %vm5387_vm3, %v11870_v19 }
 0x78b   : > { %v6042_v34 = vsel %vm5978_vm15, %v5905_v54, %v6010_v47  ;;  %v6019_v47 = vsel %vm5955_vm2, %v5928_v55, %v5987_v62 }
 0x78c   : > { %v6074_v45 = vmul.f32 1.4142135, %v6042_v34  ;;  %v6051_v25 = vmul.f32 1.4142135, %v6019_v47  ;;  %v6082_v34 = vld [vmem:[#allocation5 + $0x30] sm:$0xff] }
 0x78e   : > { %6246 = vmatpush.msrb.mxu2 %v6074_v45 }
 0x78f   : > { %v5936_v9 = vpop.f32.mrf.mxu3 }
 0x790   : > { %6247 = vmatpush.msrb.mxu2 %v6070_v2  ;;  %6912 = vmatmul.msk.f32.gmra.mxu1 %vm5387_vm3, %v11884_v32  ;;  %v5937_v53 = vadd.f32 %v5936_v9, %v11764_v0 }
 0x792   : > { %6248 = vmatpush.msrb.mxu2 %v6066_v39  ;;  %6904 = vmatmul.msk.f32.gmra.mxu0 %vm5387_vm3, %v11884_v32  ;;  %v5999_v0 = vmul.f32 0.2, %v5937_v53  ;;  %vm5967_vm1 = vcmp.ge.f32.partialorder %v5937_v53, 0.0 }
 0x794   : > { %6249 = vmatpush.msrb.mxu2 %v6062_v24  ;;  %v6031_v14 = vsel %vm5967_vm1, %v5937_v53, %v5999_v0 }
 0x796   : > { %6250 = vmatpush.msrb.mxu2 %v6058_v27 }
 0x797   : > { %v5939_v63 = vpop.f32.mrf.mxu3 }
 0x798   : > { %6251 = vmatpush.msrb.mxu2 %v6054_v48  ;;  %6913 = vmatmul.msk.f32.gmra.mxu1 %vm5387_vm3, %v11890_v60  ;;  %v5940_v5 = vadd.f32 %v5939_v63, %v11768_v12  ;;  %v11956_v63 = vpop.permute.xlu0 %6109 }
 0x79a   : > { %6252 = vmatpush.msrb.mxu2 %v6050_v16  ;;  %6905 = vmatmul.msk.f32.gmra.mxu0 %vm5387_vm3, %v11890_v60  ;;  %v6003_v12 = vmul.f32 0.2, %v5940_v5  ;;  %vm5971_vm13 = vcmp.ge.f32.partialorder %v5940_v5, 0.0 }
 0x79c   : > { %6253 = vmatpush.msrb.mxu2 %v6046_v50  ;;  %v6035_v33 = vsel %vm5971_vm13, %v5940_v5, %v6003_v12 }
 0x79d   : > { %6919 = vmatmul.msk.f32.vlgmr.msrb.gmra.mxu2 %vm5387_vm3, %v11870_v19 }
 0x79f   : > { %v5942_v35 = vpop.f32.mrf.mxu3 }
 0x7a0   : > { %v5943_v58 = vadd.f32 %v5942_v35, %v11756_v7  ;;  %6914 = vmatmul.msk.f32.gmra.mxu1 %vm5387_vm3, %v11899_v36  ;;  %v5934_v7 = vadd.f32 %v11843_v56, %v11762_v21  ;;  %v5925_v56 = vadd.f32 %v11770_v10, %v11774_v6  ;;  %v6081_v6 = vld [vmem:[#allocation5 + $0x28] sm:$0xff]  ;;  %v11966_v50 = vpop.permute.xlu0 %6094 }
 0x7a2   : > { %v6007_v18 = vmul.f32 0.2, %v5943_v58  ;;  %6906 = vmatmul.msk.f32.gmra.mxu0 %vm5387_vm3, %v11899_v36  ;;  %vm5975_vm12 = vcmp.ge.f32.partialorder %v5943_v58, 0.0  ;;  %v5995_v54 = vmul.f32 0.2, %v5934_v7  ;;  %vm5963_vm0 = vcmp.ge.f32.partialorder %v5934_v7, 0.0 }
 0x7a3   : > { %v5983_v44 = vmul.f32 0.2, %v5925_v56  ;;  %vm5951_vm14 = vcmp.ge.f32.partialorder %v5925_v56, 0.0 }
 0x7a4   : > { %v6039_v28 = vsel %vm5975_vm12, %v5943_v58, %v6007_v18  ;;  %v6027_v38 = vsel %vm5963_vm0, %v5934_v7, %v5995_v54  ;;  %v11978_v18 = vpop.permute.xlu1 %6104 }
 0x7a5   : > { %6920 = vmatmul.msk.f32.gmra.mxu2 %vm5387_vm3, %v11884_v32  ;;  %v6071_v21 = vmul.f32 1.4142135, %v6039_v28  ;;  %v6059_v10 = vmul.f32 1.4142135, %v6027_v38  ;;  %v6015_v51 = vsel %vm5951_vm14, %v5925_v56, %v5983_v44 }
 0x7a6   : > { %v6047_v23 = vmul.f32 1.4142135, %v6015_v51 }
 0x7a7   : > { %v5945_v20 = vpop.f32.mrf.mxu3 }
 0x7a8   : > { %v5946_v11 = vadd.f32 %v5945_v20, %v11758_v29  ;;  %v5931_v29 = vadd.f32 %v11822_v37, %v11795_v4  ;;  %v6067_v4 = vmul.f32 1.4142135, %v6035_v33  ;;  %6915 = vmatmul.msk.f32.gmra.mxu1 %vm5387_vm3, %v6080_v15  ;;  %v6063_v37 = vmul.f32 1.4142135, %v6031_v14 }
 0x7aa   : > { %vm5979_vm10 = vcmp.ge.f32.partialorder %v5946_v11, 0.0  ;;  %v6011_v3 = vmul.f32 0.2, %v5946_v11  ;;  %v5991_v13 = vmul.f32 0.2, %v5931_v29  ;;  %6907 = vmatmul.msk.f32.gmra.mxu0 %vm5387_vm3, %v6080_v15  ;;  %vm5959_vm5 = vcmp.ge.f32.partialorder %v5931_v29, 0.0 }
 0x7ac   : > { %v6043_v49 = vsel %vm5979_vm10, %v5946_v11, %v6011_v3  ;;  %v6023_v17 = vsel %vm5959_vm5, %v5931_v29, %v5991_v13 }
 0x7ad   : > { %v6075_v42 = vmul.f32 1.4142135, %v6043_v49  ;;  %6921 = vmatmul.msk.f32.gmra.mxu2 %vm5387_vm3, %v11890_v60  ;;  %v6055_v61 = vmul.f32 1.4142135, %v6023_v17 }
 0x7af   : > { %6287 = vmatpush.msrb.mxu3 %v6075_v42 }
 0x7b0   : > { %6916 = vmatmul.msk.f32.gmra.mxu1 %vm5387_vm3, %v6081_v6 }
 0x7b1   : > { %6288 = vmatpush.msrb.mxu3 %v6071_v21 }
 0x7b2   : > { %6908 = vmatmul.msk.f32.gmra.mxu0 %vm5387_vm3, %v6081_v6 }
 0x7b3   : > { %6289 = vmatpush.msrb.mxu3 %v6067_v4 }
 0x7b5   : > { %6290 = vmatpush.msrb.mxu3 %v6063_v37  ;;  %6922 = vmatmul.msk.f32.gmra.mxu2 %vm5387_vm3, %v11899_v36 }
 0x7b7   : > { %6291 = vmatpush.msrb.mxu3 %v6059_v10 }
 0x7b8   : > { %6917 = vmatmul.msk.f32.gmra.mxu1 %vm5387_vm3, %v6082_v34 }
 0x7b9   : > { %6292 = vmatpush.msrb.mxu3 %v6055_v61 }
 0x7ba   : > { %6909 = vmatmul.msk.f32.gmra.mxu0 %vm5387_vm3, %v6082_v34 }
 0x7bb   : > { %6293 = vmatpush.msrb.mxu3 %v6051_v25 }
 0x7bd   : > { %6294 = vmatpush.msrb.mxu3 %v6047_v23  ;;  %6923 = vmatmul.msk.f32.gmra.mxu2 %vm5387_vm3, %v6080_v15 }
 0x7be   : > { %6927 = vmatmul.msk.f32.vlgmr.msrb.gmra.mxu3 %vm5387_vm3, %v11870_v19 }
 0x7c0   : > { %6918 = vmatmul.msk.f32.gmra.mxu1 %vm5387_vm3, %v6083_v31 }
 0x7c2   : > { %6910 = vmatmul.msk.f32.gmra.mxu0 %vm5387_vm3, %v6083_v31 }
 0x7c5   : > { %6924 = vmatmul.msk.f32.gmra.mxu2 %vm5387_vm3, %v6081_v6 }
 0x7c6   : > { %6928 = vmatmul.msk.f32.gmra.mxu3 %vm5387_vm3, %v11884_v32  ;;  %v11952_v32 = vpop.permute.xlu2 %6129 }
 0x7cd   : > { %6925 = vmatmul.msk.f32.gmra.mxu2 %vm5387_vm3, %v6082_v34 }
 0x7ce   : > { %6929 = vmatmul.msk.f32.gmra.mxu3 %vm5387_vm3, %v11890_v60  ;;  %v11958_v27 = vpop.permute.xlu2 %6114 }
 0x7d5   : > { %6926 = vmatmul.msk.f32.gmra.mxu2 %vm5387_vm3, %v6083_v31 }
 0x7d6   : > { %6930 = vmatmul.msk.f32.gmra.mxu3 %vm5387_vm3, %v11899_v36  ;;  %v11969_v58 = vpop.permute.xlu2 %6099 }
 0x7de   : > { %6931 = vmatmul.msk.f32.gmra.mxu3 %vm5387_vm3, %v6080_v15 }
 0x7e6   : > { %6932 = vmatmul.msk.f32.gmra.mxu3 %vm5387_vm3, %v6081_v6 }
 0x7ee   : > { %6933 = vmatmul.msk.f32.gmra.mxu3 %vm5387_vm3, %v6082_v34 }
 0x7f6   : > { %6934 = vmatmul.msk.f32.gmra.mxu3 %vm5387_vm3, %v6083_v31 }
 0x805   : > { %v6214_v9 = vpop.f32.mrf.mxu1 }
 0x806   : > { %v11981_v11 = vadd.f32 %v6214_v9, %v11966_v50 }
 0x807   : > { %v6173_v19 = vpop.f32.mrf.mxu0 }
 0x808   : > { %v11972_v36 = vadd.f32 %v6173_v19, %v11966_v50 }
 0x80a   : > { %vm6320_vm14 = vcmp.ge.f32.partialorder %v11972_v36, 0.0 }
 0x80d   : > { %v6217_v40 = vpop.f32.mrf.mxu1 }
 0x80e   : > { %v11987_v12 = vadd.f32 %v6217_v40, %v11969_v58 }
 0x80f   : > { %v6176_v45 = vpop.f32.mrf.mxu0 }
 0x810   : > { %v11984_v7 = vadd.f32 %v6176_v45, %v11969_v58  ;;  %vm6325_vm2 = vcmp.ge.f32.partialorder %v11987_v12, 0.0 }
 0x812   : > { %vm6324_vm5 = vcmp.ge.f32.partialorder %v11984_v7, 0.0 }
 0x815   : > { %v6220_v46 = vpop.f32.mrf.mxu1 }
 0x816   : > { %v11994_v0 = vadd.f32 %v6220_v46, %v11978_v18 }
 0x817   : > { %v6179_v8 = vpop.f32.mrf.mxu0 }
 0x818   : > { %v11991_v29 = vadd.f32 %v6179_v8, %v11978_v18  ;;  %vm6329_vm0 = vcmp.ge.f32.partialorder %v11994_v0, 0.0 }
 0x81a   : > { %v6360_v40 = vmul.f32 0.2, %v11991_v29  ;;  %vm6328_vm1 = vcmp.ge.f32.partialorder %v11991_v29, 0.0 }
 0x81d   : > { %v6223_v41 = vpop.f32.mrf.mxu1 }
 0x81e   : > { %v6224_v15 = vadd.f32 %v6223_v41, %v11956_v63 }
 0x81f   : > { %v6182_v59 = vpop.f32.mrf.mxu0 }
 0x820   : > { %v11946_v2 = vpop.f32.mrf.mxu2  ;;  %v6183_v49 = vadd.f32 %v6182_v59, %v11956_v63  ;;  %v6365_v19 = vmul.f32 0.2, %v6224_v15  ;;  %vm6333_vm13 = vcmp.ge.f32.partialorder %v6224_v15, 0.0  ;;  %v6361_v59 = vmul.f32 0.2, %v11994_v0 }
 0x822   : > { %v6364_v23 = vmul.f32 0.2, %v6183_v49  ;;  %vm6332_vm10 = vcmp.ge.f32.partialorder %v6183_v49, 0.0 }
 0x825   : > { %v6226_v1 = vpop.f32.mrf.mxu1 }
 0x826   : > { %v6227_v55 = vadd.f32 %v6226_v1, %v11958_v27  ;;  %v6356_v1 = vmul.f32 0.2, %v11984_v7 }
 0x827   : > { %v6185_v39 = vpop.f32.mrf.mxu0 }
 0x828   : > { %v11948_v43 = vpop.f32.mrf.mxu2  ;;  %v6186_v5 = vadd.f32 %v6185_v39, %v11958_v27  ;;  %v6369_v6 = vmul.f32 0.2, %v6227_v55  ;;  %vm6337_vm12 = vcmp.ge.f32.partialorder %v6227_v55, 0.0 }
 0x82a   : > { %vm6336_vm15 = vcmp.ge.f32.partialorder %v6186_v5, 0.0  ;;  %v6368_v44 = vmul.f32 0.2, %v6186_v5  ;;  %v6401_v39 = vsel %vm6337_vm12, %v6227_v55, %v6369_v6 }
 0x82c   : > { %v6400_v46 = vsel %vm6336_vm15, %v6186_v5, %v6368_v44  ;;  %v6397_v5 = vsel %vm6333_vm13, %v6224_v15, %v6365_v19  ;;  %v6393_v15 = vsel %vm6329_vm0, %v11994_v0, %v6361_v59  ;;  %vm6321_vm15 = vcmp.ge.f32.partialorder %v11981_v11, 0.0  ;;  %v12044_v44 = vld [vmem:[#allocation6] sm:$0x7] }
 0x82d   : > { %v6229_v52 = vpop.f32.mrf.mxu1 }
 0x82e   : > { %v6230_v28 = vadd.f32 %v6229_v52, %v11960_v22  ;;  %v6396_v52 = vsel %vm6332_vm10, %v6183_v49, %v6364_v23  ;;  %v6392_v49 = vsel %vm6328_vm1, %v11991_v29, %v6360_v40 }
 0x82f   : > { %v6188_v30 = vpop.f32.mrf.mxu0  ;;  %v6428_v55 = vmul.f32 1.4142135, %v6396_v52  ;;  %v6424_v29 = vmul.f32 1.4142135, %v6392_v49 }
 0x830   : > { %v11954_v24 = vpop.f32.mrf.mxu2  ;;  %v6189_v3 = vadd.f32 %v6188_v30, %v11960_v22  ;;  %v6373_v38 = vmul.f32 0.2, %v6230_v28  ;;  %vm6341_vm11 = vcmp.ge.f32.partialorder %v6230_v28, 0.0 }
 0x832   : > { %v6372_v14 = vmul.f32 0.2, %v6189_v3  ;;  %vm6340_vm8 = vcmp.ge.f32.partialorder %v6189_v3, 0.0  ;;  %v6405_v45 = vsel %vm6341_vm11, %v6230_v28, %v6373_v38  ;;  %v6353_v28 = vmul.f32 0.2, %v11981_v11 }
 0x833   : > { %v6437_v30 = vmul.f32 1.4142135, %v6405_v45 }
 0x834   : > { %v6404_v31 = vsel %vm6340_vm8, %v6189_v3, %v6372_v14  ;;  %v6433_v3 = vmul.f32 1.4142135, %v6401_v39  ;;  %v6385_v14 = vsel %vm6321_vm15, %v11981_v11, %v6353_v28 }
 0x835   : > { %v6232_v16 = vpop.f32.mrf.mxu1  ;;  %v6436_v41 = vmul.f32 1.4142135, %v6404_v31 }
 0x836   : > { %v6233_v20 = vadd.f32 %v6232_v16, %v11950_v57 }
 0x837   : > { %v6191_v26 = vpop.f32.mrf.mxu0 }
 0x838   : > { %v11962_v48 = vpop.f32.mrf.mxu2  ;;  %v6192_v35 = vadd.f32 %v6191_v26, %v11950_v57  ;;  %v6377_v56 = vmul.f32 0.2, %v6233_v20  ;;  %vm6345_vm6 = vcmp.ge.f32.partialorder %v6233_v20, 0.0  ;;  %v6357_v26 = vmul.f32 0.2, %v11987_v12 }
 0x83a   : > { %v6376_v54 = vmul.f32 0.2, %v6192_v35  ;;  %vm6344_vm4 = vcmp.ge.f32.partialorder %v6192_v35, 0.0  ;;  %v6409_v25 = vsel %vm6345_vm6, %v6233_v20, %v6377_v56  ;;  %v6352_v20 = vmul.f32 0.2, %v11972_v36 }
 0x83b   : > { %v6441_v8 = vmul.f32 1.4142135, %v6409_v25  ;;  %v6425_v56 = vmul.f32 1.4142135, %v6393_v15 }
 0x83c   : > { %v6408_v10 = vsel %vm6344_vm4, %v6192_v35, %v6376_v54  ;;  %v6432_v35 = vmul.f32 1.4142135, %v6400_v46  ;;  %v6429_v54 = vmul.f32 1.4142135, %v6397_v5 }
 0x83d   : > { %v6235_v21 = vpop.f32.mrf.mxu1  ;;  %v6440_v9 = vmul.f32 1.4142135, %v6408_v10 }
 0x83e   : > { %v6236_v13 = vadd.f32 %v6235_v21, %v11952_v32  ;;  %v6389_v21 = vsel %vm6325_vm2, %v11987_v12, %v6357_v26 }
 0x83f   : > { %v6194_v42 = vpop.f32.mrf.mxu0  ;;  %v6421_v38 = vmul.f32 1.4142135, %v6389_v21 }
 0x840   : > { %v11976_v53 = vpop.f32.mrf.mxu2  ;;  %v6195_v33 = vadd.f32 %v6194_v42, %v11952_v32  ;;  %vm6349_vm9 = vcmp.ge.f32.partialorder %v6236_v13, 0.0  ;;  %v6381_v37 = vmul.f32 0.2, %v6236_v13 }
 0x841   : > { %v11964_v60 = vpop.f32.mrf.mxu3  ;;  %v6268_v11 = vadd.f32 %v11976_v53, %v11958_v27  ;;  %v6262_v53 = vadd.f32 %v11954_v24, %v11978_v18 }
 0x842   : > { %vm6348_vm7 = vcmp.ge.f32.partialorder %v6195_v33, 0.0  ;;  %v6380_v4 = vmul.f32 0.2, %v6195_v33  ;;  %v6413_v61 = vsel %vm6349_vm9, %v6236_v13, %v6381_v37  ;;  %v6384_v13 = vsel %vm6320_vm14, %v11972_v36, %v6352_v20 }
 0x843   : > { %v6445_v34 = vmul.f32 1.4142135, %v6413_v61  ;;  %v6370_v25 = vmul.f32 0.2, %v6268_v11  ;;  %vm6338_vm8 = vcmp.ge.f32.partialorder %v6268_v11, 0.0  ;;  %vm6330_vm11 = vcmp.ge.f32.partialorder %v6262_v53, 0.0 }
 0x844   : > { %v6412_v17 = vsel %vm6348_vm7, %v6195_v33, %v6380_v4  ;;  %v6388_v33 = vsel %vm6324_vm5, %v11984_v7, %v6356_v1  ;;  %v6416_v7 = vmul.f32 1.4142135, %v6384_v13  ;;  %v6362_v46 = vmul.f32 0.2, %v6262_v53 }
 0x845   : > { %v6444_v47 = vmul.f32 1.4142135, %v6412_v17  ;;  %6486 = vmatpush.msra.mxu1 %v6445_v34  ;;  %v6420_v0 = vmul.f32 1.4142135, %v6388_v33  ;;  %v6417_v17 = vmul.f32 1.4142135, %v6385_v14  ;;  %v6402_v59 = vsel %vm6338_vm8, %v6268_v11, %v6370_v25 }
 0x846   : > { %v6434_v1 = vmul.f32 1.4142135, %v6402_v59 }
 0x847   : > { %6466 = vmatpush.msra.mxu0 %v6444_v47  ;;  %6487 = vmatpush.msra.mxu1 %v6441_v8  ;;  %v6265_v47 = vadd.f32 %v11962_v48, %v11956_v63  ;;  %v6256_v8 = vadd.f32 %v11946_v2, %v11966_v50 }
 0x848   : > { %v12004_v51 = vpop.f32.mrf.mxu2 }
 0x849   : > { %v12002_v62 = vpop.f32.mrf.mxu3  ;;  %6467 = vmatpush.msra.mxu0 %v6440_v9  ;;  %6488 = vmatpush.msra.mxu1 %v6437_v30  ;;  %v6271_v12 = vadd.f32 %v12004_v51, %v11960_v22  ;;  %v6259_v9 = vadd.f32 %v11948_v43, %v11969_v58  ;;  %v6366_v45 = vmul.f32 0.2, %v6265_v47  ;;  %vm6334_vm9 = vcmp.ge.f32.partialorder %v6265_v47, 0.0 }
 0x84a   : > { %v6354_v30 = vmul.f32 0.2, %v6256_v8  ;;  %v6394_v43 = vsel %vm6330_vm11, %v6262_v53, %v6362_v46  ;;  %vm6322_vm10 = vcmp.ge.f32.partialorder %v6256_v8, 0.0 }
 0x84b   : > { %6468 = vmatpush.msra.mxu0 %v6436_v41  ;;  %6489 = vmatpush.msra.mxu1 %v6433_v3  ;;  %v6374_v61 = vmul.f32 0.2, %v6271_v12  ;;  %vm6342_vm7 = vcmp.ge.f32.partialorder %v6271_v12, 0.0  ;;  %v6358_v41 = vmul.f32 0.2, %v6259_v9  ;;  %v6398_v39 = vsel %vm6334_vm9, %v6265_v47, %v6366_v45  ;;  %v6453_v47 = vpop.permute.xlu1 %6452 }
 0x84c   : > { %vm6326_vm12 = vcmp.ge.f32.partialorder %v6259_v9, 0.0  ;;  %v6430_v26 = vmul.f32 1.4142135, %v6398_v39  ;;  %v6426_v5 = vmul.f32 1.4142135, %v6394_v43  ;;  %v6386_v2 = vsel %vm6322_vm10, %v6256_v8, %v6354_v30 }
 0x84d   : > { %6469 = vmatpush.msra.mxu0 %v6432_v35  ;;  %6490 = vmatpush.msra.mxu1 %v6429_v54  ;;  %v6406_v40 = vsel %vm6342_vm7, %v6271_v12, %v6374_v61  ;;  %v6390_v35 = vsel %vm6326_vm12, %v6259_v9, %v6358_v41  ;;  %v6418_v3 = vmul.f32 1.4142135, %v6386_v2  ;;  %vm6620_vm10 = vcmask 1043456  }
 0x84e   : > { %v6438_v24 = vmul.f32 1.4142135, %v6406_v40  ;;  %v6422_v20 = vmul.f32 1.4142135, %v6390_v35 }
 0x84f   : > { %6470 = vmatpush.msra.mxu0 %v6428_v55  ;;  %6491 = vmatpush.msra.mxu1 %v6425_v56 }
 0x850   : > { %v6273_v42 = vpop.f32.mrf.mxu2 }
 0x851   : > { %v12019_v16 = vpop.f32.mrf.mxu3  ;;  %6471 = vmatpush.msra.mxu0 %v6424_v29  ;;  %v6274_v4 = vadd.f32 %v6273_v42, %v11950_v57  ;;  %6492 = vmatpush.msra.mxu1 %v6421_v38  ;;  %v6297_v38 = vadd.f32 %v11964_v60, %v11966_v50 }
 0x852   : > { %v6303_v13 = vadd.f32 %v12019_v16, %v11978_v18 }
 0x853   : > { %6472 = vmatpush.msra.mxu0 %v6420_v0  ;;  %v6378_v10 = vmul.f32 0.2, %v6274_v4  ;;  %6493 = vmatpush.msra.mxu1 %v6417_v17  ;;  %vm6346_vm4 = vcmp.ge.f32.partialorder %v6274_v4, 0.0 }
 0x854   : > { %6936 = vmatmul.msk.f32.vlgmr.msra.gmra.mxu1 %vm5387_vm3, %v12044_v44  ;;  %vm6331_vm14 = vcmp.ge.f32.partialorder %v6303_v13, 0.0 }
 0x855   : > { %6473 = vmatpush.msra.mxu0 %v6416_v7  ;;  %v6410_v34 = vsel %vm6346_vm4, %v6274_v4, %v6378_v10  ;;  %vm6323_vm4 = vcmp.ge.f32.partialorder %v6297_v38, 0.0 }
 0x856   : > { %6935 = vmatmul.msk.f32.vlgmr.msra.gmra.mxu0 %vm5387_vm3, %v12044_v44  ;;  %v6442_v48 = vmul.f32 1.4142135, %v6410_v34 }
 0x858   : > { %v6276_v36 = vpop.f32.mrf.mxu2 }
 0x859   : > { %v12042_v37 = vpop.f32.mrf.mxu3  ;;  %v6277_v6 = vadd.f32 %v6276_v36, %v11952_v32  ;;  %v6355_v36 = vmul.f32 0.2, %v6297_v38 }
 0x85a   : > { %v6306_v29 = vadd.f32 %v12042_v37, %v11956_v63  ;;  %v6363_v37 = vmul.f32 0.2, %v6303_v13 }
 0x85b   : > { %vm6350_vm6 = vcmp.ge.f32.partialorder %v6277_v6, 0.0  ;;  %v6382_v51 = vmul.f32 0.2, %v6277_v6 }
 0x85c   : > { %vm6335_vm2 = vcmp.ge.f32.partialorder %v6306_v29, 0.0 }
 0x85d   : > { %v6414_v23 = vsel %vm6350_vm6, %v6277_v6, %v6382_v51  ;;  %v6387_v6 = vsel %vm6323_vm4, %v6297_v38, %v6355_v36 }
 0x85e   : > { %v6446_v19 = vmul.f32 1.4142135, %v6414_v23  ;;  %v6419_v50 = vmul.f32 1.4142135, %v6387_v6 }
 0x860   : > { %6506 = vmatpush.msra.mxu2 %v6446_v19 }
 0x861   : > { %v6308_v31 = vpop.f32.mrf.mxu3 }
 0x862   : > { %6507 = vmatpush.msra.mxu2 %v6442_v48  ;;  %v6309_v15 = vadd.f32 %v6308_v31, %v11958_v27  ;;  %v6300_v27 = vadd.f32 %v12002_v62, %v11969_v58  ;;  %v6395_v58 = vsel %vm6331_vm14, %v6303_v13, %v6363_v37 }
 0x863   : > { %v6427_v10 = vmul.f32 1.4142135, %v6395_v58 }
 0x864   : > { %6508 = vmatpush.msra.mxu2 %v6438_v24  ;;  %vm6339_vm5 = vcmp.ge.f32.partialorder %v6309_v15, 0.0  ;;  %v6359_v16 = vmul.f32 0.2, %v6300_v27  ;;  %vm6327_vm15 = vcmp.ge.f32.partialorder %v6300_v27, 0.0 }
 0x866   : > { %6509 = vmatpush.msra.mxu2 %v6434_v1  ;;  %v6391_v11 = vsel %vm6327_vm15, %v6300_v27, %v6359_v16 }
 0x867   : > { %v6423_v60 = vmul.f32 1.4142135, %v6391_v11 }
 0x868   : > { %6510 = vmatpush.msra.mxu2 %v6430_v26 }
 0x869   : > { %v6311_v52 = vpop.f32.mrf.mxu3 }
 0x86a   : > { %6511 = vmatpush.msra.mxu2 %v6426_v5  ;;  %v6312_v42 = vadd.f32 %v6311_v52, %v11960_v22 }
 0x86c   : > { %6512 = vmatpush.msra.mxu2 %v6422_v20  ;;  %v6375_v21 = vmul.f32 0.2, %v6312_v42  ;;  %vm6343_vm0 = vcmp.ge.f32.partialorder %v6312_v42, 0.0 }
 0x86e   : > { %6513 = vmatpush.msra.mxu2 %v6418_v3  ;;  %v6407_v4 = vsel %vm6343_vm0, %v6312_v42, %v6375_v21 }
 0x86f   : > { %6937 = vmatmul.msk.f32.vlgmr.msra.gmra.mxu2 %vm5387_vm3, %v12044_v44  ;;  %v6439_v18 = vmul.f32 1.4142135, %v6407_v4 }
 0x871   : > { %v6314_v49 = vpop.f32.mrf.mxu3 }
 0x872   : > { %v6315_v28 = vadd.f32 %v6314_v49, %v11950_v57  ;;  %v6371_v57 = vmul.f32 0.2, %v6309_v15 }
 0x874   : > { %v6379_v54 = vmul.f32 0.2, %v6315_v28  ;;  %vm6347_vm13 = vcmp.ge.f32.partialorder %v6315_v28, 0.0  ;;  %v6403_v7 = vsel %vm6339_vm5, %v6309_v15, %v6371_v57 }
 0x875   : > { %v6435_v17 = vmul.f32 1.4142135, %v6403_v7 }
 0x876   : > { %v6411_v22 = vsel %vm6347_vm13, %v6315_v28, %v6379_v54 }
 0x877   : > { %v6443_v63 = vmul.f32 1.4142135, %v6411_v22 }
 0x879   : > { %v6317_v55 = vpop.f32.mrf.mxu3 }
 0x87a   : > { %v6318_v33 = vadd.f32 %v6317_v55, %v11952_v32  ;;  %v6367_v32 = vmul.f32 0.2, %v6306_v29 }
 0x87c   : > { %vm6351_vm1 = vcmp.ge.f32.partialorder %v6318_v33, 0.0  ;;  %v6383_v56 = vmul.f32 0.2, %v6318_v33  ;;  %v6399_v12 = vsel %vm6335_vm2, %v6306_v29, %v6367_v32 }
 0x87d   : > { %v6431_v62 = vmul.f32 1.4142135, %v6399_v12 }
 0x87e   : > { %v6415_v0 = vsel %vm6351_vm1, %v6318_v33, %v6383_v56 }
 0x87f   : > { %v6447_v14 = vmul.f32 1.4142135, %v6415_v0 }
 0x881   : > { %6526 = vmatpush.msra.mxu3 %v6447_v14 }
 0x883   : > { %6527 = vmatpush.msra.mxu3 %v6443_v63 }
 0x885   : > { %6528 = vmatpush.msra.mxu3 %v6439_v18 }
 0x887   : > { %6529 = vmatpush.msra.mxu3 %v6435_v17 }
 0x889   : > { %6530 = vmatpush.msra.mxu3 %v6431_v62 }
 0x88b   : > { %6531 = vmatpush.msra.mxu3 %v6427_v10 }
 0x88d   : > { %6532 = vmatpush.msra.mxu3 %v6423_v60 }
 0x88f   : > { %6533 = vmatpush.msra.mxu3 %v6419_v50 }
 0x890   : > { %6938 = vmatmul.msk.f32.vlgmr.msra.gmra.mxu3 %vm5387_vm3, %v12044_v44 }
 0x8d1   : > { %v6495_v53 = vpop.f32.mrf.mxu1 }
 0x8d2   : > { %v6496_v25 = vadd.f32 %v6495_v53, %v6453_v47 }
 0x8d3   : > { %v6475_v61 = vpop.f32.mrf.mxu0 }
 0x8d4   : > { %v6476_v51 = vadd.f32 %v6475_v61, %v6453_v47  ;;  %v6940_v34 = vmul.f32 -1.442695, %v6496_v25 }
 0x8d6   : > { %v6939_v23 = vmul.f32 -1.442695, %v6476_v51 }
 0x8d8   : > { %7061 = vpow2.f32 %v6939_v23 }
 0x8d9   : > { %7063 = vpow2.f32 %v6940_v34 }
 0x8de   : > { %v7062_v31 = vpop.eup %7061 }
 0x8df   : > { %v7064_v19 = vpop.eup %7063  ;;  %v6550_v9 = vadd.f32 1.0, %v7062_v31 }
 0x8e0   : > { %v6551_v45 = vadd.f32 1.0, %v7064_v19 }
 0x8e1   : > { %7065 = vrcp.f32 %v6550_v9  ;;  %vm6559_vm7 = vweird.f32 %v6550_v9  ;;  %v6565_v43 = vand.u32 2147483648, %v6550_v9  ;;  %v6563_v52 = vand.u32 2147483647, %v6550_v9 }
 0x8e2   : > { %7067 = vrcp.f32 %v6551_v45  ;;  %v6580_v41 = vand.u32 2147483648, %v6551_v45  ;;  %v6578_v1 = vand.u32 2147483647, %v6551_v45  ;;  %vm6574_vm9 = vweird.f32 %v6551_v45 }
 0x8e3   : > { %v6566_v20 = vor.u32 1.1754944e-38, %v6565_v43  ;;  %vm6564_vm13 = vcmp.eq.f32.partialorder %v6563_v52, 8.507059e+37 }
 0x8e4   : > { %v6581_v35 = vor.u32 1.1754944e-38, %v6580_v41  ;;  %vm6579_vm12 = vcmp.eq.f32.partialorder %v6578_v1, 8.507059e+37 }
 0x8e7   : > { %v7066_v40 = vpop.eup %7065 }
 0x8e8   : > { %v7068_v48 = vpop.eup %7067  ;;  %v6555_v8 = vmul.f32 %v7066_v40, %v6550_v9  ;;  %vm6560_vm3 = vweird.f32 %v7066_v40 }
 0x8e9   : > { %v6570_v46 = vmul.f32 %v7068_v48, %v6551_v45  ;;  %vm6575_vm6 = vweird.f32 %v7068_v48  ;;  %vm6561_vm8 = vmor %vm6559_vm7, %vm6560_vm3 }
 0x8ea   : > { %v6556_v44 = vsub.f32 1.0, %v6555_v8  ;;  %vm6576_vm11 = vmor %vm6574_vm9, %vm6575_vm6 }
 0x8eb   : > { %v6571_v59 = vsub.f32 1.0, %v6570_v46 }
 0x8ec   : > { %v6557_v24 = vmul.f32 %v7066_v40, %v6556_v44 }
 0x8ed   : > { %v6572_v39 = vmul.f32 %v7068_v48, %v6571_v59 }
 0x8ee   : > { %v6558_v30 = vadd.f32 %v7066_v40, %v6557_v24 }
 0x8ef   : > { %v6573_v26 = vadd.f32 %v7068_v48, %v6572_v39 }
 0x8f0   : > { %v6562_v5 = vsel %vm6561_vm8, %v7066_v40, %v6558_v30 }
 0x8f1   : > { %v6577_v2 = vsel %vm6576_vm11, %v7068_v48, %v6573_v26  ;;  %v6567_v28 = vsel %vm6564_vm13, %v6566_v20, %v6562_v5 }
 0x8f2   : > { %v6582_v3 = vsel %vm6579_vm12, %v6581_v35, %v6577_v2  ;;  %v6515_v55 = vpop.f32.mrf.mxu2 }
 0x8f3   : > { %v6618_v49 = vrot.slane %v6582_v3, 4  ;;  %v6516_v15 = vadd.f32 %v6515_v55, %v6453_v47 }
 0x8f5   : > { %v6621_v42 = vsel %vm6620_vm10, %v6567_v28, %v6618_v49  ;;  %v6941_v54 = vmul.f32 -1.442695, %v6516_v15 }
 0x8f6   : > { %6625 = vst [vmem:[%s7295_s16] sm:$0x77] %v6621_v42 }
 0x8f7   : > { %7069 = vpow2.f32 %v6941_v54 }
 0x8fd   : > { %v7070_v33 = vpop.eup %7069 }
 0x8fe   : > { %v6552_v29 = vadd.f32 1.0, %v7070_v33 }
 0x900   : > { %7071 = vrcp.f32 %v6552_v29  ;;  %vm6589_vm5 = vweird.f32 %v6552_v29  ;;  %v6595_v12 = vand.u32 2147483648, %v6552_v29  ;;  %v6593_v17 = vand.u32 2147483647, %v6552_v29 }
 0x902   : > { %v6596_v10 = vor.u32 1.1754944e-38, %v6595_v12  ;;  %vm6594_vm3 = vcmp.eq.f32.partialorder %v6593_v17, 8.507059e+37 }
 0x906   : > { %v7072_v57 = vpop.eup %7071 }
 0x907   : > { %v6585_v14 = vmul.f32 %v7072_v57, %v6552_v29  ;;  %vm6590_vm1 = vweird.f32 %v7072_v57 }
 0x908   : > { %vm6591_vm2 = vmor %vm6589_vm5, %vm6590_vm1 }
 0x909   : > { %v6586_v27 = vsub.f32 1.0, %v6585_v14 }
 0x90b   : > { %v6587_v4 = vmul.f32 %v7072_v57, %v6586_v27 }
 0x90d   : > { %v6588_v7 = vadd.f32 %v7072_v57, %v6587_v4 }
 0x90f   : > { %v6592_v62 = vsel %vm6591_vm2, %v7072_v57, %v6588_v7 }
 0x910   : > { %v6597_v50 = vsel %vm6594_vm3, %v6596_v10, %v6592_v62 }
 0x913   : > { %v6535_v21 = vpop.f32.mrf.mxu3 }
 0x914   : > { %v6536_v56 = vadd.f32 %v6535_v21, %v6453_v47 }
 0x916   : > { %v6942_v13 = vmul.f32 -1.442695, %v6536_v56 }
 0x918   : > { %7073 = vpow2.f32 %v6942_v13 }
 0x91e   : > { %v7074_v0 = vpop.eup %7073 }
 0x91f   : > { %v6553_v22 = vadd.f32 1.0, %v7074_v0 }
 0x921   : > { %7075 = vrcp.f32 %v6553_v22  ;;  %v6610_v37 = vand.u32 2147483648, %v6553_v22  ;;  %v6608_v16 = vand.u32 2147483647, %v6553_v22  ;;  %vm6604_vm14 = vweird.f32 %v6553_v22 }
 0x923   : > { %v6611_v58 = vor.u32 1.1754944e-38, %v6610_v37  ;;  %vm6609_vm4 = vcmp.eq.f32.partialorder %v6608_v16, 8.507059e+37 }
 0x927   : > { %v7076_v32 = vpop.eup %7075 }
 0x928   : > { %v6600_v63 = vmul.f32 %v7076_v32, %v6553_v22  ;;  %vm6605_vm0 = vweird.f32 %v7076_v32 }
 0x929   : > { %vm6606_vm15 = vmor %vm6604_vm14, %vm6605_vm0 }
 0x92a   : > { %v6601_v38 = vsub.f32 1.0, %v6600_v63 }
 0x92c   : > { %v6602_v18 = vmul.f32 %v7076_v32, %v6601_v38 }
 0x92e   : > { %v6603_v36 = vadd.f32 %v7076_v32, %v6602_v18 }
 0x930   : > { %v6607_v11 = vsel %vm6606_vm15, %v7076_v32, %v6603_v36 }
 0x931   : > { %v6612_v6 = vsel %vm6609_vm4, %v6611_v58, %v6607_v11 }
 0x932   : > { %v6619_v60 = vrot.slane %v6612_v6, 4 }
 0x934   : > { %v6622_v47 = vsel %vm6620_vm10, %v6597_v50, %v6619_v60 }
 0x935   : > { %6626 = vst [vmem:[%s7295_s16 + $0x8] sm:$0x77] %v6622_v47 }
 0x936 PF: > { %s12351_s20 = sld [smem:[#allocation9_spill]] }
 0x937   : > { %s12352_s29 = sld [smem:[#allocation7_spill]] }
 0x938   : > { %s12353_s2 = sld [smem:[#allocation8_spill]] }
 0x939   : > { %s12354_s6 = sld [smem:[#allocation10_spill]] }
 0x93a   : > { %s12355_s30 = sld [smem:[#allocation11_spill]] }
 0x93c   : > { %s35_s7 = sadd.s32 1, %s12351_s20  }
 0x93d   : > { %p32_p8 = scmp.ge.s32.totalorder %s35_s7, 6  }
 0x93f   :  { %34 = sbr.rel (!%p32_p8) target bundleno = 15 (0xf), region = 157 }

</bundles_post_ra>
